<compile_context>
chip_gen: v5e
topology: v5e:2x2
jax: 0.10.0
libtpu: 0.0.40
codegen_flags: <defaults>
</compile_context>

<pallas_src>
import functools
import math

import jax
import jax.numpy as jnp
from jax.experimental import pallas as pl
from jax.experimental.pallas import tpu as pltpu


# ----------------------------- helpers -----------------------------

def _round_up(x, m):
    return ((x + m - 1) // m) * m


_VMEM_LIMIT = 48 * 1024 * 1024       # headroom on v7x (64 MiB phys), generous on v5e/v6e
_TILE_BUDGET = 20 * 1024 * 1024      # per-call budget for the double-buffered blocks


def _cparams(grid_rank):
    return pltpu.CompilerParams(
        dimension_semantics=("parallel",) * grid_rank,
        vmem_limit_bytes=_VMEM_LIMIT)


def _lane(c):
    # last-dim VMEM footprint is padded to 128 lanes
    return max(int(c), 128)


def _choose_m_tile(m, per_row_bytes, soft_cap=1024):
    """Pick a tile for the point axis (second-minor, 8-granular).

    The tile is the largest divisor of the padded M that fits the double-buffered VMEM
    budget, soft-capped so large M still produces multiple grid steps (v7x megacore /
    pipelining).  Small M (< cap) runs as a single full block with no padding."""
    fit = max(8, _TILE_BUDGET // max(per_row_bytes, 1))
    cap = int(min(soft_cap, fit))
    if m <= cap:
        return m, m
    m_p = _round_up(m, 8)
    units = m_p // 8
    cap_units = max(1, cap // 8)
    tile_units = 1
    for t in range(1, cap_units + 1):
        if units % t == 0:
            tile_units = t
    return tile_units * 8, m_p


# ----------------------------- Pallas kernels -----------------------------

def _mlp_apply(h, ws, bs, relus):
    """y = actL(...act1(X @ W1 + b1)...) on one (TILE_M, C) bf16 tile; fp32 accumulation."""
    y = None
    n = len(ws)
    for li in range(n):
        y = jnp.dot(h, ws[li], preferred_element_type=jnp.float32) + bs[li]
        if relus[li]:
            y = jnp.maximum(y, 0.0)
        if li + 1 < n:
            h = y.astype(jnp.bfloat16)           # bf16 feed for the next MXU pass
    return y


def _unpack_stack(refs, num_layers):
    ws = [refs[2 * i][...] for i in range(num_layers)]
    bs = [refs[2 * i + 1][...] for i in range(num_layers)]
    return ws, bs, refs[2 * num_layers:]


def _fused_mlp_kernel(*refs, num_layers, relus):
    ws, bs, rest = _unpack_stack(refs, num_layers)
    x_ref, o_ref = rest
    y = _mlp_apply(x_ref[0], ws, bs, relus)                       # (TILE_M, cout) fp32
    o_ref[0] = y.astype(o_ref.dtype)


def _fused_mlp_max_kernel(*refs, num_layers, relus, k):
    # Input (1, K, TILE_NC, C): per-scale SA stage.  Centroid subtraction, the MLP stack
    # and the max over the K neighbours are all fused (no grouped-tensor re-materialization).
    ws, bs, rest = _unpack_stack(refs, num_layers)
    c_ref, x_ref, o_ref = rest
    cen = c_ref[0]                                                # (TILE_NC, C) bf16
    if k <= 8:                                                    # small K -> static unroll
        acc = None
        for kk in range(k):
            y = _mlp_apply(x_ref[0, kk] - cen, ws, bs, relus)
            acc = y if acc is None else jnp.maximum(acc, y)
    else:                                                         # large K -> bounded live set
        def body(kk, acc):
            return jnp.maximum(acc, _mlp_apply(x_ref[0, kk] - cen, ws, bs, relus))
        acc = jax.lax.fori_loop(1, k, body,
                                _mlp_apply(x_ref[0, 0] - cen, ws, bs, relus))
    o_ref[0] = acc.astype(o_ref.dtype)


def _fused_mlp_global_max_kernel(*refs, num_layers, relus):
    # MLP stack + max over ALL points fused (global SA stage) -> (1, cout) per batch.
    # TODO(synk): for very large point counts make M a reduction grid axis with a
    # pl.when-guarded accumulator instead of a single full block.
    ws, bs, rest = _unpack_stack(refs, num_layers)
    x_ref, o_ref = rest
    y = _mlp_apply(x_ref[0], ws, bs, relus)                       # (M, cout) fp32
    o_ref[0] = jnp.max(y, axis=0, keepdims=True).astype(o_ref.dtype)


def _pdist2_kernel(a_ref, b_ref, o_ref):
    # a: (N1, 3) lane-dense-ish, b: (3, N2) lane-dense; aa/bb computed in-kernel.
    a = a_ref[0]
    b = b_ref[0]
    aa = jnp.sum(a * a, axis=-1, keepdims=True)                   # (N1, 1)
    bb = jnp.sum(b * b, axis=0, keepdims=True)                    # (1, N2)
    ab = jnp.dot(a, b, preferred_element_type=jnp.float32)        # (N1, N2)
    o_ref[0] = aa + bb - 2.0 * ab


def _fps_kernel(xyz_ref, idx_ref, dist_ref, *, num_centroids, n):
    # Farthest point sampling for one batch element; xyz and the running min-distance stay
    # resident in VMEM for the whole centroid loop (no HBM traffic inside the loop).
    xyz = xyz_ref[0]                                               # (3, N)
    lane = jax.lax.broadcasted_iota(jnp.int32, (1, n), 1)
    lane_f = lane.astype(jnp.float32)
    cent = jax.lax.broadcasted_iota(jnp.int32, (1, num_centroids), 1)
    idx_ref[0] = jnp.zeros((1, num_centroids), jnp.int32)          # centroid 0 = point 0
    dist_ref[...] = jnp.full(dist_ref.shape, 1e10, dist_ref.dtype)

    def body(i, last):
        sel = lane == last                                         # (1, N)
        last_xyz = jnp.sum(jnp.where(sel, xyz, 0.0), axis=-1, keepdims=True)   # (3, 1)
        d = jnp.sum((xyz - last_xyz) ** 2, axis=0, keepdims=True)              # (1, N)
        new_dist = jnp.minimum(dist_ref[...], d)
        dist_ref[...] = new_dist
        maxval = jnp.max(new_dist, axis=-1, keepdims=True)                     # (1, 1)
        nxt = jnp.min(jnp.where(new_dist == maxval, lane_f, float(n)),
                      axis=-1, keepdims=True).astype(jnp.int32)                # (1, 1)
        idx_ref[0] = idx_ref[0] + nxt * (cent == i).astype(jnp.int32)
        return nxt

    jax.lax.fori_loop(1, num_centroids, body, jnp.zeros((1, 1), jnp.int32))


# ----------------------------- Pallas wrappers -----------------------------

def _stack_specs_args(stack, grid_rank):
    wmap = (lambda b: (0, 0)) if grid_rank == 1 else (lambda b, j: (0, 0))
    specs, args = [], []
    for w, bias in zip(stack['ws'], stack['bs']):
        specs.append(pl.BlockSpec(w.shape, wmap))
        specs.append(pl.BlockSpec(bias.shape, wmap))
        args.extend([w, bias])
    return specs, args


def shared_mlp(x, stack, out_dtype=jnp.bfloat16):
    """x: (B, M, C) channel-last -> (B, M, cout).  Whole conv stack fused in one call."""
    b, m, c = x.shape
    cout = stack['cout']
    xb = x.astype(jnp.bfloat16)
    per_row = 4 * _lane(c) + 2 * jnp.dtype(out_dtype).itemsize * _lane(cout)
    tile, m_p = _choose_m_tile(m, per_row)
    if m_p != m:
        xb = jnp.pad(xb, ((0, 0), (0, m_p - m), (0, 0)))
    specs, args = _stack_specs_args(stack, 2)
    specs.append(pl.BlockSpec((1, tile, c), lambda bb, j: (bb, j, 0)))
    args.append(xb)
    y = pl.pallas_call(
        functools.partial(_fused_mlp_kernel, num_layers=len(stack['ws']),
                          relus=stack['relus']),
        grid=(b, m_p // tile),
        in_specs=specs,
        out_specs=pl.BlockSpec((1, tile, cout), lambda bb, j: (bb, j, 0)),
        out_shape=jax.ShapeDtypeStruct((b, m_p, cout), out_dtype),
        compiler_params=_cparams(2),
    )(*args)
    return y if m_p == m else y[:, :m, :]


def fused_mlp_max(grp, cen, stack, out_dtype=jnp.bfloat16):
    """grp: (B, K, nc, C) bf16 grouped neighbours, cen: (B, nc, C) bf16 centroid (zero beyond
    xyz channels).  Returns (B, nc, cout): centroid-subtract + MLP + max-over-K in ONE call."""
    b, k, nc, c = grp.shape
    cout = stack['cout']
    per_row = (4 * k * _lane(c) + 4 * _lane(c)
               + 2 * jnp.dtype(out_dtype).itemsize * _lane(cout))
    tile, nc_p = _choose_m_tile(nc, per_row)
    if nc_p != nc:
        grp = jnp.pad(grp, ((0, 0), (0, 0), (0, nc_p - nc), (0, 0)))
        cen = jnp.pad(cen, ((0, 0), (0, nc_p - nc), (0, 0)))
    specs, args = _stack_specs_args(stack, 2)
    specs.append(pl.BlockSpec((1, tile, c), lambda bb, j: (bb, j, 0)))
    args.append(cen)
    specs.append(pl.BlockSpec((1, k, tile, c), lambda bb, j: (bb, 0, j, 0)))
    args.append(grp)
    y = pl.pallas_call(
        functools.partial(_fused_mlp_max_kernel, num_layers=len(stack['ws']),
                          relus=stack['relus'], k=k),
        grid=(b, nc_p // tile),
        in_specs=specs,
        out_specs=pl.BlockSpec((1, tile, cout), lambda bb, j: (bb, j, 0)),
        out_shape=jax.ShapeDtypeStruct((b, nc_p, cout), out_dtype),
        compiler_params=_cparams(2),
    )(*args)
    return y if nc_p == nc else y[:, :nc, :]


def fused_mlp_global_max(x, stack, out_dtype=jnp.bfloat16):
    """x: (B, M, C) -> (B, 1, cout): MLP stack + max over all M points, fused (no (B,M,cout)
    HBM round trip)."""
    b, m, c = x.shape
    cout = stack['cout']
    specs, args = _stack_specs_args(stack, 1)
    specs.append(pl.BlockSpec((1, m, c), lambda bb: (bb, 0, 0)))
    args.append(x.astype(jnp.bfloat16))
    return pl.pallas_call(
        functools.partial(_fused_mlp_global_max_kernel, num_layers=len(stack['ws']),
                          relus=stack['relus']),
        grid=(b,),
        in_specs=specs,
        out_specs=pl.BlockSpec((1, 1, cout), lambda bb: (bb, 0, 0)),
        out_shape=jax.ShapeDtypeStruct((b, 1, cout), out_dtype),
        compiler_params=_cparams(1),
    )(*args)


def pairwise_dist2(a_xyz, b_xyz):
    """Squared distances.  a:(B,3,N1) b:(B,3,N2) -> (B,N1,N2) fp32 (aa/bb computed in-kernel)."""
    bsz, _, n1 = a_xyz.shape
    n2 = b_xyz.shape[2]
    a_t = jnp.transpose(a_xyz, (0, 2, 1))                           # (B, N1, 3), tiny
    return pl.pallas_call(
        _pdist2_kernel,
        grid=(bsz,),
        in_specs=[pl.BlockSpec((1, n1, 3), lambda i: (i, 0, 0)),
                  pl.BlockSpec((1, 3, n2), lambda i: (i, 0, 0))],
        out_specs=pl.BlockSpec((1, n1, n2), lambda i: (i, 0, 0)),
        out_shape=jax.ShapeDtypeStruct((bsz, n1, n2), jnp.float32),
        compiler_params=_cparams(1),
    )(a_t, b_xyz)


def farthest_point_sample(xyz, num_centroids):
    """xyz:(B,3,N) -> (B, num_centroids) int32 indices; whole FPS loop runs in VMEM."""
    bsz, _, n = xyz.shape
    idx = pl.pallas_call(
        functools.partial(_fps_kernel, num_centroids=num_centroids, n=n),
        grid=(bsz,),
        in_specs=[pl.BlockSpec((1, 3, n), lambda b: (b, 0, 0))],
        out_specs=pl.BlockSpec((1, 1, num_centroids), lambda b: (b, 0, 0)),
        out_shape=jax.ShapeDtypeStruct((bsz, 1, num_centroids), jnp.int32),
        scratch_shapes=[pltpu.VMEM((1, n), jnp.float32)],
        compiler_params=_cparams(1),
    )(xyz)
    return idx[:, 0, :]


# ----------------------------- JAX glue (indexing / grouping) -----------------------------

def ball_query(dist2, radius, k):
    """First k in-radius neighbour indices per centroid (pad with the first hit, else 0)."""
    bsz, nc, n = dist2.shape
    in_ball = dist2 < (radius * radius)
    cand = jnp.where(in_ball, jnp.arange(n, dtype=jnp.int32)[None, None, :], n)
    neg_top, _ = jax.lax.top_k(-cand, k)             # k smallest indices, ascending
    cand_k = -neg_top
    first = cand_k[:, :, :1]
    idx = jnp.where(cand_k >= n, first, cand_k)
    idx = jnp.where(idx >= n, 0, idx)
    return idx.astype(jnp.int32)


def group_points_cl(src_cl, idx):
    """src_cl:(B,N,C) channel-last, idx:(B,nc,K) -> (B,K,nc,C).

    Single row gather straight into the layout the fused SA kernel consumes (no transpose
    of the grouped tensor)."""
    bsz, _, c = src_cl.shape
    _, nc, k = idx.shape
    idx_r = jnp.transpose(idx, (0, 2, 1)).reshape(bsz, k * nc, 1)   # (B, K*nc, 1)
    grp = jnp.take_along_axis(src_cl, idx_r, axis=1)                # (B, K*nc, C)
    return grp.reshape(bsz, k, nc, c)


# ----------------------------- PointNet++ modules -----------------------------

def sa_msg_forward(xyz, feature_cl, scale_stacks, num_centroids, radius_list,
                   num_neighbours_list, use_xyz=True):
    bsz, _, n = xyz.shape
    fps_idx = farthest_point_sample(xyz, num_centroids)
    new_xyz = jnp.take_along_axis(
        xyz, jnp.broadcast_to(fps_idx[:, None, :], (bsz, 3, num_centroids)), axis=2)
    d2 = pairwise_dist2(new_xyz, xyz)                               # (B, nc, N)

    xyz_cl = jnp.transpose(xyz, (0, 2, 1))                          # (B, N, 3), small
    if feature_cl is not None:
        src = jnp.concatenate([xyz_cl, feature_cl], axis=-1) if use_xyz else feature_cl
    else:
        src = xyz_cl
    src = src.astype(jnp.bfloat16)                                  # (B, N, C) bf16 source
    c = src.shape[-1]
    cen = jnp.transpose(new_xyz, (0, 2, 1))                         # (B, nc, 3)
    cen = jnp.pad(cen, ((0, 0), (0, 0), (0, c - 3))).astype(jnp.bfloat16)   # (B, nc, C)

    outs = []
    # TODO(synk): move the neighbour gather into the fused SA kernel via
    # PrefetchScalarGridSpec (scalar-prefetch idx into SMEM + manual DMA) to avoid
    # materializing the grouped tensor in HBM at all.
    # TODO(synk): per-scale stacks with identical shapes could be packed block-diagonally
    # into one pallas_call to raise MXU occupancy on v6e/v7x.
    for stack, radius, k in zip(scale_stacks, radius_list, num_neighbours_list):
        idx = ball_query(d2, radius, k)                             # (B, nc, K)
        grp = group_points_cl(src, idx)                             # (B, K, nc, C) bf16
        outs.append(fused_mlp_max(grp, cen, stack))                 # (B, nc, cout) bf16
    return new_xyz, jnp.concatenate(outs, axis=-1)


def sa_global_forward(xyz, feature_cl, stack, use_xyz=True):
    bsz = xyz.shape[0]
    xyz_cl = jnp.transpose(xyz, (0, 2, 1))
    if feature_cl is not None:
        src = jnp.concatenate([xyz_cl, feature_cl], axis=-1) if use_xyz else feature_cl
    else:
        src = xyz_cl
    new_feature = fused_mlp_global_max(src, stack)                  # (B, 1, Cout) bf16
    new_xyz = jnp.zeros((bsz, 3, 1), jnp.float32)
    return new_xyz, new_feature


def fp_forward(dense_xyz, sparse_xyz, dense_feature_cl, sparse_feature_cl, stack,
               num_neighbors):
    bsz, _, nd = dense_xyz.shape
    cs = sparse_feature_cl.shape[-1]
    if num_neighbors == 0:
        interp = jnp.broadcast_to(sparse_feature_cl, (bsz, nd, cs)).astype(jnp.bfloat16)
    else:
        d2 = jnp.maximum(pairwise_dist2(dense_xyz, sparse_xyz), 0.0)      # (B, Nd, Ns)
        neg_d2, idx = jax.lax.top_k(-d2, num_neighbors)                   # 3 nearest
        dist = jnp.maximum(-neg_d2, 1e-10)
        w = 1.0 / dist
        w = w / jnp.sum(w, axis=-1, keepdims=True)                        # (B, Nd, K)
        idx_r = idx.astype(jnp.int32).reshape(bsz, nd * num_neighbors, 1)
        grp = jnp.take_along_axis(sparse_feature_cl, idx_r, axis=1)       # (B, Nd*K, Cs)
        grp = grp.reshape(bsz, nd, num_neighbors, cs)
        interp = jnp.sum(grp.astype(jnp.float32) * w[..., None],
                         axis=2).astype(jnp.bfloat16)                     # (B, Nd, Cs)
    if dense_feature_cl is None:
        feat = interp
    else:
        feat = jnp.concatenate([interp, dense_feature_cl.astype(jnp.bfloat16)], axis=-1)
    return shared_mlp(feat, stack)                                        # (B, Nd, cout) bf16


# ----------------------------- Parameter init -----------------------------

def _xavier(key, cin, cout):
    limit = math.sqrt(6.0 / (cin + cout))
    return jax.random.uniform(key, (cin, cout), jnp.float32, -limit, limit)


def _make_stack(key, cin, channels, relu_flags=None):
    """Conv stack with weights stored (cin, cout) bf16 (true shapes; MXU pads internally)."""
    if relu_flags is None:
        relu_flags = [True] * len(channels)
    ws, bs = [], []
    c = cin
    for cout in channels:
        key, sub = jax.random.split(key)
        ws.append(_xavier(sub, c, cout).astype(jnp.bfloat16))
        bs.append(jnp.zeros((1, cout), jnp.float32))                 # conv bias init = 0
        c = cout
    stack = {'ws': ws, 'bs': bs, 'relus': tuple(relu_flags), 'cin': cin, 'cout': c}
    return key, stack, c


def init_params(key, in_channels, num_classes, num_seg_classes, cfg):
    params = {}
    feature_channels = in_channels - 3
    sa_out_channels = []
    sa_msg_params = []
    for layer_ind in range(2):                                       # MSG SA layers
        scales, out_total = [], 0
        cin_base = feature_channels + 3                              # use_xyz=True
        for mlp_channels in cfg['sa_channels_list'][layer_ind]:
            key, stack, cout = _make_stack(key, cin_base, mlp_channels)
            scales.append(stack)
            out_total += cout
        sa_msg_params.append(scales)
        feature_channels = out_total
        sa_out_channels.append(out_total)
    params['sa_msg'] = sa_msg_params

    key, stack, cout = _make_stack(key, feature_channels + 3, cfg['sa_channels_list'][2])
    params['sa_global'] = stack
    sa_out_channels.append(cout)

    inter_channels = [in_channels + num_classes] + sa_out_channels   # use_xyz + one_hot
    fp_params = []
    feat = inter_channels[-1]
    for ind in range(len(cfg['fp_channels'])):
        key, stack, feat = _make_stack(key, feat + inter_channels[-2 - ind],
                                       cfg['fp_channels'][ind])
        fp_params.append(stack)
    params['fp'] = fp_params

    # Fused seg head: mlp_seg + conv_seg + seg_logit as ONE stack.
    # TODO(synk): dropout is identity at inference; BN folded to identity defaults.
    seg_chain = tuple(cfg['seg_channels']) + (num_seg_classes,)
    key, stack, _ = _make_stack(key, feat, seg_chain,
                                [True] * (len(seg_chain) - 1) + [False])
    params['seg_head'] = stack

    # Fused cls head: mlp_cls + cls_logit as ONE stack.
    cls_chain = tuple(cfg['cls_channels']) + (num_classes,)
    key, stack, _ = _make_stack(key, cfg['local_channels'][-1], cls_chain,
                                [True] * (len(cls_chain) - 1) + [False])
    params['cls_head'] = stack
    return params


# ----------------------------- Full forward -----------------------------

def pointnet2_forward(params, points, cls_label, cfg, num_classes):
    bsz, c_in, n = points.shape
    xyz = points[:, :3, :]
    feature_cl = jnp.transpose(points[:, 3:, :], (0, 2, 1)) if c_in > 3 else None

    # one-hot class conditioning (use_one_hot=True, use_xyz=True), channel-last
    one_hot = jax.nn.one_hot(cls_label, num_classes, dtype=jnp.float32)
    points_cl = jnp.transpose(points, (0, 2, 1))
    feat0_cl = jnp.concatenate(
        [points_cl, jnp.broadcast_to(one_hot[:, None, :], (bsz, n, num_classes))], axis=-1)
    inter_xyz = [xyz]
    inter_feature = [feat0_cl]

    for i in range(2):                                               # MSG set-abstraction
        xyz, feature_cl = sa_msg_forward(
            xyz, feature_cl, params['sa_msg'][i], cfg['num_centroids'][i],
            cfg['radius_list'][i], cfg['num_neighbours_list'][i])
        inter_xyz.append(xyz)
        inter_feature.append(feature_cl)
    xyz, feature_cl = sa_global_forward(xyz, feature_cl, params['sa_global'])
    inter_xyz.append(xyz)
    inter_feature.append(feature_cl)

    sparse_xyz, sparse_feature = xyz, feature_cl
    for ind in range(3):                                             # feature propagation
        dense_xyz = inter_xyz[-2 - ind]
        dense_feature = inter_feature[-2 - ind]
        sparse_feature = fp_forward(dense_xyz, sparse_xyz, dense_feature, sparse_feature,
                                    params['fp'][ind], cfg['num_fp_neighbours'][ind])
        sparse_xyz = dense_xyz

    # Seg head (fp32 logits); transpose back to the reference (B, num_seg, N) layout.
    seg_logit = jnp.transpose(
        shared_mlp(sparse_feature, params['seg_head'], out_dtype=jnp.float32), (0, 2, 1))

    # torch.max(feature, 2) on a size-1 axis == squeeze: global feature is (B, 1, C_global).
    cls_logit = shared_mlp(feature_cl, params['cls_head'], out_dtype=jnp.float32)[:, 0, :]

    return {'seg_logit': seg_logit, 'cls_logit': cls_logit}


# ----------------------------- Demo -----------------------------

if __name__ == "__main__":
    B, N = 2, 128
    IN_CHANNELS, NUM_CLASSES, NUM_SEG_CLASSES = 3, 4, 8
    cfg = dict(
        num_centroids=(32, 8, 0),
        radius_list=((0.2, 0.4, 0.8), (0.4, 0.8), -1.0),
        num_neighbours_list=((4, 8, 8), (8, 8), -1),
        sa_channels_list=(((16, 16, 32), (16, 16, 32), (16, 16, 32)),
                          ((32, 32, 64), (32, 32, 64)),
                          (64, 64, 128)),
        fp_channels=((64, 64), (64, 32), (32, 32)),
        num_fp_neighbours=(0, 3, 3),
        local_channels=(64, 128),
        seg_channels=(32, 32, 32),
        cls_channels=(32, 32),
    )

    key = jax.random.PRNGKey(0)
    k_pts, k_lbl, k_par = jax.random.split(key, 3)
    points = jax.random.uniform(k_pts, (B, IN_CHANNELS, N), jnp.float32, -1.0, 1.0)
    cls_label = jax.random.randint(k_lbl, (B,), 0, NUM_CLASSES)

    params = init_params(k_par, IN_CHANNELS, NUM_CLASSES, NUM_SEG_CLASSES, cfg)

    # params / cfg captured as compile-time constants (static relu flags / channel counts).
    fwd = jax.jit(lambda pts, lbl: pointnet2_forward(params, pts, lbl, cfg, NUM_CLASSES))
    preds = jax.block_until_ready(fwd(points, cls_label))

    assert preds['seg_logit'].shape == (B, NUM_SEG_CLASSES, N)
    assert preds['cls_logit'].shape == (B, NUM_CLASSES)
    assert preds['seg_logit'].dtype == jnp.float32
    print("KERNEL_OK")
</pallas_src>

<mosaic_0001>
module attributes {stable_mosaic.version = 11 : i64} {
  func.func @_fps_kernel(%arg0: i32, %arg1: memref<1x3x128xf32, #tpu.memory_space<vmem>>, %arg2: memref<1x1x32xi32, #tpu.memory_space<vmem>>, %arg3: memref<1x128xf32, #tpu.memory_space<vmem>>) attributes {dimension_semantics = [#tpu.dimension_semantics<parallel>], iteration_bounds = array<i64: 2>, scalar_prefetch = 0 : i64, scratch_operands = 1 : i64, tpu.core_type = #tpu.core_type<tc>, window_params = [{transform_indices = @transform_0, window_bounds = array<i64: 1, 3, 128>}, {transform_indices = @transform_1, window_bounds = array<i64: 1, 1, 32>}]} {
    %c0 = arith.constant 0 : index
    %c0_0 = arith.constant 0 : index
    %c0_1 = arith.constant 0 : index
    %0 = vector.load %arg1[%c0, %c0_0, %c0_1] : memref<1x3x128xf32, #tpu.memory_space<vmem>>, vector<1x3x128xf32>
    %1 = vector.shape_cast %0 : vector<1x3x128xf32> to vector<3x128xf32>
    %2 = tpu.iota {dimensions = array<i32: 1>} : vector<1x128xi32>
    %3 = arith.sitofp %2 : vector<1x128xi32> to vector<1x128xf32>
    %4 = tpu.iota {dimensions = array<i32: 1>} : vector<1x32xi32>
    %c0_i32 = arith.constant 0 : i32
    %5 = vector.broadcast %c0_i32 : i32 to vector<1x32xi32>
    %c0_2 = arith.constant 0 : index
    %c0_3 = arith.constant 0 : index
    %c0_4 = arith.constant 0 : index
    %6 = vector.load %arg2[%c0_2, %c0_3, %c0_4] : memref<1x1x32xi32, #tpu.memory_space<vmem>>, vector<1x1x32xi32>
    %7 = vector.shape_cast %6 : vector<1x1x32xi32> to vector<1x32xi32>
    %8 = vector.shape_cast %5 : vector<1x32xi32> to vector<1x1x32xi32>
    tpu.vector_store %arg2[%c0_2, %c0_3, %c0_4], %8 {strides = array<i32>} : memref<1x1x32xi32, #tpu.memory_space<vmem>>, vector<1x1x32xi32>,
    %cst = arith.constant 1.000000e+10 : f32
    %9 = vector.broadcast %cst : f32 to vector<1x128xf32>
    %c0_5 = arith.constant 0 : index
    %c0_6 = arith.constant 0 : index
    %10 = vector.load %arg3[%c0_5, %c0_6] : memref<1x128xf32, #tpu.memory_space<vmem>>, vector<1x128xf32>
    tpu.vector_store %arg3[%c0_5, %c0_6], %9 {strides = array<i32>} : memref<1x128xf32, #tpu.memory_space<vmem>>, vector<1x128xf32>,
    %c0_i32_7 = arith.constant 0 : i32
    %11 = vector.broadcast %c0_i32_7 : i32 to vector<1x1xi32>
    %c1_i32 = arith.constant 1 : i32
    %c31_i32 = arith.constant 31 : i32
    %12 = arith.addi %c1_i32, %c31_i32 : i32
    %c1_i32_8 = arith.constant 1 : i32
    %13 = scf.for %arg4 = %c1_i32 to %12 step %c1_i32_8 iter_args(%arg5 = %11) -> (vector<1x1xi32>)  : i32 {
      %14 = vector.broadcast %arg5 : vector<1x1xi32> to vector<1x128xi32>
      %15 = arith.cmpi eq, %2, %14 : vector<1x128xi32>
      %cst_10 = arith.constant 0.000000e+00 : f32
      %16 = vector.shape_cast %15 : vector<1x128xi1> to vector<1x128xi1>
      %17 = vector.broadcast %16 : vector<1x128xi1> to vector<3x128xi1>
      %18 = vector.broadcast %cst_10 : f32 to vector<3x128xf32>
      %19 = arith.select %17, %1, %18 : vector<3x128xi1>, vector<3x128xf32>
      %cst_11 = arith.constant dense<0.000000e+00> : vector<3xf32>
      %20 = vector.multi_reduction <add>, %19, %cst_11 [1] : vector<3x128xf32> to vector<3xf32>
      %21 = vector.shape_cast %20 : vector<3xf32> to vector<3x1xf32>
      %22 = vector.broadcast %21 : vector<3x1xf32> to vector<3x128xf32>
      %23 = arith.subf %1, %22 : vector<3x128xf32>
      %24 = arith.mulf %23, %23 : vector<3x128xf32>
      %cst_12 = arith.constant dense<0.000000e+00> : vector<128xf32>
      %25 = vector.multi_reduction <add>, %24, %cst_12 [0] : vector<3x128xf32> to vector<128xf32>
      %26 = vector.shape_cast %25 : vector<128xf32> to vector<1x128xf32>
      %c0_13 = arith.constant 0 : index
      %c0_14 = arith.constant 0 : index
      %27 = vector.load %arg3[%c0_13, %c0_14] : memref<1x128xf32, #tpu.memory_space<vmem>>, vector<1x128xf32>
      %28 = arith.minimumf %27, %26 : vector<1x128xf32>
      %c0_15 = arith.constant 0 : index
      %c0_16 = arith.constant 0 : index
      %29 = vector.load %arg3[%c0_15, %c0_16] : memref<1x128xf32, #tpu.memory_space<vmem>>, vector<1x128xf32>
      tpu.vector_store %arg3[%c0_15, %c0_16], %28 {strides = array<i32>} : memref<1x128xf32, #tpu.memory_space<vmem>>, vector<1x128xf32>,
      %cst_17 = arith.constant dense<0xFF800000> : vector<1xf32>
      %30 = vector.multi_reduction <maximumf>, %28, %cst_17 [1] : vector<1x128xf32> to vector<1xf32>
      %31 = vector.shape_cast %30 : vector<1xf32> to vector<1x1xf32>
      %32 = vector.broadcast %31 : vector<1x1xf32> to vector<1x128xf32>
      %33 = arith.cmpf oeq, %28, %32 : vector<1x128xf32>
      %cst_18 = arith.constant 1.280000e+02 : f32
      %34 = vector.broadcast %cst_18 : f32 to vector<1x128xf32>
      %35 = arith.select %33, %3, %34 : vector<1x128xi1>, vector<1x128xf32>
      %cst_19 = arith.constant dense<0x7F800000> : vector<1xf32>
      %36 = vector.multi_reduction <minimumf>, %35, %cst_19 [1] : vector<1x128xf32> to vector<1xf32>
      %37 = vector.shape_cast %36 : vector<1xf32> to vector<1x1xf32>
      %38 = arith.fptosi %37 : vector<1x1xf32> to vector<1x1xi32>
      %c0_20 = arith.constant 0 : index
      %c0_21 = arith.constant 0 : index
      %c0_22 = arith.constant 0 : index
      %39 = vector.load %arg2[%c0_20, %c0_21, %c0_22] : memref<1x1x32xi32, #tpu.memory_space<vmem>>, vector<1x1x32xi32>
      %40 = vector.shape_cast %39 : vector<1x1x32xi32> to vector<1x32xi32>
      %41 = vector.broadcast %arg4 : i32 to vector<1x32xi32>
      %42 = arith.cmpi eq, %4, %41 : vector<1x32xi32>
      %43 = arith.extui %42 : vector<1x32xi1> to vector<1x32xi32>
      %44 = vector.broadcast %38 : vector<1x1xi32> to vector<1x32xi32>
      %45 = arith.muli %44, %43 : vector<1x32xi32>
      %46 = arith.addi %40, %45 : vector<1x32xi32>
      %c0_23 = arith.constant 0 : index
      %c0_24 = arith.constant 0 : index
      %c0_25 = arith.constant 0 : index
      %47 = vector.load %arg2[%c0_23, %c0_24, %c0_25] : memref<1x1x32xi32, #tpu.memory_space<vmem>>, vector<1x1x32xi32>
      %48 = vector.shape_cast %47 : vector<1x1x32xi32> to vector<1x32xi32>
      %49 = vector.shape_cast %46 : vector<1x32xi32> to vector<1x1x32xi32>
      tpu.vector_store %arg2[%c0_23, %c0_24, %c0_25], %49 {strides = array<i32>} : memref<1x1x32xi32, #tpu.memory_space<vmem>>, vector<1x1x32xi32>,
      scf.yield %38 : vector<1x1xi32>
    }
    %c31_i32_9 = arith.constant 31 : i32
    return
  }
  func.func @transform_0(%arg0: i32) -> (i32, i32, i32) {
    %c0_i32 = arith.constant 0 : i32
    %c0_i32_0 = arith.constant 0 : i32
    %c0_i32_1 = arith.constant 0 : i32
    return %arg0, %c0_i32, %c0_i32_0 : i32, i32, i32
  }
  func.func @transform_1(%arg0: i32) -> (i32, i32, i32) {
    %c0_i32 = arith.constant 0 : i32
    %c0_i32_0 = arith.constant 0 : i32
    %c0_i32_1 = arith.constant 0 : i32
    return %arg0, %c0_i32, %c0_i32_0 : i32, i32, i32
  }
}

module attributes {stable_mosaic.version = 11 : i64} {
  func.func @_pdist2_kernel(%arg0: i32, %arg1: memref<1x32x3xf32, #tpu.memory_space<vmem>>, %arg2: memref<1x3x128xf32, #tpu.memory_space<vmem>>, %arg3: memref<1x32x128xf32, #tpu.memory_space<vmem>>) attributes {dimension_semantics = [#tpu.dimension_semantics<parallel>], iteration_bounds = array<i64: 2>, scalar_prefetch = 0 : i64, scratch_operands = 0 : i64, tpu.core_type = #tpu.core_type<tc>, window_params = [{transform_indices = @transform_0, window_bounds = array<i64: 1, 32, 3>}, {transform_indices = @transform_1, window_bounds = array<i64: 1, 3, 128>}, {transform_indices = @transform_2, window_bounds = array<i64: 1, 32, 128>}]} {
    %c0 = arith.constant 0 : index
    %c0_0 = arith.constant 0 : index
    %c0_1 = arith.constant 0 : index
    %0 = vector.load %arg1[%c0, %c0_0, %c0_1] : memref<1x32x3xf32, #tpu.memory_space<vmem>>, vector<1x32x3xf32>
    %1 = vector.shape_cast %0 : vector<1x32x3xf32> to vector<32x3xf32>
    %c0_2 = arith.constant 0 : index
    %c0_3 = arith.constant 0 : index
    %c0_4 = arith.constant 0 : index
    %2 = vector.load %arg2[%c0_2, %c0_3, %c0_4] : memref<1x3x128xf32, #tpu.memory_space<vmem>>, vector<1x3x128xf32>
    %3 = vector.shape_cast %2 : vector<1x3x128xf32> to vector<3x128xf32>
    %4 = arith.mulf %1, %1 : vector<32x3xf32>
    %cst = arith.constant dense<0.000000e+00> : vector<32xf32>
    %5 = vector.multi_reduction <add>, %4, %cst [1] : vector<32x3xf32> to vector<32xf32>
    %6 = vector.shape_cast %5 : vector<32xf32> to vector<32x1xf32>
    %7 = arith.mulf %3, %3 : vector<3x128xf32>
    %cst_5 = arith.constant dense<0.000000e+00> : vector<128xf32>
    %8 = vector.multi_reduction <add>, %7, %cst_5 [0] : vector<3x128xf32> to vector<128xf32>
    %9 = vector.shape_cast %8 : vector<128xf32> to vector<1x128xf32>
    %cst_6 = arith.constant dense<0.000000e+00> : vector<32x128xf32>
    %10 = tpu.matmul %1, %3, %cst_6 {dimension_numbers = #tpu.dot_dimension_numbers<[1], [0], [0], [1], [0, 0, 1, 1], [], []>} : vector<32x3xf32>, vector<3x128xf32>, vector<32x128xf32> -> vector<32x128xf32>
    %11 = vector.broadcast %6 : vector<32x1xf32> to vector<32x128xf32>
    %12 = vector.broadcast %9 : vector<1x128xf32> to vector<32x128xf32>
    %13 = arith.addf %11, %12 : vector<32x128xf32>
    %cst_7 = arith.constant 2.000000e+00 : f32
    %14 = vector.broadcast %cst_7 : f32 to vector<32x128xf32>
    %15 = arith.mulf %14, %10 : vector<32x128xf32>
    %16 = arith.subf %13, %15 : vector<32x128xf32>
    %c0_8 = arith.constant 0 : index
    %c0_9 = arith.constant 0 : index
    %c0_10 = arith.constant 0 : index
    %17 = vector.load %arg3[%c0_8, %c0_9, %c0_10] : memref<1x32x128xf32, #tpu.memory_space<vmem>>, vector<1x32x128xf32>
    %18 = vector.shape_cast %17 : vector<1x32x128xf32> to vector<32x128xf32>
    %19 = vector.shape_cast %16 : vector<32x128xf32> to vector<1x32x128xf32>
    tpu.vector_store %arg3[%c0_8, %c0_9, %c0_10], %19 {strides = array<i32>} : memref<1x32x128xf32, #tpu.memory_space<vmem>>, vector<1x32x128xf32>,
    return
  }
  func.func @transform_0(%arg0: i32) -> (i32, i32, i32) {
    %c0_i32 = arith.constant 0 : i32
    %c0_i32_0 = arith.constant 0 : i32
    %c0_i32_1 = arith.constant 0 : i32
    return %arg0, %c0_i32, %c0_i32_0 : i32, i32, i32
  }
  func.func @transform_1(%arg0: i32) -> (i32, i32, i32) {
    %c0_i32 = arith.constant 0 : i32
    %c0_i32_0 = arith.constant 0 : i32
    %c0_i32_1 = arith.constant 0 : i32
    return %arg0, %c0_i32, %c0_i32_0 : i32, i32, i32
  }
  func.func @transform_2(%arg0: i32) -> (i32, i32, i32) {
    %c0_i32 = arith.constant 0 : i32
    %c0_i32_0 = arith.constant 0 : i32
    %c0_i32_1 = arith.constant 0 : i32
    return %arg0, %c0_i32, %c0_i32_0 : i32, i32, i32
  }
}

module attributes {stable_mosaic.version = 11 : i64} {
  func.func @_fused_mlp_max_kernel(%arg0: i32, %arg1: i32, %arg2: memref<3x16xbf16, #tpu.memory_space<vmem>>, %arg3: memref<1x16xf32, #tpu.memory_space<vmem>>, %arg4: memref<16x16xbf16, #tpu.memory_space<vmem>>, %arg5: memref<1x16xf32, #tpu.memory_space<vmem>>, %arg6: memref<16x32xbf16, #tpu.memory_space<vmem>>, %arg7: memref<1x32xf32, #tpu.memory_space<vmem>>, %arg8: memref<1x32x3xbf16, #tpu.memory_space<vmem>>, %arg9: memref<1x4x32x3xbf16, #tpu.memory_space<vmem>>, %arg10: memref<1x32x32xbf16, #tpu.memory_space<vmem>>) attributes {dimension_semantics = [#tpu.dimension_semantics<parallel>, #tpu.dimension_semantics<parallel>], iteration_bounds = array<i64: 2, 1>, scalar_prefetch = 0 : i64, scratch_operands = 0 : i64, tpu.core_type = #tpu.core_type<tc>, window_params = [{pipeline_mode = #tpu.pipeline_mode<synchronous>, transform_indices = @transform_0, window_bounds = array<i64: 3, 16>}, {pipeline_mode = #tpu.pipeline_mode<synchronous>, transform_indices = @transform_1, window_bounds = array<i64: 1, 16>}, {pipeline_mode = #tpu.pipeline_mode<synchronous>, transform_indices = @transform_2, window_bounds = array<i64: 16, 16>}, {pipeline_mode = #tpu.pipeline_mode<synchronous>, transform_indices = @transform_3, window_bounds = array<i64: 1, 16>}, {pipeline_mode = #tpu.pipeline_mode<synchronous>, transform_indices = @transform_4, window_bounds = array<i64: 16, 32>}, {pipeline_mode = #tpu.pipeline_mode<synchronous>, transform_indices = @transform_5, window_bounds = array<i64: 1, 32>}, {transform_indices = @transform_6, window_bounds = array<i64: 1, 32, 3>}, {transform_indices = @transform_7, window_bounds = array<i64: 1, 4, 32, 3>}, {transform_indices = @transform_8, window_bounds = array<i64: 1, 32, 32>}]} {
    %c0 = arith.constant 0 : index
    %c0_0 = arith.constant 0 : index
    %0 = vector.load %arg2[%c0, %c0_0] : memref<3x16xbf16, #tpu.memory_space<vmem>>, vector<3x16xbf16>
    %c0_1 = arith.constant 0 : index
    %c0_2 = arith.constant 0 : index
    %1 = vector.load %arg4[%c0_1, %c0_2] : memref<16x16xbf16, #tpu.memory_space<vmem>>, vector<16x16xbf16>
    %c0_3 = arith.constant 0 : index
    %c0_4 = arith.constant 0 : index
    %2 = vector.load %arg6[%c0_3, %c0_4] : memref<16x32xbf16, #tpu.memory_space<vmem>>, vector<16x32xbf16>
    %c0_5 = arith.constant 0 : index
    %c0_6 = arith.constant 0 : index
    %3 = vector.load %arg3[%c0_5, %c0_6] : memref<1x16xf32, #tpu.memory_space<vmem>>, vector<1x16xf32>
    %c0_7 = arith.constant 0 : index
    %c0_8 = arith.constant 0 : index
    %4 = vector.load %arg5[%c0_7, %c0_8] : memref<1x16xf32, #tpu.memory_space<vmem>>, vector<1x16xf32>
    %c0_9 = arith.constant 0 : index
    %c0_10 = arith.constant 0 : index
    %5 = vector.load %arg7[%c0_9, %c0_10] : memref<1x32xf32, #tpu.memory_space<vmem>>, vector<1x32xf32>
    %c0_11 = arith.constant 0 : index
    %c0_12 = arith.constant 0 : index
    %c0_13 = arith.constant 0 : index
    %6 = vector.load %arg8[%c0_11, %c0_12, %c0_13] : memref<1x32x3xbf16, #tpu.memory_space<vmem>>, vector<1x32x3xbf16>
    %7 = vector.shape_cast %6 : vector<1x32x3xbf16> to vector<32x3xbf16>
    %c0_14 = arith.constant 0 : index
    %c0_15 = arith.constant 0 : index
    %c0_16 = arith.constant 0 : index
    %c0_17 = arith.constant 0 : index
    %8 = vector.load %arg9[%c0_14, %c0_15, %c0_16, %c0_17] : memref<1x4x32x3xbf16, #tpu.memory_space<vmem>>, vector<1x1x32x3xbf16>
    %9 = vector.shape_cast %8 : vector<1x1x32x3xbf16> to vector<32x3xbf16>
    %10 = arith.subf %9, %7 : vector<32x3xbf16>
    %cst = arith.constant dense<0.000000e+00> : vector<32x16xf32>
    %11 = tpu.matmul %10, %0, %cst {dimension_numbers = #tpu.dot_dimension_numbers<[1], [0], [0], [1], [0, 0, 1, 1], [], []>} : vector<32x3xbf16>, vector<3x16xbf16>, vector<32x16xf32> -> vector<32x16xf32>
    %12 = vector.broadcast %3 : vector<1x16xf32> to vector<32x16xf32>
    %13 = arith.addf %11, %12 : vector<32x16xf32>
    %cst_18 = arith.constant 0.000000e+00 : f32
    %14 = vector.broadcast %cst_18 : f32 to vector<32x16xf32>
    %15 = arith.maximumf %13, %14 : vector<32x16xf32>
    %16 = arith.truncf %15 : vector<32x16xf32> to vector<32x16xbf16>
    %cst_19 = arith.constant dense<0.000000e+00> : vector<32x16xf32>
    %17 = tpu.matmul %16, %1, %cst_19 {dimension_numbers = #tpu.dot_dimension_numbers<[1], [0], [0], [1], [0, 0, 1, 1], [], []>} : vector<32x16xbf16>, vector<16x16xbf16>, vector<32x16xf32> -> vector<32x16xf32>
    %18 = vector.broadcast %4 : vector<1x16xf32> to vector<32x16xf32>
    %19 = arith.addf %17, %18 : vector<32x16xf32>
    %cst_20 = arith.constant 0.000000e+00 : f32
    %20 = vector.broadcast %cst_20 : f32 to vector<32x16xf32>
    %21 = arith.maximumf %19, %20 : vector<32x16xf32>
    %22 = arith.truncf %21 : vector<32x16xf32> to vector<32x16xbf16>
    %cst_21 = arith.constant dense<0.000000e+00> : vector<32x32xf32>
    %23 = tpu.matmul %22, %2, %cst_21 {dimension_numbers = #tpu.dot_dimension_numbers<[1], [0], [0], [1], [0, 0, 1, 1], [], []>} : vector<32x16xbf16>, vector<16x32xbf16>, vector<32x32xf32> -> vector<32x32xf32>
    %24 = vector.broadcast %5 : vector<1x32xf32> to vector<32x32xf32>
    %25 = arith.addf %23, %24 : vector<32x32xf32>
    %cst_22 = arith.constant 0.000000e+00 : f32
    %26 = vector.broadcast %cst_22 : f32 to vector<32x32xf32>
    %27 = arith.maximumf %25, %26 : vector<32x32xf32>
    %c0_23 = arith.constant 0 : index
    %c1 = arith.constant 1 : index
    %c0_24 = arith.constant 0 : index
    %c0_25 = arith.constant 0 : index
    %28 = vector.load %arg9[%c0_23, %c1, %c0_24, %c0_25] : memref<1x4x32x3xbf16, #tpu.memory_space<vmem>>, vector<1x1x32x3xbf16>
    %29 = vector.shape_cast %28 : vector<1x1x32x3xbf16> to vector<32x3xbf16>
    %30 = arith.subf %29, %7 : vector<32x3xbf16>
    %cst_26 = arith.constant dense<0.000000e+00> : vector<32x16xf32>
    %31 = tpu.matmul %30, %0, %cst_26 {dimension_numbers = #tpu.dot_dimension_numbers<[1], [0], [0], [1], [0, 0, 1, 1], [], []>} : vector<32x3xbf16>, vector<3x16xbf16>, vector<32x16xf32> -> vector<32x16xf32>
    %32 = vector.broadcast %3 : vector<1x16xf32> to vector<32x16xf32>
    %33 = arith.addf %31, %32 : vector<32x16xf32>
    %cst_27 = arith.constant 0.000000e+00 : f32
    %34 = vector.broadcast %cst_27 : f32 to vector<32x16xf32>
    %35 = arith.maximumf %33, %34 : vector<32x16xf32>
    %36 = arith.truncf %35 : vector<32x16xf32> to vector<32x16xbf16>
    %cst_28 = arith.constant dense<0.000000e+00> : vector<32x16xf32>
    %37 = tpu.matmul %36, %1, %cst_28 {dimension_numbers = #tpu.dot_dimension_numbers<[1], [0], [0], [1], [0, 0, 1, 1], [], []>} : vector<32x16xbf16>, vector<16x16xbf16>, vector<32x16xf32> -> vector<32x16xf32>
    %38 = vector.broadcast %4 : vector<1x16xf32> to vector<32x16xf32>
    %39 = arith.addf %37, %38 : vector<32x16xf32>
    %cst_29 = arith.constant 0.000000e+00 : f32
    %40 = vector.broadcast %cst_29 : f32 to vector<32x16xf32>
    %41 = arith.maximumf %39, %40 : vector<32x16xf32>
    %42 = arith.truncf %41 : vector<32x16xf32> to vector<32x16xbf16>
    %cst_30 = arith.constant dense<0.000000e+00> : vector<32x32xf32>
    %43 = tpu.matmul %42, %2, %cst_30 {dimension_numbers = #tpu.dot_dimension_numbers<[1], [0], [0], [1], [0, 0, 1, 1], [], []>} : vector<32x16xbf16>, vector<16x32xbf16>, vector<32x32xf32> -> vector<32x32xf32>
    %44 = vector.broadcast %5 : vector<1x32xf32> to vector<32x32xf32>
    %45 = arith.addf %43, %44 : vector<32x32xf32>
    %cst_31 = arith.constant 0.000000e+00 : f32
    %46 = vector.broadcast %cst_31 : f32 to vector<32x32xf32>
    %47 = arith.maximumf %45, %46 : vector<32x32xf32>
    %48 = arith.maximumf %27, %47 : vector<32x32xf32>
    %c0_32 = arith.constant 0 : index
    %c2 = arith.constant 2 : index
    %c0_33 = arith.constant 0 : index
    %c0_34 = arith.constant 0 : index
    %49 = vector.load %arg9[%c0_32, %c2, %c0_33, %c0_34] : memref<1x4x32x3xbf16, #tpu.memory_space<vmem>>, vector<1x1x32x3xbf16>
    %50 = vector.shape_cast %49 : vector<1x1x32x3xbf16> to vector<32x3xbf16>
    %51 = arith.subf %50, %7 : vector<32x3xbf16>
    %cst_35 = arith.constant dense<0.000000e+00> : vector<32x16xf32>
    %52 = tpu.matmul %51, %0, %cst_35 {dimension_numbers = #tpu.dot_dimension_numbers<[1], [0], [0], [1], [0, 0, 1, 1], [], []>} : vector<32x3xbf16>, vector<3x16xbf16>, vector<32x16xf32> -> vector<32x16xf32>
    %53 = vector.broadcast %3 : vector<1x16xf32> to vector<32x16xf32>
    %54 = arith.addf %52, %53 : vector<32x16xf32>
    %cst_36 = arith.constant 0.000000e+00 : f32
    %55 = vector.broadcast %cst_36 : f32 to vector<32x16xf32>
    %56 = arith.maximumf %54, %55 : vector<32x16xf32>
    %57 = arith.truncf %56 : vector<32x16xf32> to vector<32x16xbf16>
    %cst_37 = arith.constant dense<0.000000e+00> : vector<32x16xf32>
    %58 = tpu.matmul %57, %1, %cst_37 {dimension_numbers = #tpu.dot_dimension_numbers<[1], [0], [0], [1], [0, 0, 1, 1], [], []>} : vector<32x16xbf16>, vector<16x16xbf16>, vector<32x16xf32> -> vector<32x16xf32>
    %59 = vector.broadcast %4 : vector<1x16xf32> to vector<32x16xf32>
    %60 = arith.addf %58, %59 : vector<32x16xf32>
    %cst_38 = arith.constant 0.000000e+00 : f32
    %61 = vector.broadcast %cst_38 : f32 to vector<32x16xf32>
    %62 = arith.maximumf %60, %61 : vector<32x16xf32>
    %63 = arith.truncf %62 : vector<32x16xf32> to vector<32x16xbf16>
    %cst_39 = arith.constant dense<0.000000e+00> : vector<32x32xf32>
    %64 = tpu.matmul %63, %2, %cst_39 {dimension_numbers = #tpu.dot_dimension_numbers<[1], [0], [0], [1], [0, 0, 1, 1], [], []>} : vector<32x16xbf16>, vector<16x32xbf16>, vector<32x32xf32> -> vector<32x32xf32>
    %65 = vector.broadcast %5 : vector<1x32xf32> to vector<32x32xf32>
    %66 = arith.addf %64, %65 : vector<32x32xf32>
    %cst_40 = arith.constant 0.000000e+00 : f32
    %67 = vector.broadcast %cst_40 : f32 to vector<32x32xf32>
    %68 = arith.maximumf %66, %67 : vector<32x32xf32>
    %69 = arith.maximumf %48, %68 : vector<32x32xf32>
    %c0_41 = arith.constant 0 : index
    %c3 = arith.constant 3 : index
    %c0_42 = arith.constant 0 : index
    %c0_43 = arith.constant 0 : index
    %70 = vector.load %arg9[%c0_41, %c3, %c0_42, %c0_43] : memref<1x4x32x3xbf16, #tpu.memory_space<vmem>>, vector<1x1x32x3xbf16>
    %71 = vector.shape_cast %70 : vector<1x1x32x3xbf16> to vector<32x3xbf16>
    %72 = arith.subf %71, %7 : vector<32x3xbf16>
    %cst_44 = arith.constant dense<0.000000e+00> : vector<32x16xf32>
    %73 = tpu.matmul %72, %0, %cst_44 {dimension_numbers = #tpu.dot_dimension_numbers<[1], [0], [0], [1], [0, 0, 1, 1], [], []>} : vector<32x3xbf16>, vector<3x16xbf16>, vector<32x16xf32> -> vector<32x16xf32>
    %74 = vector.broadcast %3 : vector<1x16xf32> to vector<32x16xf32>
    %75 = arith.addf %73, %74 : vector<32x16xf32>
    %cst_45 = arith.constant 0.000000e+00 : f32
    %76 = vector.broadcast %cst_45 : f32 to vector<32x16xf32>
    %77 = arith.maximumf %75, %76 : vector<32x16xf32>
    %78 = arith.truncf %77 : vector<32x16xf32> to vector<32x16xbf16>
    %cst_46 = arith.constant dense<0.000000e+00> : vector<32x16xf32>
    %79 = tpu.matmul %78, %1, %cst_46 {dimension_numbers = #tpu.dot_dimension_numbers<[1], [0], [0], [1], [0, 0, 1, 1], [], []>} : vector<32x16xbf16>, vector<16x16xbf16>, vector<32x16xf32> -> vector<32x16xf32>
    %80 = vector.broadcast %4 : vector<1x16xf32> to vector<32x16xf32>
    %81 = arith.addf %79, %80 : vector<32x16xf32>
    %cst_47 = arith.constant 0.000000e+00 : f32
    %82 = vector.broadcast %cst_47 : f32 to vector<32x16xf32>
    %83 = arith.maximumf %81, %82 : vector<32x16xf32>
    %84 = arith.truncf %83 : vector<32x16xf32> to vector<32x16xbf16>
    %cst_48 = arith.constant dense<0.000000e+00> : vector<32x32xf32>
    %85 = tpu.matmul %84, %2, %cst_48 {dimension_numbers = #tpu.dot_dimension_numbers<[1], [0], [0], [1], [0, 0, 1, 1], [], []>} : vector<32x16xbf16>, vector<16x32xbf16>, vector<32x32xf32> -> vector<32x32xf32>
    %86 = vector.broadcast %5 : vector<1x32xf32> to vector<32x32xf32>
    %87 = arith.addf %85, %86 : vector<32x32xf32>
    %cst_49 = arith.constant 0.000000e+00 : f32
    %88 = vector.broadcast %cst_49 : f32 to vector<32x32xf32>
    %89 = arith.maximumf %87, %88 : vector<32x32xf32>
    %90 = arith.maximumf %69, %89 : vector<32x32xf32>
    %91 = arith.truncf %90 : vector<32x32xf32> to vector<32x32xbf16>
    %c0_50 = arith.constant 0 : index
    %c0_51 = arith.constant 0 : index
    %c0_52 = arith.constant 0 : index
    %92 = vector.load %arg10[%c0_50, %c0_51, %c0_52] : memref<1x32x32xbf16, #tpu.memory_space<vmem>>, vector<1x32x32xbf16>
    %93 = vector.shape_cast %92 : vector<1x32x32xbf16> to vector<32x32xbf16>
    %94 = vector.shape_cast %91 : vector<32x32xbf16> to vector<1x32x32xbf16>
    tpu.vector_store %arg10[%c0_50, %c0_51, %c0_52], %94 {strides = array<i32>} : memref<1x32x32xbf16, #tpu.memory_space<vmem>>, vector<1x32x32xbf16>,
    return
  }
  func.func @transform_0(%arg0: i32, %arg1: i32) -> (i32, i32) {
    %c0_i32 = arith.constant 0 : i32
    %c0_i32_0 = arith.constant 0 : i32
    %c0_i32_1 = arith.constant 0 : i32
    return %c0_i32, %c0_i32_0 : i32, i32
  }
  func.func @transform_1(%arg0: i32, %arg1: i32) -> (i32, i32) {
    %c0_i32 = arith.constant 0 : i32
    %c0_i32_0 = arith.constant 0 : i32
    %c0_i32_1 = arith.constant 0 : i32
    return %c0_i32, %c0_i32_0 : i32, i32
  }
  func.func @transform_2(%arg0: i32, %arg1: i32) -> (i32, i32) {
    %c0_i32 = arith.constant 0 : i32
    %c0_i32_0 = arith.constant 0 : i32
    %c0_i32_1 = arith.constant 0 : i32
    return %c0_i32, %c0_i32_0 : i32, i32
  }
  func.func @transform_3(%arg0: i32, %arg1: i32) -> (i32, i32) {
    %c0_i32 = arith.constant 0 : i32
    %c0_i32_0 = arith.constant 0 : i32
    %c0_i32_1 = arith.constant 0 : i32
    return %c0_i32, %c0_i32_0 : i32, i32
  }
  func.func @transform_4(%arg0: i32, %arg1: i32) -> (i32, i32) {
    %c0_i32 = arith.constant 0 : i32
    %c0_i32_0 = arith.constant 0 : i32
    %c0_i32_1 = arith.constant 0 : i32
    return %c0_i32, %c0_i32_0 : i32, i32
  }
  func.func @transform_5(%arg0: i32, %arg1: i32) -> (i32, i32) {
    %c0_i32 = arith.constant 0 : i32
    %c0_i32_0 = arith.constant 0 : i32
    %c0_i32_1 = arith.constant 0 : i32
    return %c0_i32, %c0_i32_0 : i32, i32
  }
  func.func @transform_6(%arg0: i32, %arg1: i32) -> (i32, i32, i32) {
    %c0_i32 = arith.constant 0 : i32
    %c0_i32_0 = arith.constant 0 : i32
    return %arg0, %arg1, %c0_i32 : i32, i32, i32
  }
  func.func @transform_7(%arg0: i32, %arg1: i32) -> (i32, i32, i32, i32) {
    %c0_i32 = arith.constant 0 : i32
    %c0_i32_0 = arith.constant 0 : i32
    %c0_i32_1 = arith.constant 0 : i32
    return %arg0, %c0_i32, %arg1, %c0_i32_0 : i32, i32, i32, i32
  }
  func.func @transform_8(%arg0: i32, %arg1: i32) -> (i32, i32, i32) {
    %c0_i32 = arith.constant 0 : i32
    %c0_i32_0 = arith.constant 0 : i32
    return %arg0, %arg1, %c0_i32 : i32, i32, i32
  }
}

module attributes {stable_mosaic.version = 11 : i64} {
  func.func @_fused_mlp_max_kernel(%arg0: i32, %arg1: i32, %arg2: memref<3x16xbf16, #tpu.memory_space<vmem>>, %arg3: memref<1x16xf32, #tpu.memory_space<vmem>>, %arg4: memref<16x16xbf16, #tpu.memory_space<vmem>>, %arg5: memref<1x16xf32, #tpu.memory_space<vmem>>, %arg6: memref<16x32xbf16, #tpu.memory_space<vmem>>, %arg7: memref<1x32xf32, #tpu.memory_space<vmem>>, %arg8: memref<1x32x3xbf16, #tpu.memory_space<vmem>>, %arg9: memref<1x8x32x3xbf16, #tpu.memory_space<vmem>>, %arg10: memref<1x32x32xbf16, #tpu.memory_space<vmem>>) attributes {dimension_semantics = [#tpu.dimension_semantics<parallel>, #tpu.dimension_semantics<parallel>], iteration_bounds = array<i64: 2, 1>, scalar_prefetch = 0 : i64, scratch_operands = 0 : i64, tpu.core_type = #tpu.core_type<tc>, window_params = [{pipeline_mode = #tpu.pipeline_mode<synchronous>, transform_indices = @transform_0, window_bounds = array<i64: 3, 16>}, {pipeline_mode = #tpu.pipeline_mode<synchronous>, transform_indices = @transform_1, window_bounds = array<i64: 1, 16>}, {pipeline_mode = #tpu.pipeline_mode<synchronous>, transform_indices = @transform_2, window_bounds = array<i64: 16, 16>}, {pipeline_mode = #tpu.pipeline_mode<synchronous>, transform_indices = @transform_3, window_bounds = array<i64: 1, 16>}, {pipeline_mode = #tpu.pipeline_mode<synchronous>, transform_indices = @transform_4, window_bounds = array<i64: 16, 32>}, {pipeline_mode = #tpu.pipeline_mode<synchronous>, transform_indices = @transform_5, window_bounds = array<i64: 1, 32>}, {transform_indices = @transform_6, window_bounds = array<i64: 1, 32, 3>}, {transform_indices = @transform_7, window_bounds = array<i64: 1, 8, 32, 3>}, {transform_indices = @transform_8, window_bounds = array<i64: 1, 32, 32>}]} {
    %c0 = arith.constant 0 : index
    %c0_0 = arith.constant 0 : index
    %0 = vector.load %arg2[%c0, %c0_0] : memref<3x16xbf16, #tpu.memory_space<vmem>>, vector<3x16xbf16>
    %c0_1 = arith.constant 0 : index
    %c0_2 = arith.constant 0 : index
    %1 = vector.load %arg4[%c0_1, %c0_2] : memref<16x16xbf16, #tpu.memory_space<vmem>>, vector<16x16xbf16>
    %c0_3 = arith.constant 0 : index
    %c0_4 = arith.constant 0 : index
    %2 = vector.load %arg6[%c0_3, %c0_4] : memref<16x32xbf16, #tpu.memory_space<vmem>>, vector<16x32xbf16>
    %c0_5 = arith.constant 0 : index
    %c0_6 = arith.constant 0 : index
    %3 = vector.load %arg3[%c0_5, %c0_6] : memref<1x16xf32, #tpu.memory_space<vmem>>, vector<1x16xf32>
    %c0_7 = arith.constant 0 : index
    %c0_8 = arith.constant 0 : index
    %4 = vector.load %arg5[%c0_7, %c0_8] : memref<1x16xf32, #tpu.memory_space<vmem>>, vector<1x16xf32>
    %c0_9 = arith.constant 0 : index
    %c0_10 = arith.constant 0 : index
    %5 = vector.load %arg7[%c0_9, %c0_10] : memref<1x32xf32, #tpu.memory_space<vmem>>, vector<1x32xf32>
    %c0_11 = arith.constant 0 : index
    %c0_12 = arith.constant 0 : index
    %c0_13 = arith.constant 0 : index
    %6 = vector.load %arg8[%c0_11, %c0_12, %c0_13] : memref<1x32x3xbf16, #tpu.memory_space<vmem>>, vector<1x32x3xbf16>
    %7 = vector.shape_cast %6 : vector<1x32x3xbf16> to vector<32x3xbf16>
    %c0_14 = arith.constant 0 : index
    %c0_15 = arith.constant 0 : index
    %c0_16 = arith.constant 0 : index
    %c0_17 = arith.constant 0 : index
    %8 = vector.load %arg9[%c0_14, %c0_15, %c0_16, %c0_17] : memref<1x8x32x3xbf16, #tpu.memory_space<vmem>>, vector<1x1x32x3xbf16>
    %9 = vector.shape_cast %8 : vector<1x1x32x3xbf16> to vector<32x3xbf16>
    %10 = arith.subf %9, %7 : vector<32x3xbf16>
    %cst = arith.constant dense<0.000000e+00> : vector<32x16xf32>
    %11 = tpu.matmul %10, %0, %cst {dimension_numbers = #tpu.dot_dimension_numbers<[1], [0], [0], [1], [0, 0, 1, 1], [], []>} : vector<32x3xbf16>, vector<3x16xbf16>, vector<32x16xf32> -> vector<32x16xf32>
    %12 = vector.broadcast %3 : vector<1x16xf32> to vector<32x16xf32>
    %13 = arith.addf %11, %12 : vector<32x16xf32>
    %cst_18 = arith.constant 0.000000e+00 : f32
    %14 = vector.broadcast %cst_18 : f32 to vector<32x16xf32>
    %15 = arith.maximumf %13, %14 : vector<32x16xf32>
    %16 = arith.truncf %15 : vector<32x16xf32> to vector<32x16xbf16>
    %cst_19 = arith.constant dense<0.000000e+00> : vector<32x16xf32>
    %17 = tpu.matmul %16, %1, %cst_19 {dimension_numbers = #tpu.dot_dimension_numbers<[1], [0], [0], [1], [0, 0, 1, 1], [], []>} : vector<32x16xbf16>, vector<16x16xbf16>, vector<32x16xf32> -> vector<32x16xf32>
    %18 = vector.broadcast %4 : vector<1x16xf32> to vector<32x16xf32>
    %19 = arith.addf %17, %18 : vector<32x16xf32>
    %cst_20 = arith.constant 0.000000e+00 : f32
    %20 = vector.broadcast %cst_20 : f32 to vector<32x16xf32>
    %21 = arith.maximumf %19, %20 : vector<32x16xf32>
    %22 = arith.truncf %21 : vector<32x16xf32> to vector<32x16xbf16>
    %cst_21 = arith.constant dense<0.000000e+00> : vector<32x32xf32>
    %23 = tpu.matmul %22, %2, %cst_21 {dimension_numbers = #tpu.dot_dimension_numbers<[1], [0], [0], [1], [0, 0, 1, 1], [], []>} : vector<32x16xbf16>, vector<16x32xbf16>, vector<32x32xf32> -> vector<32x32xf32>
    %24 = vector.broadcast %5 : vector<1x32xf32> to vector<32x32xf32>
    %25 = arith.addf %23, %24 : vector<32x32xf32>
    %cst_22 = arith.constant 0.000000e+00 : f32
    %26 = vector.broadcast %cst_22 : f32 to vector<32x32xf32>
    %27 = arith.maximumf %25, %26 : vector<32x32xf32>
    %c0_23 = arith.constant 0 : index
    %c1 = arith.constant 1 : index
    %c0_24 = arith.constant 0 : index
    %c0_25 = arith.constant 0 : index
    %28 = vector.load %arg9[%c0_23, %c1, %c0_24, %c0_25] : memref<1x8x32x3xbf16, #tpu.memory_space<vmem>>, vector<1x1x32x3xbf16>
    %29 = vector.shape_cast %28 : vector<1x1x32x3xbf16> to vector<32x3xbf16>
    %30 = arith.subf %29, %7 : vector<32x3xbf16>
    %cst_26 = arith.constant dense<0.000000e+00> : vector<32x16xf32>
    %31 = tpu.matmul %30, %0, %cst_26 {dimension_numbers = #tpu.dot_dimension_numbers<[1], [0], [0], [1], [0, 0, 1, 1], [], []>} : vector<32x3xbf16>, vector<3x16xbf16>, vector<32x16xf32> -> vector<32x16xf32>
    %32 = vector.broadcast %3 : vector<1x16xf32> to vector<32x16xf32>
    %33 = arith.addf %31, %32 : vector<32x16xf32>
    %cst_27 = arith.constant 0.000000e+00 : f32
    %34 = vector.broadcast %cst_27 : f32 to vector<32x16xf32>
    %35 = arith.maximumf %33, %34 : vector<32x16xf32>
    %36 = arith.truncf %35 : vector<32x16xf32> to vector<32x16xbf16>
    %cst_28 = arith.constant dense<0.000000e+00> : vector<32x16xf32>
    %37 = tpu.matmul %36, %1, %cst_28 {dimension_numbers = #tpu.dot_dimension_numbers<[1], [0], [0], [1], [0, 0, 1, 1], [], []>} : vector<32x16xbf16>, vector<16x16xbf16>, vector<32x16xf32> -> vector<32x16xf32>
    %38 = vector.broadcast %4 : vector<1x16xf32> to vector<32x16xf32>
    %39 = arith.addf %37, %38 : vector<32x16xf32>
    %cst_29 = arith.constant 0.000000e+00 : f32
    %40 = vector.broadcast %cst_29 : f32 to vector<32x16xf32>
    %41 = arith.maximumf %39, %40 : vector<32x16xf32>
    %42 = arith.truncf %41 : vector<32x16xf32> to vector<32x16xbf16>
    %cst_30 = arith.constant dense<0.000000e+00> : vector<32x32xf32>
    %43 = tpu.matmul %42, %2, %cst_30 {dimension_numbers = #tpu.dot_dimension_numbers<[1], [0], [0], [1], [0, 0, 1, 1], [], []>} : vector<32x16xbf16>, vector<16x32xbf16>, vector<32x32xf32> -> vector<32x32xf32>
    %44 = vector.broadcast %5 : vector<1x32xf32> to vector<32x32xf32>
    %45 = arith.addf %43, %44 : vector<32x32xf32>
    %cst_31 = arith.constant 0.000000e+00 : f32
    %46 = vector.broadcast %cst_31 : f32 to vector<32x32xf32>
    %47 = arith.maximumf %45, %46 : vector<32x32xf32>
    %48 = arith.maximumf %27, %47 : vector<32x32xf32>
    %c0_32 = arith.constant 0 : index
    %c2 = arith.constant 2 : index
    %c0_33 = arith.constant 0 : index
    %c0_34 = arith.constant 0 : index
    %49 = vector.load %arg9[%c0_32, %c2, %c0_33, %c0_34] : memref<1x8x32x3xbf16, #tpu.memory_space<vmem>>, vector<1x1x32x3xbf16>
    %50 = vector.shape_cast %49 : vector<1x1x32x3xbf16> to vector<32x3xbf16>
    %51 = arith.subf %50, %7 : vector<32x3xbf16>
    %cst_35 = arith.constant dense<0.000000e+00> : vector<32x16xf32>
    %52 = tpu.matmul %51, %0, %cst_35 {dimension_numbers = #tpu.dot_dimension_numbers<[1], [0], [0], [1], [0, 0, 1, 1], [], []>} : vector<32x3xbf16>, vector<3x16xbf16>, vector<32x16xf32> -> vector<32x16xf32>
    %53 = vector.broadcast %3 : vector<1x16xf32> to vector<32x16xf32>
    %54 = arith.addf %52, %53 : vector<32x16xf32>
    %cst_36 = arith.constant 0.000000e+00 : f32
    %55 = vector.broadcast %cst_36 : f32 to vector<32x16xf32>
    %56 = arith.maximumf %54, %55 : vector<32x16xf32>
    %57 = arith.truncf %56 : vector<32x16xf32> to vector<32x16xbf16>
    %cst_37 = arith.constant dense<0.000000e+00> : vector<32x16xf32>
    %58 = tpu.matmul %57, %1, %cst_37 {dimension_numbers = #tpu.dot_dimension_numbers<[1], [0], [0], [1], [0, 0, 1, 1], [], []>} : vector<32x16xbf16>, vector<16x16xbf16>, vector<32x16xf32> -> vector<32x16xf32>
    %59 = vector.broadcast %4 : vector<1x16xf32> to vector<32x16xf32>
    %60 = arith.addf %58, %59 : vector<32x16xf32>
    %cst_38 = arith.constant 0.000000e+00 : f32
    %61 = vector.broadcast %cst_38 : f32 to vector<32x16xf32>
    %62 = arith.maximumf %60, %61 : vector<32x16xf32>
    %63 = arith.truncf %62 : vector<32x16xf32> to vector<32x16xbf16>
    %cst_39 = arith.constant dense<0.000000e+00> : vector<32x32xf32>
    %64 = tpu.matmul %63, %2, %cst_39 {dimension_numbers = #tpu.dot_dimension_numbers<[1], [0], [0], [1], [0, 0, 1, 1], [], []>} : vector<32x16xbf16>, vector<16x32xbf16>, vector<32x32xf32> -> vector<32x32xf32>
    %65 = vector.broadcast %5 : vector<1x32xf32> to vector<32x32xf32>
    %66 = arith.addf %64, %65 : vector<32x32xf32>
    %cst_40 = arith.constant 0.000000e+00 : f32
    %67 = vector.broadcast %cst_40 : f32 to vector<32x32xf32>
    %68 = arith.maximumf %66, %67 : vector<32x32xf32>
    %69 = arith.maximumf %48, %68 : vector<32x32xf32>
    %c0_41 = arith.constant 0 : index
    %c3 = arith.constant 3 : index
    %c0_42 = arith.constant 0 : index
    %c0_43 = arith.constant 0 : index
    %70 = vector.load %arg9[%c0_41, %c3, %c0_42, %c0_43] : memref<1x8x32x3xbf16, #tpu.memory_space<vmem>>, vector<1x1x32x3xbf16>
    %71 = vector.shape_cast %70 : vector<1x1x32x3xbf16> to vector<32x3xbf16>
    %72 = arith.subf %71, %7 : vector<32x3xbf16>
    %cst_44 = arith.constant dense<0.000000e+00> : vector<32x16xf32>
    %73 = tpu.matmul %72, %0, %cst_44 {dimension_numbers = #tpu.dot_dimension_numbers<[1], [0], [0], [1], [0, 0, 1, 1], [], []>} : vector<32x3xbf16>, vector<3x16xbf16>, vector<32x16xf32> -> vector<32x16xf32>
    %74 = vector.broadcast %3 : vector<1x16xf32> to vector<32x16xf32>
    %75 = arith.addf %73, %74 : vector<32x16xf32>
    %cst_45 = arith.constant 0.000000e+00 : f32
    %76 = vector.broadcast %cst_45 : f32 to vector<32x16xf32>
    %77 = arith.maximumf %75, %76 : vector<32x16xf32>
    %78 = arith.truncf %77 : vector<32x16xf32> to vector<32x16xbf16>
    %cst_46 = arith.constant dense<0.000000e+00> : vector<32x16xf32>
    %79 = tpu.matmul %78, %1, %cst_46 {dimension_numbers = #tpu.dot_dimension_numbers<[1], [0], [0], [1], [0, 0, 1, 1], [], []>} : vector<32x16xbf16>, vector<16x16xbf16>, vector<32x16xf32> -> vector<32x16xf32>
    %80 = vector.broadcast %4 : vector<1x16xf32> to vector<32x16xf32>
    %81 = arith.addf %79, %80 : vector<32x16xf32>
    %cst_47 = arith.constant 0.000000e+00 : f32
    %82 = vector.broadcast %cst_47 : f32 to vector<32x16xf32>
    %83 = arith.maximumf %81, %82 : vector<32x16xf32>
    %84 = arith.truncf %83 : vector<32x16xf32> to vector<32x16xbf16>
    %cst_48 = arith.constant dense<0.000000e+00> : vector<32x32xf32>
    %85 = tpu.matmul %84, %2, %cst_48 {dimension_numbers = #tpu.dot_dimension_numbers<[1], [0], [0], [1], [0, 0, 1, 1], [], []>} : vector<32x16xbf16>, vector<16x32xbf16>, vector<32x32xf32> -> vector<32x32xf32>
    %86 = vector.broadcast %5 : vector<1x32xf32> to vector<32x32xf32>
    %87 = arith.addf %85, %86 : vector<32x32xf32>
    %cst_49 = arith.constant 0.000000e+00 : f32
    %88 = vector.broadcast %cst_49 : f32 to vector<32x32xf32>
    %89 = arith.maximumf %87, %88 : vector<32x32xf32>
    %90 = arith.maximumf %69, %89 : vector<32x32xf32>
    %c0_50 = arith.constant 0 : index
    %c4 = arith.constant 4 : index
    %c0_51 = arith.constant 0 : index
    %c0_52 = arith.constant 0 : index
    %91 = vector.load %arg9[%c0_50, %c4, %c0_51, %c0_52] : memref<1x8x32x3xbf16, #tpu.memory_space<vmem>>, vector<1x1x32x3xbf16>
    %92 = vector.shape_cast %91 : vector<1x1x32x3xbf16> to vector<32x3xbf16>
    %93 = arith.subf %92, %7 : vector<32x3xbf16>
    %cst_53 = arith.constant dense<0.000000e+00> : vector<32x16xf32>
    %94 = tpu.matmul %93, %0, %cst_53 {dimension_numbers = #tpu.dot_dimension_numbers<[1], [0], [0], [1], [0, 0, 1, 1], [], []>} : vector<32x3xbf16>, vector<3x16xbf16>, vector<32x16xf32> -> vector<32x16xf32>
    %95 = vector.broadcast %3 : vector<1x16xf32> to vector<32x16xf32>
    %96 = arith.addf %94, %95 : vector<32x16xf32>
    %cst_54 = arith.constant 0.000000e+00 : f32
    %97 = vector.broadcast %cst_54 : f32 to vector<32x16xf32>
    %98 = arith.maximumf %96, %97 : vector<32x16xf32>
    %99 = arith.truncf %98 : vector<32x16xf32> to vector<32x16xbf16>
    %cst_55 = arith.constant dense<0.000000e+00> : vector<32x16xf32>
    %100 = tpu.matmul %99, %1, %cst_55 {dimension_numbers = #tpu.dot_dimension_numbers<[1], [0], [0], [1], [0, 0, 1, 1], [], []>} : vector<32x16xbf16>, vector<16x16xbf16>, vector<32x16xf32> -> vector<32x16xf32>
    %101 = vector.broadcast %4 : vector<1x16xf32> to vector<32x16xf32>
    %102 = arith.addf %100, %101 : vector<32x16xf32>
    %cst_56 = arith.constant 0.000000e+00 : f32
    %103 = vector.broadcast %cst_56 : f32 to vector<32x16xf32>
    %104 = arith.maximumf %102, %103 : vector<32x16xf32>
    %105 = arith.truncf %104 : vector<32x16xf32> to vector<32x16xbf16>
    %cst_57 = arith.constant dense<0.000000e+00> : vector<32x32xf32>
    %106 = tpu.matmul %105, %2, %cst_57 {dimension_numbers = #tpu.dot_dimension_numbers<[1], [0], [0], [1], [0, 0, 1, 1], [], []>} : vector<32x16xbf16>, vector<16x32xbf16>, vector<32x32xf32> -> vector<32x32xf32>
    %107 = vector.broadcast %5 : vector<1x32xf32> to vector<32x32xf32>
    %108 = arith.addf %106, %107 : vector<32x32xf32>
    %cst_58 = arith.constant 0.000000e+00 : f32
    %109 = vector.broadcast %cst_58 : f32 to vector<32x32xf32>
    %110 = arith.maximumf %108, %109 : vector<32x32xf32>
    %111 = arith.maximumf %90, %110 : vector<32x32xf32>
    %c0_59 = arith.constant 0 : index
    %c5 = arith.constant 5 : index
    %c0_60 = arith.constant 0 : index
    %c0_61 = arith.constant 0 : index
    %112 = vector.load %arg9[%c0_59, %c5, %c0_60, %c0_61] : memref<1x8x32x3xbf16, #tpu.memory_space<vmem>>, vector<1x1x32x3xbf16>
    %113 = vector.shape_cast %112 : vector<1x1x32x3xbf16> to vector<32x3xbf16>
    %114 = arith.subf %113, %7 : vector<32x3xbf16>
    %cst_62 = arith.constant dense<0.000000e+00> : vector<32x16xf32>
    %115 = tpu.matmul %114, %0, %cst_62 {dimension_numbers = #tpu.dot_dimension_numbers<[1], [0], [0], [1], [0, 0, 1, 1], [], []>} : vector<32x3xbf16>, vector<3x16xbf16>, vector<32x16xf32> -> vector<32x16xf32>
    %116 = vector.broadcast %3 : vector<1x16xf32> to vector<32x16xf32>
    %117 = arith.addf %115, %116 : vector<32x16xf32>
    %cst_63 = arith.constant 0.000000e+00 : f32
    %118 = vector.broadcast %cst_63 : f32 to vector<32x16xf32>
    %119 = arith.maximumf %117, %118 : vector<32x16xf32>
    %120 = arith.truncf %119 : vector<32x16xf32> to vector<32x16xbf16>
    %cst_64 = arith.constant dense<0.000000e+00> : vector<32x16xf32>
    %121 = tpu.matmul %120, %1, %cst_64 {dimension_numbers = #tpu.dot_dimension_numbers<[1], [0], [0], [1], [0, 0, 1, 1], [], []>} : vector<32x16xbf16>, vector<16x16xbf16>, vector<32x16xf32> -> vector<32x16xf32>
    %122 = vector.broadcast %4 : vector<1x16xf32> to vector<32x16xf32>
    %123 = arith.addf %121, %122 : vector<32x16xf32>
    %cst_65 = arith.constant 0.000000e+00 : f32
    %124 = vector.broadcast %cst_65 : f32 to vector<32x16xf32>
    %125 = arith.maximumf %123, %124 : vector<32x16xf32>
    %126 = arith.truncf %125 : vector<32x16xf32> to vector<32x16xbf16>
    %cst_66 = arith.constant dense<0.000000e+00> : vector<32x32xf32>
    %127 = tpu.matmul %126, %2, %cst_66 {dimension_numbers = #tpu.dot_dimension_numbers<[1], [0], [0], [1], [0, 0, 1, 1], [], []>} : vector<32x16xbf16>, vector<16x32xbf16>, vector<32x32xf32> -> vector<32x32xf32>
    %128 = vector.broadcast %5 : vector<1x32xf32> to vector<32x32xf32>
    %129 = arith.addf %127, %128 : vector<32x32xf32>
    %cst_67 = arith.constant 0.000000e+00 : f32
    %130 = vector.broadcast %cst_67 : f32 to vector<32x32xf32>
    %131 = arith.maximumf %129, %130 : vector<32x32xf32>
    %132 = arith.maximumf %111, %131 : vector<32x32xf32>
    %c0_68 = arith.constant 0 : index
    %c6 = arith.constant 6 : index
    %c0_69 = arith.constant 0 : index
    %c0_70 = arith.constant 0 : index
    %133 = vector.load %arg9[%c0_68, %c6, %c0_69, %c0_70] : memref<1x8x32x3xbf16, #tpu.memory_space<vmem>>, vector<1x1x32x3xbf16>
    %134 = vector.shape_cast %133 : vector<1x1x32x3xbf16> to vector<32x3xbf16>
    %135 = arith.subf %134, %7 : vector<32x3xbf16>
    %cst_71 = arith.constant dense<0.000000e+00> : vector<32x16xf32>
    %136 = tpu.matmul %135, %0, %cst_71 {dimension_numbers = #tpu.dot_dimension_numbers<[1], [0], [0], [1], [0, 0, 1, 1], [], []>} : vector<32x3xbf16>, vector<3x16xbf16>, vector<32x16xf32> -> vector<32x16xf32>
    %137 = vector.broadcast %3 : vector<1x16xf32> to vector<32x16xf32>
    %138 = arith.addf %136, %137 : vector<32x16xf32>
    %cst_72 = arith.constant 0.000000e+00 : f32
    %139 = vector.broadcast %cst_72 : f32 to vector<32x16xf32>
    %140 = arith.maximumf %138, %139 : vector<32x16xf32>
    %141 = arith.truncf %140 : vector<32x16xf32> to vector<32x16xbf16>
    %cst_73 = arith.constant dense<0.000000e+00> : vector<32x16xf32>
    %142 = tpu.matmul %141, %1, %cst_73 {dimension_numbers = #tpu.dot_dimension_numbers<[1], [0], [0], [1], [0, 0, 1, 1], [], []>} : vector<32x16xbf16>, vector<16x16xbf16>, vector<32x16xf32> -> vector<32x16xf32>
    %143 = vector.broadcast %4 : vector<1x16xf32> to vector<32x16xf32>
    %144 = arith.addf %142, %143 : vector<32x16xf32>
    %cst_74 = arith.constant 0.000000e+00 : f32
    %145 = vector.broadcast %cst_74 : f32 to vector<32x16xf32>
    %146 = arith.maximumf %144, %145 : vector<32x16xf32>
    %147 = arith.truncf %146 : vector<32x16xf32> to vector<32x16xbf16>
    %cst_75 = arith.constant dense<0.000000e+00> : vector<32x32xf32>
    %148 = tpu.matmul %147, %2, %cst_75 {dimension_numbers = #tpu.dot_dimension_numbers<[1], [0], [0], [1], [0, 0, 1, 1], [], []>} : vector<32x16xbf16>, vector<16x32xbf16>, vector<32x32xf32> -> vector<32x32xf32>
    %149 = vector.broadcast %5 : vector<1x32xf32> to vector<32x32xf32>
    %150 = arith.addf %148, %149 : vector<32x32xf32>
    %cst_76 = arith.constant 0.000000e+00 : f32
    %151 = vector.broadcast %cst_76 : f32 to vector<32x32xf32>
    %152 = arith.maximumf %150, %151 : vector<32x32xf32>
    %153 = arith.maximumf %132, %152 : vector<32x32xf32>
    %c0_77 = arith.constant 0 : index
    %c7 = arith.constant 7 : index
    %c0_78 = arith.constant 0 : index
    %c0_79 = arith.constant 0 : index
    %154 = vector.load %arg9[%c0_77, %c7, %c0_78, %c0_79] : memref<1x8x32x3xbf16, #tpu.memory_space<vmem>>, vector<1x1x32x3xbf16>
    %155 = vector.shape_cast %154 : vector<1x1x32x3xbf16> to vector<32x3xbf16>
    %156 = arith.subf %155, %7 : vector<32x3xbf16>
    %cst_80 = arith.constant dense<0.000000e+00> : vector<32x16xf32>
    %157 = tpu.matmul %156, %0, %cst_80 {dimension_numbers = #tpu.dot_dimension_numbers<[1], [0], [0], [1], [0, 0, 1, 1], [], []>} : vector<32x3xbf16>, vector<3x16xbf16>, vector<32x16xf32> -> vector<32x16xf32>
    %158 = vector.broadcast %3 : vector<1x16xf32> to vector<32x16xf32>
    %159 = arith.addf %157, %158 : vector<32x16xf32>
    %cst_81 = arith.constant 0.000000e+00 : f32
    %160 = vector.broadcast %cst_81 : f32 to vector<32x16xf32>
    %161 = arith.maximumf %159, %160 : vector<32x16xf32>
    %162 = arith.truncf %161 : vector<32x16xf32> to vector<32x16xbf16>
    %cst_82 = arith.constant dense<0.000000e+00> : vector<32x16xf32>
    %163 = tpu.matmul %162, %1, %cst_82 {dimension_numbers = #tpu.dot_dimension_numbers<[1], [0], [0], [1], [0, 0, 1, 1], [], []>} : vector<32x16xbf16>, vector<16x16xbf16>, vector<32x16xf32> -> vector<32x16xf32>
    %164 = vector.broadcast %4 : vector<1x16xf32> to vector<32x16xf32>
    %165 = arith.addf %163, %164 : vector<32x16xf32>
    %cst_83 = arith.constant 0.000000e+00 : f32
    %166 = vector.broadcast %cst_83 : f32 to vector<32x16xf32>
    %167 = arith.maximumf %165, %166 : vector<32x16xf32>
    %168 = arith.truncf %167 : vector<32x16xf32> to vector<32x16xbf16>
    %cst_84 = arith.constant dense<0.000000e+00> : vector<32x32xf32>
    %169 = tpu.matmul %168, %2, %cst_84 {dimension_numbers = #tpu.dot_dimension_numbers<[1], [0], [0], [1], [0, 0, 1, 1], [], []>} : vector<32x16xbf16>, vector<16x32xbf16>, vector<32x32xf32> -> vector<32x32xf32>
    %170 = vector.broadcast %5 : vector<1x32xf32> to vector<32x32xf32>
    %171 = arith.addf %169, %170 : vector<32x32xf32>
    %cst_85 = arith.constant 0.000000e+00 : f32
    %172 = vector.broadcast %cst_85 : f32 to vector<32x32xf32>
    %173 = arith.maximumf %171, %172 : vector<32x32xf32>
    %174 = arith.maximumf %153, %173 : vector<32x32xf32>
    %175 = arith.truncf %174 : vector<32x32xf32> to vector<32x32xbf16>
    %c0_86 = arith.constant 0 : index
    %c0_87 = arith.constant 0 : index
    %c0_88 = arith.constant 0 : index
    %176 = vector.load %arg10[%c0_86, %c0_87, %c0_88] : memref<1x32x32xbf16, #tpu.memory_space<vmem>>, vector<1x32x32xbf16>
    %177 = vector.shape_cast %176 : vector<1x32x32xbf16> to vector<32x32xbf16>
    %178 = vector.shape_cast %175 : vector<32x32xbf16> to vector<1x32x32xbf16>
    tpu.vector_store %arg10[%c0_86, %c0_87, %c0_88], %178 {strides = array<i32>} : memref<1x32x32xbf16, #tpu.memory_space<vmem>>, vector<1x32x32xbf16>,
    return
  }
  func.func @transform_0(%arg0: i32, %arg1: i32) -> (i32, i32) {
    %c0_i32 = arith.constant 0 : i32
    %c0_i32_0 = arith.constant 0 : i32
    %c0_i32_1 = arith.constant 0 : i32
    return %c0_i32, %c0_i32_0 : i32, i32
  }
  func.func @transform_1(%arg0: i32, %arg1: i32) -> (i32, i32) {
    %c0_i32 = arith.constant 0 : i32
    %c0_i32_0 = arith.constant 0 : i32
    %c0_i32_1 = arith.constant 0 : i32
    return %c0_i32, %c0_i32_0 : i32, i32
  }
  func.func @transform_2(%arg0: i32, %arg1: i32) -> (i32, i32) {
    %c0_i32 = arith.constant 0 : i32
    %c0_i32_0 = arith.constant 0 : i32
    %c0_i32_1 = arith.constant 0 : i32
    return %c0_i32, %c0_i32_0 : i32, i32
  }
  func.func @transform_3(%arg0: i32, %arg1: i32) -> (i32, i32) {
    %c0_i32 = arith.constant 0 : i32
    %c0_i32_0 = arith.constant 0 : i32
    %c0_i32_1 = arith.constant 0 : i32
    return %c0_i32, %c0_i32_0 : i32, i32
  }
  func.func @transform_4(%arg0: i32, %arg1: i32) -> (i32, i32) {
    %c0_i32 = arith.constant 0 : i32
    %c0_i32_0 = arith.constant 0 : i32
    %c0_i32_1 = arith.constant 0 : i32
    return %c0_i32, %c0_i32_0 : i32, i32
  }
  func.func @transform_5(%arg0: i32, %arg1: i32) -> (i32, i32) {
    %c0_i32 = arith.constant 0 : i32
    %c0_i32_0 = arith.constant 0 : i32
    %c0_i32_1 = arith.constant 0 : i32
    return %c0_i32, %c0_i32_0 : i32, i32
  }
  func.func @transform_6(%arg0: i32, %arg1: i32) -> (i32, i32, i32) {
    %c0_i32 = arith.constant 0 : i32
    %c0_i32_0 = arith.constant 0 : i32
    return %arg0, %arg1, %c0_i32 : i32, i32, i32
  }
  func.func @transform_7(%arg0: i32, %arg1: i32) -> (i32, i32, i32, i32) {
    %c0_i32 = arith.constant 0 : i32
    %c0_i32_0 = arith.constant 0 : i32
    %c0_i32_1 = arith.constant 0 : i32
    return %arg0, %c0_i32, %arg1, %c0_i32_0 : i32, i32, i32, i32
  }
  func.func @transform_8(%arg0: i32, %arg1: i32) -> (i32, i32, i32) {
    %c0_i32 = arith.constant 0 : i32
    %c0_i32_0 = arith.constant 0 : i32
    return %arg0, %arg1, %c0_i32 : i32, i32, i32
  }
}

module attributes {stable_mosaic.version = 11 : i64} {
  func.func @_fps_kernel(%arg0: i32, %arg1: memref<1x3x32xf32, #tpu.memory_space<vmem>>, %arg2: memref<1x1x8xi32, #tpu.memory_space<vmem>>, %arg3: memref<1x32xf32, #tpu.memory_space<vmem>>) attributes {dimension_semantics = [#tpu.dimension_semantics<parallel>], iteration_bounds = array<i64: 2>, scalar_prefetch = 0 : i64, scratch_operands = 1 : i64, tpu.core_type = #tpu.core_type<tc>, window_params = [{transform_indices = @transform_0, window_bounds = array<i64: 1, 3, 32>}, {transform_indices = @transform_1, window_bounds = array<i64: 1, 1, 8>}]} {
    %c0 = arith.constant 0 : index
    %c0_0 = arith.constant 0 : index
    %c0_1 = arith.constant 0 : index
    %0 = vector.load %arg1[%c0, %c0_0, %c0_1] : memref<1x3x32xf32, #tpu.memory_space<vmem>>, vector<1x3x32xf32>
    %1 = vector.shape_cast %0 : vector<1x3x32xf32> to vector<3x32xf32>
    %2 = tpu.iota {dimensions = array<i32: 1>} : vector<1x32xi32>
    %3 = arith.sitofp %2 : vector<1x32xi32> to vector<1x32xf32>
    %4 = tpu.iota {dimensions = array<i32: 1>} : vector<1x8xi32>
    %c0_i32 = arith.constant 0 : i32
    %5 = vector.broadcast %c0_i32 : i32 to vector<1x8xi32>
    %c0_2 = arith.constant 0 : index
    %c0_3 = arith.constant 0 : index
    %c0_4 = arith.constant 0 : index
    %6 = vector.load %arg2[%c0_2, %c0_3, %c0_4] : memref<1x1x8xi32, #tpu.memory_space<vmem>>, vector<1x1x8xi32>
    %7 = vector.shape_cast %6 : vector<1x1x8xi32> to vector<1x8xi32>
    %8 = vector.shape_cast %5 : vector<1x8xi32> to vector<1x1x8xi32>
    tpu.vector_store %arg2[%c0_2, %c0_3, %c0_4], %8 {strides = array<i32>} : memref<1x1x8xi32, #tpu.memory_space<vmem>>, vector<1x1x8xi32>,
    %cst = arith.constant 1.000000e+10 : f32
    %9 = vector.broadcast %cst : f32 to vector<1x32xf32>
    %c0_5 = arith.constant 0 : index
    %c0_6 = arith.constant 0 : index
    %10 = vector.load %arg3[%c0_5, %c0_6] : memref<1x32xf32, #tpu.memory_space<vmem>>, vector<1x32xf32>
    tpu.vector_store %arg3[%c0_5, %c0_6], %9 {strides = array<i32>} : memref<1x32xf32, #tpu.memory_space<vmem>>, vector<1x32xf32>,
    %c0_i32_7 = arith.constant 0 : i32
    %11 = vector.broadcast %c0_i32_7 : i32 to vector<1x1xi32>
    %c1_i32 = arith.constant 1 : i32
    %c7_i32 = arith.constant 7 : i32
    %12 = arith.addi %c1_i32, %c7_i32 : i32
    %c1_i32_8 = arith.constant 1 : i32
    %13 = scf.for %arg4 = %c1_i32 to %12 step %c1_i32_8 iter_args(%arg5 = %11) -> (vector<1x1xi32>)  : i32 {
      %14 = vector.broadcast %arg5 : vector<1x1xi32> to vector<1x32xi32>
      %15 = arith.cmpi eq, %2, %14 : vector<1x32xi32>
      %cst_10 = arith.constant 0.000000e+00 : f32
      %16 = vector.shape_cast %15 : vector<1x32xi1> to vector<1x32xi1>
      %17 = vector.broadcast %16 : vector<1x32xi1> to vector<3x32xi1>
      %18 = vector.broadcast %cst_10 : f32 to vector<3x32xf32>
      %19 = arith.select %17, %1, %18 : vector<3x32xi1>, vector<3x32xf32>
      %cst_11 = arith.constant dense<0.000000e+00> : vector<3xf32>
      %20 = vector.multi_reduction <add>, %19, %cst_11 [1] : vector<3x32xf32> to vector<3xf32>
      %21 = vector.shape_cast %20 : vector<3xf32> to vector<3x1xf32>
      %22 = vector.broadcast %21 : vector<3x1xf32> to vector<3x32xf32>
      %23 = arith.subf %1, %22 : vector<3x32xf32>
      %24 = arith.mulf %23, %23 : vector<3x32xf32>
      %cst_12 = arith.constant dense<0.000000e+00> : vector<32xf32>
      %25 = vector.multi_reduction <add>, %24, %cst_12 [0] : vector<3x32xf32> to vector<32xf32>
      %26 = vector.shape_cast %25 : vector<32xf32> to vector<1x32xf32>
      %c0_13 = arith.constant 0 : index
      %c0_14 = arith.constant 0 : index
      %27 = vector.load %arg3[%c0_13, %c0_14] : memref<1x32xf32, #tpu.memory_space<vmem>>, vector<1x32xf32>
      %28 = arith.minimumf %27, %26 : vector<1x32xf32>
      %c0_15 = arith.constant 0 : index
      %c0_16 = arith.constant 0 : index
      %29 = vector.load %arg3[%c0_15, %c0_16] : memref<1x32xf32, #tpu.memory_space<vmem>>, vector<1x32xf32>
      tpu.vector_store %arg3[%c0_15, %c0_16], %28 {strides = array<i32>} : memref<1x32xf32, #tpu.memory_space<vmem>>, vector<1x32xf32>,
      %cst_17 = arith.constant dense<0xFF800000> : vector<1xf32>
      %30 = vector.multi_reduction <maximumf>, %28, %cst_17 [1] : vector<1x32xf32> to vector<1xf32>
      %31 = vector.shape_cast %30 : vector<1xf32> to vector<1x1xf32>
      %32 = vector.broadcast %31 : vector<1x1xf32> to vector<1x32xf32>
      %33 = arith.cmpf oeq, %28, %32 : vector<1x32xf32>
      %cst_18 = arith.constant 3.200000e+01 : f32
      %34 = vector.broadcast %cst_18 : f32 to vector<1x32xf32>
      %35 = arith.select %33, %3, %34 : vector<1x32xi1>, vector<1x32xf32>
      %cst_19 = arith.constant dense<0x7F800000> : vector<1xf32>
      %36 = vector.multi_reduction <minimumf>, %35, %cst_19 [1] : vector<1x32xf32> to vector<1xf32>
      %37 = vector.shape_cast %36 : vector<1xf32> to vector<1x1xf32>
      %38 = arith.fptosi %37 : vector<1x1xf32> to vector<1x1xi32>
      %c0_20 = arith.constant 0 : index
      %c0_21 = arith.constant 0 : index
      %c0_22 = arith.constant 0 : index
      %39 = vector.load %arg2[%c0_20, %c0_21, %c0_22] : memref<1x1x8xi32, #tpu.memory_space<vmem>>, vector<1x1x8xi32>
      %40 = vector.shape_cast %39 : vector<1x1x8xi32> to vector<1x8xi32>
      %41 = vector.broadcast %arg4 : i32 to vector<1x8xi32>
      %42 = arith.cmpi eq, %4, %41 : vector<1x8xi32>
      %43 = arith.extui %42 : vector<1x8xi1> to vector<1x8xi32>
      %44 = vector.broadcast %38 : vector<1x1xi32> to vector<1x8xi32>
      %45 = arith.muli %44, %43 : vector<1x8xi32>
      %46 = arith.addi %40, %45 : vector<1x8xi32>
      %c0_23 = arith.constant 0 : index
      %c0_24 = arith.constant 0 : index
      %c0_25 = arith.constant 0 : index
      %47 = vector.load %arg2[%c0_23, %c0_24, %c0_25] : memref<1x1x8xi32, #tpu.memory_space<vmem>>, vector<1x1x8xi32>
      %48 = vector.shape_cast %47 : vector<1x1x8xi32> to vector<1x8xi32>
      %49 = vector.shape_cast %46 : vector<1x8xi32> to vector<1x1x8xi32>
      tpu.vector_store %arg2[%c0_23, %c0_24, %c0_25], %49 {strides = array<i32>} : memref<1x1x8xi32, #tpu.memory_space<vmem>>, vector<1x1x8xi32>,
      scf.yield %38 : vector<1x1xi32>
    }
    %c7_i32_9 = arith.constant 7 : i32
    return
  }
  func.func @transform_0(%arg0: i32) -> (i32, i32, i32) {
    %c0_i32 = arith.constant 0 : i32
    %c0_i32_0 = arith.constant 0 : i32
    %c0_i32_1 = arith.constant 0 : i32
    return %arg0, %c0_i32, %c0_i32_0 : i32, i32, i32
  }
  func.func @transform_1(%arg0: i32) -> (i32, i32, i32) {
    %c0_i32 = arith.constant 0 : i32
    %c0_i32_0 = arith.constant 0 : i32
    %c0_i32_1 = arith.constant 0 : i32
    return %arg0, %c0_i32, %c0_i32_0 : i32, i32, i32
  }
}

module attributes {stable_mosaic.version = 11 : i64} {
  func.func @_pdist2_kernel(%arg0: i32, %arg1: memref<1x8x3xf32, #tpu.memory_space<vmem>>, %arg2: memref<1x3x32xf32, #tpu.memory_space<vmem>>, %arg3: memref<1x8x32xf32, #tpu.memory_space<vmem>>) attributes {dimension_semantics = [#tpu.dimension_semantics<parallel>], iteration_bounds = array<i64: 2>, scalar_prefetch = 0 : i64, scratch_operands = 0 : i64, tpu.core_type = #tpu.core_type<tc>, window_params = [{transform_indices = @transform_0, window_bounds = array<i64: 1, 8, 3>}, {transform_indices = @transform_1, window_bounds = array<i64: 1, 3, 32>}, {transform_indices = @transform_2, window_bounds = array<i64: 1, 8, 32>}]} {
    %c0 = arith.constant 0 : index
    %c0_0 = arith.constant 0 : index
    %c0_1 = arith.constant 0 : index
    %0 = vector.load %arg1[%c0, %c0_0, %c0_1] : memref<1x8x3xf32, #tpu.memory_space<vmem>>, vector<1x8x3xf32>
    %1 = vector.shape_cast %0 : vector<1x8x3xf32> to vector<8x3xf32>
    %c0_2 = arith.constant 0 : index
    %c0_3 = arith.constant 0 : index
    %c0_4 = arith.constant 0 : index
    %2 = vector.load %arg2[%c0_2, %c0_3, %c0_4] : memref<1x3x32xf32, #tpu.memory_space<vmem>>, vector<1x3x32xf32>
    %3 = vector.shape_cast %2 : vector<1x3x32xf32> to vector<3x32xf32>
    %4 = arith.mulf %1, %1 : vector<8x3xf32>
    %cst = arith.constant dense<0.000000e+00> : vector<8xf32>
    %5 = vector.multi_reduction <add>, %4, %cst [1] : vector<8x3xf32> to vector<8xf32>
    %6 = vector.shape_cast %5 : vector<8xf32> to vector<8x1xf32>
    %7 = arith.mulf %3, %3 : vector<3x32xf32>
    %cst_5 = arith.constant dense<0.000000e+00> : vector<32xf32>
    %8 = vector.multi_reduction <add>, %7, %cst_5 [0] : vector<3x32xf32> to vector<32xf32>
    %9 = vector.shape_cast %8 : vector<32xf32> to vector<1x32xf32>
    %cst_6 = arith.constant dense<0.000000e+00> : vector<8x32xf32>
    %10 = tpu.matmul %1, %3, %cst_6 {dimension_numbers = #tpu.dot_dimension_numbers<[1], [0], [0], [1], [0, 0, 1, 1], [], []>} : vector<8x3xf32>, vector<3x32xf32>, vector<8x32xf32> -> vector<8x32xf32>
    %11 = vector.broadcast %6 : vector<8x1xf32> to vector<8x32xf32>
    %12 = vector.broadcast %9 : vector<1x32xf32> to vector<8x32xf32>
    %13 = arith.addf %11, %12 : vector<8x32xf32>
    %cst_7 = arith.constant 2.000000e+00 : f32
    %14 = vector.broadcast %cst_7 : f32 to vector<8x32xf32>
    %15 = arith.mulf %14, %10 : vector<8x32xf32>
    %16 = arith.subf %13, %15 : vector<8x32xf32>
    %c0_8 = arith.constant 0 : index
    %c0_9 = arith.constant 0 : index
    %c0_10 = arith.constant 0 : index
    %17 = vector.load %arg3[%c0_8, %c0_9, %c0_10] : memref<1x8x32xf32, #tpu.memory_space<vmem>>, vector<1x8x32xf32>
    %18 = vector.shape_cast %17 : vector<1x8x32xf32> to vector<8x32xf32>
    %19 = vector.shape_cast %16 : vector<8x32xf32> to vector<1x8x32xf32>
    tpu.vector_store %arg3[%c0_8, %c0_9, %c0_10], %19 {strides = array<i32>} : memref<1x8x32xf32, #tpu.memory_space<vmem>>, vector<1x8x32xf32>,
    return
  }
  func.func @transform_0(%arg0: i32) -> (i32, i32, i32) {
    %c0_i32 = arith.constant 0 : i32
    %c0_i32_0 = arith.constant 0 : i32
    %c0_i32_1 = arith.constant 0 : i32
    return %arg0, %c0_i32, %c0_i32_0 : i32, i32, i32
  }
  func.func @transform_1(%arg0: i32) -> (i32, i32, i32) {
    %c0_i32 = arith.constant 0 : i32
    %c0_i32_0 = arith.constant 0 : i32
    %c0_i32_1 = arith.constant 0 : i32
    return %arg0, %c0_i32, %c0_i32_0 : i32, i32, i32
  }
  func.func @transform_2(%arg0: i32) -> (i32, i32, i32) {
    %c0_i32 = arith.constant 0 : i32
    %c0_i32_0 = arith.constant 0 : i32
    %c0_i32_1 = arith.constant 0 : i32
    return %arg0, %c0_i32, %c0_i32_0 : i32, i32, i32
  }
}

module attributes {stable_mosaic.version = 11 : i64} {
  func.func @_fused_mlp_max_kernel(%arg0: i32, %arg1: i32, %arg2: memref<99x32xbf16, #tpu.memory_space<vmem>>, %arg3: memref<1x32xf32, #tpu.memory_space<vmem>>, %arg4: memref<32x32xbf16, #tpu.memory_space<vmem>>, %arg5: memref<1x32xf32, #tpu.memory_space<vmem>>, %arg6: memref<32x64xbf16, #tpu.memory_space<vmem>>, %arg7: memref<1x64xf32, #tpu.memory_space<vmem>>, %arg8: memref<1x8x99xbf16, #tpu.memory_space<vmem>>, %arg9: memref<1x8x8x99xbf16, #tpu.memory_space<vmem>>, %arg10: memref<1x8x64xbf16, #tpu.memory_space<vmem>>) attributes {dimension_semantics = [#tpu.dimension_semantics<parallel>, #tpu.dimension_semantics<parallel>], iteration_bounds = array<i64: 2, 1>, scalar_prefetch = 0 : i64, scratch_operands = 0 : i64, tpu.core_type = #tpu.core_type<tc>, window_params = [{pipeline_mode = #tpu.pipeline_mode<synchronous>, transform_indices = @transform_0, window_bounds = array<i64: 99, 32>}, {pipeline_mode = #tpu.pipeline_mode<synchronous>, transform_indices = @transform_1, window_bounds = array<i64: 1, 32>}, {pipeline_mode = #tpu.pipeline_mode<synchronous>, transform_indices = @transform_2, window_bounds = array<i64: 32, 32>}, {pipeline_mode = #tpu.pipeline_mode<synchronous>, transform_indices = @transform_3, window_bounds = array<i64: 1, 32>}, {pipeline_mode = #tpu.pipeline_mode<synchronous>, transform_indices = @transform_4, window_bounds = array<i64: 32, 64>}, {pipeline_mode = #tpu.pipeline_mode<synchronous>, transform_indices = @transform_5, window_bounds = array<i64: 1, 64>}, {transform_indices = @transform_6, window_bounds = array<i64: 1, 8, 99>}, {transform_indices = @transform_7, window_bounds = array<i64: 1, 8, 8, 99>}, {transform_indices = @transform_8, window_bounds = array<i64: 1, 8, 64>}]} {
    %c0 = arith.constant 0 : index
    %c0_0 = arith.constant 0 : index
    %0 = vector.load %arg2[%c0, %c0_0] : memref<99x32xbf16, #tpu.memory_space<vmem>>, vector<99x32xbf16>
    %c0_1 = arith.constant 0 : index
    %c0_2 = arith.constant 0 : index
    %1 = vector.load %arg4[%c0_1, %c0_2] : memref<32x32xbf16, #tpu.memory_space<vmem>>, vector<32x32xbf16>
    %c0_3 = arith.constant 0 : index
    %c0_4 = arith.constant 0 : index
    %2 = vector.load %arg6[%c0_3, %c0_4] : memref<32x64xbf16, #tpu.memory_space<vmem>>, vector<32x64xbf16>
    %c0_5 = arith.constant 0 : index
    %c0_6 = arith.constant 0 : index
    %3 = vector.load %arg3[%c0_5, %c0_6] : memref<1x32xf32, #tpu.memory_space<vmem>>, vector<1x32xf32>
    %c0_7 = arith.constant 0 : index
    %c0_8 = arith.constant 0 : index
    %4 = vector.load %arg5[%c0_7, %c0_8] : memref<1x32xf32, #tpu.memory_space<vmem>>, vector<1x32xf32>
    %c0_9 = arith.constant 0 : index
    %c0_10 = arith.constant 0 : index
    %5 = vector.load %arg7[%c0_9, %c0_10] : memref<1x64xf32, #tpu.memory_space<vmem>>, vector<1x64xf32>
    %c0_11 = arith.constant 0 : index
    %c0_12 = arith.constant 0 : index
    %c0_13 = arith.constant 0 : index
    %6 = vector.load %arg8[%c0_11, %c0_12, %c0_13] : memref<1x8x99xbf16, #tpu.memory_space<vmem>>, vector<1x8x99xbf16>
    %7 = vector.shape_cast %6 : vector<1x8x99xbf16> to vector<8x99xbf16>
    %c0_14 = arith.constant 0 : index
    %c0_15 = arith.constant 0 : index
    %c0_16 = arith.constant 0 : index
    %c0_17 = arith.constant 0 : index
    %8 = vector.load %arg9[%c0_14, %c0_15, %c0_16, %c0_17] : memref<1x8x8x99xbf16, #tpu.memory_space<vmem>>, vector<1x1x8x99xbf16>
    %9 = vector.shape_cast %8 : vector<1x1x8x99xbf16> to vector<8x99xbf16>
    %10 = arith.subf %9, %7 : vector<8x99xbf16>
    %cst = arith.constant dense<0.000000e+00> : vector<8x32xf32>
    %11 = tpu.matmul %10, %0, %cst {dimension_numbers = #tpu.dot_dimension_numbers<[1], [0], [0], [1], [0, 0, 1, 1], [], []>} : vector<8x99xbf16>, vector<99x32xbf16>, vector<8x32xf32> -> vector<8x32xf32>
    %12 = vector.broadcast %3 : vector<1x32xf32> to vector<8x32xf32>
    %13 = arith.addf %11, %12 : vector<8x32xf32>
    %cst_18 = arith.constant 0.000000e+00 : f32
    %14 = vector.broadcast %cst_18 : f32 to vector<8x32xf32>
    %15 = arith.maximumf %13, %14 : vector<8x32xf32>
    %16 = arith.truncf %15 : vector<8x32xf32> to vector<8x32xbf16>
    %cst_19 = arith.constant dense<0.000000e+00> : vector<8x32xf32>
    %17 = tpu.matmul %16, %1, %cst_19 {dimension_numbers = #tpu.dot_dimension_numbers<[1], [0], [0], [1], [0, 0, 1, 1], [], []>} : vector<8x32xbf16>, vector<32x32xbf16>, vector<8x32xf32> -> vector<8x32xf32>
    %18 = vector.broadcast %4 : vector<1x32xf32> to vector<8x32xf32>
    %19 = arith.addf %17, %18 : vector<8x32xf32>
    %cst_20 = arith.constant 0.000000e+00 : f32
    %20 = vector.broadcast %cst_20 : f32 to vector<8x32xf32>
    %21 = arith.maximumf %19, %20 : vector<8x32xf32>
    %22 = arith.truncf %21 : vector<8x32xf32> to vector<8x32xbf16>
    %cst_21 = arith.constant dense<0.000000e+00> : vector<8x64xf32>
    %23 = tpu.matmul %22, %2, %cst_21 {dimension_numbers = #tpu.dot_dimension_numbers<[1], [0], [0], [1], [0, 0, 1, 1], [], []>} : vector<8x32xbf16>, vector<32x64xbf16>, vector<8x64xf32> -> vector<8x64xf32>
    %24 = vector.broadcast %5 : vector<1x64xf32> to vector<8x64xf32>
    %25 = arith.addf %23, %24 : vector<8x64xf32>
    %cst_22 = arith.constant 0.000000e+00 : f32
    %26 = vector.broadcast %cst_22 : f32 to vector<8x64xf32>
    %27 = arith.maximumf %25, %26 : vector<8x64xf32>
    %c0_23 = arith.constant 0 : index
    %c1 = arith.constant 1 : index
    %c0_24 = arith.constant 0 : index
    %c0_25 = arith.constant 0 : index
    %28 = vector.load %arg9[%c0_23, %c1, %c0_24, %c0_25] : memref<1x8x8x99xbf16, #tpu.memory_space<vmem>>, vector<1x1x8x99xbf16>
    %29 = vector.shape_cast %28 : vector<1x1x8x99xbf16> to vector<8x99xbf16>
    %30 = arith.subf %29, %7 : vector<8x99xbf16>
    %cst_26 = arith.constant dense<0.000000e+00> : vector<8x32xf32>
    %31 = tpu.matmul %30, %0, %cst_26 {dimension_numbers = #tpu.dot_dimension_numbers<[1], [0], [0], [1], [0, 0, 1, 1], [], []>} : vector<8x99xbf16>, vector<99x32xbf16>, vector<8x32xf32> -> vector<8x32xf32>
    %32 = vector.broadcast %3 : vector<1x32xf32> to vector<8x32xf32>
    %33 = arith.addf %31, %32 : vector<8x32xf32>
    %cst_27 = arith.constant 0.000000e+00 : f32
    %34 = vector.broadcast %cst_27 : f32 to vector<8x32xf32>
    %35 = arith.maximumf %33, %34 : vector<8x32xf32>
    %36 = arith.truncf %35 : vector<8x32xf32> to vector<8x32xbf16>
    %cst_28 = arith.constant dense<0.000000e+00> : vector<8x32xf32>
    %37 = tpu.matmul %36, %1, %cst_28 {dimension_numbers = #tpu.dot_dimension_numbers<[1], [0], [0], [1], [0, 0, 1, 1], [], []>} : vector<8x32xbf16>, vector<32x32xbf16>, vector<8x32xf32> -> vector<8x32xf32>
    %38 = vector.broadcast %4 : vector<1x32xf32> to vector<8x32xf32>
    %39 = arith.addf %37, %38 : vector<8x32xf32>
    %cst_29 = arith.constant 0.000000e+00 : f32
    %40 = vector.broadcast %cst_29 : f32 to vector<8x32xf32>
    %41 = arith.maximumf %39, %40 : vector<8x32xf32>
    %42 = arith.truncf %41 : vector<8x32xf32> to vector<8x32xbf16>
    %cst_30 = arith.constant dense<0.000000e+00> : vector<8x64xf32>
    %43 = tpu.matmul %42, %2, %cst_30 {dimension_numbers = #tpu.dot_dimension_numbers<[1], [0], [0], [1], [0, 0, 1, 1], [], []>} : vector<8x32xbf16>, vector<32x64xbf16>, vector<8x64xf32> -> vector<8x64xf32>
    %44 = vector.broadcast %5 : vector<1x64xf32> to vector<8x64xf32>
    %45 = arith.addf %43, %44 : vector<8x64xf32>
    %cst_31 = arith.constant 0.000000e+00 : f32
    %46 = vector.broadcast %cst_31 : f32 to vector<8x64xf32>
    %47 = arith.maximumf %45, %46 : vector<8x64xf32>
    %48 = arith.maximumf %27, %47 : vector<8x64xf32>
    %c0_32 = arith.constant 0 : index
    %c2 = arith.constant 2 : index
    %c0_33 = arith.constant 0 : index
    %c0_34 = arith.constant 0 : index
    %49 = vector.load %arg9[%c0_32, %c2, %c0_33, %c0_34] : memref<1x8x8x99xbf16, #tpu.memory_space<vmem>>, vector<1x1x8x99xbf16>
    %50 = vector.shape_cast %49 : vector<1x1x8x99xbf16> to vector<8x99xbf16>
    %51 = arith.subf %50, %7 : vector<8x99xbf16>
    %cst_35 = arith.constant dense<0.000000e+00> : vector<8x32xf32>
    %52 = tpu.matmul %51, %0, %cst_35 {dimension_numbers = #tpu.dot_dimension_numbers<[1], [0], [0], [1], [0, 0, 1, 1], [], []>} : vector<8x99xbf16>, vector<99x32xbf16>, vector<8x32xf32> -> vector<8x32xf32>
    %53 = vector.broadcast %3 : vector<1x32xf32> to vector<8x32xf32>
    %54 = arith.addf %52, %53 : vector<8x32xf32>
    %cst_36 = arith.constant 0.000000e+00 : f32
    %55 = vector.broadcast %cst_36 : f32 to vector<8x32xf32>
    %56 = arith.maximumf %54, %55 : vector<8x32xf32>
    %57 = arith.truncf %56 : vector<8x32xf32> to vector<8x32xbf16>
    %cst_37 = arith.constant dense<0.000000e+00> : vector<8x32xf32>
    %58 = tpu.matmul %57, %1, %cst_37 {dimension_numbers = #tpu.dot_dimension_numbers<[1], [0], [0], [1], [0, 0, 1, 1], [], []>} : vector<8x32xbf16>, vector<32x32xbf16>, vector<8x32xf32> -> vector<8x32xf32>
    %59 = vector.broadcast %4 : vector<1x32xf32> to vector<8x32xf32>
    %60 = arith.addf %58, %59 : vector<8x32xf32>
    %cst_38 = arith.constant 0.000000e+00 : f32
    %61 = vector.broadcast %cst_38 : f32 to vector<8x32xf32>
    %62 = arith.maximumf %60, %61 : vector<8x32xf32>
    %63 = arith.truncf %62 : vector<8x32xf32> to vector<8x32xbf16>
    %cst_39 = arith.constant dense<0.000000e+00> : vector<8x64xf32>
    %64 = tpu.matmul %63, %2, %cst_39 {dimension_numbers = #tpu.dot_dimension_numbers<[1], [0], [0], [1], [0, 0, 1, 1], [], []>} : vector<8x32xbf16>, vector<32x64xbf16>, vector<8x64xf32> -> vector<8x64xf32>
    %65 = vector.broadcast %5 : vector<1x64xf32> to vector<8x64xf32>
    %66 = arith.addf %64, %65 : vector<8x64xf32>
    %cst_40 = arith.constant 0.000000e+00 : f32
    %67 = vector.broadcast %cst_40 : f32 to vector<8x64xf32>
    %68 = arith.maximumf %66, %67 : vector<8x64xf32>
    %69 = arith.maximumf %48, %68 : vector<8x64xf32>
    %c0_41 = arith.constant 0 : index
    %c3 = arith.constant 3 : index
    %c0_42 = arith.constant 0 : index
    %c0_43 = arith.constant 0 : index
    %70 = vector.load %arg9[%c0_41, %c3, %c0_42, %c0_43] : memref<1x8x8x99xbf16, #tpu.memory_space<vmem>>, vector<1x1x8x99xbf16>
    %71 = vector.shape_cast %70 : vector<1x1x8x99xbf16> to vector<8x99xbf16>
    %72 = arith.subf %71, %7 : vector<8x99xbf16>
    %cst_44 = arith.constant dense<0.000000e+00> : vector<8x32xf32>
    %73 = tpu.matmul %72, %0, %cst_44 {dimension_numbers = #tpu.dot_dimension_numbers<[1], [0], [0], [1], [0, 0, 1, 1], [], []>} : vector<8x99xbf16>, vector<99x32xbf16>, vector<8x32xf32> -> vector<8x32xf32>
    %74 = vector.broadcast %3 : vector<1x32xf32> to vector<8x32xf32>
    %75 = arith.addf %73, %74 : vector<8x32xf32>
    %cst_45 = arith.constant 0.000000e+00 : f32
    %76 = vector.broadcast %cst_45 : f32 to vector<8x32xf32>
    %77 = arith.maximumf %75, %76 : vector<8x32xf32>
    %78 = arith.truncf %77 : vector<8x32xf32> to vector<8x32xbf16>
    %cst_46 = arith.constant dense<0.000000e+00> : vector<8x32xf32>
    %79 = tpu.matmul %78, %1, %cst_46 {dimension_numbers = #tpu.dot_dimension_numbers<[1], [0], [0], [1], [0, 0, 1, 1], [], []>} : vector<8x32xbf16>, vector<32x32xbf16>, vector<8x32xf32> -> vector<8x32xf32>
    %80 = vector.broadcast %4 : vector<1x32xf32> to vector<8x32xf32>
    %81 = arith.addf %79, %80 : vector<8x32xf32>
    %cst_47 = arith.constant 0.000000e+00 : f32
    %82 = vector.broadcast %cst_47 : f32 to vector<8x32xf32>
    %83 = arith.maximumf %81, %82 : vector<8x32xf32>
    %84 = arith.truncf %83 : vector<8x32xf32> to vector<8x32xbf16>
    %cst_48 = arith.constant dense<0.000000e+00> : vector<8x64xf32>
    %85 = tpu.matmul %84, %2, %cst_48 {dimension_numbers = #tpu.dot_dimension_numbers<[1], [0], [0], [1], [0, 0, 1, 1], [], []>} : vector<8x32xbf16>, vector<32x64xbf16>, vector<8x64xf32> -> vector<8x64xf32>
    %86 = vector.broadcast %5 : vector<1x64xf32> to vector<8x64xf32>
    %87 = arith.addf %85, %86 : vector<8x64xf32>
    %cst_49 = arith.constant 0.000000e+00 : f32
    %88 = vector.broadcast %cst_49 : f32 to vector<8x64xf32>
    %89 = arith.maximumf %87, %88 : vector<8x64xf32>
    %90 = arith.maximumf %69, %89 : vector<8x64xf32>
    %c0_50 = arith.constant 0 : index
    %c4 = arith.constant 4 : index
    %c0_51 = arith.constant 0 : index
    %c0_52 = arith.constant 0 : index
    %91 = vector.load %arg9[%c0_50, %c4, %c0_51, %c0_52] : memref<1x8x8x99xbf16, #tpu.memory_space<vmem>>, vector<1x1x8x99xbf16>
    %92 = vector.shape_cast %91 : vector<1x1x8x99xbf16> to vector<8x99xbf16>
    %93 = arith.subf %92, %7 : vector<8x99xbf16>
    %cst_53 = arith.constant dense<0.000000e+00> : vector<8x32xf32>
    %94 = tpu.matmul %93, %0, %cst_53 {dimension_numbers = #tpu.dot_dimension_numbers<[1], [0], [0], [1], [0, 0, 1, 1], [], []>} : vector<8x99xbf16>, vector<99x32xbf16>, vector<8x32xf32> -> vector<8x32xf32>
    %95 = vector.broadcast %3 : vector<1x32xf32> to vector<8x32xf32>
    %96 = arith.addf %94, %95 : vector<8x32xf32>
    %cst_54 = arith.constant 0.000000e+00 : f32
    %97 = vector.broadcast %cst_54 : f32 to vector<8x32xf32>
    %98 = arith.maximumf %96, %97 : vector<8x32xf32>
    %99 = arith.truncf %98 : vector<8x32xf32> to vector<8x32xbf16>
    %cst_55 = arith.constant dense<0.000000e+00> : vector<8x32xf32>
    %100 = tpu.matmul %99, %1, %cst_55 {dimension_numbers = #tpu.dot_dimension_numbers<[1], [0], [0], [1], [0, 0, 1, 1], [], []>} : vector<8x32xbf16>, vector<32x32xbf16>, vector<8x32xf32> -> vector<8x32xf32>
    %101 = vector.broadcast %4 : vector<1x32xf32> to vector<8x32xf32>
    %102 = arith.addf %100, %101 : vector<8x32xf32>
    %cst_56 = arith.constant 0.000000e+00 : f32
    %103 = vector.broadcast %cst_56 : f32 to vector<8x32xf32>
    %104 = arith.maximumf %102, %103 : vector<8x32xf32>
    %105 = arith.truncf %104 : vector<8x32xf32> to vector<8x32xbf16>
    %cst_57 = arith.constant dense<0.000000e+00> : vector<8x64xf32>
    %106 = tpu.matmul %105, %2, %cst_57 {dimension_numbers = #tpu.dot_dimension_numbers<[1], [0], [0], [1], [0, 0, 1, 1], [], []>} : vector<8x32xbf16>, vector<32x64xbf16>, vector<8x64xf32> -> vector<8x64xf32>
    %107 = vector.broadcast %5 : vector<1x64xf32> to vector<8x64xf32>
    %108 = arith.addf %106, %107 : vector<8x64xf32>
    %cst_58 = arith.constant 0.000000e+00 : f32
    %109 = vector.broadcast %cst_58 : f32 to vector<8x64xf32>
    %110 = arith.maximumf %108, %109 : vector<8x64xf32>
    %111 = arith.maximumf %90, %110 : vector<8x64xf32>
    %c0_59 = arith.constant 0 : index
    %c5 = arith.constant 5 : index
    %c0_60 = arith.constant 0 : index
    %c0_61 = arith.constant 0 : index
    %112 = vector.load %arg9[%c0_59, %c5, %c0_60, %c0_61] : memref<1x8x8x99xbf16, #tpu.memory_space<vmem>>, vector<1x1x8x99xbf16>
    %113 = vector.shape_cast %112 : vector<1x1x8x99xbf16> to vector<8x99xbf16>
    %114 = arith.subf %113, %7 : vector<8x99xbf16>
    %cst_62 = arith.constant dense<0.000000e+00> : vector<8x32xf32>
    %115 = tpu.matmul %114, %0, %cst_62 {dimension_numbers = #tpu.dot_dimension_numbers<[1], [0], [0], [1], [0, 0, 1, 1], [], []>} : vector<8x99xbf16>, vector<99x32xbf16>, vector<8x32xf32> -> vector<8x32xf32>
    %116 = vector.broadcast %3 : vector<1x32xf32> to vector<8x32xf32>
    %117 = arith.addf %115, %116 : vector<8x32xf32>
    %cst_63 = arith.constant 0.000000e+00 : f32
    %118 = vector.broadcast %cst_63 : f32 to vector<8x32xf32>
    %119 = arith.maximumf %117, %118 : vector<8x32xf32>
    %120 = arith.truncf %119 : vector<8x32xf32> to vector<8x32xbf16>
    %cst_64 = arith.constant dense<0.000000e+00> : vector<8x32xf32>
    %121 = tpu.matmul %120, %1, %cst_64 {dimension_numbers = #tpu.dot_dimension_numbers<[1], [0], [0], [1], [0, 0, 1, 1], [], []>} : vector<8x32xbf16>, vector<32x32xbf16>, vector<8x32xf32> -> vector<8x32xf32>
    %122 = vector.broadcast %4 : vector<1x32xf32> to vector<8x32xf32>
    %123 = arith.addf %121, %122 : vector<8x32xf32>
    %cst_65 = arith.constant 0.000000e+00 : f32
    %124 = vector.broadcast %cst_65 : f32 to vector<8x32xf32>
    %125 = arith.maximumf %123, %124 : vector<8x32xf32>
    %126 = arith.truncf %125 : vector<8x32xf32> to vector<8x32xbf16>
    %cst_66 = arith.constant dense<0.000000e+00> : vector<8x64xf32>
    %127 = tpu.matmul %126, %2, %cst_66 {dimension_numbers = #tpu.dot_dimension_numbers<[1], [0], [0], [1], [0, 0, 1, 1], [], []>} : vector<8x32xbf16>, vector<32x64xbf16>, vector<8x64xf32> -> vector<8x64xf32>
    %128 = vector.broadcast %5 : vector<1x64xf32> to vector<8x64xf32>
    %129 = arith.addf %127, %128 : vector<8x64xf32>
    %cst_67 = arith.constant 0.000000e+00 : f32
    %130 = vector.broadcast %cst_67 : f32 to vector<8x64xf32>
    %131 = arith.maximumf %129, %130 : vector<8x64xf32>
    %132 = arith.maximumf %111, %131 : vector<8x64xf32>
    %c0_68 = arith.constant 0 : index
    %c6 = arith.constant 6 : index
    %c0_69 = arith.constant 0 : index
    %c0_70 = arith.constant 0 : index
    %133 = vector.load %arg9[%c0_68, %c6, %c0_69, %c0_70] : memref<1x8x8x99xbf16, #tpu.memory_space<vmem>>, vector<1x1x8x99xbf16>
    %134 = vector.shape_cast %133 : vector<1x1x8x99xbf16> to vector<8x99xbf16>
    %135 = arith.subf %134, %7 : vector<8x99xbf16>
    %cst_71 = arith.constant dense<0.000000e+00> : vector<8x32xf32>
    %136 = tpu.matmul %135, %0, %cst_71 {dimension_numbers = #tpu.dot_dimension_numbers<[1], [0], [0], [1], [0, 0, 1, 1], [], []>} : vector<8x99xbf16>, vector<99x32xbf16>, vector<8x32xf32> -> vector<8x32xf32>
    %137 = vector.broadcast %3 : vector<1x32xf32> to vector<8x32xf32>
    %138 = arith.addf %136, %137 : vector<8x32xf32>
    %cst_72 = arith.constant 0.000000e+00 : f32
    %139 = vector.broadcast %cst_72 : f32 to vector<8x32xf32>
    %140 = arith.maximumf %138, %139 : vector<8x32xf32>
    %141 = arith.truncf %140 : vector<8x32xf32> to vector<8x32xbf16>
    %cst_73 = arith.constant dense<0.000000e+00> : vector<8x32xf32>
    %142 = tpu.matmul %141, %1, %cst_73 {dimension_numbers = #tpu.dot_dimension_numbers<[1], [0], [0], [1], [0, 0, 1, 1], [], []>} : vector<8x32xbf16>, vector<32x32xbf16>, vector<8x32xf32> -> vector<8x32xf32>
    %143 = vector.broadcast %4 : vector<1x32xf32> to vector<8x32xf32>
    %144 = arith.addf %142, %143 : vector<8x32xf32>
    %cst_74 = arith.constant 0.000000e+00 : f32
    %145 = vector.broadcast %cst_74 : f32 to vector<8x32xf32>
    %146 = arith.maximumf %144, %145 : vector<8x32xf32>
    %147 = arith.truncf %146 : vector<8x32xf32> to vector<8x32xbf16>
    %cst_75 = arith.constant dense<0.000000e+00> : vector<8x64xf32>
    %148 = tpu.matmul %147, %2, %cst_75 {dimension_numbers = #tpu.dot_dimension_numbers<[1], [0], [0], [1], [0, 0, 1, 1], [], []>} : vector<8x32xbf16>, vector<32x64xbf16>, vector<8x64xf32> -> vector<8x64xf32>
    %149 = vector.broadcast %5 : vector<1x64xf32> to vector<8x64xf32>
    %150 = arith.addf %148, %149 : vector<8x64xf32>
    %cst_76 = arith.constant 0.000000e+00 : f32
    %151 = vector.broadcast %cst_76 : f32 to vector<8x64xf32>
    %152 = arith.maximumf %150, %151 : vector<8x64xf32>
    %153 = arith.maximumf %132, %152 : vector<8x64xf32>
    %c0_77 = arith.constant 0 : index
    %c7 = arith.constant 7 : index
    %c0_78 = arith.constant 0 : index
    %c0_79 = arith.constant 0 : index
    %154 = vector.load %arg9[%c0_77, %c7, %c0_78, %c0_79] : memref<1x8x8x99xbf16, #tpu.memory_space<vmem>>, vector<1x1x8x99xbf16>
    %155 = vector.shape_cast %154 : vector<1x1x8x99xbf16> to vector<8x99xbf16>
    %156 = arith.subf %155, %7 : vector<8x99xbf16>
    %cst_80 = arith.constant dense<0.000000e+00> : vector<8x32xf32>
    %157 = tpu.matmul %156, %0, %cst_80 {dimension_numbers = #tpu.dot_dimension_numbers<[1], [0], [0], [1], [0, 0, 1, 1], [], []>} : vector<8x99xbf16>, vector<99x32xbf16>, vector<8x32xf32> -> vector<8x32xf32>
    %158 = vector.broadcast %3 : vector<1x32xf32> to vector<8x32xf32>
    %159 = arith.addf %157, %158 : vector<8x32xf32>
    %cst_81 = arith.constant 0.000000e+00 : f32
    %160 = vector.broadcast %cst_81 : f32 to vector<8x32xf32>
    %161 = arith.maximumf %159, %160 : vector<8x32xf32>
    %162 = arith.truncf %161 : vector<8x32xf32> to vector<8x32xbf16>
    %cst_82 = arith.constant dense<0.000000e+00> : vector<8x32xf32>
    %163 = tpu.matmul %162, %1, %cst_82 {dimension_numbers = #tpu.dot_dimension_numbers<[1], [0], [0], [1], [0, 0, 1, 1], [], []>} : vector<8x32xbf16>, vector<32x32xbf16>, vector<8x32xf32> -> vector<8x32xf32>
    %164 = vector.broadcast %4 : vector<1x32xf32> to vector<8x32xf32>
    %165 = arith.addf %163, %164 : vector<8x32xf32>
    %cst_83 = arith.constant 0.000000e+00 : f32
    %166 = vector.broadcast %cst_83 : f32 to vector<8x32xf32>
    %167 = arith.maximumf %165, %166 : vector<8x32xf32>
    %168 = arith.truncf %167 : vector<8x32xf32> to vector<8x32xbf16>
    %cst_84 = arith.constant dense<0.000000e+00> : vector<8x64xf32>
    %169 = tpu.matmul %168, %2, %cst_84 {dimension_numbers = #tpu.dot_dimension_numbers<[1], [0], [0], [1], [0, 0, 1, 1], [], []>} : vector<8x32xbf16>, vector<32x64xbf16>, vector<8x64xf32> -> vector<8x64xf32>
    %170 = vector.broadcast %5 : vector<1x64xf32> to vector<8x64xf32>
    %171 = arith.addf %169, %170 : vector<8x64xf32>
    %cst_85 = arith.constant 0.000000e+00 : f32
    %172 = vector.broadcast %cst_85 : f32 to vector<8x64xf32>
    %173 = arith.maximumf %171, %172 : vector<8x64xf32>
    %174 = arith.maximumf %153, %173 : vector<8x64xf32>
    %175 = arith.truncf %174 : vector<8x64xf32> to vector<8x64xbf16>
    %c0_86 = arith.constant 0 : index
    %c0_87 = arith.constant 0 : index
    %c0_88 = arith.constant 0 : index
    %176 = vector.load %arg10[%c0_86, %c0_87, %c0_88] : memref<1x8x64xbf16, #tpu.memory_space<vmem>>, vector<1x8x64xbf16>
    %177 = vector.shape_cast %176 : vector<1x8x64xbf16> to vector<8x64xbf16>
    %178 = vector.shape_cast %175 : vector<8x64xbf16> to vector<1x8x64xbf16>
    tpu.vector_store %arg10[%c0_86, %c0_87, %c0_88], %178 {strides = array<i32>} : memref<1x8x64xbf16, #tpu.memory_space<vmem>>, vector<1x8x64xbf16>,
    return
  }
  func.func @transform_0(%arg0: i32, %arg1: i32) -> (i32, i32) {
    %c0_i32 = arith.constant 0 : i32
    %c0_i32_0 = arith.constant 0 : i32
    %c0_i32_1 = arith.constant 0 : i32
    return %c0_i32, %c0_i32_0 : i32, i32
  }
  func.func @transform_1(%arg0: i32, %arg1: i32) -> (i32, i32) {
    %c0_i32 = arith.constant 0 : i32
    %c0_i32_0 = arith.constant 0 : i32
    %c0_i32_1 = arith.constant 0 : i32
    return %c0_i32, %c0_i32_0 : i32, i32
  }
  func.func @transform_2(%arg0: i32, %arg1: i32) -> (i32, i32) {
    %c0_i32 = arith.constant 0 : i32
    %c0_i32_0 = arith.constant 0 : i32
    %c0_i32_1 = arith.constant 0 : i32
    return %c0_i32, %c0_i32_0 : i32, i32
  }
  func.func @transform_3(%arg0: i32, %arg1: i32) -> (i32, i32) {
    %c0_i32 = arith.constant 0 : i32
    %c0_i32_0 = arith.constant 0 : i32
    %c0_i32_1 = arith.constant 0 : i32
    return %c0_i32, %c0_i32_0 : i32, i32
  }
  func.func @transform_4(%arg0: i32, %arg1: i32) -> (i32, i32) {
    %c0_i32 = arith.constant 0 : i32
    %c0_i32_0 = arith.constant 0 : i32
    %c0_i32_1 = arith.constant 0 : i32
    return %c0_i32, %c0_i32_0 : i32, i32
  }
  func.func @transform_5(%arg0: i32, %arg1: i32) -> (i32, i32) {
    %c0_i32 = arith.constant 0 : i32
    %c0_i32_0 = arith.constant 0 : i32
    %c0_i32_1 = arith.constant 0 : i32
    return %c0_i32, %c0_i32_0 : i32, i32
  }
  func.func @transform_6(%arg0: i32, %arg1: i32) -> (i32, i32, i32) {
    %c0_i32 = arith.constant 0 : i32
    %c0_i32_0 = arith.constant 0 : i32
    return %arg0, %arg1, %c0_i32 : i32, i32, i32
  }
  func.func @transform_7(%arg0: i32, %arg1: i32) -> (i32, i32, i32, i32) {
    %c0_i32 = arith.constant 0 : i32
    %c0_i32_0 = arith.constant 0 : i32
    %c0_i32_1 = arith.constant 0 : i32
    return %arg0, %c0_i32, %arg1, %c0_i32_0 : i32, i32, i32, i32
  }
  func.func @transform_8(%arg0: i32, %arg1: i32) -> (i32, i32, i32) {
    %c0_i32 = arith.constant 0 : i32
    %c0_i32_0 = arith.constant 0 : i32
    return %arg0, %arg1, %c0_i32 : i32, i32, i32
  }
}

module attributes {stable_mosaic.version = 11 : i64} {
  func.func @_fused_mlp_kernel(%arg0: i32, %arg1: i32, %arg2: memref<256x64xbf16, #tpu.memory_space<vmem>>, %arg3: memref<1x64xf32, #tpu.memory_space<vmem>>, %arg4: memref<64x64xbf16, #tpu.memory_space<vmem>>, %arg5: memref<1x64xf32, #tpu.memory_space<vmem>>, %arg6: memref<1x8x256xbf16, #tpu.memory_space<vmem>>, %arg7: memref<1x8x64xbf16, #tpu.memory_space<vmem>>) attributes {dimension_semantics = [#tpu.dimension_semantics<parallel>, #tpu.dimension_semantics<parallel>], iteration_bounds = array<i64: 2, 1>, scalar_prefetch = 0 : i64, scratch_operands = 0 : i64, tpu.core_type = #tpu.core_type<tc>, window_params = [{pipeline_mode = #tpu.pipeline_mode<synchronous>, transform_indices = @transform_0, window_bounds = array<i64: 256, 64>}, {pipeline_mode = #tpu.pipeline_mode<synchronous>, transform_indices = @transform_1, window_bounds = array<i64: 1, 64>}, {pipeline_mode = #tpu.pipeline_mode<synchronous>, transform_indices = @transform_2, window_bounds = array<i64: 64, 64>}, {pipeline_mode = #tpu.pipeline_mode<synchronous>, transform_indices = @transform_3, window_bounds = array<i64: 1, 64>}, {transform_indices = @transform_4, window_bounds = array<i64: 1, 8, 256>}, {transform_indices = @transform_5, window_bounds = array<i64: 1, 8, 64>}]} {
    %c0 = arith.constant 0 : index
    %c0_0 = arith.constant 0 : index
    %0 = vector.load %arg2[%c0, %c0_0] : memref<256x64xbf16, #tpu.memory_space<vmem>>, vector<256x64xbf16>
    %c0_1 = arith.constant 0 : index
    %c0_2 = arith.constant 0 : index
    %1 = vector.load %arg4[%c0_1, %c0_2] : memref<64x64xbf16, #tpu.memory_space<vmem>>, vector<64x64xbf16>
    %c0_3 = arith.constant 0 : index
    %c0_4 = arith.constant 0 : index
    %2 = vector.load %arg3[%c0_3, %c0_4] : memref<1x64xf32, #tpu.memory_space<vmem>>, vector<1x64xf32>
    %c0_5 = arith.constant 0 : index
    %c0_6 = arith.constant 0 : index
    %3 = vector.load %arg5[%c0_5, %c0_6] : memref<1x64xf32, #tpu.memory_space<vmem>>, vector<1x64xf32>
    %c0_7 = arith.constant 0 : index
    %c0_8 = arith.constant 0 : index
    %c0_9 = arith.constant 0 : index
    %4 = vector.load %arg6[%c0_7, %c0_8, %c0_9] : memref<1x8x256xbf16, #tpu.memory_space<vmem>>, vector<1x8x256xbf16>
    %5 = vector.shape_cast %4 : vector<1x8x256xbf16> to vector<8x256xbf16>
    %cst = arith.constant dense<0.000000e+00> : vector<8x64xf32>
    %6 = tpu.matmul %5, %0, %cst {dimension_numbers = #tpu.dot_dimension_numbers<[1], [0], [0], [1], [0, 0, 1, 1], [], []>} : vector<8x256xbf16>, vector<256x64xbf16>, vector<8x64xf32> -> vector<8x64xf32>
    %7 = vector.broadcast %2 : vector<1x64xf32> to vector<8x64xf32>
    %8 = arith.addf %6, %7 : vector<8x64xf32>
    %cst_10 = arith.constant 0.000000e+00 : f32
    %9 = vector.broadcast %cst_10 : f32 to vector<8x64xf32>
    %10 = arith.maximumf %8, %9 : vector<8x64xf32>
    %11 = arith.truncf %10 : vector<8x64xf32> to vector<8x64xbf16>
    %cst_11 = arith.constant dense<0.000000e+00> : vector<8x64xf32>
    %12 = tpu.matmul %11, %1, %cst_11 {dimension_numbers = #tpu.dot_dimension_numbers<[1], [0], [0], [1], [0, 0, 1, 1], [], []>} : vector<8x64xbf16>, vector<64x64xbf16>, vector<8x64xf32> -> vector<8x64xf32>
    %13 = vector.broadcast %3 : vector<1x64xf32> to vector<8x64xf32>
    %14 = arith.addf %12, %13 : vector<8x64xf32>
    %cst_12 = arith.constant 0.000000e+00 : f32
    %15 = vector.broadcast %cst_12 : f32 to vector<8x64xf32>
    %16 = arith.maximumf %14, %15 : vector<8x64xf32>
    %17 = arith.truncf %16 : vector<8x64xf32> to vector<8x64xbf16>
    %c0_13 = arith.constant 0 : index
    %c0_14 = arith.constant 0 : index
    %c0_15 = arith.constant 0 : index
    %18 = vector.load %arg7[%c0_13, %c0_14, %c0_15] : memref<1x8x64xbf16, #tpu.memory_space<vmem>>, vector<1x8x64xbf16>
    %19 = vector.shape_cast %18 : vector<1x8x64xbf16> to vector<8x64xbf16>
    %20 = vector.shape_cast %17 : vector<8x64xbf16> to vector<1x8x64xbf16>
    tpu.vector_store %arg7[%c0_13, %c0_14, %c0_15], %20 {strides = array<i32>} : memref<1x8x64xbf16, #tpu.memory_space<vmem>>, vector<1x8x64xbf16>,
    return
  }
  func.func @transform_0(%arg0: i32, %arg1: i32) -> (i32, i32) {
    %c0_i32 = arith.constant 0 : i32
    %c0_i32_0 = arith.constant 0 : i32
    %c0_i32_1 = arith.constant 0 : i32
    return %c0_i32, %c0_i32_0 : i32, i32
  }
  func.func @transform_1(%arg0: i32, %arg1: i32) -> (i32, i32) {
    %c0_i32 = arith.constant 0 : i32
    %c0_i32_0 = arith.constant 0 : i32
    %c0_i32_1 = arith.constant 0 : i32
    return %c0_i32, %c0_i32_0 : i32, i32
  }
  func.func @transform_2(%arg0: i32, %arg1: i32) -> (i32, i32) {
    %c0_i32 = arith.constant 0 : i32
    %c0_i32_0 = arith.constant 0 : i32
    %c0_i32_1 = arith.constant 0 : i32
    return %c0_i32, %c0_i32_0 : i32, i32
  }
  func.func @transform_3(%arg0: i32, %arg1: i32) -> (i32, i32) {
    %c0_i32 = arith.constant 0 : i32
    %c0_i32_0 = arith.constant 0 : i32
    %c0_i32_1 = arith.constant 0 : i32
    return %c0_i32, %c0_i32_0 : i32, i32
  }
  func.func @transform_4(%arg0: i32, %arg1: i32) -> (i32, i32, i32) {
    %c0_i32 = arith.constant 0 : i32
    %c0_i32_0 = arith.constant 0 : i32
    return %arg0, %arg1, %c0_i32 : i32, i32, i32
  }
  func.func @transform_5(%arg0: i32, %arg1: i32) -> (i32, i32, i32) {
    %c0_i32 = arith.constant 0 : i32
    %c0_i32_0 = arith.constant 0 : i32
    return %arg0, %arg1, %c0_i32 : i32, i32, i32
  }
}

module attributes {stable_mosaic.version = 11 : i64} {
  func.func @_fused_mlp_global_max_kernel(%arg0: i32, %arg1: memref<131x64xbf16, #tpu.memory_space<vmem>>, %arg2: memref<1x64xf32, #tpu.memory_space<vmem>>, %arg3: memref<64x64xbf16, #tpu.memory_space<vmem>>, %arg4: memref<1x64xf32, #tpu.memory_space<vmem>>, %arg5: memref<64x128xbf16, #tpu.memory_space<vmem>>, %arg6: memref<1x128xf32, #tpu.memory_space<vmem>>, %arg7: memref<1x8x131xbf16, #tpu.memory_space<vmem>>, %arg8: memref<1x1x128xbf16, #tpu.memory_space<vmem>>) attributes {dimension_semantics = [#tpu.dimension_semantics<parallel>], iteration_bounds = array<i64: 2>, scalar_prefetch = 0 : i64, scratch_operands = 0 : i64, tpu.core_type = #tpu.core_type<tc>, window_params = [{pipeline_mode = #tpu.pipeline_mode<synchronous>, transform_indices = @transform_0, window_bounds = array<i64: 131, 64>}, {pipeline_mode = #tpu.pipeline_mode<synchronous>, transform_indices = @transform_1, window_bounds = array<i64: 1, 64>}, {pipeline_mode = #tpu.pipeline_mode<synchronous>, transform_indices = @transform_2, window_bounds = array<i64: 64, 64>}, {pipeline_mode = #tpu.pipeline_mode<synchronous>, transform_indices = @transform_3, window_bounds = array<i64: 1, 64>}, {pipeline_mode = #tpu.pipeline_mode<synchronous>, transform_indices = @transform_4, window_bounds = array<i64: 64, 128>}, {pipeline_mode = #tpu.pipeline_mode<synchronous>, transform_indices = @transform_5, window_bounds = array<i64: 1, 128>}, {transform_indices = @transform_6, window_bounds = array<i64: 1, 8, 131>}, {transform_indices = @transform_7, window_bounds = array<i64: 1, 1, 128>}]} {
    %c0 = arith.constant 0 : index
    %c0_0 = arith.constant 0 : index
    %0 = vector.load %arg1[%c0, %c0_0] : memref<131x64xbf16, #tpu.memory_space<vmem>>, vector<131x64xbf16>
    %c0_1 = arith.constant 0 : index
    %c0_2 = arith.constant 0 : index
    %1 = vector.load %arg3[%c0_1, %c0_2] : memref<64x64xbf16, #tpu.memory_space<vmem>>, vector<64x64xbf16>
    %c0_3 = arith.constant 0 : index
    %c0_4 = arith.constant 0 : index
    %2 = vector.load %arg5[%c0_3, %c0_4] : memref<64x128xbf16, #tpu.memory_space<vmem>>, vector<64x128xbf16>
    %c0_5 = arith.constant 0 : index
    %c0_6 = arith.constant 0 : index
    %3 = vector.load %arg2[%c0_5, %c0_6] : memref<1x64xf32, #tpu.memory_space<vmem>>, vector<1x64xf32>
    %c0_7 = arith.constant 0 : index
    %c0_8 = arith.constant 0 : index
    %4 = vector.load %arg4[%c0_7, %c0_8] : memref<1x64xf32, #tpu.memory_space<vmem>>, vector<1x64xf32>
    %c0_9 = arith.constant 0 : index
    %c0_10 = arith.constant 0 : index
    %5 = vector.load %arg6[%c0_9, %c0_10] : memref<1x128xf32, #tpu.memory_space<vmem>>, vector<1x128xf32>
    %c0_11 = arith.constant 0 : index
    %c0_12 = arith.constant 0 : index
    %c0_13 = arith.constant 0 : index
    %6 = vector.load %arg7[%c0_11, %c0_12, %c0_13] : memref<1x8x131xbf16, #tpu.memory_space<vmem>>, vector<1x8x131xbf16>
    %7 = vector.shape_cast %6 : vector<1x8x131xbf16> to vector<8x131xbf16>
    %cst = arith.constant dense<0.000000e+00> : vector<8x64xf32>
    %8 = tpu.matmul %7, %0, %cst {dimension_numbers = #tpu.dot_dimension_numbers<[1], [0], [0], [1], [0, 0, 1, 1], [], []>} : vector<8x131xbf16>, vector<131x64xbf16>, vector<8x64xf32> -> vector<8x64xf32>
    %9 = vector.broadcast %3 : vector<1x64xf32> to vector<8x64xf32>
    %10 = arith.addf %8, %9 : vector<8x64xf32>
    %cst_14 = arith.constant 0.000000e+00 : f32
    %11 = vector.broadcast %cst_14 : f32 to vector<8x64xf32>
    %12 = arith.maximumf %10, %11 : vector<8x64xf32>
    %13 = arith.truncf %12 : vector<8x64xf32> to vector<8x64xbf16>
    %cst_15 = arith.constant dense<0.000000e+00> : vector<8x64xf32>
    %14 = tpu.matmul %13, %1, %cst_15 {dimension_numbers = #tpu.dot_dimension_numbers<[1], [0], [0], [1], [0, 0, 1, 1], [], []>} : vector<8x64xbf16>, vector<64x64xbf16>, vector<8x64xf32> -> vector<8x64xf32>
    %15 = vector.broadcast %4 : vector<1x64xf32> to vector<8x64xf32>
    %16 = arith.addf %14, %15 : vector<8x64xf32>
    %cst_16 = arith.constant 0.000000e+00 : f32
    %17 = vector.broadcast %cst_16 : f32 to vector<8x64xf32>
    %18 = arith.maximumf %16, %17 : vector<8x64xf32>
    %19 = arith.truncf %18 : vector<8x64xf32> to vector<8x64xbf16>
    %cst_17 = arith.constant dense<0.000000e+00> : vector<8x128xf32>
    %20 = tpu.matmul %19, %2, %cst_17 {dimension_numbers = #tpu.dot_dimension_numbers<[1], [0], [0], [1], [0, 0, 1, 1], [], []>} : vector<8x64xbf16>, vector<64x128xbf16>, vector<8x128xf32> -> vector<8x128xf32>
    %21 = vector.broadcast %5 : vector<1x128xf32> to vector<8x128xf32>
    %22 = arith.addf %20, %21 : vector<8x128xf32>
    %cst_18 = arith.constant 0.000000e+00 : f32
    %23 = vector.broadcast %cst_18 : f32 to vector<8x128xf32>
    %24 = arith.maximumf %22, %23 : vector<8x128xf32>
    %cst_19 = arith.constant dense<0xFF800000> : vector<128xf32>
    %25 = vector.multi_reduction <maximumf>, %24, %cst_19 [0] : vector<8x128xf32> to vector<128xf32>
    %26 = vector.shape_cast %25 : vector<128xf32> to vector<1x128xf32>
    %27 = arith.truncf %26 : vector<1x128xf32> to vector<1x128xbf16>
    %c0_20 = arith.constant 0 : index
    %c0_21 = arith.constant 0 : index
    %c0_22 = arith.constant 0 : index
    %28 = vector.load %arg8[%c0_20, %c0_21, %c0_22] : memref<1x1x128xbf16, #tpu.memory_space<vmem>>, vector<1x1x128xbf16>
    %29 = vector.shape_cast %28 : vector<1x1x128xbf16> to vector<1x128xbf16>
    %30 = vector.shape_cast %27 : vector<1x128xbf16> to vector<1x1x128xbf16>
    tpu.vector_store %arg8[%c0_20, %c0_21, %c0_22], %30 {strides = array<i32>} : memref<1x1x128xbf16, #tpu.memory_space<vmem>>, vector<1x1x128xbf16>,
    return
  }
  func.func @transform_0(%arg0: i32) -> (i32, i32) {
    %c0_i32 = arith.constant 0 : i32
    %c0_i32_0 = arith.constant 0 : i32
    %c0_i32_1 = arith.constant 0 : i32
    return %c0_i32, %c0_i32_0 : i32, i32
  }
  func.func @transform_1(%arg0: i32) -> (i32, i32) {
    %c0_i32 = arith.constant 0 : i32
    %c0_i32_0 = arith.constant 0 : i32
    %c0_i32_1 = arith.constant 0 : i32
    return %c0_i32, %c0_i32_0 : i32, i32
  }
  func.func @transform_2(%arg0: i32) -> (i32, i32) {
    %c0_i32 = arith.constant 0 : i32
    %c0_i32_0 = arith.constant 0 : i32
    %c0_i32_1 = arith.constant 0 : i32
    return %c0_i32, %c0_i32_0 : i32, i32
  }
  func.func @transform_3(%arg0: i32) -> (i32, i32) {
    %c0_i32 = arith.constant 0 : i32
    %c0_i32_0 = arith.constant 0 : i32
    %c0_i32_1 = arith.constant 0 : i32
    return %c0_i32, %c0_i32_0 : i32, i32
  }
  func.func @transform_4(%arg0: i32) -> (i32, i32) {
    %c0_i32 = arith.constant 0 : i32
    %c0_i32_0 = arith.constant 0 : i32
    %c0_i32_1 = arith.constant 0 : i32
    return %c0_i32, %c0_i32_0 : i32, i32
  }
  func.func @transform_5(%arg0: i32) -> (i32, i32) {
    %c0_i32 = arith.constant 0 : i32
    %c0_i32_0 = arith.constant 0 : i32
    %c0_i32_1 = arith.constant 0 : i32
    return %c0_i32, %c0_i32_0 : i32, i32
  }
  func.func @transform_6(%arg0: i32) -> (i32, i32, i32) {
    %c0_i32 = arith.constant 0 : i32
    %c0_i32_0 = arith.constant 0 : i32
    %c0_i32_1 = arith.constant 0 : i32
    return %arg0, %c0_i32, %c0_i32_0 : i32, i32, i32
  }
  func.func @transform_7(%arg0: i32) -> (i32, i32, i32) {
    %c0_i32 = arith.constant 0 : i32
    %c0_i32_0 = arith.constant 0 : i32
    %c0_i32_1 = arith.constant 0 : i32
    return %arg0, %c0_i32, %c0_i32_0 : i32, i32, i32
  }
}

module attributes {stable_mosaic.version = 11 : i64} {
  func.func @_pdist2_kernel(%arg0: i32, %arg1: memref<1x32x3xf32, #tpu.memory_space<vmem>>, %arg2: memref<1x3x8xf32, #tpu.memory_space<vmem>>, %arg3: memref<1x32x8xf32, #tpu.memory_space<vmem>>) attributes {dimension_semantics = [#tpu.dimension_semantics<parallel>], iteration_bounds = array<i64: 2>, scalar_prefetch = 0 : i64, scratch_operands = 0 : i64, tpu.core_type = #tpu.core_type<tc>, window_params = [{transform_indices = @transform_0, window_bounds = array<i64: 1, 32, 3>}, {transform_indices = @transform_1, window_bounds = array<i64: 1, 3, 8>}, {transform_indices = @transform_2, window_bounds = array<i64: 1, 32, 8>}]} {
    %c0 = arith.constant 0 : index
    %c0_0 = arith.constant 0 : index
    %c0_1 = arith.constant 0 : index
    %0 = vector.load %arg1[%c0, %c0_0, %c0_1] : memref<1x32x3xf32, #tpu.memory_space<vmem>>, vector<1x32x3xf32>
    %1 = vector.shape_cast %0 : vector<1x32x3xf32> to vector<32x3xf32>
    %c0_2 = arith.constant 0 : index
    %c0_3 = arith.constant 0 : index
    %c0_4 = arith.constant 0 : index
    %2 = vector.load %arg2[%c0_2, %c0_3, %c0_4] : memref<1x3x8xf32, #tpu.memory_space<vmem>>, vector<1x3x8xf32>
    %3 = vector.shape_cast %2 : vector<1x3x8xf32> to vector<3x8xf32>
    %4 = arith.mulf %1, %1 : vector<32x3xf32>
    %cst = arith.constant dense<0.000000e+00> : vector<32xf32>
    %5 = vector.multi_reduction <add>, %4, %cst [1] : vector<32x3xf32> to vector<32xf32>
    %6 = vector.shape_cast %5 : vector<32xf32> to vector<32x1xf32>
    %7 = arith.mulf %3, %3 : vector<3x8xf32>
    %cst_5 = arith.constant dense<0.000000e+00> : vector<8xf32>
    %8 = vector.multi_reduction <add>, %7, %cst_5 [0] : vector<3x8xf32> to vector<8xf32>
    %9 = vector.shape_cast %8 : vector<8xf32> to vector<1x8xf32>
    %cst_6 = arith.constant dense<0.000000e+00> : vector<32x8xf32>
    %10 = tpu.matmul %1, %3, %cst_6 {dimension_numbers = #tpu.dot_dimension_numbers<[1], [0], [0], [1], [0, 0, 1, 1], [], []>} : vector<32x3xf32>, vector<3x8xf32>, vector<32x8xf32> -> vector<32x8xf32>
    %11 = vector.broadcast %6 : vector<32x1xf32> to vector<32x8xf32>
    %12 = vector.broadcast %9 : vector<1x8xf32> to vector<32x8xf32>
    %13 = arith.addf %11, %12 : vector<32x8xf32>
    %cst_7 = arith.constant 2.000000e+00 : f32
    %14 = vector.broadcast %cst_7 : f32 to vector<32x8xf32>
    %15 = arith.mulf %14, %10 : vector<32x8xf32>
    %16 = arith.subf %13, %15 : vector<32x8xf32>
    %c0_8 = arith.constant 0 : index
    %c0_9 = arith.constant 0 : index
    %c0_10 = arith.constant 0 : index
    %17 = vector.load %arg3[%c0_8, %c0_9, %c0_10] : memref<1x32x8xf32, #tpu.memory_space<vmem>>, vector<1x32x8xf32>
    %18 = vector.shape_cast %17 : vector<1x32x8xf32> to vector<32x8xf32>
    %19 = vector.shape_cast %16 : vector<32x8xf32> to vector<1x32x8xf32>
    tpu.vector_store %arg3[%c0_8, %c0_9, %c0_10], %19 {strides = array<i32>} : memref<1x32x8xf32, #tpu.memory_space<vmem>>, vector<1x32x8xf32>,
    return
  }
  func.func @transform_0(%arg0: i32) -> (i32, i32, i32) {
    %c0_i32 = arith.constant 0 : i32
    %c0_i32_0 = arith.constant 0 : i32
    %c0_i32_1 = arith.constant 0 : i32
    return %arg0, %c0_i32, %c0_i32_0 : i32, i32, i32
  }
  func.func @transform_1(%arg0: i32) -> (i32, i32, i32) {
    %c0_i32 = arith.constant 0 : i32
    %c0_i32_0 = arith.constant 0 : i32
    %c0_i32_1 = arith.constant 0 : i32
    return %arg0, %c0_i32, %c0_i32_0 : i32, i32, i32
  }
  func.func @transform_2(%arg0: i32) -> (i32, i32, i32) {
    %c0_i32 = arith.constant 0 : i32
    %c0_i32_0 = arith.constant 0 : i32
    %c0_i32_1 = arith.constant 0 : i32
    return %arg0, %c0_i32, %c0_i32_0 : i32, i32, i32
  }
}

module attributes {stable_mosaic.version = 11 : i64} {
  func.func @_pdist2_kernel(%arg0: i32, %arg1: memref<1x128x3xf32, #tpu.memory_space<vmem>>, %arg2: memref<1x3x32xf32, #tpu.memory_space<vmem>>, %arg3: memref<1x128x32xf32, #tpu.memory_space<vmem>>) attributes {dimension_semantics = [#tpu.dimension_semantics<parallel>], iteration_bounds = array<i64: 2>, scalar_prefetch = 0 : i64, scratch_operands = 0 : i64, tpu.core_type = #tpu.core_type<tc>, window_params = [{transform_indices = @transform_0, window_bounds = array<i64: 1, 128, 3>}, {transform_indices = @transform_1, window_bounds = array<i64: 1, 3, 32>}, {transform_indices = @transform_2, window_bounds = array<i64: 1, 128, 32>}]} {
    %c0 = arith.constant 0 : index
    %c0_0 = arith.constant 0 : index
    %c0_1 = arith.constant 0 : index
    %0 = vector.load %arg1[%c0, %c0_0, %c0_1] : memref<1x128x3xf32, #tpu.memory_space<vmem>>, vector<1x128x3xf32>
    %1 = vector.shape_cast %0 : vector<1x128x3xf32> to vector<128x3xf32>
    %c0_2 = arith.constant 0 : index
    %c0_3 = arith.constant 0 : index
    %c0_4 = arith.constant 0 : index
    %2 = vector.load %arg2[%c0_2, %c0_3, %c0_4] : memref<1x3x32xf32, #tpu.memory_space<vmem>>, vector<1x3x32xf32>
    %3 = vector.shape_cast %2 : vector<1x3x32xf32> to vector<3x32xf32>
    %4 = arith.mulf %1, %1 : vector<128x3xf32>
    %cst = arith.constant dense<0.000000e+00> : vector<128xf32>
    %5 = vector.multi_reduction <add>, %4, %cst [1] : vector<128x3xf32> to vector<128xf32>
    %6 = vector.shape_cast %5 : vector<128xf32> to vector<128x1xf32>
    %7 = arith.mulf %3, %3 : vector<3x32xf32>
    %cst_5 = arith.constant dense<0.000000e+00> : vector<32xf32>
    %8 = vector.multi_reduction <add>, %7, %cst_5 [0] : vector<3x32xf32> to vector<32xf32>
    %9 = vector.shape_cast %8 : vector<32xf32> to vector<1x32xf32>
    %cst_6 = arith.constant dense<0.000000e+00> : vector<128x32xf32>
    %10 = tpu.matmul %1, %3, %cst_6 {dimension_numbers = #tpu.dot_dimension_numbers<[1], [0], [0], [1], [0, 0, 1, 1], [], []>} : vector<128x3xf32>, vector<3x32xf32>, vector<128x32xf32> -> vector<128x32xf32>
    %11 = vector.broadcast %6 : vector<128x1xf32> to vector<128x32xf32>
    %12 = vector.broadcast %9 : vector<1x32xf32> to vector<128x32xf32>
    %13 = arith.addf %11, %12 : vector<128x32xf32>
    %cst_7 = arith.constant 2.000000e+00 : f32
    %14 = vector.broadcast %cst_7 : f32 to vector<128x32xf32>
    %15 = arith.mulf %14, %10 : vector<128x32xf32>
    %16 = arith.subf %13, %15 : vector<128x32xf32>
    %c0_8 = arith.constant 0 : index
    %c0_9 = arith.constant 0 : index
    %c0_10 = arith.constant 0 : index
    %17 = vector.load %arg3[%c0_8, %c0_9, %c0_10] : memref<1x128x32xf32, #tpu.memory_space<vmem>>, vector<1x128x32xf32>
    %18 = vector.shape_cast %17 : vector<1x128x32xf32> to vector<128x32xf32>
    %19 = vector.shape_cast %16 : vector<128x32xf32> to vector<1x128x32xf32>
    tpu.vector_store %arg3[%c0_8, %c0_9, %c0_10], %19 {strides = array<i32>} : memref<1x128x32xf32, #tpu.memory_space<vmem>>, vector<1x128x32xf32>,
    return
  }
  func.func @transform_0(%arg0: i32) -> (i32, i32, i32) {
    %c0_i32 = arith.constant 0 : i32
    %c0_i32_0 = arith.constant 0 : i32
    %c0_i32_1 = arith.constant 0 : i32
    return %arg0, %c0_i32, %c0_i32_0 : i32, i32, i32
  }
  func.func @transform_1(%arg0: i32) -> (i32, i32, i32) {
    %c0_i32 = arith.constant 0 : i32
    %c0_i32_0 = arith.constant 0 : i32
    %c0_i32_1 = arith.constant 0 : i32
    return %arg0, %c0_i32, %c0_i32_0 : i32, i32, i32
  }
  func.func @transform_2(%arg0: i32) -> (i32, i32, i32) {
    %c0_i32 = arith.constant 0 : i32
    %c0_i32_0 = arith.constant 0 : i32
    %c0_i32_1 = arith.constant 0 : i32
    return %arg0, %c0_i32, %c0_i32_0 : i32, i32, i32
  }
}

module attributes {stable_mosaic.version = 11 : i64} {
  func.func @_fused_mlp_kernel(%arg0: i32, %arg1: i32, %arg2: memref<160x64xbf16, #tpu.memory_space<vmem>>, %arg3: memref<1x64xf32, #tpu.memory_space<vmem>>, %arg4: memref<64x32xbf16, #tpu.memory_space<vmem>>, %arg5: memref<1x32xf32, #tpu.memory_space<vmem>>, %arg6: memref<1x32x160xbf16, #tpu.memory_space<vmem>>, %arg7: memref<1x32x32xbf16, #tpu.memory_space<vmem>>) attributes {dimension_semantics = [#tpu.dimension_semantics<parallel>, #tpu.dimension_semantics<parallel>], iteration_bounds = array<i64: 2, 1>, scalar_prefetch = 0 : i64, scratch_operands = 0 : i64, tpu.core_type = #tpu.core_type<tc>, window_params = [{pipeline_mode = #tpu.pipeline_mode<synchronous>, transform_indices = @transform_0, window_bounds = array<i64: 160, 64>}, {pipeline_mode = #tpu.pipeline_mode<synchronous>, transform_indices = @transform_1, window_bounds = array<i64: 1, 64>}, {pipeline_mode = #tpu.pipeline_mode<synchronous>, transform_indices = @transform_2, window_bounds = array<i64: 64, 32>}, {pipeline_mode = #tpu.pipeline_mode<synchronous>, transform_indices = @transform_3, window_bounds = array<i64: 1, 32>}, {transform_indices = @transform_4, window_bounds = array<i64: 1, 32, 160>}, {transform_indices = @transform_5, window_bounds = array<i64: 1, 32, 32>}]} {
    %c0 = arith.constant 0 : index
    %c0_0 = arith.constant 0 : index
    %0 = vector.load %arg2[%c0, %c0_0] : memref<160x64xbf16, #tpu.memory_space<vmem>>, vector<160x64xbf16>
    %c0_1 = arith.constant 0 : index
    %c0_2 = arith.constant 0 : index
    %1 = vector.load %arg4[%c0_1, %c0_2] : memref<64x32xbf16, #tpu.memory_space<vmem>>, vector<64x32xbf16>
    %c0_3 = arith.constant 0 : index
    %c0_4 = arith.constant 0 : index
    %2 = vector.load %arg3[%c0_3, %c0_4] : memref<1x64xf32, #tpu.memory_space<vmem>>, vector<1x64xf32>
    %c0_5 = arith.constant 0 : index
    %c0_6 = arith.constant 0 : index
    %3 = vector.load %arg5[%c0_5, %c0_6] : memref<1x32xf32, #tpu.memory_space<vmem>>, vector<1x32xf32>
    %c0_7 = arith.constant 0 : index
    %c0_8 = arith.constant 0 : index
    %c0_9 = arith.constant 0 : index
    %4 = vector.load %arg6[%c0_7, %c0_8, %c0_9] : memref<1x32x160xbf16, #tpu.memory_space<vmem>>, vector<1x32x160xbf16>
    %5 = vector.shape_cast %4 : vector<1x32x160xbf16> to vector<32x160xbf16>
    %cst = arith.constant dense<0.000000e+00> : vector<32x64xf32>
    %6 = tpu.matmul %5, %0, %cst {dimension_numbers = #tpu.dot_dimension_numbers<[1], [0], [0], [1], [0, 0, 1, 1], [], []>} : vector<32x160xbf16>, vector<160x64xbf16>, vector<32x64xf32> -> vector<32x64xf32>
    %7 = vector.broadcast %2 : vector<1x64xf32> to vector<32x64xf32>
    %8 = arith.addf %6, %7 : vector<32x64xf32>
    %cst_10 = arith.constant 0.000000e+00 : f32
    %9 = vector.broadcast %cst_10 : f32 to vector<32x64xf32>
    %10 = arith.maximumf %8, %9 : vector<32x64xf32>
    %11 = arith.truncf %10 : vector<32x64xf32> to vector<32x64xbf16>
    %cst_11 = arith.constant dense<0.000000e+00> : vector<32x32xf32>
    %12 = tpu.matmul %11, %1, %cst_11 {dimension_numbers = #tpu.dot_dimension_numbers<[1], [0], [0], [1], [0, 0, 1, 1], [], []>} : vector<32x64xbf16>, vector<64x32xbf16>, vector<32x32xf32> -> vector<32x32xf32>
    %13 = vector.broadcast %3 : vector<1x32xf32> to vector<32x32xf32>
    %14 = arith.addf %12, %13 : vector<32x32xf32>
    %cst_12 = arith.constant 0.000000e+00 : f32
    %15 = vector.broadcast %cst_12 : f32 to vector<32x32xf32>
    %16 = arith.maximumf %14, %15 : vector<32x32xf32>
    %17 = arith.truncf %16 : vector<32x32xf32> to vector<32x32xbf16>
    %c0_13 = arith.constant 0 : index
    %c0_14 = arith.constant 0 : index
    %c0_15 = arith.constant 0 : index
    %18 = vector.load %arg7[%c0_13, %c0_14, %c0_15] : memref<1x32x32xbf16, #tpu.memory_space<vmem>>, vector<1x32x32xbf16>
    %19 = vector.shape_cast %18 : vector<1x32x32xbf16> to vector<32x32xbf16>
    %20 = vector.shape_cast %17 : vector<32x32xbf16> to vector<1x32x32xbf16>
    tpu.vector_store %arg7[%c0_13, %c0_14, %c0_15], %20 {strides = array<i32>} : memref<1x32x32xbf16, #tpu.memory_space<vmem>>, vector<1x32x32xbf16>,
    return
  }
  func.func @transform_0(%arg0: i32, %arg1: i32) -> (i32, i32) {
    %c0_i32 = arith.constant 0 : i32
    %c0_i32_0 = arith.constant 0 : i32
    %c0_i32_1 = arith.constant 0 : i32
    return %c0_i32, %c0_i32_0 : i32, i32
  }
  func.func @transform_1(%arg0: i32, %arg1: i32) -> (i32, i32) {
    %c0_i32 = arith.constant 0 : i32
    %c0_i32_0 = arith.constant 0 : i32
    %c0_i32_1 = arith.constant 0 : i32
    return %c0_i32, %c0_i32_0 : i32, i32
  }
  func.func @transform_2(%arg0: i32, %arg1: i32) -> (i32, i32) {
    %c0_i32 = arith.constant 0 : i32
    %c0_i32_0 = arith.constant 0 : i32
    %c0_i32_1 = arith.constant 0 : i32
    return %c0_i32, %c0_i32_0 : i32, i32
  }
  func.func @transform_3(%arg0: i32, %arg1: i32) -> (i32, i32) {
    %c0_i32 = arith.constant 0 : i32
    %c0_i32_0 = arith.constant 0 : i32
    %c0_i32_1 = arith.constant 0 : i32
    return %c0_i32, %c0_i32_0 : i32, i32
  }
  func.func @transform_4(%arg0: i32, %arg1: i32) -> (i32, i32, i32) {
    %c0_i32 = arith.constant 0 : i32
    %c0_i32_0 = arith.constant 0 : i32
    return %arg0, %arg1, %c0_i32 : i32, i32, i32
  }
  func.func @transform_5(%arg0: i32, %arg1: i32) -> (i32, i32, i32) {
    %c0_i32 = arith.constant 0 : i32
    %c0_i32_0 = arith.constant 0 : i32
    return %arg0, %arg1, %c0_i32 : i32, i32, i32
  }
}

module attributes {stable_mosaic.version = 11 : i64} {
  func.func @_fused_mlp_kernel(%arg0: i32, %arg1: i32, %arg2: memref<39x32xbf16, #tpu.memory_space<vmem>>, %arg3: memref<1x32xf32, #tpu.memory_space<vmem>>, %arg4: memref<32x32xbf16, #tpu.memory_space<vmem>>, %arg5: memref<1x32xf32, #tpu.memory_space<vmem>>, %arg6: memref<1x128x39xbf16, #tpu.memory_space<vmem>>, %arg7: memref<1x128x32xbf16, #tpu.memory_space<vmem>>) attributes {dimension_semantics = [#tpu.dimension_semantics<parallel>, #tpu.dimension_semantics<parallel>], iteration_bounds = array<i64: 2, 1>, scalar_prefetch = 0 : i64, scratch_operands = 0 : i64, tpu.core_type = #tpu.core_type<tc>, window_params = [{pipeline_mode = #tpu.pipeline_mode<synchronous>, transform_indices = @transform_0, window_bounds = array<i64: 39, 32>}, {pipeline_mode = #tpu.pipeline_mode<synchronous>, transform_indices = @transform_1, window_bounds = array<i64: 1, 32>}, {pipeline_mode = #tpu.pipeline_mode<synchronous>, transform_indices = @transform_2, window_bounds = array<i64: 32, 32>}, {pipeline_mode = #tpu.pipeline_mode<synchronous>, transform_indices = @transform_3, window_bounds = array<i64: 1, 32>}, {transform_indices = @transform_4, window_bounds = array<i64: 1, 128, 39>}, {transform_indices = @transform_5, window_bounds = array<i64: 1, 128, 32>}]} {
    %c0 = arith.constant 0 : index
    %c0_0 = arith.constant 0 : index
    %0 = vector.load %arg2[%c0, %c0_0] : memref<39x32xbf16, #tpu.memory_space<vmem>>, vector<39x32xbf16>
    %c0_1 = arith.constant 0 : index
    %c0_2 = arith.constant 0 : index
    %1 = vector.load %arg4[%c0_1, %c0_2] : memref<32x32xbf16, #tpu.memory_space<vmem>>, vector<32x32xbf16>
    %c0_3 = arith.constant 0 : index
    %c0_4 = arith.constant 0 : index
    %2 = vector.load %arg3[%c0_3, %c0_4] : memref<1x32xf32, #tpu.memory_space<vmem>>, vector<1x32xf32>
    %c0_5 = arith.constant 0 : index
    %c0_6 = arith.constant 0 : index
    %3 = vector.load %arg5[%c0_5, %c0_6] : memref<1x32xf32, #tpu.memory_space<vmem>>, vector<1x32xf32>
    %c0_7 = arith.constant 0 : index
    %c0_8 = arith.constant 0 : index
    %c0_9 = arith.constant 0 : index
    %4 = vector.load %arg6[%c0_7, %c0_8, %c0_9] : memref<1x128x39xbf16, #tpu.memory_space<vmem>>, vector<1x128x39xbf16>
    %5 = vector.shape_cast %4 : vector<1x128x39xbf16> to vector<128x39xbf16>
    %cst = arith.constant dense<0.000000e+00> : vector<128x32xf32>
    %6 = tpu.matmul %5, %0, %cst {dimension_numbers = #tpu.dot_dimension_numbers<[1], [0], [0], [1], [0, 0, 1, 1], [], []>} : vector<128x39xbf16>, vector<39x32xbf16>, vector<128x32xf32> -> vector<128x32xf32>
    %7 = vector.broadcast %2 : vector<1x32xf32> to vector<128x32xf32>
    %8 = arith.addf %6, %7 : vector<128x32xf32>
    %cst_10 = arith.constant 0.000000e+00 : f32
    %9 = vector.broadcast %cst_10 : f32 to vector<128x32xf32>
    %10 = arith.maximumf %8, %9 : vector<128x32xf32>
    %11 = arith.truncf %10 : vector<128x32xf32> to vector<128x32xbf16>
    %cst_11 = arith.constant dense<0.000000e+00> : vector<128x32xf32>
    %12 = tpu.matmul %11, %1, %cst_11 {dimension_numbers = #tpu.dot_dimension_numbers<[1], [0], [0], [1], [0, 0, 1, 1], [], []>} : vector<128x32xbf16>, vector<32x32xbf16>, vector<128x32xf32> -> vector<128x32xf32>
    %13 = vector.broadcast %3 : vector<1x32xf32> to vector<128x32xf32>
    %14 = arith.addf %12, %13 : vector<128x32xf32>
    %cst_12 = arith.constant 0.000000e+00 : f32
    %15 = vector.broadcast %cst_12 : f32 to vector<128x32xf32>
    %16 = arith.maximumf %14, %15 : vector<128x32xf32>
    %17 = arith.truncf %16 : vector<128x32xf32> to vector<128x32xbf16>
    %c0_13 = arith.constant 0 : index
    %c0_14 = arith.constant 0 : index
    %c0_15 = arith.constant 0 : index
    %18 = vector.load %arg7[%c0_13, %c0_14, %c0_15] : memref<1x128x32xbf16, #tpu.memory_space<vmem>>, vector<1x128x32xbf16>
    %19 = vector.shape_cast %18 : vector<1x128x32xbf16> to vector<128x32xbf16>
    %20 = vector.shape_cast %17 : vector<128x32xbf16> to vector<1x128x32xbf16>
    tpu.vector_store %arg7[%c0_13, %c0_14, %c0_15], %20 {strides = array<i32>} : memref<1x128x32xbf16, #tpu.memory_space<vmem>>, vector<1x128x32xbf16>,
    return
  }
  func.func @transform_0(%arg0: i32, %arg1: i32) -> (i32, i32) {
    %c0_i32 = arith.constant 0 : i32
    %c0_i32_0 = arith.constant 0 : i32
    %c0_i32_1 = arith.constant 0 : i32
    return %c0_i32, %c0_i32_0 : i32, i32
  }
  func.func @transform_1(%arg0: i32, %arg1: i32) -> (i32, i32) {
    %c0_i32 = arith.constant 0 : i32
    %c0_i32_0 = arith.constant 0 : i32
    %c0_i32_1 = arith.constant 0 : i32
    return %c0_i32, %c0_i32_0 : i32, i32
  }
  func.func @transform_2(%arg0: i32, %arg1: i32) -> (i32, i32) {
    %c0_i32 = arith.constant 0 : i32
    %c0_i32_0 = arith.constant 0 : i32
    %c0_i32_1 = arith.constant 0 : i32
    return %c0_i32, %c0_i32_0 : i32, i32
  }
  func.func @transform_3(%arg0: i32, %arg1: i32) -> (i32, i32) {
    %c0_i32 = arith.constant 0 : i32
    %c0_i32_0 = arith.constant 0 : i32
    %c0_i32_1 = arith.constant 0 : i32
    return %c0_i32, %c0_i32_0 : i32, i32
  }
  func.func @transform_4(%arg0: i32, %arg1: i32) -> (i32, i32, i32) {
    %c0_i32 = arith.constant 0 : i32
    %c0_i32_0 = arith.constant 0 : i32
    return %arg0, %arg1, %c0_i32 : i32, i32, i32
  }
  func.func @transform_5(%arg0: i32, %arg1: i32) -> (i32, i32, i32) {
    %c0_i32 = arith.constant 0 : i32
    %c0_i32_0 = arith.constant 0 : i32
    return %arg0, %arg1, %c0_i32 : i32, i32, i32
  }
}

module attributes {stable_mosaic.version = 11 : i64} {
  func.func @_fused_mlp_kernel(%arg0: i32, %arg1: i32, %arg2: memref<32x32xbf16, #tpu.memory_space<vmem>>, %arg3: memref<1x32xf32, #tpu.memory_space<vmem>>, %arg4: memref<32x32xbf16, #tpu.memory_space<vmem>>, %arg5: memref<1x32xf32, #tpu.memory_space<vmem>>, %arg6: memref<32x32xbf16, #tpu.memory_space<vmem>>, %arg7: memref<1x32xf32, #tpu.memory_space<vmem>>, %arg8: memref<32x8xbf16, #tpu.memory_space<vmem>>, %arg9: memref<1x8xf32, #tpu.memory_space<vmem>>, %arg10: memref<1x128x32xbf16, #tpu.memory_space<vmem>>, %arg11: memref<1x128x8xf32, #tpu.memory_space<vmem>>) attributes {dimension_semantics = [#tpu.dimension_semantics<parallel>, #tpu.dimension_semantics<parallel>], iteration_bounds = array<i64: 2, 1>, scalar_prefetch = 0 : i64, scratch_operands = 0 : i64, tpu.core_type = #tpu.core_type<tc>, window_params = [{pipeline_mode = #tpu.pipeline_mode<synchronous>, transform_indices = @transform_0, window_bounds = array<i64: 32, 32>}, {pipeline_mode = #tpu.pipeline_mode<synchronous>, transform_indices = @transform_1, window_bounds = array<i64: 1, 32>}, {pipeline_mode = #tpu.pipeline_mode<synchronous>, transform_indices = @transform_2, window_bounds = array<i64: 32, 32>}, {pipeline_mode = #tpu.pipeline_mode<synchronous>, transform_indices = @transform_3, window_bounds = array<i64: 1, 32>}, {pipeline_mode = #tpu.pipeline_mode<synchronous>, transform_indices = @transform_4, window_bounds = array<i64: 32, 32>}, {pipeline_mode = #tpu.pipeline_mode<synchronous>, transform_indices = @transform_5, window_bounds = array<i64: 1, 32>}, {pipeline_mode = #tpu.pipeline_mode<synchronous>, transform_indices = @transform_6, window_bounds = array<i64: 32, 8>}, {pipeline_mode = #tpu.pipeline_mode<synchronous>, transform_indices = @transform_7, window_bounds = array<i64: 1, 8>}, {transform_indices = @transform_8, window_bounds = array<i64: 1, 128, 32>}, {transform_indices = @transform_9, window_bounds = array<i64: 1, 128, 8>}]} {
    %c0 = arith.constant 0 : index
    %c0_0 = arith.constant 0 : index
    %0 = vector.load %arg2[%c0, %c0_0] : memref<32x32xbf16, #tpu.memory_space<vmem>>, vector<32x32xbf16>
    %c0_1 = arith.constant 0 : index
    %c0_2 = arith.constant 0 : index
    %1 = vector.load %arg4[%c0_1, %c0_2] : memref<32x32xbf16, #tpu.memory_space<vmem>>, vector<32x32xbf16>
    %c0_3 = arith.constant 0 : index
    %c0_4 = arith.constant 0 : index
    %2 = vector.load %arg6[%c0_3, %c0_4] : memref<32x32xbf16, #tpu.memory_space<vmem>>, vector<32x32xbf16>
    %c0_5 = arith.constant 0 : index
    %c0_6 = arith.constant 0 : index
    %3 = vector.load %arg8[%c0_5, %c0_6] : memref<32x8xbf16, #tpu.memory_space<vmem>>, vector<32x8xbf16>
    %c0_7 = arith.constant 0 : index
    %c0_8 = arith.constant 0 : index
    %4 = vector.load %arg3[%c0_7, %c0_8] : memref<1x32xf32, #tpu.memory_space<vmem>>, vector<1x32xf32>
    %c0_9 = arith.constant 0 : index
    %c0_10 = arith.constant 0 : index
    %5 = vector.load %arg5[%c0_9, %c0_10] : memref<1x32xf32, #tpu.memory_space<vmem>>, vector<1x32xf32>
    %c0_11 = arith.constant 0 : index
    %c0_12 = arith.constant 0 : index
    %6 = vector.load %arg7[%c0_11, %c0_12] : memref<1x32xf32, #tpu.memory_space<vmem>>, vector<1x32xf32>
    %c0_13 = arith.constant 0 : index
    %c0_14 = arith.constant 0 : index
    %7 = vector.load %arg9[%c0_13, %c0_14] : memref<1x8xf32, #tpu.memory_space<vmem>>, vector<1x8xf32>
    %c0_15 = arith.constant 0 : index
    %c0_16 = arith.constant 0 : index
    %c0_17 = arith.constant 0 : index
    %8 = vector.load %arg10[%c0_15, %c0_16, %c0_17] : memref<1x128x32xbf16, #tpu.memory_space<vmem>>, vector<1x128x32xbf16>
    %9 = vector.shape_cast %8 : vector<1x128x32xbf16> to vector<128x32xbf16>
    %cst = arith.constant dense<0.000000e+00> : vector<128x32xf32>
    %10 = tpu.matmul %9, %0, %cst {dimension_numbers = #tpu.dot_dimension_numbers<[1], [0], [0], [1], [0, 0, 1, 1], [], []>} : vector<128x32xbf16>, vector<32x32xbf16>, vector<128x32xf32> -> vector<128x32xf32>
    %11 = vector.broadcast %4 : vector<1x32xf32> to vector<128x32xf32>
    %12 = arith.addf %10, %11 : vector<128x32xf32>
    %cst_18 = arith.constant 0.000000e+00 : f32
    %13 = vector.broadcast %cst_18 : f32 to vector<128x32xf32>
    %14 = arith.maximumf %12, %13 : vector<128x32xf32>
    %15 = arith.truncf %14 : vector<128x32xf32> to vector<128x32xbf16>
    %cst_19 = arith.constant dense<0.000000e+00> : vector<128x32xf32>
    %16 = tpu.matmul %15, %1, %cst_19 {dimension_numbers = #tpu.dot_dimension_numbers<[1], [0], [0], [1], [0, 0, 1, 1], [], []>} : vector<128x32xbf16>, vector<32x32xbf16>, vector<128x32xf32> -> vector<128x32xf32>
    %17 = vector.broadcast %5 : vector<1x32xf32> to vector<128x32xf32>
    %18 = arith.addf %16, %17 : vector<128x32xf32>
    %cst_20 = arith.constant 0.000000e+00 : f32
    %19 = vector.broadcast %cst_20 : f32 to vector<128x32xf32>
    %20 = arith.maximumf %18, %19 : vector<128x32xf32>
    %21 = arith.truncf %20 : vector<128x32xf32> to vector<128x32xbf16>
    %cst_21 = arith.constant dense<0.000000e+00> : vector<128x32xf32>
    %22 = tpu.matmul %21, %2, %cst_21 {dimension_numbers = #tpu.dot_dimension_numbers<[1], [0], [0], [1], [0, 0, 1, 1], [], []>} : vector<128x32xbf16>, vector<32x32xbf16>, vector<128x32xf32> -> vector<128x32xf32>
    %23 = vector.broadcast %6 : vector<1x32xf32> to vector<128x32xf32>
    %24 = arith.addf %22, %23 : vector<128x32xf32>
    %cst_22 = arith.constant 0.000000e+00 : f32
    %25 = vector.broadcast %cst_22 : f32 to vector<128x32xf32>
    %26 = arith.maximumf %24, %25 : vector<128x32xf32>
    %27 = arith.truncf %26 : vector<128x32xf32> to vector<128x32xbf16>
    %cst_23 = arith.constant dense<0.000000e+00> : vector<128x8xf32>
    %28 = tpu.matmul %27, %3, %cst_23 {dimension_numbers = #tpu.dot_dimension_numbers<[1], [0], [0], [1], [0, 0, 1, 1], [], []>} : vector<128x32xbf16>, vector<32x8xbf16>, vector<128x8xf32> -> vector<128x8xf32>
    %29 = vector.broadcast %7 : vector<1x8xf32> to vector<128x8xf32>
    %30 = arith.addf %28, %29 : vector<128x8xf32>
    %c0_24 = arith.constant 0 : index
    %c0_25 = arith.constant 0 : index
    %c0_26 = arith.constant 0 : index
    %31 = vector.load %arg11[%c0_24, %c0_25, %c0_26] : memref<1x128x8xf32, #tpu.memory_space<vmem>>, vector<1x128x8xf32>
    %32 = vector.shape_cast %31 : vector<1x128x8xf32> to vector<128x8xf32>
    %33 = vector.shape_cast %30 : vector<128x8xf32> to vector<1x128x8xf32>
    tpu.vector_store %arg11[%c0_24, %c0_25, %c0_26], %33 {strides = array<i32>} : memref<1x128x8xf32, #tpu.memory_space<vmem>>, vector<1x128x8xf32>,
    return
  }
  func.func @transform_0(%arg0: i32, %arg1: i32) -> (i32, i32) {
    %c0_i32 = arith.constant 0 : i32
    %c0_i32_0 = arith.constant 0 : i32
    %c0_i32_1 = arith.constant 0 : i32
    return %c0_i32, %c0_i32_0 : i32, i32
  }
  func.func @transform_1(%arg0: i32, %arg1: i32) -> (i32, i32) {
    %c0_i32 = arith.constant 0 : i32
    %c0_i32_0 = arith.constant 0 : i32
    %c0_i32_1 = arith.constant 0 : i32
    return %c0_i32, %c0_i32_0 : i32, i32
  }
  func.func @transform_2(%arg0: i32, %arg1: i32) -> (i32, i32) {
    %c0_i32 = arith.constant 0 : i32
    %c0_i32_0 = arith.constant 0 : i32
    %c0_i32_1 = arith.constant 0 : i32
    return %c0_i32, %c0_i32_0 : i32, i32
  }
  func.func @transform_3(%arg0: i32, %arg1: i32) -> (i32, i32) {
    %c0_i32 = arith.constant 0 : i32
    %c0_i32_0 = arith.constant 0 : i32
    %c0_i32_1 = arith.constant 0 : i32
    return %c0_i32, %c0_i32_0 : i32, i32
  }
  func.func @transform_4(%arg0: i32, %arg1: i32) -> (i32, i32) {
    %c0_i32 = arith.constant 0 : i32
    %c0_i32_0 = arith.constant 0 : i32
    %c0_i32_1 = arith.constant 0 : i32
    return %c0_i32, %c0_i32_0 : i32, i32
  }
  func.func @transform_5(%arg0: i32, %arg1: i32) -> (i32, i32) {
    %c0_i32 = arith.constant 0 : i32
    %c0_i32_0 = arith.constant 0 : i32
    %c0_i32_1 = arith.constant 0 : i32
    return %c0_i32, %c0_i32_0 : i32, i32
  }
  func.func @transform_6(%arg0: i32, %arg1: i32) -> (i32, i32) {
    %c0_i32 = arith.constant 0 : i32
    %c0_i32_0 = arith.constant 0 : i32
    %c0_i32_1 = arith.constant 0 : i32
    return %c0_i32, %c0_i32_0 : i32, i32
  }
  func.func @transform_7(%arg0: i32, %arg1: i32) -> (i32, i32) {
    %c0_i32 = arith.constant 0 : i32
    %c0_i32_0 = arith.constant 0 : i32
    %c0_i32_1 = arith.constant 0 : i32
    return %c0_i32, %c0_i32_0 : i32, i32
  }
  func.func @transform_8(%arg0: i32, %arg1: i32) -> (i32, i32, i32) {
    %c0_i32 = arith.constant 0 : i32
    %c0_i32_0 = arith.constant 0 : i32
    return %arg0, %arg1, %c0_i32 : i32, i32, i32
  }
  func.func @transform_9(%arg0: i32, %arg1: i32) -> (i32, i32, i32) {
    %c0_i32 = arith.constant 0 : i32
    %c0_i32_0 = arith.constant 0 : i32
    return %arg0, %arg1, %c0_i32 : i32, i32, i32
  }
}

module attributes {stable_mosaic.version = 11 : i64} {
  func.func @_fused_mlp_kernel(%arg0: i32, %arg1: i32, %arg2: memref<128x32xbf16, #tpu.memory_space<vmem>>, %arg3: memref<1x32xf32, #tpu.memory_space<vmem>>, %arg4: memref<32x32xbf16, #tpu.memory_space<vmem>>, %arg5: memref<1x32xf32, #tpu.memory_space<vmem>>, %arg6: memref<32x4xbf16, #tpu.memory_space<vmem>>, %arg7: memref<1x4xf32, #tpu.memory_space<vmem>>, %arg8: memref<1x1x128xbf16, #tpu.memory_space<vmem>>, %arg9: memref<1x1x4xf32, #tpu.memory_space<vmem>>) attributes {dimension_semantics = [#tpu.dimension_semantics<parallel>, #tpu.dimension_semantics<parallel>], iteration_bounds = array<i64: 2, 1>, scalar_prefetch = 0 : i64, scratch_operands = 0 : i64, tpu.core_type = #tpu.core_type<tc>, window_params = [{pipeline_mode = #tpu.pipeline_mode<synchronous>, transform_indices = @transform_0, window_bounds = array<i64: 128, 32>}, {pipeline_mode = #tpu.pipeline_mode<synchronous>, transform_indices = @transform_1, window_bounds = array<i64: 1, 32>}, {pipeline_mode = #tpu.pipeline_mode<synchronous>, transform_indices = @transform_2, window_bounds = array<i64: 32, 32>}, {pipeline_mode = #tpu.pipeline_mode<synchronous>, transform_indices = @transform_3, window_bounds = array<i64: 1, 32>}, {pipeline_mode = #tpu.pipeline_mode<synchronous>, transform_indices = @transform_4, window_bounds = array<i64: 32, 4>}, {pipeline_mode = #tpu.pipeline_mode<synchronous>, transform_indices = @transform_5, window_bounds = array<i64: 1, 4>}, {transform_indices = @transform_6, window_bounds = array<i64: 1, 1, 128>}, {transform_indices = @transform_7, window_bounds = array<i64: 1, 1, 4>}]} {
    %c0 = arith.constant 0 : index
    %c0_0 = arith.constant 0 : index
    %0 = vector.load %arg2[%c0, %c0_0] : memref<128x32xbf16, #tpu.memory_space<vmem>>, vector<128x32xbf16>
    %c0_1 = arith.constant 0 : index
    %c0_2 = arith.constant 0 : index
    %1 = vector.load %arg4[%c0_1, %c0_2] : memref<32x32xbf16, #tpu.memory_space<vmem>>, vector<32x32xbf16>
    %c0_3 = arith.constant 0 : index
    %c0_4 = arith.constant 0 : index
    %2 = vector.load %arg6[%c0_3, %c0_4] : memref<32x4xbf16, #tpu.memory_space<vmem>>, vector<32x4xbf16>
    %c0_5 = arith.constant 0 : index
    %c0_6 = arith.constant 0 : index
    %3 = vector.load %arg3[%c0_5, %c0_6] : memref<1x32xf32, #tpu.memory_space<vmem>>, vector<1x32xf32>
    %c0_7 = arith.constant 0 : index
    %c0_8 = arith.constant 0 : index
    %4 = vector.load %arg5[%c0_7, %c0_8] : memref<1x32xf32, #tpu.memory_space<vmem>>, vector<1x32xf32>
    %c0_9 = arith.constant 0 : index
    %c0_10 = arith.constant 0 : index
    %5 = vector.load %arg7[%c0_9, %c0_10] : memref<1x4xf32, #tpu.memory_space<vmem>>, vector<1x4xf32>
    %c0_11 = arith.constant 0 : index
    %c0_12 = arith.constant 0 : index
    %c0_13 = arith.constant 0 : index
    %6 = vector.load %arg8[%c0_11, %c0_12, %c0_13] : memref<1x1x128xbf16, #tpu.memory_space<vmem>>, vector<1x1x128xbf16>
    %7 = vector.shape_cast %6 : vector<1x1x128xbf16> to vector<1x128xbf16>
    %cst = arith.constant dense<0.000000e+00> : vector<1x32xf32>
    %8 = tpu.matmul %7, %0, %cst {dimension_numbers = #tpu.dot_dimension_numbers<[1], [0], [0], [1], [0, 0, 1, 1], [], []>} : vector<1x128xbf16>, vector<128x32xbf16>, vector<1x32xf32> -> vector<1x32xf32>
    %9 = arith.addf %8, %3 : vector<1x32xf32>
    %cst_14 = arith.constant 0.000000e+00 : f32
    %10 = vector.broadcast %cst_14 : f32 to vector<1x32xf32>
    %11 = arith.maximumf %9, %10 : vector<1x32xf32>
    %12 = arith.truncf %11 : vector<1x32xf32> to vector<1x32xbf16>
    %cst_15 = arith.constant dense<0.000000e+00> : vector<1x32xf32>
    %13 = tpu.matmul %12, %1, %cst_15 {dimension_numbers = #tpu.dot_dimension_numbers<[1], [0], [0], [1], [0, 0, 1, 1], [], []>} : vector<1x32xbf16>, vector<32x32xbf16>, vector<1x32xf32> -> vector<1x32xf32>
    %14 = arith.addf %13, %4 : vector<1x32xf32>
    %cst_16 = arith.constant 0.000000e+00 : f32
    %15 = vector.broadcast %cst_16 : f32 to vector<1x32xf32>
    %16 = arith.maximumf %14, %15 : vector<1x32xf32>
    %17 = arith.truncf %16 : vector<1x32xf32> to vector<1x32xbf16>
    %cst_17 = arith.constant dense<0.000000e+00> : vector<1x4xf32>
    %18 = tpu.matmul %17, %2, %cst_17 {dimension_numbers = #tpu.dot_dimension_numbers<[1], [0], [0], [1], [0, 0, 1, 1], [], []>} : vector<1x32xbf16>, vector<32x4xbf16>, vector<1x4xf32> -> vector<1x4xf32>
    %19 = arith.addf %18, %5 : vector<1x4xf32>
    %c0_18 = arith.constant 0 : index
    %c0_19 = arith.constant 0 : index
    %c0_20 = arith.constant 0 : index
    %20 = vector.load %arg9[%c0_18, %c0_19, %c0_20] : memref<1x1x4xf32, #tpu.memory_space<vmem>>, vector<1x1x4xf32>
    %21 = vector.shape_cast %20 : vector<1x1x4xf32> to vector<1x4xf32>
    %22 = vector.shape_cast %19 : vector<1x4xf32> to vector<1x1x4xf32>
    tpu.vector_store %arg9[%c0_18, %c0_19, %c0_20], %22 {strides = array<i32>} : memref<1x1x4xf32, #tpu.memory_space<vmem>>, vector<1x1x4xf32>,
    return
  }
  func.func @transform_0(%arg0: i32, %arg1: i32) -> (i32, i32) {
    %c0_i32 = arith.constant 0 : i32
    %c0_i32_0 = arith.constant 0 : i32
    %c0_i32_1 = arith.constant 0 : i32
    return %c0_i32, %c0_i32_0 : i32, i32
  }
  func.func @transform_1(%arg0: i32, %arg1: i32) -> (i32, i32) {
    %c0_i32 = arith.constant 0 : i32
    %c0_i32_0 = arith.constant 0 : i32
    %c0_i32_1 = arith.constant 0 : i32
    return %c0_i32, %c0_i32_0 : i32, i32
  }
  func.func @transform_2(%arg0: i32, %arg1: i32) -> (i32, i32) {
    %c0_i32 = arith.constant 0 : i32
    %c0_i32_0 = arith.constant 0 : i32
    %c0_i32_1 = arith.constant 0 : i32
    return %c0_i32, %c0_i32_0 : i32, i32
  }
  func.func @transform_3(%arg0: i32, %arg1: i32) -> (i32, i32) {
    %c0_i32 = arith.constant 0 : i32
    %c0_i32_0 = arith.constant 0 : i32
    %c0_i32_1 = arith.constant 0 : i32
    return %c0_i32, %c0_i32_0 : i32, i32
  }
  func.func @transform_4(%arg0: i32, %arg1: i32) -> (i32, i32) {
    %c0_i32 = arith.constant 0 : i32
    %c0_i32_0 = arith.constant 0 : i32
    %c0_i32_1 = arith.constant 0 : i32
    return %c0_i32, %c0_i32_0 : i32, i32
  }
  func.func @transform_5(%arg0: i32, %arg1: i32) -> (i32, i32) {
    %c0_i32 = arith.constant 0 : i32
    %c0_i32_0 = arith.constant 0 : i32
    %c0_i32_1 = arith.constant 0 : i32
    return %c0_i32, %c0_i32_0 : i32, i32
  }
  func.func @transform_6(%arg0: i32, %arg1: i32) -> (i32, i32, i32) {
    %c0_i32 = arith.constant 0 : i32
    %c0_i32_0 = arith.constant 0 : i32
    return %arg0, %arg1, %c0_i32 : i32, i32, i32
  }
  func.func @transform_7(%arg0: i32, %arg1: i32) -> (i32, i32, i32) {
    %c0_i32 = arith.constant 0 : i32
    %c0_i32_0 = arith.constant 0 : i32
    return %arg0, %arg1, %c0_i32 : i32, i32, i32
  }
}

</mosaic_0001>

<bundles_post_ra>
// kernel: _lambda_.17
= control target key start
LH: loop header
LB: loop body
LE: loop exit
PB: predicated region body
PF: predicated region fallthrough
CT: control target
= control target key end

     0   :  { %s294_s6 = smov 0   ;;  %s327_s0 = inlined_call_operand.vmem [shape: f32[2,3,128], index: 0, kind: input, shape index: {}]   ;;  %s328_s1 = inlined_call_operand.vmem [shape: s32[2,1,32], index: 1, kind: output, shape index: {}]  }
   0x1 LB: > { %s217_s7 = sadd.s32 4294967295, %s271_s6   ;;  %p221_p0 = scmp.ge.s32.totalorder %s271_s6, 1  ;;  %s271_s6 = sphi %s294_s6, %s11_s6  }
   0x2   : > { %p86_p1 = scmp.lt.s32.totalorder %s271_s6, 3 }
   0x4   : > { %p87_p2 = pnand %p221_p0, %p86_p1 }
   0x5   : > { %p103_p3 = scmp.lt.s32.totalorder (!%p87_p2), %s217_s7, 1  ;;  %s312_s15 = smov (!%p87_p2), 1  }
   0x6   : > { %90 = sbr.rel (%p87_p2) target bundleno = 404 (0x194), region = 24 }
   0xb   : > { %v111_v0 = vlaneseq  ;;  %v281_v1 = vmov 1e+10   ;;  %s330_s7 = smov (!%p103_p3, %s217_s7), 1  ;;  %vm114_vm0 = vcmask 253952   ;;  %v282_v4 = vmov 0  }
   0xc   : > { %116 = vst [vmem:[#allocation2] sm:$0x1] %v281_v1  ;;  %s222_s8 = sshll.u32 %s330_s7, 2  ;;  %s305_s11 = scalar_lea.vmem %s328_s1, %s330_s7  ;;  %v273_v6 = vmov 0  }
   0xd   : > { %v112_v2 = vand.u32 127, %v111_v0  ;;  %s106_s14 = scalar_lea.vmem %s327_s0, %s222_s8  ;;  %115 = vst.msk [vmem:[%s305_s11] sm:$0x1] %vm114_vm0, %v282_v4 }
   0xe   : > { %v110_v5 = vld [vmem:[%s106_s14] sm:$0x7] }
   0xf   : > { %v113_v3 = vcvt.s32.f32 %v112_v2 }
  0x10 LB: >> { %vm124_vm1 = vcmp.eq.s32.totalorder %v112_v2, %v275_v6  ;;  %v283_v7 = vmov 0   ;;  %vm129_vm2 = vcmask 1042432   ;;  %vm145_vm4 = vcmask 1040384   ;;  %s279_s15 = sphi %s312_s15, %s122_s15   ;;  %v275_v6 = vphi %v273_v6, %v229_v6  }
  0x11   : >> { %v125_v8 = vsel %vm124_vm1, 1, %v283_v7  ;;  %v156_v28 = vstv %s279_s15  ;;  %s122_s15 = sadd.s32 1, %s279_s15  }
  0x12   : >> { %v126_v9 = vperm.slane %v125_v8, 0  ;;  %vm157_vm6 = vcmp.eq.s32.totalorder %v112_v2, %v156_v28  ;;  %p119_p4 = scmp.ge.s32.totalorder %s122_s15, 32  }
  0x13   : >> { %v142_v21 = vld [vmem:[#allocation2] sm:$0x1]  ;;  %v158_v32 = vsel %vm157_vm6, 1, %v283_v7 }
  0x14   : >> { %vm127_vm3 = vcmp.eq.s32.totalorder %v126_v9, 1  ;;  %v155_v34 = vld [vmem:[%s305_s11] sm:$0x1] }
  0x15   : >> { %v128_v10 = vsel %vm127_vm3, %v110_v5, 0.0 }
  0x16   : >> { %v130_v11 = vsel %vm129_vm2, %v128_v10, 0.0 }
  0x17   : >> { %131 = vadd.xlane.f32.xlu0 %v130_v11 }
  0x8a   : >> { %v132_v12 = vpop.xlane.xlu0 %131 }
  0x8b   : >> { %v133_v13 = vsub.f32 %v110_v5, %v132_v12 }
  0x8d   : >> { %v134_v14 = vmul.f32 %v133_v13, %v133_v13 }
  0x8f   : >> { %v135_v15 = vsel %vm129_vm2, %v134_v14, 0.0 }
  0x90   : >> { %v136_v16 = vrot.slane %v135_v15, 4 }
  0x92   : >> { %v137_v17 = vadd.f32 %v136_v16, %v135_v15 }
  0x94   : >> { %v138_v18 = vrot.slane %v137_v17, 2 }
  0x96   : >> { %v139_v19 = vadd.f32 %v138_v18, %v137_v17 }
  0x98   : >> { %v140_v20 = vrot.slane %v139_v19, 1 }
  0x9a   : >> { %v141_v22 = vadd.f32 %v140_v20, %v139_v19 }
  0x9c   : >> { %v143_v23 = vmin.f32 %v142_v21, %v141_v22 }
  0x9e   : >> { %v146_v24 = vsel %vm145_vm4, %v143_v23, -inf  ;;  %144 = vst [vmem:[#allocation2] sm:$0x1] %v143_v23 }
  0x9f   : >> { %147 = vmax.xlane.f32.xlu0 %v146_v24 }
 0x112   : >> { %v148_v25 = vpop.xlane.xlu0 %147 }
 0x113   : >> { %vm149_vm5 = vcmp.eq.f32.partialorder %v143_v23, %v148_v25 }
 0x114   : >> { %v150_v26 = vsel %vm149_vm5, %v113_v3, 128.0 }
 0x115   : >> { %v151_v27 = vsel %vm145_vm4, %v150_v26, inf }
 0x116   : >> { %152 = vmin.xlane.f32.xlu1 %v151_v27 }
 0x189   : >> { %v153_v29 = vpop.xlane.xlu1 %152 }
 0x18a   : >> { %vm225_vm7 = vcmp.lt.s32.totalorder %v153_v29, 0  ;;  %v226_v30 = vceil.f32 %v153_v29  ;;  %v227_v31 = vfloor.f32 %v153_v29 }
 0x18c   : >> { %v228_v33 = vsel %vm225_vm7, %v226_v30, %v227_v31 }
 0x18d   : >> { %v229_v6 = vcvt.f32.s32 %v228_v33  }
 0x18f   : >> { %v159_v35 = vmul.u32 %v229_v6, %v158_v32  ;;  %121 = sbr.rel (!%p119_p4) target bundleno = 16 (0x10), region = 61 }
 0x191   : >> { %v160_v36 = vadd.s32 %v159_v35, %v155_v34 }
 0x193   : >> { %161 = vst.msk [vmem:[%s305_s11] sm:$0x1] %vm114_vm0, %v160_v36 }
 0x194 PF: > { %s11_s6 = sadd.s32 1, %s271_s6  }
 0x195   : > { %p8_p5 = scmp.ge.s32.totalorder %s11_s6, 4  }
 0x197   :  { %10 = sbr.rel (!%p8_p5) target bundleno = 1 (0x1), region = 72 }

// kernel: _lambda_.18
= control target key start
LH: loop header
LB: loop body
LE: loop exit
PB: predicated region body
PF: predicated region fallthrough
CT: control target
= control target key end

     0   :  { %s372_s9 = smov 0   ;;  %s413_s0 = inlined_call_operand.vmem [shape: f32[2,32,3], index: 0, kind: input, shape index: {}]   ;;  %s414_s1 = inlined_call_operand.vmem [shape: f32[2,3,128], index: 1, kind: input, shape index: {}]   ;;  %s415_s2 = inlined_call_operand.vmem [shape: f32[2,32,128], index: 2, kind: output, shape index: {}]  }
   0x1 LB: > { %s319_s10 = sadd.s32 4294967295, %s355_s9   ;;  %p323_p0 = scmp.ge.s32.totalorder %s355_s9, 1  ;;  %s355_s9 = sphi %s372_s9, %s12_s9  }
   0x2   : > { %p121_p1 = scmp.lt.s32.totalorder %s355_s9, 3 }
   0x4   : > { %p122_p2 = pnand %p323_p0, %p121_p1 }
   0x5   : > { %p147_p3 = scmp.lt.s32.totalorder (!%p122_p2), %s319_s10, 1 }
   0x6   : > { %125 = sbr.rel (%p122_p2) target bundleno = 155 (0x9b), region = 28 }
   0xb   : > { %s417_s10 = smov (!%p147_p3, %s319_s10), 1  ;;  %vm184_vm0 = vcmask 1042432   ;;  %vm170_vm1 = vcmask 23552  }
   0xc   : > { %s326_s11 = sshll.u32 %s417_s10, 2  ;;  %s336_s12 = sshll.u32 %s417_s10, 5 }
   0xd   : > { %s155_s15 = scalar_lea.vmem %s414_s1, %s326_s11  ;;  %s151_s18 = scalar_lea.vmem %s413_s0, %s336_s12 }
   0xe   : > { %v165_v0 = vld [vmem:[%s155_s15] sm:$0x7]  ;;  %v163_v2 = vld [vmem:[%s151_s18 + $0x10] sm:$0xff]  ;;  %v164_v4 = vld [vmem:[%s151_s18 + $0x18] sm:$0xff]  ;;  %s160_s21 = scalar_lea.vmem %s415_s2, %s336_s12 }
   0xf   : > { %v161_v1 = vld [vmem:[%s151_s18] sm:$0xff]  ;;  %v183_v3 = vmul.f32 %v165_v0, %v165_v0  ;;  %329 = vmatpush.msk.msra.mxu0 %vm184_vm0, %v165_v0  ;;  %339 = vmatpush.msk.msra.mxu2 %vm184_vm0, %v165_v0  ;;  %v168_v5 = vmul.f32 %v163_v2, %v163_v2  ;;  %v162_v7 = vld [vmem:[%s151_s18 + $0x8] sm:$0xff]  ;;  %v169_v11 = vmul.f32 %v164_v4, %v164_v4 }
  0x10   : > { %v166_v6 = vmul.f32 %v161_v1, %v161_v1  ;;  %340 = vmatpush.msk.msra.mxu3 %vm184_vm0, %v165_v0  ;;  %330 = vmatmul.msk.f32.vlgmr.msra.gmra.mxu0 %vm170_vm1, %v161_v1  ;;  %v167_v12 = vmul.f32 %v162_v7, %v162_v7 }
  0x11   : > { %v185_v8 = vsel %vm184_vm0, %v183_v3, 0.0  ;;  %332 = vmatmul.msk.f32.vlgmr.msra.gmra.mxu2 %vm170_vm1, %v163_v2  ;;  %333 = vmatmul.msk.f32.vlgmr.msra.gmra.mxu3 %vm170_vm1, %v164_v4  ;;  %v177_v9 = vsel %vm170_vm1, %v168_v5, 0.0  ;;  %v180_v13 = vsel %vm170_vm1, %v169_v11, 0.0 }
  0x12   : > { %v171_v10 = vsel %vm170_vm1, %v166_v6, 0.0  ;;  %338 = vmatpush.msk.msra.mxu1 %vm184_vm0, %v165_v0  ;;  %178 = vadd.xlane.f32.xlu1 %v177_v9  ;;  %v174_v14 = vsel %vm170_vm1, %v167_v12, 0.0  ;;  %v186_v15 = vrot.slane %v185_v8, 4 }
  0x13   : > { %331 = vmatmul.msk.f32.vlgmr.msra.gmra.mxu1 %vm170_vm1, %v162_v7  ;;  %172 = vadd.xlane.f32.xlu0 %v171_v10 }
  0x14   : > { %v187_v16 = vadd.f32 %v186_v15, %v185_v8 }
  0x16   : > { %v188_v17 = vrot.slane %v187_v16, 2 }
  0x18   : > { %v189_v18 = vadd.f32 %v188_v17, %v187_v16 }
  0x1a   : > { %181 = vadd.xlane.f32.xlu1 %v180_v13  ;;  %v190_v19 = vrot.slane %v189_v18, 1 }
  0x1b   : > { %175 = vadd.xlane.f32.xlu0 %v174_v14 }
  0x1c   : > { %v191_v22 = vadd.f32 %v190_v19, %v189_v18 }
  0x85   : > { %v179_v20 = vpop.xlane.xlu1 %178 }
  0x86   : > { %v173_v21 = vpop.xlane.xlu0 %172  ;;  %v238_v36 = vadd.f32 %v191_v22, %v179_v20 }
  0x87   : > { %v236_v24 = vadd.f32 %v191_v22, %v173_v21 }
  0x8d   : > { %v224_v23 = vpop.f32.mrf.mxu0  ;;  %v182_v29 = vpop.xlane.xlu1 %181 }
  0x8e   : > { %v240_v25 = vmul.f32 2.0, %v224_v23  ;;  %v176_v26 = vpop.xlane.xlu0 %175  ;;  %v239_v32 = vadd.f32 %v191_v22, %v182_v29 }
  0x8f   : > { %v237_v27 = vadd.f32 %v191_v22, %v176_v26 }
  0x90   : > { %v244_v28 = vsub.f32 %v236_v24, %v240_v25  ;;  %v227_v30 = vpop.f32.mrf.mxu1 }
  0x91   : > { %v241_v31 = vmul.f32 2.0, %v227_v30 }
  0x92   : > { %248 = vst [vmem:[%s160_s21] sm:$0xff] %v244_v28 }
  0x93   : > { %v245_v33 = vsub.f32 %v237_v27, %v241_v31 }
  0x94   : > { %v230_v34 = vpop.f32.mrf.mxu2  ;;  %v233_v35 = vpop.f32.mrf.mxu3 }
  0x95   : > { %v242_v37 = vmul.f32 2.0, %v230_v34  ;;  %v243_v38 = vmul.f32 2.0, %v233_v35  ;;  %249 = vst [vmem:[%s160_s21 + $0x8] sm:$0xff] %v245_v33 }
  0x97   : > { %v246_v39 = vsub.f32 %v238_v36, %v242_v37  ;;  %v247_v40 = vsub.f32 %v239_v32, %v243_v38 }
  0x99   : > { %250 = vst [vmem:[%s160_s21 + $0x10] sm:$0xff] %v246_v39 }
  0x9a   : > { %251 = vst [vmem:[%s160_s21 + $0x18] sm:$0xff] %v247_v40 }
  0x9b PF: > { %s12_s9 = sadd.s32 1, %s355_s9  }
  0x9c   : > { %p9_p4 = scmp.ge.s32.totalorder %s12_s9, 4  }
  0x9e   :  { %11 = sbr.rel (!%p9_p4) target bundleno = 1 (0x1), region = 61 }

// kernel: _lambda_.19
= control target key start
LH: loop header
LB: loop body
LE: loop exit
PB: predicated region body
PF: predicated region fallthrough
CT: control target
= control target key end

     0   :  { %s1185_s27 = smov 0   ;;  %s1187_s28 = smov 0   ;;  %s1393_s0 = inlined_call_operand.vmem [shape: bf16[3,16], index: 0, kind: input, shape index: {}]   ;;  %s1394_s1 = inlined_call_operand.vmem [shape: f32[1,16], index: 1, kind: input, shape index: {}, may-alias: {1,3}]   ;;  %s1395_s2 = inlined_call_operand.vmem [shape: bf16[16,16], index: 2, kind: input, shape index: {}]   ;;  %s1396_s3 = inlined_call_operand.vmem [shape: f32[1,16], index: 3, kind: input, shape index: {}, may-alias: {1,3}]   ;;  %s1397_s4 = inlined_call_operand.vmem [shape: bf16[16,32], index: 4, kind: input, shape index: {}]   ;;  %s1398_s5 = inlined_call_operand.vmem [shape: f32[1,32], index: 5, kind: input, shape index: {}]   ;;  %s1399_s6 = inlined_call_operand.vmem [shape: bf16[2,32,3], index: 6, kind: input, shape index: {}]   ;;  %s1400_s7 = inlined_call_operand.vmem [shape: bf16[2,4,32,3], index: 7, kind: input, shape index: {}]   ;;  %s1401_s8 = inlined_call_operand.vmem [shape: bf16[2,32,32], index: 8, kind: output, shape index: {}]  }
   0x1   :  { %s1189_s29 = smov 0  }
   0x2 LB: > { %s30_s30 = sadd.s32 1, %s1133_s28  ;;  %p981_p0 = scmp.ge.s32.totalorder %s1137_s29, 1  ;;  %s1137_s29 = sphi %s1189_s29, %s18_s29   ;;  %s1133_s28 = sphi %s1187_s28, %s1403_s28   ;;  %s1129_s27 = sphi %s1185_s27, %s1402_s27  }
   0x3   : > { %p32_p1 = scmp.ge.s32.totalorder %s30_s30, 2  ;;  %p300_p2 = scmp.lt.s32.totalorder %s1137_s29, 3 }
   0x5   : > { %s1405_s30 = smov (%p32_p1, %s30_s30), 0  ;;  %p301_p3 = pnand %p981_p0, %p300_p2 }
   0x6   : > { %p352_p4 = scmp.lt.s32.totalorder (!%p301_p3), %s1129_s27, 1 }
   0x7   : > { %304 = sbr.rel (%p301_p3) target bundleno = 791 (0x317), region = 52 }
   0xc   : > { %v382_v0 = vld [vmem:[%s1393_s0] sm:$0x3]  ;;  %vm422_vm0 = vcmask 1040384   ;;  %vm423_vm1 = vcmask 1041408   ;;  %v1139_v1 = vmov 65535   ;;  %s1407_s27 = smov (!%p352_p4, %s1129_s27), 1 }
   0xd   : > { %v424_v2 = vsel %vm422_vm0, 4294967295, %v1139_v1  ;;  %v1209_v3 = vld [vmem:[%s1395_s2] sm:$0xff]  ;;  %s1034_s13 = sshll.u32 %s1407_s27, 4  ;;  %s1035_s14 = sshll.u32 %s1407_s27, 6  ;;  %vm415_vm2 = vcmask 23552   ;;  %vm463_vm3 = vcmask 130048  }
   0xe   : > { %v425_v4 = vsel %vm423_vm1, %v424_v2, 0  ;;  %477 = vmatpush.bf16.msra.mxu1 %v1209_v3  ;;  %s359_s17 = scalar_lea.vmem %s1399_s6, %s1034_s13  ;;  %s1228_s20 = scalar_lea.vmem %s1400_s7, %s1035_s14  ;;  %v1259_v37 = vld [vmem:[%s1394_s1] ss:$0 sm:$0xff]  ;;  %vm867_vm4 = vcmask 257024  }
   0xf   : > { %v1213_v5 = vand.u32 %v425_v4, %v382_v0  ;;  %v1040_v6 = vld [vmem:[%s359_s17] sm:$0xff]   ;;  %v1081_v8 = vld [vmem:[%s1228_s20 + $0x10] sm:$0xff]   ;;  %v1079_v21 = vld [vmem:[%s359_s17 + $0x8] sm:$0xff]   ;;  %s1366_s14 = scalar_lea.vmem %s1401_s8, %s1034_s13 }
  0x10   : > { %v1048_v7 = vld [vmem:[%s1228_s20] sm:$0xff]   ;;  %v1234_v9 = vunpack.c.l.bf16 %v1040_v6  ;;  %v1236_v10 = vunpack.c.h.bf16 %v1040_v6  ;;  %v1057_v13 = vunpack.c.l.bf16 %v1081_v8  ;;  %v1058_v14 = vunpack.c.h.bf16 %v1081_v8  ;;  %v1080_v22 = vld [vmem:[%s1228_s20 + $0x8] sm:$0xff]   ;;  %v1082_v23 = vld [vmem:[%s1228_s20 + $0x18] sm:$0xff]  }
  0x11   : > { %436 = vmatpush.bf16.msra.mxu0 %v1213_v5  ;;  %561 = vmatpush.bf16.msra.mxu3 %v1213_v5  ;;  %v1049_v11 = vunpack.c.l.bf16 %v1048_v7  ;;  %v1050_v12 = vunpack.c.h.bf16 %v1048_v7  ;;  %v1246_v24 = vunpack.c.l.bf16 %v1079_v21  ;;  %v1248_v25 = vunpack.c.h.bf16 %v1079_v21  ;;  %v1038_v38 = vld [vmem:[%s1397_s4] sm:$0xff] }
  0x12   : > { %v542_v17 = vsub.f32 %v1057_v13, %v1234_v9  ;;  %v543_v18 = vsub.f32 %v1058_v14, %v1236_v10  ;;  %v1053_v26 = vunpack.c.l.bf16 %v1080_v22  ;;  %v1054_v27 = vunpack.c.h.bf16 %v1080_v22  ;;  %623 = vmatpush.bf16.msrb.mxu1 %v1038_v38  ;;  %517 = vmatpush.bf16.msra.mxu2 %v1038_v38  ;;  %v1281_v4 = vld [vmem:[%s1396_s3] ss:$0 sm:$0xff] }
  0x13   : > { %v406_v15 = vsub.f32 %v1049_v11, %v1234_v9  ;;  %v407_v16 = vsub.f32 %v1050_v12, %v1236_v10  ;;  %v1061_v28 = vunpack.c.l.bf16 %v1082_v23  ;;  %v1062_v29 = vunpack.c.h.bf16 %v1082_v23 }
  0x14   : > { %v546_v20 = vpack.c.bf16 %v543_v18, %v542_v17  ;;  %v408_v30 = vsub.f32 %v1053_v26, %v1246_v24  ;;  %v409_v31 = vsub.f32 %v1054_v27, %v1248_v25 }
  0x15   : > { %592 = vmatpush.bf16.msrb.mxu0 %v1209_v3  ;;  %702 = vmatpush.bf16.msrb.mxu3 %v1209_v3  ;;  %v410_v19 = vpack.c.bf16 %v407_v16, %v406_v15  ;;  %v544_v32 = vsub.f32 %v1061_v28, %v1246_v24  ;;  %v545_v33 = vsub.f32 %v1062_v29, %v1248_v25 }
  0x16   : > { %1006 = vmatmul.msk.bf16.vlgmr.msra.gmra.mxu3 %vm415_vm2, %v546_v20  ;;  %v411_v34 = vpack.c.bf16 %v409_v31, %v408_v30  ;;  %671 = vmatpush.bf16.msrb.mxu2 %v1213_v5 }
  0x17   : > { %988 = vmatmul.msk.bf16.vlgmr.msra.gmra.mxu0 %vm415_vm2, %v410_v19  ;;  %v547_v35 = vpack.c.bf16 %v545_v33, %v544_v32  ;;  %v1083_v32 = vld [vmem:[%s1228_s20 + $0x20] sm:$0xff]  }
  0x19   : > { %843 = vmatpush.bf16.msra.mxu3 %v1038_v38  ;;  %733 = vmatpush.bf16.msra.mxu0 %v1038_v38 }
  0x26   : > { %1007 = vmatmul.msk.bf16.gmra.mxu3 %vm415_vm2, %v547_v35  ;;  %v1065_v35 = vunpack.c.l.bf16 %v1083_v32 }
  0x27   : > { %989 = vmatmul.msk.bf16.gmra.mxu0 %vm415_vm2, %v411_v34 }
  0x94   : > { %v438_v36 = vpop.f32.mrf.mxu0 }
  0x95   : > { %v439_v39 = vadd.f32 %v1259_v37, %v438_v36  ;;  %v1066_v36 = vunpack.c.h.bf16 %v1083_v32 }
  0x97   : > { %v448_v43 = vmax.f32 %v439_v39, 0.0  ;;  %v652_v39 = vsub.f32 %v1065_v35, %v1234_v9 }
  0x99   : > { %v563_v40 = vpop.f32.mrf.mxu3 }
  0x9a   : > { %v564_v46 = vadd.f32 %v1259_v37, %v563_v40  ;;  %v653_v40 = vsub.f32 %v1066_v36, %v1236_v10 }
  0x9c   : > { %v440_v41 = vpop.f32.mrf.mxu0  ;;  %v573_v50 = vmax.f32 %v564_v46, 0.0 }
  0x9d   : > { %v441_v42 = vadd.f32 %v1259_v37, %v440_v41  ;;  %v1085_v41 = vld [vmem:[%s1228_s20 + $0x30] sm:$0xff]  }
  0x9f   : > { %v449_v44 = vmax.f32 %v441_v42, 0.0  ;;  %v1073_v42 = vunpack.c.l.bf16 %v1085_v41 }
  0xa1   : > { %v452_v45 = vpack.c.bf16 %v449_v44, %v448_v43  ;;  %v565_v47 = vpop.f32.mrf.mxu3  ;;  %v1074_v43 = vunpack.c.h.bf16 %v1085_v41  ;;  %v656_v44 = vpack.c.bf16 %v653_v40, %v652_v39 }
  0xa2   : > { %v566_v48 = vadd.f32 %v1259_v37, %v565_v47  ;;  %v1084_v47 = vld [vmem:[%s1228_s20 + $0x28] sm:$0xff]  }
  0xa3   : > { %994 = vmatmul.msk.bf16.vlgmr.msra.gmra.mxu1 %vm463_vm3, %v452_v45  ;;  %v762_v45 = vsub.f32 %v1073_v42, %v1234_v9  ;;  %v763_v46 = vsub.f32 %v1074_v43, %v1236_v10 }
  0xa4   : > { %v443_v49 = vpop.f32.mrf.mxu0  ;;  %781 = vmatpush.bf16.msra.mxu1 %v1213_v5  ;;  %v574_v51 = vmax.f32 %v566_v48, 0.0 }
  0xa5   : > { %v444_v53 = vadd.f32 %v1259_v37, %v443_v49  ;;  %v766_v48 = vpack.c.bf16 %v763_v46, %v762_v45  ;;  %v1069_v49 = vunpack.c.l.bf16 %v1084_v47 }
  0xa6   : > { %v577_v52 = vpack.c.bf16 %v574_v51, %v573_v50  ;;  %v1070_v50 = vunpack.c.h.bf16 %v1084_v47 }
  0xa7   : > { %v450_v57 = vmax.f32 %v444_v53, 0.0  ;;  %v654_v51 = vsub.f32 %v1069_v49, %v1246_v24  ;;  %v1086_v53 = vld [vmem:[%s1228_s20 + $0x38] sm:$0xff]  }
  0xa8   : > { %1008 = vmatmul.msk.bf16.vlgmr.msrb.gmra.mxu0 %vm463_vm3, %v577_v52  ;;  %v655_v52 = vsub.f32 %v1070_v50, %v1248_v25 }
  0xa9   : > { %v568_v54 = vpop.f32.mrf.mxu3 }
  0xaa   : > { %v569_v60 = vadd.f32 %v1259_v37, %v568_v54  ;;  %v1077_v54 = vunpack.c.l.bf16 %v1086_v53 }
  0xac   : > { %v445_v55 = vpop.f32.mrf.mxu0  ;;  %v575_v63 = vmax.f32 %v569_v60, 0.0  ;;  %v764_v9 = vsub.f32 %v1077_v54, %v1246_v24 }
  0xad   : > { %v446_v56 = vadd.f32 %v1259_v37, %v445_v55  ;;  %v1078_v55 = vunpack.c.h.bf16 %v1086_v53 }
  0xaf   : > { %v451_v58 = vmax.f32 %v446_v56, 0.0  ;;  %v657_v56 = vpack.c.bf16 %v655_v52, %v654_v51  ;;  %v765_v10 = vsub.f32 %v1078_v55, %v1248_v25 }
  0xb1   : > { %v453_v59 = vpack.c.bf16 %v451_v58, %v450_v57  ;;  %v570_v61 = vpop.f32.mrf.mxu3  ;;  %v767_v57 = vpack.c.bf16 %v765_v10, %v764_v9  ;;  %v1315_v58 = vld [vmem:[%s1398_s5] ss:$0 sm:$0xff] }
  0xb2   : > { %v571_v62 = vadd.f32 %v1259_v37, %v570_v61 }
  0xb3   : > { %995 = vmatmul.msk.bf16.gmra.mxu1 %vm463_vm3, %v453_v59 }
  0xb4   : > { %v576_v0 = vmax.f32 %v571_v62, 0.0 }
  0xb6   : > { %v578_v1 = vpack.c.bf16 %v576_v0, %v575_v63 }
  0xb8   : > { %1009 = vmatmul.msk.bf16.gmra.mxu0 %vm463_vm3, %v578_v1 }
 0x120   : > { %v479_v2 = vpop.f32.mrf.mxu1 }
 0x121   : > { %v480_v5 = vadd.f32 %v1281_v4, %v479_v2 }
 0x123   : > { %v489_v11 = vmax.f32 %v480_v5, 0.0 }
 0x125   : > { %v594_v6 = vpop.f32.mrf.mxu0 }
 0x126   : > { %v595_v14 = vadd.f32 %v1281_v4, %v594_v6 }
 0x128   : > { %v481_v7 = vpop.f32.mrf.mxu1  ;;  %v604_v18 = vmax.f32 %v595_v14, 0.0 }
 0x129   : > { %v482_v8 = vadd.f32 %v1281_v4, %v481_v7 }
 0x12b   : > { %v490_v12 = vmax.f32 %v482_v8, 0.0 }
 0x12d   : > { %v493_v13 = vpack.c.bf16 %v490_v12, %v489_v11  ;;  %v596_v15 = vpop.f32.mrf.mxu0 }
 0x12e   : > { %v597_v16 = vadd.f32 %v1281_v4, %v596_v15 }
 0x12f   : > { %1000 = vmatmul.msk.bf16.vlgmr.msra.gmra.mxu2 %vm463_vm3, %v493_v13 }
 0x130   : > { %v484_v17 = vpop.f32.mrf.mxu1  ;;  %812 = vmatpush.bf16.msra.mxu2 %v1209_v3  ;;  %v605_v19 = vmax.f32 %v597_v16, 0.0 }
 0x131   : > { %v485_v21 = vadd.f32 %v1281_v4, %v484_v17 }
 0x132   : > { %v608_v20 = vpack.c.bf16 %v605_v19, %v604_v18 }
 0x133   : > { %v491_v27 = vmax.f32 %v485_v21, 0.0 }
 0x134   : > { %1010 = vmatmul.msk.bf16.vlgmr.msrb.gmra.mxu1 %vm463_vm3, %v608_v20 }
 0x135   : > { %v599_v22 = vpop.f32.mrf.mxu0 }
 0x136   : > { %v600_v30 = vadd.f32 %v1281_v4, %v599_v22 }
 0x138   : > { %v486_v23 = vpop.f32.mrf.mxu1  ;;  %v606_v33 = vmax.f32 %v600_v30, 0.0 }
 0x139   : > { %v487_v26 = vadd.f32 %v1281_v4, %v486_v23 }
 0x13b   : > { %v492_v28 = vmax.f32 %v487_v26, 0.0 }
 0x13d   : > { %v494_v29 = vpack.c.bf16 %v492_v28, %v491_v27  ;;  %v601_v31 = vpop.f32.mrf.mxu0 }
 0x13e   : > { %v602_v3 = vadd.f32 %v1281_v4, %v601_v31 }
 0x13f   : > { %1001 = vmatmul.msk.bf16.gmra.mxu2 %vm463_vm3, %v494_v29 }
 0x140   : > { %v607_v34 = vmax.f32 %v602_v3, 0.0 }
 0x142   : > { %v609_v38 = vpack.c.bf16 %v607_v34, %v606_v33 }
 0x144   : > { %1011 = vmatmul.msk.bf16.gmra.mxu1 %vm463_vm3, %v609_v38 }
 0x14f   : > { %1016 = vmatmul.msk.bf16.vlgmr.msrb.gmra.mxu2 %vm415_vm2, %v656_v44 }
 0x154   : > { %1026 = vmatmul.msk.bf16.vlgmr.msra.gmra.mxu1 %vm415_vm2, %v766_v48 }
 0x15f   : > { %1017 = vmatmul.msk.bf16.gmra.mxu2 %vm415_vm2, %v657_v56 }
 0x164   : > { %1027 = vmatmul.msk.bf16.gmra.mxu1 %vm415_vm2, %v767_v57 }
 0x1b1   : > { %v625_v61 = vpop.f32.mrf.mxu1 }
 0x1b2   : > { %v519_v59 = vpop.f32.mrf.mxu2  ;;  %v626_v62 = vadd.f32 %v1315_v58, %v625_v61 }
 0x1b3   : > { %v520_v60 = vadd.f32 %v1315_v58, %v519_v59 }
 0x1b4   : > { %v635_v24 = vmax.f32 %v626_v62, 0.0 }
 0x1b5   : > { %v529_v63 = vmax.f32 %v520_v60, 0.0 }
 0x1b7   : > { %v1319_v0 = vmax.f32 %v529_v63, %v635_v24 }
 0x1b9   : > { %v627_v2 = vpop.f32.mrf.mxu1 }
 0x1ba   : > { %v521_v25 = vpop.f32.mrf.mxu2  ;;  %v628_v5 = vadd.f32 %v1315_v58, %v627_v2 }
 0x1bb   : > { %v522_v1 = vadd.f32 %v1315_v58, %v521_v25 }
 0x1bc   : > { %v636_v7 = vmax.f32 %v628_v5, 0.0 }
 0x1bd   : > { %v530_v6 = vmax.f32 %v522_v1, 0.0 }
 0x1bf   : > { %v1323_v8 = vmax.f32 %v530_v6, %v636_v7 }
 0x1c1   : > { %v630_v13 = vpop.f32.mrf.mxu1 }
 0x1c2   : > { %v524_v11 = vpop.f32.mrf.mxu2  ;;  %v631_v14 = vadd.f32 %v1315_v58, %v630_v13 }
 0x1c3   : > { %v525_v12 = vadd.f32 %v1315_v58, %v524_v11 }
 0x1c4   : > { %v637_v16 = vmax.f32 %v631_v14, 0.0 }
 0x1c5   : > { %v531_v15 = vmax.f32 %v525_v12, 0.0 }
 0x1c7   : > { %v1327_v17 = vmax.f32 %v531_v15, %v637_v16 }
 0x1c9   : > { %v632_v20 = vpop.f32.mrf.mxu1 }
 0x1ca   : > { %v526_v18 = vpop.f32.mrf.mxu2  ;;  %v633_v21 = vadd.f32 %v1315_v58, %v632_v20 }
 0x1cb   : > { %v527_v19 = vadd.f32 %v1315_v58, %v526_v18 }
 0x1cc   : > { %v638_v23 = vmax.f32 %v633_v21, 0.0 }
 0x1cd   : > { %v532_v22 = vmax.f32 %v527_v19, 0.0 }
 0x1cf   : > { %v1331_v26 = vmax.f32 %v532_v22, %v638_v23 }
 0x1d1   : > { %v783_v28 = vpop.f32.mrf.mxu1 }
 0x1d2   : > { %v673_v27 = vpop.f32.mrf.mxu2  ;;  %v784_v30 = vadd.f32 %v1259_v37, %v783_v28 }
 0x1d3   : > { %v674_v29 = vadd.f32 %v1259_v37, %v673_v27 }
 0x1d4   : > { %v793_v36 = vmax.f32 %v784_v30, 0.0 }
 0x1d5   : > { %v683_v34 = vmax.f32 %v674_v29, 0.0 }
 0x1d9   : > { %v785_v32 = vpop.f32.mrf.mxu1 }
 0x1da   : > { %v675_v31 = vpop.f32.mrf.mxu2  ;;  %v786_v33 = vadd.f32 %v1259_v37, %v785_v32 }
 0x1db   : > { %v676_v3 = vadd.f32 %v1259_v37, %v675_v31 }
 0x1dc   : > { %v794_v38 = vmax.f32 %v786_v33, 0.0 }
 0x1dd   : > { %v684_v35 = vmax.f32 %v676_v3, 0.0 }
 0x1de   : > { %v797_v40 = vpack.c.bf16 %v794_v38, %v793_v36 }
 0x1df   : > { %v687_v39 = vpack.c.bf16 %v684_v35, %v683_v34 }
 0x1e0   : > { %1028 = vmatmul.msk.bf16.vlgmr.msra.gmra.mxu2 %vm463_vm3, %v797_v40 }
 0x1e1   : > { %1018 = vmatmul.msk.bf16.vlgmr.msrb.gmra.mxu3 %vm463_vm3, %v687_v39  ;;  %v788_v42 = vpop.f32.mrf.mxu1 }
 0x1e2   : > { %v678_v41 = vpop.f32.mrf.mxu2  ;;  %v789_v44 = vadd.f32 %v1259_v37, %v788_v42 }
 0x1e3   : > { %v679_v43 = vadd.f32 %v1259_v37, %v678_v41 }
 0x1e4   : > { %v795_v51 = vmax.f32 %v789_v44, 0.0 }
 0x1e5   : > { %v685_v49 = vmax.f32 %v679_v43, 0.0 }
 0x1e9   : > { %v790_v47 = vpop.f32.mrf.mxu1 }
 0x1ea   : > { %v680_v45 = vpop.f32.mrf.mxu2  ;;  %v791_v48 = vadd.f32 %v1259_v37, %v790_v47 }
 0x1eb   : > { %v681_v46 = vadd.f32 %v1259_v37, %v680_v45 }
 0x1ec   : > { %v796_v52 = vmax.f32 %v791_v48, 0.0 }
 0x1ed   : > { %v686_v50 = vmax.f32 %v681_v46, 0.0 }
 0x1ee   : > { %v798_v54 = vpack.c.bf16 %v796_v52, %v795_v51 }
 0x1ef   : > { %v688_v53 = vpack.c.bf16 %v686_v50, %v685_v49 }
 0x1f0   : > { %1029 = vmatmul.msk.bf16.gmra.mxu2 %vm463_vm3, %v798_v54 }
 0x1f1   : > { %1019 = vmatmul.msk.bf16.gmra.mxu3 %vm463_vm3, %v688_v53 }
 0x263   : > { %v814_v56 = vpop.f32.mrf.mxu2 }
 0x264   : > { %v704_v55 = vpop.f32.mrf.mxu3  ;;  %v815_v10 = vadd.f32 %v1281_v4, %v814_v56 }
 0x265   : > { %v705_v9 = vadd.f32 %v1281_v4, %v704_v55 }
 0x266   : > { %v824_v63 = vmax.f32 %v815_v10, 0.0 }
 0x267   : > { %v714_v61 = vmax.f32 %v705_v9, 0.0 }
 0x26b   : > { %v816_v37 = vpop.f32.mrf.mxu2 }
 0x26c   : > { %v706_v57 = vpop.f32.mrf.mxu3  ;;  %v817_v60 = vadd.f32 %v1281_v4, %v816_v37 }
 0x26d   : > { %v707_v59 = vadd.f32 %v1281_v4, %v706_v57 }
 0x26e   : > { %v825_v24 = vmax.f32 %v817_v60, 0.0 }
 0x26f   : > { %v715_v62 = vmax.f32 %v707_v59, 0.0 }
 0x270   : > { %v828_v1 = vpack.c.bf16 %v825_v24, %v824_v63 }
 0x271   : > { %v718_v25 = vpack.c.bf16 %v715_v62, %v714_v61 }
 0x272   : > { %1030 = vmatmul.msk.bf16.vlgmr.msra.gmra.mxu3 %vm463_vm3, %v828_v1 }
 0x273   : > { %1020 = vmatmul.msk.bf16.vlgmr.msra.gmra.mxu0 %vm463_vm3, %v718_v25  ;;  %v819_v5 = vpop.f32.mrf.mxu2 }
 0x274   : > { %v709_v2 = vpop.f32.mrf.mxu3  ;;  %v820_v7 = vadd.f32 %v1281_v4, %v819_v5 }
 0x275   : > { %v710_v6 = vadd.f32 %v1281_v4, %v709_v2 }
 0x276   : > { %v826_v18 = vmax.f32 %v820_v7, 0.0 }
 0x277   : > { %v716_v15 = vmax.f32 %v710_v6, 0.0 }
 0x27b   : > { %v821_v13 = vpop.f32.mrf.mxu2 }
 0x27c   : > { %v711_v11 = vpop.f32.mrf.mxu3  ;;  %v822_v14 = vadd.f32 %v1281_v4, %v821_v13 }
 0x27d   : > { %v712_v12 = vadd.f32 %v1281_v4, %v711_v11 }
 0x27e   : > { %v827_v19 = vmax.f32 %v822_v14, 0.0 }
 0x27f   : > { %v717_v16 = vmax.f32 %v712_v12, 0.0 }
 0x280   : > { %v829_v21 = vpack.c.bf16 %v827_v19, %v826_v18 }
 0x281   : > { %v719_v20 = vpack.c.bf16 %v717_v16, %v716_v15 }
 0x282   : > { %1031 = vmatmul.msk.bf16.gmra.mxu3 %vm463_vm3, %v829_v21 }
 0x283   : > { %1021 = vmatmul.msk.bf16.gmra.mxu0 %vm463_vm3, %v719_v20 }
 0x2f0   : > { %v735_v22 = vpop.f32.mrf.mxu0 }
 0x2f1   : > { %v736_v23 = vadd.f32 %v1315_v58, %v735_v22 }
 0x2f3   : > { %v745_v27 = vmax.f32 %v736_v23, 0.0 }
 0x2f5   : > { %v845_v28 = vpop.f32.mrf.mxu3  ;;  %v749_v4 = vmax.f32 %v1319_v0, %v745_v27 }
 0x2f6   : > { %v846_v29 = vadd.f32 %v1315_v58, %v845_v28 }
 0x2f8   : > { %v737_v30 = vpop.f32.mrf.mxu0  ;;  %v855_v31 = vmax.f32 %v846_v29, 0.0 }
 0x2f9   : > { %v738_v3 = vadd.f32 %v1315_v58, %v737_v30 }
 0x2fa   : > { %v859_v32 = vmax.f32 %v749_v4, %v855_v31 }
 0x2fb   : > { %v746_v34 = vmax.f32 %v738_v3, 0.0 }
 0x2fc   : > { %v863_v33 = vpack.c.bf16 %v859_v32, %v859_v32 }
 0x2fd   : > { %v847_v35 = vpop.f32.mrf.mxu3  ;;  %v750_v38 = vmax.f32 %v1323_v8, %v746_v34 }
 0x2fe   : > { %868 = vst.msk [vmem:[%s1366_s14] sm:$0xf] %vm867_vm4, %v863_v33  ;;  %v848_v0 = vadd.f32 %v1315_v58, %v847_v35 }
 0x300   : > { %v740_v36 = vpop.f32.mrf.mxu0  ;;  %v856_v39 = vmax.f32 %v848_v0, 0.0 }
 0x301   : > { %v741_v40 = vadd.f32 %v1315_v58, %v740_v36 }
 0x302   : > { %v860_v41 = vmax.f32 %v750_v38, %v856_v39 }
 0x303   : > { %v747_v43 = vmax.f32 %v741_v40, 0.0 }
 0x304   : > { %v864_v42 = vpack.c.bf16 %v860_v41, %v860_v41 }
 0x305   : > { %v850_v44 = vpop.f32.mrf.mxu3  ;;  %v751_v47 = vmax.f32 %v1327_v17, %v747_v43 }
 0x306   : > { %869 = vst.msk [vmem:[%s1366_s14 + $0x4] sm:$0xf] %vm867_vm4, %v864_v42  ;;  %v851_v45 = vadd.f32 %v1315_v58, %v850_v44 }
 0x308   : > { %v742_v46 = vpop.f32.mrf.mxu0  ;;  %v857_v48 = vmax.f32 %v851_v45, 0.0 }
 0x309   : > { %v743_v49 = vadd.f32 %v1315_v58, %v742_v46 }
 0x30a   : > { %v861_v8 = vmax.f32 %v751_v47, %v857_v48 }
 0x30b   : > { %v748_v51 = vmax.f32 %v743_v49, 0.0 }
 0x30c   : > { %v865_v50 = vpack.c.bf16 %v861_v8, %v861_v8 }
 0x30d   : > { %v852_v52 = vpop.f32.mrf.mxu3  ;;  %v752_v54 = vmax.f32 %v1331_v26, %v748_v51 }
 0x30e   : > { %870 = vst.msk [vmem:[%s1366_s14 + $0x8] sm:$0xf] %vm867_vm4, %v865_v50  ;;  %v853_v53 = vadd.f32 %v1315_v58, %v852_v52 }
 0x310   : > { %v858_v55 = vmax.f32 %v853_v53, 0.0 }
 0x312   : > { %v862_v56 = vmax.f32 %v752_v54, %v858_v55 }
 0x314   : > { %v866_v9 = vpack.c.bf16 %v862_v56, %v862_v56 }
 0x316   : > { %871 = vst.msk [vmem:[%s1366_s14 + $0xc] sm:$0xf] %vm867_vm4, %v866_v9 }
 0x317 PF: > { %s18_s29 = sadd.s32 1, %s1137_s29   ;;  %s1402_s27 = smov %s1133_s28 }
 0x318   : > { %p15_p5 = scmp.ge.s32.totalorder %s18_s29, 4   ;;  %s1403_s28 = smov %s1405_s30 }
 0x31a   :  { %17 = sbr.rel (!%p15_p5) target bundleno = 2 (0x2), region = 88 }

// kernel: _lambda_.22
= control target key start
LH: loop header
LB: loop body
LE: loop exit
PB: predicated region body
PF: predicated region fallthrough
CT: control target
= control target key end

     0   :  { %s294_s6 = smov 0   ;;  %s336_s0 = inlined_call_operand.vmem [shape: f32[2,3,32], index: 0, kind: input, shape index: {}]   ;;  %s337_s1 = inlined_call_operand.vmem [shape: s32[2,1,8], index: 1, kind: output, shape index: {}]  }
   0x1 LB: > { %s217_s7 = sadd.s32 4294967295, %s271_s6   ;;  %p221_p0 = scmp.ge.s32.totalorder %s271_s6, 1  ;;  %s271_s6 = sphi %s294_s6, %s11_s6  }
   0x2   : > { %p86_p1 = scmp.lt.s32.totalorder %s271_s6, 3 }
   0x4   : > { %p87_p2 = pnand %p221_p0, %p86_p1 }
   0x5   : > { %p103_p3 = scmp.lt.s32.totalorder (!%p87_p2), %s217_s7, 1  ;;  %s316_s15 = smov (!%p87_p2), 1  }
   0x6   : > { %90 = sbr.rel (%p87_p2) target bundleno = 404 (0x194), region = 24 }
   0xb   : > { %v111_v0 = vlaneseq  ;;  %vm116_vm0 = vcmask 253952   ;;  %s339_s7 = smov (!%p103_p3, %s217_s7), 1  ;;  %vm114_vm1 = vcmask 57344   ;;  %v281_v2 = vmov 1e+10  }
   0xc   : > { %117 = vst.msk [vmem:[#allocation2] sm:$0x1] %vm116_vm0, %v281_v2  ;;  %s222_s8 = sshll.u32 %s339_s7, 2  ;;  %s308_s11 = scalar_lea.vmem %s337_s1, %s339_s7  ;;  %v282_v4 = vmov 0   ;;  %v273_v6 = vmov 0  }
   0xd   : > { %v302_v1 = vand.u32 127, %v111_v0  ;;  %s106_s14 = scalar_lea.vmem %s336_s0, %s222_s8  ;;  %115 = vst.msk [vmem:[%s308_s11] sm:$0x1] %vm114_vm1, %v282_v4 }
   0xe   : > { %v110_v5 = vld [vmem:[%s106_s14] sm:$0x7] }
   0xf   : > { %v113_v3 = vcvt.s32.f32 %v302_v1 }
  0x10 LB: >> { %vm125_vm2 = vcmp.eq.s32.totalorder %v302_v1, %v275_v6  ;;  %v283_v7 = vmov 0   ;;  %vm130_vm3 = vcmask 256000   ;;  %v156_v28 = vstv %s279_s15  ;;  %s123_s15 = sadd.s32 1, %s279_s15   ;;  %s279_s15 = sphi %s316_s15, %s123_s15   ;;  %v275_v6 = vphi %v273_v6, %v229_v6  }
  0x11   : >> { %v126_v8 = vsel %vm125_vm2, 1, %v283_v7  ;;  %vm157_vm6 = vcmp.eq.s32.totalorder %v302_v1, %v156_v28  ;;  %p120_p4 = scmp.ge.s32.totalorder %s123_s15, 8  }
  0x12   : >> { %v127_v9 = vperm.slane %v126_v8, 0  ;;  %v158_v32 = vsel %vm157_vm6, 1, %v283_v7 }
  0x13   : >> { %v143_v21 = vld [vmem:[#allocation2] sm:$0x1] }
  0x14   : >> { %vm128_vm4 = vcmp.eq.s32.totalorder %v127_v9, 1  ;;  %v155_v34 = vld [vmem:[%s308_s11] sm:$0x1] }
  0x15   : >> { %v129_v10 = vsel %vm128_vm4, %v110_v5, 0.0 }
  0x16   : >> { %v131_v11 = vsel %vm130_vm3, %v129_v10, 0.0 }
  0x17   : >> { %132 = vadd.xlane.f32.xlu0 %v131_v11 }
  0x8a   : >> { %v133_v12 = vpop.xlane.xlu0 %132 }
  0x8b   : >> { %v134_v13 = vsub.f32 %v110_v5, %v133_v12 }
  0x8d   : >> { %v135_v14 = vmul.f32 %v134_v13, %v134_v13 }
  0x8f   : >> { %v136_v15 = vsel %vm130_vm3, %v135_v14, 0.0 }
  0x90   : >> { %v137_v16 = vrot.slane %v136_v15, 4 }
  0x92   : >> { %v138_v17 = vadd.f32 %v137_v16, %v136_v15 }
  0x94   : >> { %v139_v18 = vrot.slane %v138_v17, 2 }
  0x96   : >> { %v140_v19 = vadd.f32 %v139_v18, %v138_v17 }
  0x98   : >> { %v141_v20 = vrot.slane %v140_v19, 1 }
  0x9a   : >> { %v142_v22 = vadd.f32 %v141_v20, %v140_v19 }
  0x9c   : >> { %v144_v23 = vmin.f32 %v143_v21, %v142_v22 }
  0x9e   : >> { %v146_v24 = vsel %vm116_vm0, %v144_v23, -inf  ;;  %145 = vst.msk [vmem:[#allocation2] sm:$0x1] %vm116_vm0, %v144_v23 }
  0x9f   : >> { %147 = vmax.xlane.f32.xlu0 %v146_v24 }
 0x112   : >> { %v148_v25 = vpop.xlane.xlu0 %147 }
 0x113   : >> { %vm149_vm5 = vcmp.eq.f32.partialorder %v144_v23, %v148_v25 }
 0x114   : >> { %v150_v26 = vsel %vm149_vm5, %v113_v3, 32.0 }
 0x115   : >> { %v151_v27 = vsel %vm116_vm0, %v150_v26, inf }
 0x116   : >> { %152 = vmin.xlane.f32.xlu1 %v151_v27 }
 0x189   : >> { %v153_v29 = vpop.xlane.xlu1 %152 }
 0x18a   : >> { %vm225_vm7 = vcmp.lt.s32.totalorder %v153_v29, 0  ;;  %v226_v30 = vceil.f32 %v153_v29  ;;  %v227_v31 = vfloor.f32 %v153_v29 }
 0x18c   : >> { %v228_v33 = vsel %vm225_vm7, %v226_v30, %v227_v31 }
 0x18d   : >> { %v229_v6 = vcvt.f32.s32 %v228_v33  }
 0x18f   : >> { %v159_v35 = vmul.u32 %v229_v6, %v158_v32  ;;  %122 = sbr.rel (!%p120_p4) target bundleno = 16 (0x10), region = 61 }
 0x191   : >> { %v160_v36 = vadd.s32 %v159_v35, %v155_v34 }
 0x193   : >> { %161 = vst.msk [vmem:[%s308_s11] sm:$0x1] %vm114_vm1, %v160_v36 }
 0x194 PF: > { %s11_s6 = sadd.s32 1, %s271_s6  }
 0x195   : > { %p8_p5 = scmp.ge.s32.totalorder %s11_s6, 4  }
 0x197   :  { %10 = sbr.rel (!%p8_p5) target bundleno = 1 (0x1), region = 72 }

// kernel: _lambda_.20
= control target key start
LH: loop header
LB: loop body
LE: loop exit
PB: predicated region body
PF: predicated region fallthrough
CT: control target
= control target key end

     0   :  { %s1705_s27 = smov 0   ;;  %s1707_s28 = smov 0   ;;  %s2051_s0 = inlined_call_operand.vmem [shape: bf16[3,16], index: 0, kind: input, shape index: {}]   ;;  %s2052_s1 = inlined_call_operand.vmem [shape: f32[1,16], index: 1, kind: input, shape index: {}, may-alias: {1,3}]   ;;  %s2053_s2 = inlined_call_operand.vmem [shape: bf16[16,16], index: 2, kind: input, shape index: {}]   ;;  %s2054_s3 = inlined_call_operand.vmem [shape: f32[1,16], index: 3, kind: input, shape index: {}, may-alias: {1,3}]   ;;  %s2055_s4 = inlined_call_operand.vmem [shape: bf16[16,32], index: 4, kind: input, shape index: {}]   ;;  %s2056_s5 = inlined_call_operand.vmem [shape: f32[1,32], index: 5, kind: input, shape index: {}]   ;;  %s2057_s6 = inlined_call_operand.vmem [shape: bf16[2,32,3], index: 6, kind: input, shape index: {}]   ;;  %s2058_s7 = inlined_call_operand.vmem [shape: bf16[2,8,32,3], index: 7, kind: input, shape index: {}]   ;;  %s2059_s8 = inlined_call_operand.vmem [shape: bf16[2,32,32], index: 8, kind: output, shape index: {}]  }
   0x1   :  { %s1709_s29 = smov 0  }
   0x2 LB: > { %s30_s30 = sadd.s32 1, %s1653_s28  ;;  %p1421_p0 = scmp.ge.s32.totalorder %s1657_s29, 1  ;;  %s1657_s29 = sphi %s1709_s29, %s18_s29   ;;  %s1653_s28 = sphi %s1707_s28, %s2061_s28   ;;  %s1649_s27 = sphi %s1705_s27, %s2060_s27  }
   0x3   : > { %p32_p1 = scmp.ge.s32.totalorder %s30_s30, 2  ;;  %p300_p2 = scmp.lt.s32.totalorder %s1657_s29, 3 }
   0x5   : > { %s2063_s30 = smov (%p32_p1, %s30_s30), 0  ;;  %p301_p3 = pnand %p1421_p0, %p300_p2 }
   0x6   : > { %p352_p4 = scmp.lt.s32.totalorder (!%p301_p3), %s1649_s27, 1 }
   0x7   : > { %304 = sbr.rel (%p301_p3) target bundleno = 1427 (0x593), region = 52 }
   0xc   : > { %v382_v0 = vld [vmem:[%s2051_s0] sm:$0x3]  ;;  %vm422_vm0 = vcmask 1040384   ;;  %vm423_vm1 = vcmask 1041408   ;;  %v1659_v1 = vmov 65535   ;;  %s2065_s27 = smov (!%p352_p4, %s1649_s27), 1 }
   0xd   : > { %v424_v2 = vsel %vm422_vm0, 4294967295, %v1659_v1  ;;  %v1729_v3 = vld [vmem:[%s2053_s2] sm:$0xff]  ;;  %s1514_s13 = sshll.u32 %s2065_s27, 4  ;;  %s1515_s14 = sshll.u32 %s2065_s27, 7  ;;  %vm415_vm2 = vcmask 23552   ;;  %vm463_vm3 = vcmask 130048  }
   0xe   : > { %v425_v4 = vsel %vm423_vm1, %v424_v2, 0  ;;  %477 = vmatpush.bf16.msra.mxu1 %v1729_v3  ;;  %s359_s17 = scalar_lea.vmem %s2057_s6, %s1514_s13  ;;  %s1748_s20 = scalar_lea.vmem %s2058_s7, %s1515_s14  ;;  %v1779_v37 = vld [vmem:[%s2052_s1] ss:$0 sm:$0xff]  ;;  %vm1307_vm4 = vcmask 257024  }
   0xf   : > { %v1733_v5 = vand.u32 %v425_v4, %v382_v0  ;;  %v1520_v6 = vld [vmem:[%s359_s17] sm:$0xff]   ;;  %v1593_v8 = vld [vmem:[%s1748_s20 + $0x10] sm:$0xff]   ;;  %v1591_v21 = vld [vmem:[%s359_s17 + $0x8] sm:$0xff]   ;;  %s2024_s14 = scalar_lea.vmem %s2059_s8, %s1514_s13 }
  0x10   : > { %v1528_v7 = vld [vmem:[%s1748_s20] sm:$0xff]   ;;  %v1754_v9 = vunpack.c.l.bf16 %v1520_v6  ;;  %v1756_v10 = vunpack.c.h.bf16 %v1520_v6  ;;  %v1537_v13 = vunpack.c.l.bf16 %v1593_v8  ;;  %v1538_v14 = vunpack.c.h.bf16 %v1593_v8  ;;  %v1592_v22 = vld [vmem:[%s1748_s20 + $0x8] sm:$0xff]   ;;  %v1594_v23 = vld [vmem:[%s1748_s20 + $0x18] sm:$0xff]  }
  0x11   : > { %436 = vmatpush.bf16.msra.mxu0 %v1733_v5  ;;  %561 = vmatpush.bf16.msra.mxu3 %v1733_v5  ;;  %v1529_v11 = vunpack.c.l.bf16 %v1528_v7  ;;  %v1530_v12 = vunpack.c.h.bf16 %v1528_v7  ;;  %v1766_v24 = vunpack.c.l.bf16 %v1591_v21  ;;  %v1768_v25 = vunpack.c.h.bf16 %v1591_v21  ;;  %v1784_v38 = vld [vmem:[%s2055_s4] sm:$0xff] }
  0x12   : > { %v542_v17 = vsub.f32 %v1537_v13, %v1754_v9  ;;  %v543_v18 = vsub.f32 %v1538_v14, %v1756_v10  ;;  %v1533_v26 = vunpack.c.l.bf16 %v1592_v22  ;;  %v1534_v27 = vunpack.c.h.bf16 %v1592_v22  ;;  %623 = vmatpush.bf16.msrb.mxu1 %v1784_v38  ;;  %517 = vmatpush.bf16.msra.mxu2 %v1784_v38  ;;  %v1808_v4 = vld [vmem:[%s2054_s3] ss:$0 sm:$0xff] }
  0x13   : > { %v406_v15 = vsub.f32 %v1529_v11, %v1754_v9  ;;  %v407_v16 = vsub.f32 %v1530_v12, %v1756_v10  ;;  %v1541_v28 = vunpack.c.l.bf16 %v1594_v23  ;;  %v1542_v29 = vunpack.c.h.bf16 %v1594_v23 }
  0x14   : > { %v546_v20 = vpack.c.bf16 %v543_v18, %v542_v17  ;;  %v408_v30 = vsub.f32 %v1533_v26, %v1766_v24  ;;  %v409_v31 = vsub.f32 %v1534_v27, %v1768_v25 }
  0x15   : > { %592 = vmatpush.bf16.msrb.mxu0 %v1729_v3  ;;  %702 = vmatpush.bf16.msrb.mxu3 %v1729_v3  ;;  %v410_v19 = vpack.c.bf16 %v407_v16, %v406_v15  ;;  %v544_v32 = vsub.f32 %v1541_v28, %v1766_v24  ;;  %v545_v33 = vsub.f32 %v1542_v29, %v1768_v25 }
  0x16   : > { %1446 = vmatmul.msk.bf16.vlgmr.msra.gmra.mxu3 %vm415_vm2, %v546_v20  ;;  %v411_v34 = vpack.c.bf16 %v409_v31, %v408_v30  ;;  %671 = vmatpush.bf16.msrb.mxu2 %v1733_v5 }
  0x17   : > { %1428 = vmatmul.msk.bf16.vlgmr.msra.gmra.mxu0 %vm415_vm2, %v410_v19  ;;  %v547_v35 = vpack.c.bf16 %v545_v33, %v544_v32 }
  0x19   : > { %843 = vmatpush.bf16.msra.mxu3 %v1784_v38  ;;  %733 = vmatpush.bf16.msra.mxu0 %v1784_v38 }
  0x26   : > { %1447 = vmatmul.msk.bf16.gmra.mxu3 %vm415_vm2, %v547_v35 }
  0x27   : > { %1429 = vmatmul.msk.bf16.gmra.mxu0 %vm415_vm2, %v411_v34  ;;  %v1595_v34 = vld [vmem:[%s1748_s20 + $0x20] sm:$0xff]  }
  0x94   : > { %v438_v36 = vpop.f32.mrf.mxu0 }
  0x95   : > { %v439_v39 = vadd.f32 %v1779_v37, %v438_v36 }
  0x97   : > { %v448_v43 = vmax.f32 %v439_v39, 0.0  ;;  %v1545_v39 = vunpack.c.l.bf16 %v1595_v34 }
  0x99   : > { %v563_v40 = vpop.f32.mrf.mxu3 }
  0x9a   : > { %v564_v46 = vadd.f32 %v1779_v37, %v563_v40  ;;  %v1546_v40 = vunpack.c.h.bf16 %v1595_v34 }
  0x9c   : > { %v440_v41 = vpop.f32.mrf.mxu0  ;;  %v573_v50 = vmax.f32 %v564_v46, 0.0 }
  0x9d   : > { %v441_v42 = vadd.f32 %v1779_v37, %v440_v41 }
  0x9f   : > { %v449_v44 = vmax.f32 %v441_v42, 0.0  ;;  %v652_v42 = vsub.f32 %v1545_v39, %v1754_v9 }
  0xa1   : > { %v452_v45 = vpack.c.bf16 %v449_v44, %v448_v43  ;;  %v565_v47 = vpop.f32.mrf.mxu3  ;;  %v653_v43 = vsub.f32 %v1546_v40, %v1756_v10  ;;  %v1597_v44 = vld [vmem:[%s1748_s20 + $0x30] sm:$0xff]  }
  0xa2   : > { %v566_v48 = vadd.f32 %v1779_v37, %v565_v47  ;;  %v1554_v46 = vunpack.c.h.bf16 %v1597_v44 }
  0xa3   : > { %1434 = vmatmul.msk.bf16.vlgmr.msra.gmra.mxu1 %vm463_vm3, %v452_v45  ;;  %v1553_v45 = vunpack.c.l.bf16 %v1597_v44  ;;  %v656_v47 = vpack.c.bf16 %v653_v43, %v652_v42 }
  0xa4   : > { %v443_v49 = vpop.f32.mrf.mxu0  ;;  %781 = vmatpush.bf16.msra.mxu1 %v1733_v5  ;;  %v574_v51 = vmax.f32 %v566_v48, 0.0 }
  0xa5   : > { %v444_v53 = vadd.f32 %v1779_v37, %v443_v49  ;;  %v762_v48 = vsub.f32 %v1553_v45, %v1754_v9  ;;  %v763_v49 = vsub.f32 %v1554_v46, %v1756_v10 }
  0xa6   : > { %v577_v52 = vpack.c.bf16 %v574_v51, %v573_v50  ;;  %v1596_v50 = vld [vmem:[%s1748_s20 + $0x28] sm:$0xff]  }
  0xa7   : > { %v450_v57 = vmax.f32 %v444_v53, 0.0  ;;  %v766_v51 = vpack.c.bf16 %v763_v49, %v762_v48  ;;  %v1550_v53 = vunpack.c.h.bf16 %v1596_v50 }
  0xa8   : > { %1448 = vmatmul.msk.bf16.vlgmr.msrb.gmra.mxu0 %vm463_vm3, %v577_v52  ;;  %v1549_v52 = vunpack.c.l.bf16 %v1596_v50 }
  0xa9   : > { %v568_v54 = vpop.f32.mrf.mxu3  ;;  %891 = vmatpush.bf16.msrb.mxu0 %v1733_v5 }
  0xaa   : > { %v569_v60 = vadd.f32 %v1779_v37, %v568_v54  ;;  %v654_v54 = vsub.f32 %v1549_v52, %v1766_v24 }
  0xac   : > { %v445_v55 = vpop.f32.mrf.mxu0  ;;  %v575_v63 = vmax.f32 %v569_v60, 0.0 }
  0xad   : > { %v446_v56 = vadd.f32 %v1779_v37, %v445_v55  ;;  %v655_v55 = vsub.f32 %v1550_v53, %v1768_v25 }
  0xaf   : > { %v451_v58 = vmax.f32 %v446_v56, 0.0  ;;  %v1598_v56 = vld [vmem:[%s1748_s20 + $0x38] sm:$0xff]  }
  0xb1   : > { %v453_v59 = vpack.c.bf16 %v451_v58, %v450_v57  ;;  %v570_v61 = vpop.f32.mrf.mxu3  ;;  %v1557_v57 = vunpack.c.l.bf16 %v1598_v56  ;;  %v1558_v58 = vunpack.c.h.bf16 %v1598_v56 }
  0xb2   : > { %v571_v62 = vadd.f32 %v1779_v37, %v570_v61 }
  0xb3   : > { %1435 = vmatmul.msk.bf16.gmra.mxu1 %vm463_vm3, %v453_v59  ;;  %v657_v59 = vpack.c.bf16 %v655_v55, %v654_v54  ;;  %v764_v60 = vsub.f32 %v1557_v57, %v1766_v24  ;;  %v765_v61 = vsub.f32 %v1558_v58, %v1768_v25 }
  0xb4   : > { %v576_v0 = vmax.f32 %v571_v62, 0.0 }
  0xb5   : > { %v767_v62 = vpack.c.bf16 %v765_v61, %v764_v60 }
  0xb6   : > { %v578_v1 = vpack.c.bf16 %v576_v0, %v575_v63  ;;  %v1845_v63 = vld [vmem:[%s2056_s5] ss:$0 sm:$0xff] }
  0xb8   : > { %1449 = vmatmul.msk.bf16.gmra.mxu0 %vm463_vm3, %v578_v1 }
 0x120   : > { %v479_v2 = vpop.f32.mrf.mxu1 }
 0x121   : > { %v480_v6 = vadd.f32 %v1808_v4, %v479_v2 }
 0x123   : > { %v489_v12 = vmax.f32 %v480_v6, 0.0 }
 0x125   : > { %v594_v7 = vpop.f32.mrf.mxu0 }
 0x126   : > { %v595_v15 = vadd.f32 %v1808_v4, %v594_v7 }
 0x128   : > { %v481_v8 = vpop.f32.mrf.mxu1  ;;  %v604_v19 = vmax.f32 %v595_v15, 0.0 }
 0x129   : > { %v482_v11 = vadd.f32 %v1808_v4, %v481_v8 }
 0x12b   : > { %v490_v13 = vmax.f32 %v482_v11, 0.0 }
 0x12d   : > { %v493_v14 = vpack.c.bf16 %v490_v13, %v489_v12  ;;  %v596_v16 = vpop.f32.mrf.mxu0 }
 0x12e   : > { %v597_v17 = vadd.f32 %v1808_v4, %v596_v16 }
 0x12f   : > { %1440 = vmatmul.msk.bf16.vlgmr.msra.gmra.mxu2 %vm463_vm3, %v493_v14 }
 0x130   : > { %v484_v18 = vpop.f32.mrf.mxu1  ;;  %812 = vmatpush.bf16.msra.mxu2 %v1729_v3  ;;  %v605_v20 = vmax.f32 %v597_v17, 0.0 }
 0x131   : > { %v485_v22 = vadd.f32 %v1808_v4, %v484_v18 }
 0x132   : > { %v608_v21 = vpack.c.bf16 %v605_v20, %v604_v19 }
 0x133   : > { %v491_v28 = vmax.f32 %v485_v22, 0.0 }
 0x134   : > { %1450 = vmatmul.msk.bf16.vlgmr.msrb.gmra.mxu1 %vm463_vm3, %v608_v21 }
 0x135   : > { %v599_v23 = vpop.f32.mrf.mxu0  ;;  %922 = vmatpush.bf16.msrb.mxu1 %v1729_v3 }
 0x136   : > { %v600_v31 = vadd.f32 %v1808_v4, %v599_v23 }
 0x138   : > { %v486_v26 = vpop.f32.mrf.mxu1  ;;  %v606_v35 = vmax.f32 %v600_v31, 0.0 }
 0x139   : > { %v487_v27 = vadd.f32 %v1808_v4, %v486_v26 }
 0x13b   : > { %v492_v29 = vmax.f32 %v487_v27, 0.0 }
 0x13d   : > { %v494_v30 = vpack.c.bf16 %v492_v29, %v491_v28  ;;  %v601_v32 = vpop.f32.mrf.mxu0 }
 0x13e   : > { %v602_v33 = vadd.f32 %v1808_v4, %v601_v32 }
 0x13f   : > { %1441 = vmatmul.msk.bf16.gmra.mxu2 %vm463_vm3, %v494_v30 }
 0x140   : > { %v607_v36 = vmax.f32 %v602_v33, 0.0 }
 0x142   : > { %v609_v41 = vpack.c.bf16 %v607_v36, %v606_v35 }
 0x144   : > { %1451 = vmatmul.msk.bf16.gmra.mxu1 %vm463_vm3, %v609_v41 }
 0x14f   : > { %1456 = vmatmul.msk.bf16.vlgmr.msrb.gmra.mxu2 %vm415_vm2, %v656_v47 }
 0x150   : > { %953 = vmatpush.bf16.msrb.mxu2 %v1784_v38 }
 0x154   : > { %1466 = vmatmul.msk.bf16.vlgmr.msra.gmra.mxu1 %vm415_vm2, %v766_v51 }
 0x155   : > { %1063 = vmatpush.bf16.msra.mxu1 %v1784_v38 }
 0x15f   : > { %1457 = vmatmul.msk.bf16.gmra.mxu2 %vm415_vm2, %v657_v59 }
 0x164   : > { %1467 = vmatmul.msk.bf16.gmra.mxu1 %vm415_vm2, %v767_v62 }
 0x1b1   : > { %v625_v2 = vpop.f32.mrf.mxu1 }
 0x1b2   : > { %v519_v0 = vpop.f32.mrf.mxu2  ;;  %v626_v6 = vadd.f32 %v1845_v63, %v625_v2 }
 0x1b3   : > { %v520_v1 = vadd.f32 %v1845_v63, %v519_v0 }
 0x1b4   : > { %v635_v8 = vmax.f32 %v626_v6, 0.0 }
 0x1b5   : > { %v529_v7 = vmax.f32 %v520_v1, 0.0 }
 0x1b7   : > { %v1849_v11 = vmax.f32 %v529_v7, %v635_v8 }
 0x1b9   : > { %v627_v14 = vpop.f32.mrf.mxu1 }
 0x1ba   : > { %v521_v12 = vpop.f32.mrf.mxu2  ;;  %v628_v15 = vadd.f32 %v1845_v63, %v627_v14 }
 0x1bb   : > { %v522_v13 = vadd.f32 %v1845_v63, %v521_v12 }
 0x1bc   : > { %v636_v17 = vmax.f32 %v628_v15, 0.0 }
 0x1bd   : > { %v530_v16 = vmax.f32 %v522_v13, 0.0 }
 0x1bf   : > { %v1853_v18 = vmax.f32 %v530_v16, %v636_v17 }
 0x1c1   : > { %v630_v21 = vpop.f32.mrf.mxu1 }
 0x1c2   : > { %v524_v19 = vpop.f32.mrf.mxu2  ;;  %v631_v22 = vadd.f32 %v1845_v63, %v630_v21 }
 0x1c3   : > { %v525_v20 = vadd.f32 %v1845_v63, %v524_v19 }
 0x1c4   : > { %v637_v26 = vmax.f32 %v631_v22, 0.0 }
 0x1c5   : > { %v531_v23 = vmax.f32 %v525_v20, 0.0 }
 0x1c7   : > { %v1857_v27 = vmax.f32 %v531_v23, %v637_v26 }
 0x1c9   : > { %v632_v30 = vpop.f32.mrf.mxu1 }
 0x1ca   : > { %v526_v28 = vpop.f32.mrf.mxu2  ;;  %v633_v31 = vadd.f32 %v1845_v63, %v632_v30 }
 0x1cb   : > { %v527_v29 = vadd.f32 %v1845_v63, %v526_v28 }
 0x1cc   : > { %v638_v33 = vmax.f32 %v633_v31, 0.0 }
 0x1cd   : > { %v532_v32 = vmax.f32 %v527_v29, 0.0 }
 0x1cf   : > { %v1861_v34 = vmax.f32 %v532_v32, %v638_v33 }
 0x1d1   : > { %v783_v36 = vpop.f32.mrf.mxu1 }
 0x1d2   : > { %v673_v35 = vpop.f32.mrf.mxu2  ;;  %v784_v40 = vadd.f32 %v1779_v37, %v783_v36 }
 0x1d3   : > { %v674_v39 = vadd.f32 %v1779_v37, %v673_v35 }
 0x1d4   : > { %v793_v47 = vmax.f32 %v784_v40, 0.0 }
 0x1d5   : > { %v683_v45 = vmax.f32 %v674_v39, 0.0 }
 0x1d9   : > { %v785_v43 = vpop.f32.mrf.mxu1 }
 0x1da   : > { %v675_v41 = vpop.f32.mrf.mxu2  ;;  %v786_v44 = vadd.f32 %v1779_v37, %v785_v43  ;;  %v1599_v43 = vld [vmem:[%s1748_s20 + $0x40] sm:$0xff]  }
 0x1db   : > { %v676_v42 = vadd.f32 %v1779_v37, %v675_v41 }
 0x1dc   : > { %v794_v48 = vmax.f32 %v786_v44, 0.0  ;;  %v1601_v44 = vld [vmem:[%s1748_s20 + $0x50] sm:$0xff]  }
 0x1dd   : > { %v684_v46 = vmax.f32 %v676_v42, 0.0 }
 0x1de   : > { %v797_v50 = vpack.c.bf16 %v794_v48, %v793_v47  ;;  %v1569_v47 = vunpack.c.l.bf16 %v1601_v44  ;;  %v1570_v48 = vunpack.c.h.bf16 %v1601_v44 }
 0x1df   : > { %v687_v49 = vpack.c.bf16 %v684_v46, %v683_v45  ;;  %v1561_v45 = vunpack.c.l.bf16 %v1599_v43  ;;  %v1562_v46 = vunpack.c.h.bf16 %v1599_v43 }
 0x1e0   : > { %1468 = vmatmul.msk.bf16.vlgmr.msra.gmra.mxu2 %vm463_vm3, %v797_v50 }
 0x1e1   : > { %1458 = vmatmul.msk.bf16.vlgmr.msrb.gmra.mxu3 %vm463_vm3, %v687_v49  ;;  %v788_v52 = vpop.f32.mrf.mxu1  ;;  %1111 = vmatpush.bf16.msra.mxu2 %v1733_v5  ;;  %v872_v49 = vsub.f32 %v1561_v45, %v1754_v9  ;;  %v873_v50 = vsub.f32 %v1562_v46, %v1756_v10 }
 0x1e2   : > { %v678_v51 = vpop.f32.mrf.mxu2  ;;  %1001 = vmatpush.bf16.msrb.mxu3 %v1733_v5  ;;  %v789_v54 = vadd.f32 %v1779_v37, %v788_v52  ;;  %v983_v52 = vsub.f32 %v1570_v48, %v1756_v10 }
 0x1e3   : > { %v679_v53 = vadd.f32 %v1779_v37, %v678_v51  ;;  %v982_v51 = vsub.f32 %v1569_v47, %v1754_v9 }
 0x1e4   : > { %v795_v61 = vmax.f32 %v789_v54, 0.0 }
 0x1e5   : > { %v685_v59 = vmax.f32 %v679_v53, 0.0  ;;  %v876_v53 = vpack.c.bf16 %v873_v50, %v872_v49  ;;  %v986_v54 = vpack.c.bf16 %v983_v52, %v982_v51 }
 0x1e9   : > { %v790_v57 = vpop.f32.mrf.mxu1 }
 0x1ea   : > { %v680_v55 = vpop.f32.mrf.mxu2  ;;  %v791_v58 = vadd.f32 %v1779_v37, %v790_v57 }
 0x1eb   : > { %v681_v56 = vadd.f32 %v1779_v37, %v680_v55  ;;  %v1600_v55 = vld [vmem:[%s1748_s20 + $0x48] sm:$0xff]  }
 0x1ec   : > { %v796_v62 = vmax.f32 %v791_v58, 0.0  ;;  %v1565_v57 = vunpack.c.l.bf16 %v1600_v55  ;;  %v1566_v58 = vunpack.c.h.bf16 %v1600_v55 }
 0x1ed   : > { %v686_v60 = vmax.f32 %v681_v56, 0.0  ;;  %v1602_v56 = vld [vmem:[%s1748_s20 + $0x58] sm:$0xff]  }
 0x1ee   : > { %v798_v1 = vpack.c.bf16 %v796_v62, %v795_v61  ;;  %v874_v61 = vsub.f32 %v1565_v57, %v1766_v24  ;;  %v875_v62 = vsub.f32 %v1566_v58, %v1768_v25 }
 0x1ef   : > { %v688_v0 = vpack.c.bf16 %v686_v60, %v685_v59  ;;  %v1573_v59 = vunpack.c.l.bf16 %v1602_v56  ;;  %v1574_v60 = vunpack.c.h.bf16 %v1602_v56 }
 0x1f0   : > { %1469 = vmatmul.msk.bf16.gmra.mxu2 %vm463_vm3, %v798_v1 }
 0x1f1   : > { %1459 = vmatmul.msk.bf16.gmra.mxu3 %vm463_vm3, %v688_v0  ;;  %v984_v0 = vsub.f32 %v1573_v59, %v1766_v24  ;;  %v985_v1 = vsub.f32 %v1574_v60, %v1768_v25 }
 0x263   : > { %v814_v6 = vpop.f32.mrf.mxu2 }
 0x264   : > { %v704_v2 = vpop.f32.mrf.mxu3  ;;  %v815_v8 = vadd.f32 %v1808_v4, %v814_v6  ;;  %v987_v6 = vpack.c.bf16 %v985_v1, %v984_v0 }
 0x265   : > { %v705_v7 = vadd.f32 %v1808_v4, %v704_v2  ;;  %v877_v2 = vpack.c.bf16 %v875_v62, %v874_v61 }
 0x266   : > { %v824_v19 = vmax.f32 %v815_v8, 0.0 }
 0x267   : > { %v714_v16 = vmax.f32 %v705_v7, 0.0 }
 0x26b   : > { %v816_v14 = vpop.f32.mrf.mxu2 }
 0x26c   : > { %v706_v12 = vpop.f32.mrf.mxu3  ;;  %v817_v15 = vadd.f32 %v1808_v4, %v816_v14 }
 0x26d   : > { %v707_v13 = vadd.f32 %v1808_v4, %v706_v12 }
 0x26e   : > { %v825_v20 = vmax.f32 %v817_v15, 0.0 }
 0x26f   : > { %v715_v17 = vmax.f32 %v707_v13, 0.0 }
 0x270   : > { %v828_v22 = vpack.c.bf16 %v825_v20, %v824_v19 }
 0x271   : > { %v718_v21 = vpack.c.bf16 %v715_v17, %v714_v16 }
 0x272   : > { %1470 = vmatmul.msk.bf16.vlgmr.msra.gmra.mxu3 %vm463_vm3, %v828_v22 }
 0x273   : > { %1460 = vmatmul.msk.bf16.vlgmr.msra.gmra.mxu0 %vm463_vm3, %v718_v21  ;;  %v819_v26 = vpop.f32.mrf.mxu2  ;;  %1142 = vmatpush.bf16.msra.mxu3 %v1729_v3 }
 0x274   : > { %v709_v23 = vpop.f32.mrf.mxu3  ;;  %1032 = vmatpush.bf16.msra.mxu0 %v1729_v3  ;;  %v820_v29 = vadd.f32 %v1808_v4, %v819_v26 }
 0x275   : > { %v710_v28 = vadd.f32 %v1808_v4, %v709_v23 }
 0x276   : > { %v826_v39 = vmax.f32 %v820_v29, 0.0 }
 0x277   : > { %v716_v35 = vmax.f32 %v710_v28, 0.0 }
 0x27b   : > { %v821_v32 = vpop.f32.mrf.mxu2 }
 0x27c   : > { %v711_v30 = vpop.f32.mrf.mxu3  ;;  %v822_v33 = vadd.f32 %v1808_v4, %v821_v32 }
 0x27d   : > { %v712_v31 = vadd.f32 %v1808_v4, %v711_v30 }
 0x27e   : > { %v827_v40 = vmax.f32 %v822_v33, 0.0 }
 0x27f   : > { %v717_v36 = vmax.f32 %v712_v31, 0.0 }
 0x280   : > { %v829_v42 = vpack.c.bf16 %v827_v40, %v826_v39 }
 0x281   : > { %v719_v41 = vpack.c.bf16 %v717_v36, %v716_v35 }
 0x282   : > { %1471 = vmatmul.msk.bf16.gmra.mxu3 %vm463_vm3, %v829_v42 }
 0x283   : > { %1461 = vmatmul.msk.bf16.gmra.mxu0 %vm463_vm3, %v719_v41 }
 0x292   : > { %1486 = vmatmul.msk.bf16.vlgmr.msrb.gmra.mxu3 %vm415_vm2, %v986_v54 }
 0x293   : > { %1476 = vmatmul.msk.bf16.vlgmr.msrb.gmra.mxu0 %vm415_vm2, %v876_v53  ;;  %1283 = vmatpush.bf16.msrb.mxu3 %v1784_v38 }
 0x294   : > { %1173 = vmatpush.bf16.msrb.mxu0 %v1784_v38 }
 0x2a2   : > { %1487 = vmatmul.msk.bf16.gmra.mxu3 %vm415_vm2, %v987_v6 }
 0x2a3   : > { %1477 = vmatmul.msk.bf16.gmra.mxu0 %vm415_vm2, %v877_v2 }
 0x2f0   : > { %v735_v7 = vpop.f32.mrf.mxu0 }
 0x2f1   : > { %v736_v38 = vadd.f32 %v1845_v63, %v735_v7 }
 0x2f3   : > { %v745_v8 = vmax.f32 %v736_v38, 0.0 }
 0x2f5   : > { %v749_v12 = vmax.f32 %v1849_v11, %v745_v8  ;;  %v845_v13 = vpop.f32.mrf.mxu3 }
 0x2f6   : > { %v846_v14 = vadd.f32 %v1845_v63, %v845_v13 }
 0x2f8   : > { %v737_v15 = vpop.f32.mrf.mxu0  ;;  %v855_v17 = vmax.f32 %v846_v14, 0.0 }
 0x2f9   : > { %v738_v16 = vadd.f32 %v1845_v63, %v737_v15 }
 0x2fa   : > { %v1913_v20 = vmax.f32 %v749_v12, %v855_v17 }
 0x2fb   : > { %v746_v19 = vmax.f32 %v738_v16, 0.0 }
 0x2fd   : > { %v750_v21 = vmax.f32 %v1853_v18, %v746_v19  ;;  %v847_v22 = vpop.f32.mrf.mxu3 }
 0x2fe   : > { %v848_v23 = vadd.f32 %v1845_v63, %v847_v22 }
 0x300   : > { %v740_v26 = vpop.f32.mrf.mxu0  ;;  %v856_v29 = vmax.f32 %v848_v23, 0.0 }
 0x301   : > { %v741_v28 = vadd.f32 %v1845_v63, %v740_v26 }
 0x302   : > { %v1918_v30 = vmax.f32 %v750_v21, %v856_v29 }
 0x303   : > { %v747_v11 = vmax.f32 %v741_v28, 0.0 }
 0x305   : > { %v751_v31 = vmax.f32 %v1857_v27, %v747_v11  ;;  %v850_v32 = vpop.f32.mrf.mxu3 }
 0x306   : > { %v851_v33 = vadd.f32 %v1845_v63, %v850_v32 }
 0x308   : > { %v742_v35 = vpop.f32.mrf.mxu0  ;;  %v857_v39 = vmax.f32 %v851_v33, 0.0 }
 0x309   : > { %v743_v36 = vadd.f32 %v1845_v63, %v742_v35 }
 0x30a   : > { %v1923_v40 = vmax.f32 %v751_v31, %v857_v39 }
 0x30b   : > { %v748_v18 = vmax.f32 %v743_v36, 0.0 }
 0x30d   : > { %v752_v41 = vmax.f32 %v1861_v34, %v748_v18  ;;  %v852_v42 = vpop.f32.mrf.mxu3 }
 0x30e   : > { %v853_v43 = vadd.f32 %v1845_v63, %v852_v42 }
 0x310   : > { %v893_v44 = vpop.f32.mrf.mxu0  ;;  %v858_v45 = vmax.f32 %v853_v43, 0.0 }
 0x311   : > { %v894_v27 = vadd.f32 %v1779_v37, %v893_v44 }
 0x312   : > { %v1927_v46 = vmax.f32 %v752_v41, %v858_v45  ;;  %v1603_v45 = vld [vmem:[%s1748_s20 + $0x60] sm:$0xff]  }
 0x313   : > { %v903_v50 = vmax.f32 %v894_v27, 0.0 }
 0x315   : > { %v1003_v47 = vpop.f32.mrf.mxu3 }
 0x316   : > { %v1004_v53 = vadd.f32 %v1779_v37, %v1003_v47 }
 0x318   : > { %v895_v48 = vpop.f32.mrf.mxu0  ;;  %v1013_v56 = vmax.f32 %v1004_v53, 0.0  ;;  %v1605_v53 = vld [vmem:[%s1748_s20 + $0x70] sm:$0xff]  }
 0x319   : > { %v896_v49 = vadd.f32 %v1779_v37, %v895_v48  ;;  %v1577_v48 = vunpack.c.l.bf16 %v1603_v45 }
 0x31b   : > { %v904_v51 = vmax.f32 %v896_v49, 0.0  ;;  %v1578_v49 = vunpack.c.h.bf16 %v1603_v45 }
 0x31d   : > { %v907_v52 = vpack.c.bf16 %v904_v51, %v903_v50  ;;  %v1005_v54 = vpop.f32.mrf.mxu3  ;;  %v1092_v51 = vsub.f32 %v1577_v48, %v1754_v9 }
 0x31e   : > { %v1006_v34 = vadd.f32 %v1779_v37, %v1005_v54  ;;  %v1585_v54 = vunpack.c.l.bf16 %v1605_v53 }
 0x31f   : > { %1478 = vmatmul.msk.bf16.vlgmr.msrb.gmra.mxu1 %vm463_vm3, %v907_v52  ;;  %v1093_v52 = vsub.f32 %v1578_v49, %v1756_v10 }
 0x320   : > { %v898_v55 = vpop.f32.mrf.mxu0  ;;  %1221 = vmatpush.bf16.msrb.mxu1 %v1733_v5  ;;  %v1014_v57 = vmax.f32 %v1006_v34, 0.0  ;;  %v1586_v34 = vunpack.c.h.bf16 %v1605_v53 }
 0x321   : > { %v899_v59 = vadd.f32 %v1779_v37, %v898_v55  ;;  %v1096_v55 = vpack.c.bf16 %v1093_v52, %v1092_v51 }
 0x322   : > { %v1017_v58 = vpack.c.bf16 %v1014_v57, %v1013_v56  ;;  %v1202_v56 = vsub.f32 %v1585_v54, %v1754_v9  ;;  %v1203_v57 = vsub.f32 %v1586_v34, %v1756_v10 }
 0x323   : > { %v905_v0 = vmax.f32 %v899_v59, 0.0 }
 0x324   : > { %1488 = vmatmul.msk.bf16.vlgmr.msra.gmra.mxu0 %vm463_vm3, %v1017_v58  ;;  %v1604_v58 = vld [vmem:[%s1748_s20 + $0x68] sm:$0xff]   ;;  %v1206_v59 = vpack.c.bf16 %v1203_v57, %v1202_v56 }
 0x325   : > { %v1008_v60 = vpop.f32.mrf.mxu3 }
 0x326   : > { %v1009_v6 = vadd.f32 %v1779_v37, %v1008_v60  ;;  %v1581_v60 = vunpack.c.l.bf16 %v1604_v58 }
 0x328   : > { %v900_v61 = vpop.f32.mrf.mxu0  ;;  %v1015_v38 = vmax.f32 %v1009_v6, 0.0 }
 0x329   : > { %v901_v62 = vadd.f32 %v1779_v37, %v900_v61  ;;  %v1582_v61 = vunpack.c.h.bf16 %v1604_v58 }
 0x32b   : > { %v906_v1 = vmax.f32 %v901_v62, 0.0  ;;  %v1094_v62 = vsub.f32 %v1581_v60, %v1766_v24 }
 0x32d   : > { %v908_v2 = vpack.c.bf16 %v906_v1, %v905_v0  ;;  %v1010_v7 = vpop.f32.mrf.mxu3  ;;  %v1095_v0 = vsub.f32 %v1582_v61, %v1768_v25  ;;  %v1606_v1 = vld [vmem:[%s1748_s20 + $0x78] sm:$0xff]  }
 0x32e   : > { %v1011_v5 = vadd.f32 %v1779_v37, %v1010_v7  ;;  %v1590_v6 = vunpack.c.h.bf16 %v1606_v1 }
 0x32f   : > { %1479 = vmatmul.msk.bf16.gmra.mxu1 %vm463_vm3, %v908_v2  ;;  %v1589_v2 = vunpack.c.l.bf16 %v1606_v1  ;;  %v1097_v7 = vpack.c.bf16 %v1095_v0, %v1094_v62 }
 0x330   : > { %v1016_v8 = vmax.f32 %v1011_v5, 0.0  ;;  %v1205_v10 = vsub.f32 %v1590_v6, %v1768_v25 }
 0x331   : > { %v1204_v9 = vsub.f32 %v1589_v2, %v1766_v24 }
 0x332   : > { %v1018_v12 = vpack.c.bf16 %v1016_v8, %v1015_v38 }
 0x333   : > { %v1207_v5 = vpack.c.bf16 %v1205_v10, %v1204_v9 }
 0x334   : > { %1489 = vmatmul.msk.bf16.gmra.mxu0 %vm463_vm3, %v1018_v12 }
 0x39c   : > { %v924_v13 = vpop.f32.mrf.mxu1 }
 0x39d   : > { %v925_v14 = vadd.f32 %v1808_v4, %v924_v13 }
 0x39f   : > { %v934_v19 = vmax.f32 %v925_v14, 0.0 }
 0x3a1   : > { %v1034_v15 = vpop.f32.mrf.mxu0 }
 0x3a2   : > { %v1035_v23 = vadd.f32 %v1808_v4, %v1034_v15 }
 0x3a4   : > { %v926_v16 = vpop.f32.mrf.mxu1  ;;  %v1044_v11 = vmax.f32 %v1035_v23, 0.0 }
 0x3a5   : > { %v927_v17 = vadd.f32 %v1808_v4, %v926_v16 }
 0x3a7   : > { %v935_v21 = vmax.f32 %v927_v17, 0.0 }
 0x3a9   : > { %v938_v22 = vpack.c.bf16 %v935_v21, %v934_v19  ;;  %v1036_v26 = vpop.f32.mrf.mxu0 }
 0x3aa   : > { %v1037_v28 = vadd.f32 %v1808_v4, %v1036_v26 }
 0x3ab   : > { %1480 = vmatmul.msk.bf16.vlgmr.msrb.gmra.mxu2 %vm463_vm3, %v938_v22 }
 0x3ac   : > { %v929_v29 = vpop.f32.mrf.mxu1  ;;  %1252 = vmatpush.bf16.msrb.mxu2 %v1729_v3  ;;  %v1045_v31 = vmax.f32 %v1037_v28, 0.0 }
 0x3ad   : > { %v930_v33 = vadd.f32 %v1808_v4, %v929_v29 }
 0x3ae   : > { %v1048_v32 = vpack.c.bf16 %v1045_v31, %v1044_v11 }
 0x3af   : > { %v936_v18 = vmax.f32 %v930_v33, 0.0 }
 0x3b0   : > { %1490 = vmatmul.msk.bf16.vlgmr.msra.gmra.mxu1 %vm463_vm3, %v1048_v32 }
 0x3b1   : > { %v1039_v35 = vpop.f32.mrf.mxu0 }
 0x3b2   : > { %v1040_v43 = vadd.f32 %v1808_v4, %v1039_v35 }
 0x3b4   : > { %v931_v36 = vpop.f32.mrf.mxu1  ;;  %v1046_v27 = vmax.f32 %v1040_v43, 0.0 }
 0x3b5   : > { %v932_v39 = vadd.f32 %v1808_v4, %v931_v36 }
 0x3b7   : > { %v937_v41 = vmax.f32 %v932_v39, 0.0 }
 0x3b9   : > { %v939_v42 = vpack.c.bf16 %v937_v41, %v936_v18  ;;  %v1041_v44 = vpop.f32.mrf.mxu0 }
 0x3ba   : > { %v1042_v3 = vadd.f32 %v1808_v4, %v1041_v44 }
 0x3bb   : > { %1481 = vmatmul.msk.bf16.gmra.mxu2 %vm463_vm3, %v939_v42 }
 0x3bc   : > { %v1047_v47 = vmax.f32 %v1042_v3, 0.0 }
 0x3be   : > { %v1049_v50 = vpack.c.bf16 %v1047_v47, %v1046_v27 }
 0x3c0   : > { %1491 = vmatmul.msk.bf16.gmra.mxu1 %vm463_vm3, %v1049_v50 }
 0x3cb   : > { %1496 = vmatmul.msk.bf16.vlgmr.msra.gmra.mxu2 %vm415_vm2, %v1096_v55 }
 0x3d0   : > { %1506 = vmatmul.msk.bf16.vlgmr.msrb.gmra.mxu1 %vm415_vm2, %v1206_v59 }
 0x3db   : > { %1497 = vmatmul.msk.bf16.gmra.mxu2 %vm415_vm2, %v1097_v7 }
 0x3e0   : > { %1507 = vmatmul.msk.bf16.gmra.mxu1 %vm415_vm2, %v1207_v5 }
 0x42d   : > { %v1065_v12 = vpop.f32.mrf.mxu1 }
 0x42e   : > { %v955_v38 = vpop.f32.mrf.mxu2  ;;  %v1066_v13 = vadd.f32 %v1845_v63, %v1065_v12 }
 0x42f   : > { %v956_v8 = vadd.f32 %v1845_v63, %v955_v38 }
 0x430   : > { %v1075_v16 = vmax.f32 %v1066_v13, 0.0 }
 0x431   : > { %v965_v14 = vmax.f32 %v956_v8, 0.0 }
 0x433   : > { %v969_v15 = vmax.f32 %v1913_v20, %v965_v14 }
 0x435   : > { %v1974_v17 = vmax.f32 %v969_v15, %v1075_v16  ;;  %v1067_v19 = vpop.f32.mrf.mxu1 }
 0x436   : > { %v957_v24 = vpop.f32.mrf.mxu2  ;;  %v1068_v21 = vadd.f32 %v1845_v63, %v1067_v19 }
 0x437   : > { %v958_v25 = vadd.f32 %v1845_v63, %v957_v24 }
 0x438   : > { %v1076_v26 = vmax.f32 %v1068_v21, 0.0 }
 0x439   : > { %v966_v22 = vmax.f32 %v958_v25, 0.0 }
 0x43b   : > { %v970_v23 = vmax.f32 %v1918_v30, %v966_v22 }
 0x43d   : > { %v1979_v28 = vmax.f32 %v970_v23, %v1076_v26  ;;  %v1070_v31 = vpop.f32.mrf.mxu1 }
 0x43e   : > { %v960_v29 = vpop.f32.mrf.mxu2  ;;  %v1071_v20 = vadd.f32 %v1845_v63, %v1070_v31 }
 0x43f   : > { %v961_v11 = vadd.f32 %v1845_v63, %v960_v29 }
 0x440   : > { %v1077_v35 = vmax.f32 %v1071_v20, 0.0 }
 0x441   : > { %v967_v32 = vmax.f32 %v961_v11, 0.0 }
 0x443   : > { %v971_v33 = vmax.f32 %v1923_v40, %v967_v32 }
 0x445   : > { %v1984_v36 = vmax.f32 %v971_v33, %v1077_v35  ;;  %v1072_v41 = vpop.f32.mrf.mxu1 }
 0x446   : > { %v962_v39 = vpop.f32.mrf.mxu2  ;;  %v1073_v30 = vadd.f32 %v1845_v63, %v1072_v41 }
 0x447   : > { %v963_v18 = vadd.f32 %v1845_v63, %v962_v39 }
 0x448   : > { %v1078_v44 = vmax.f32 %v1073_v30, 0.0 }
 0x449   : > { %v968_v42 = vmax.f32 %v963_v18, 0.0 }
 0x44b   : > { %v972_v43 = vmax.f32 %v1927_v46, %v968_v42 }
 0x44d   : > { %v1989_v3 = vmax.f32 %v972_v43, %v1078_v44  ;;  %v1223_v27 = vpop.f32.mrf.mxu1 }
 0x44e   : > { %v1113_v45 = vpop.f32.mrf.mxu2  ;;  %v1224_v40 = vadd.f32 %v1779_v37, %v1223_v27 }
 0x44f   : > { %v1114_v47 = vadd.f32 %v1779_v37, %v1113_v45 }
 0x450   : > { %v1233_v54 = vmax.f32 %v1224_v40, 0.0 }
 0x451   : > { %v1123_v52 = vmax.f32 %v1114_v47, 0.0 }
 0x455   : > { %v1225_v50 = vpop.f32.mrf.mxu1 }
 0x456   : > { %v1115_v48 = vpop.f32.mrf.mxu2  ;;  %v1226_v51 = vadd.f32 %v1779_v37, %v1225_v50 }
 0x457   : > { %v1116_v49 = vadd.f32 %v1779_v37, %v1115_v48 }
 0x458   : > { %v1234_v34 = vmax.f32 %v1226_v51, 0.0 }
 0x459   : > { %v1124_v53 = vmax.f32 %v1116_v49, 0.0 }
 0x45a   : > { %v1237_v55 = vpack.c.bf16 %v1234_v34, %v1233_v54 }
 0x45b   : > { %v1127_v46 = vpack.c.bf16 %v1124_v53, %v1123_v52 }
 0x45c   : > { %1508 = vmatmul.msk.bf16.vlgmr.msrb.gmra.mxu2 %vm463_vm3, %v1237_v55 }
 0x45d   : > { %1498 = vmatmul.msk.bf16.vlgmr.msra.gmra.mxu3 %vm463_vm3, %v1127_v46  ;;  %v1228_v57 = vpop.f32.mrf.mxu1 }
 0x45e   : > { %v1118_v56 = vpop.f32.mrf.mxu2  ;;  %v1229_v59 = vadd.f32 %v1779_v37, %v1228_v57 }
 0x45f   : > { %v1119_v58 = vadd.f32 %v1779_v37, %v1118_v56 }
 0x460   : > { %v1235_v6 = vmax.f32 %v1229_v59, 0.0 }
 0x461   : > { %v1125_v1 = vmax.f32 %v1119_v58, 0.0 }
 0x465   : > { %v1230_v62 = vpop.f32.mrf.mxu1 }
 0x466   : > { %v1120_v60 = vpop.f32.mrf.mxu2  ;;  %v1231_v0 = vadd.f32 %v1779_v37, %v1230_v62 }
 0x467   : > { %v1121_v61 = vadd.f32 %v1779_v37, %v1120_v60 }
 0x468   : > { %v1236_v7 = vmax.f32 %v1231_v0, 0.0 }
 0x469   : > { %v1126_v2 = vmax.f32 %v1121_v61, 0.0 }
 0x46a   : > { %v1238_v10 = vpack.c.bf16 %v1236_v7, %v1235_v6 }
 0x46b   : > { %v1128_v9 = vpack.c.bf16 %v1126_v2, %v1125_v1 }
 0x46c   : > { %1509 = vmatmul.msk.bf16.gmra.mxu2 %vm463_vm3, %v1238_v10 }
 0x46d   : > { %1499 = vmatmul.msk.bf16.gmra.mxu3 %vm463_vm3, %v1128_v9 }
 0x4df   : > { %v1254_v38 = vpop.f32.mrf.mxu2 }
 0x4e0   : > { %v1144_v5 = vpop.f32.mrf.mxu3  ;;  %v1255_v12 = vadd.f32 %v1808_v4, %v1254_v38 }
 0x4e1   : > { %v1145_v8 = vadd.f32 %v1808_v4, %v1144_v5 }
 0x4e2   : > { %v1264_v25 = vmax.f32 %v1255_v12, 0.0 }
 0x4e3   : > { %v1154_v16 = vmax.f32 %v1145_v8, 0.0 }
 0x4e7   : > { %v1256_v37 = vpop.f32.mrf.mxu2 }
 0x4e8   : > { %v1146_v13 = vpop.f32.mrf.mxu3  ;;  %v1257_v15 = vadd.f32 %v1808_v4, %v1256_v37 }
 0x4e9   : > { %v1147_v14 = vadd.f32 %v1808_v4, %v1146_v13 }
 0x4ea   : > { %v1265_v19 = vmax.f32 %v1257_v15, 0.0 }
 0x4eb   : > { %v1155_v24 = vmax.f32 %v1147_v14, 0.0 }
 0x4ec   : > { %v1268_v22 = vpack.c.bf16 %v1265_v19, %v1264_v25 }
 0x4ed   : > { %v1158_v21 = vpack.c.bf16 %v1155_v24, %v1154_v16 }
 0x4ee   : > { %1510 = vmatmul.msk.bf16.vlgmr.msrb.gmra.mxu3 %vm463_vm3, %v1268_v22 }
 0x4ef   : > { %1500 = vmatmul.msk.bf16.vlgmr.msrb.gmra.mxu0 %vm463_vm3, %v1158_v21  ;;  %v1259_v26 = vpop.f32.mrf.mxu2 }
 0x4f0   : > { %v1149_v23 = vpop.f32.mrf.mxu3  ;;  %v1260_v11 = vadd.f32 %v1808_v4, %v1259_v26 }
 0x4f1   : > { %v1150_v29 = vadd.f32 %v1808_v4, %v1149_v23 }
 0x4f2   : > { %v1266_v18 = vmax.f32 %v1260_v11, 0.0 }
 0x4f3   : > { %v1156_v35 = vmax.f32 %v1150_v29, 0.0 }
 0x4f7   : > { %v1261_v32 = vpop.f32.mrf.mxu2 }
 0x4f8   : > { %v1151_v31 = vpop.f32.mrf.mxu3  ;;  %v1262_v33 = vadd.f32 %v1808_v4, %v1261_v32 }
 0x4f9   : > { %v1152_v20 = vadd.f32 %v1808_v4, %v1151_v31 }
 0x4fa   : > { %v1267_v41 = vmax.f32 %v1262_v33, 0.0 }
 0x4fb   : > { %v1157_v39 = vmax.f32 %v1152_v20, 0.0 }
 0x4fc   : > { %v1269_v42 = vpack.c.bf16 %v1267_v41, %v1266_v18 }
 0x4fd   : > { %v1159_v30 = vpack.c.bf16 %v1157_v39, %v1156_v35 }
 0x4fe   : > { %1511 = vmatmul.msk.bf16.gmra.mxu3 %vm463_vm3, %v1269_v42 }
 0x4ff   : > { %1501 = vmatmul.msk.bf16.gmra.mxu0 %vm463_vm3, %v1159_v30 }
 0x56c   : > { %v1175_v43 = vpop.f32.mrf.mxu0 }
 0x56d   : > { %v1176_v44 = vadd.f32 %v1845_v63, %v1175_v43 }
 0x56f   : > { %v1185_v45 = vmax.f32 %v1176_v44, 0.0 }
 0x571   : > { %v1285_v27 = vpop.f32.mrf.mxu3  ;;  %v1189_v4 = vmax.f32 %v1974_v17, %v1185_v45 }
 0x572   : > { %v1286_v47 = vadd.f32 %v1845_v63, %v1285_v27 }
 0x574   : > { %v1177_v40 = vpop.f32.mrf.mxu0  ;;  %v1295_v48 = vmax.f32 %v1286_v47, 0.0 }
 0x575   : > { %v1178_v49 = vadd.f32 %v1845_v63, %v1177_v40 }
 0x576   : > { %v1299_v50 = vmax.f32 %v1189_v4, %v1295_v48 }
 0x577   : > { %v1186_v52 = vmax.f32 %v1178_v49, 0.0 }
 0x578   : > { %v1303_v51 = vpack.c.bf16 %v1299_v50, %v1299_v50 }
 0x579   : > { %v1287_v53 = vpop.f32.mrf.mxu3  ;;  %v1190_v34 = vmax.f32 %v1979_v28, %v1186_v52 }
 0x57a   : > { %1308 = vst.msk [vmem:[%s2024_s14] sm:$0xf] %vm1307_vm4, %v1303_v51  ;;  %v1288_v17 = vadd.f32 %v1845_v63, %v1287_v53 }
 0x57c   : > { %v1180_v54 = vpop.f32.mrf.mxu0  ;;  %v1296_v46 = vmax.f32 %v1288_v17, 0.0 }
 0x57d   : > { %v1181_v55 = vadd.f32 %v1845_v63, %v1180_v54 }
 0x57e   : > { %v1300_v56 = vmax.f32 %v1190_v34, %v1296_v46 }
 0x57f   : > { %v1187_v58 = vmax.f32 %v1181_v55, 0.0 }
 0x580   : > { %v1304_v57 = vpack.c.bf16 %v1300_v56, %v1300_v56 }
 0x581   : > { %v1290_v59 = vpop.f32.mrf.mxu3  ;;  %v1191_v62 = vmax.f32 %v1984_v36, %v1187_v58 }
 0x582   : > { %1309 = vst.msk [vmem:[%s2024_s14 + $0x4] sm:$0xf] %vm1307_vm4, %v1304_v57  ;;  %v1291_v60 = vadd.f32 %v1845_v63, %v1290_v59 }
 0x584   : > { %v1182_v61 = vpop.f32.mrf.mxu0  ;;  %v1297_v0 = vmax.f32 %v1291_v60, 0.0 }
 0x585   : > { %v1183_v1 = vadd.f32 %v1845_v63, %v1182_v61 }
 0x586   : > { %v1301_v28 = vmax.f32 %v1191_v62, %v1297_v0 }
 0x587   : > { %v1188_v6 = vmax.f32 %v1183_v1, 0.0 }
 0x588   : > { %v1305_v2 = vpack.c.bf16 %v1301_v28, %v1301_v28 }
 0x589   : > { %v1292_v7 = vpop.f32.mrf.mxu3  ;;  %v1192_v10 = vmax.f32 %v1989_v3, %v1188_v6 }
 0x58a   : > { %1310 = vst.msk [vmem:[%s2024_s14 + $0x8] sm:$0xf] %vm1307_vm4, %v1305_v2  ;;  %v1293_v9 = vadd.f32 %v1845_v63, %v1292_v7 }
 0x58c   : > { %v1298_v5 = vmax.f32 %v1293_v9, 0.0 }
 0x58e   : > { %v1302_v38 = vmax.f32 %v1192_v10, %v1298_v5 }
 0x590   : > { %v1306_v8 = vpack.c.bf16 %v1302_v38, %v1302_v38 }
 0x592   : > { %1311 = vst.msk [vmem:[%s2024_s14 + $0xc] sm:$0xf] %vm1307_vm4, %v1306_v8 }
 0x593 PF: > { %s18_s29 = sadd.s32 1, %s1657_s29   ;;  %s2060_s27 = smov %s1653_s28 }
 0x594   : > { %p15_p5 = scmp.ge.s32.totalorder %s18_s29, 4   ;;  %s2061_s28 = smov %s2063_s30 }
 0x596   :  { %17 = sbr.rel (!%p15_p5) target bundleno = 2 (0x2), region = 92 }

// kernel: _lambda_.23
= control target key start
LH: loop header
LB: loop body
LE: loop exit
PB: predicated region body
PF: predicated region fallthrough
CT: control target
= control target key end

     0   :  { %s312_s9 = smov 0   ;;  %s332_s0 = inlined_call_operand.vmem [shape: f32[2,8,3], index: 0, kind: input, shape index: {}]   ;;  %s333_s1 = inlined_call_operand.vmem [shape: f32[2,3,32], index: 1, kind: input, shape index: {}]   ;;  %s334_s2 = inlined_call_operand.vmem [shape: f32[2,8,32], index: 2, kind: output, shape index: {}]  }
   0x1 LB: > { %s269_s10 = sadd.s32 4294967295, %s295_s9   ;;  %p273_p0 = scmp.ge.s32.totalorder %s295_s9, 1  ;;  %s295_s9 = sphi %s312_s9, %s12_s9  }
   0x2   : > { %p120_p1 = scmp.lt.s32.totalorder %s295_s9, 3 }
   0x4   : > { %p121_p2 = pnand %p273_p0, %p120_p1 }
   0x5   : > { %p144_p3 = scmp.lt.s32.totalorder (!%p121_p2), %s269_s10, 1 }
   0x6   : > { %124 = sbr.rel (%p121_p2) target bundleno = 147 (0x93), region = 28 }
   0xb   : > { %s336_s10 = smov (!%p144_p3, %s269_s10), 1  ;;  %vm175_vm0 = vcmask 1042432   ;;  %vm159_vm1 = vcmask 23552   ;;  %vm164_vm2 = vcmask 256000   ;;  %vm202_vm3 = vcmask 261120  }
   0xc   : > { %s275_s11 = sshll.u32 %s336_s10, 2  ;;  %s274_s12 = sshll.u32 %s336_s10, 3 }
   0xd   : > { %s151_s15 = scalar_lea.vmem %s333_s1, %s275_s11  ;;  %s147_s18 = scalar_lea.vmem %s332_s0, %s274_s12 }
   0xe   : > { %v157_v0 = vld [vmem:[%s151_s15] sm:$0x7]  ;;  %s155_s21 = scalar_lea.vmem %s334_s2, %s274_s12 }
   0xf   : > { %v156_v1 = vld [vmem:[%s147_s18] sm:$0xff]  ;;  %277 = vmatpush.msk.msra.mxu0 %vm175_vm0, %v157_v0  ;;  %v163_v4 = vmul.f32 %v157_v0, %v157_v0 }
  0x10   : > { %v158_v2 = vmul.f32 %v156_v1, %v156_v1  ;;  %278 = vmatmul.msk.f32.vlgmr.msra.gmra.mxu0 %vm159_vm1, %v156_v1 }
  0x11   : > { %v165_v5 = vsel %vm164_vm2, %v163_v4, 0.0 }
  0x12   : > { %v160_v3 = vsel %vm159_vm1, %v158_v2, 0.0  ;;  %v166_v6 = vrot.slane %v165_v5, 4 }
  0x13   : > { %161 = vadd.xlane.f32.xlu0 %v160_v3 }
  0x14   : > { %v167_v7 = vadd.f32 %v166_v6, %v165_v5 }
  0x16   : > { %v168_v8 = vrot.slane %v167_v7, 2 }
  0x18   : > { %v169_v9 = vadd.f32 %v168_v8, %v167_v7 }
  0x1a   : > { %v170_v10 = vrot.slane %v169_v9, 1 }
  0x1c   : > { %v171_v11 = vadd.f32 %v170_v10, %v169_v9 }
  0x86   : > { %v162_v12 = vpop.xlane.xlu0 %161 }
  0x87   : > { %v199_v13 = vadd.f32 %v171_v11, %v162_v12 }
  0x8d   : > { %v196_v14 = vpop.f32.mrf.mxu0 }
  0x8e   : > { %v200_v15 = vmul.f32 2.0, %v196_v14 }
  0x90   : > { %v201_v16 = vsub.f32 %v199_v13, %v200_v15 }
  0x92   : > { %203 = vst.msk [vmem:[%s155_s21] sm:$0xff] %vm202_vm3, %v201_v16 }
  0x93 PF: > { %s12_s9 = sadd.s32 1, %s295_s9  }
  0x94   : > { %p9_p4 = scmp.ge.s32.totalorder %s12_s9, 4  }
  0x96   :  { %11 = sbr.rel (!%p9_p4) target bundleno = 1 (0x1), region = 61 }

// kernel: _lambda_.27
= control target key start
LH: loop header
LB: loop body
LE: loop exit
PB: predicated region body
PF: predicated region fallthrough
CT: control target
= control target key end

     0   :  { %s755_s18 = smov 0   ;;  %s757_s19 = smov 0   ;;  %s858_s0 = inlined_call_operand.vmem [shape: bf16[256,64], index: 0, kind: input, shape index: {}]   ;;  %s859_s1 = inlined_call_operand.vmem [shape: f32[1,64], index: 1, kind: input, shape index: {}, may-alias: {1,3}]   ;;  %s860_s2 = inlined_call_operand.vmem [shape: bf16[64,64], index: 2, kind: input, shape index: {}]   ;;  %s861_s3 = inlined_call_operand.vmem [shape: f32[1,64], index: 3, kind: input, shape index: {}, may-alias: {1,3}]   ;;  %s862_s4 = inlined_call_operand.vmem [shape: bf16[2,8,256], index: 4, kind: input, shape index: {}]   ;;  %s863_s5 = inlined_call_operand.vmem [shape: bf16[2,8,64], index: 5, kind: output, shape index: {}]  }
   0x1   :  { %s759_s20 = smov 0  }
   0x2 LB: > { %s27_s21 = sadd.s32 1, %s719_s19  ;;  %p567_p0 = scmp.ge.s32.totalorder %s723_s20, 1  ;;  %s723_s20 = sphi %s759_s20, %s15_s20   ;;  %s719_s19 = sphi %s757_s19, %s865_s19   ;;  %s715_s18 = sphi %s755_s18, %s864_s18  }
   0x3   : > { %p29_p1 = scmp.ge.s32.totalorder %s27_s21, 2  ;;  %p207_p2 = scmp.lt.s32.totalorder %s723_s20, 3 }
   0x5   : > { %s867_s21 = smov (%p29_p1, %s27_s21), 0  ;;  %p208_p3 = pnand %p567_p0, %p207_p2 }
   0x6   : > { %p241_p4 = scmp.lt.s32.totalorder (!%p208_p3), %s715_s18, 1 }
   0x7   : > { %211 = sbr.rel (%p208_p3) target bundleno = 318 (0x13e), region = 40 }
   0xc   : > { %v662_v0 = vld [vmem:[%s858_s0 + $0x38] sm:$0xff]  ;;  %v661_v2 = vld [vmem:[%s858_s0 + $0x30] sm:$0xff]  ;;  %v660_v5 = vld [vmem:[%s858_s0 + $0x28] sm:$0xff]  ;;  %s869_s18 = smov (!%p241_p4, %s715_s18), 1  ;;  %vm462_vm0 = vcmask 523264   ;;  %vm481_vm1 = vcmask 519168  }
   0xd   : > { %v670_v1 = vld [vmem:[%s858_s0 + $0x78] sm:$0xff]  ;;  %407 = vmatpush.bf16.msra.mxu0 %v662_v0  ;;  %v669_v3 = vld [vmem:[%s858_s0 + $0x70] sm:$0xff]  ;;  %v668_v6 = vld [vmem:[%s858_s0 + $0x68] sm:$0xff]  ;;  %s654_s25 = sshll.u32 %s869_s18, 3  ;;  %s570_s28 = sshll.u32 %s869_s18, 2 }
   0xe   : > { %420 = vmatpush.bf16.msra.mxu1 %v670_v1  ;;  %v674_v4 = vld [vmem:[%s860_s2 + $0x18] sm:$0xff]  ;;  %v673_v7 = vld [vmem:[%s860_s2 + $0x10] sm:$0xff]  ;;  %v659_v8 = vld [vmem:[%s858_s0 + $0x20] sm:$0xff]  ;;  %s249_s7 = scalar_lea.vmem %s862_s4, %s654_s25  ;;  %s256_s6 = scalar_lea.vmem %s863_s5, %s570_s28 }
   0xf   : > { %470 = vmatpush.bf16.msra.mxu2 %v674_v4  ;;  %v667_v9 = vld [vmem:[%s858_s0 + $0x60] sm:$0xff]  ;;  %v658_v10 = vld [vmem:[%s858_s0 + $0x18] sm:$0xff]  ;;  %v657_v12 = vld [vmem:[%s858_s0 + $0x10] sm:$0xff] }
  0x10   : > { %v666_v11 = vld [vmem:[%s858_s0 + $0x58] sm:$0xff]  ;;  %v665_v13 = vld [vmem:[%s858_s0 + $0x50] sm:$0xff]  ;;  %v656_v14 = vld [vmem:[%s858_s0 + $0x8] sm:$0xff] }
  0x11   : > { %408 = vmatpush.bf16.msra.mxu0 %v661_v2  ;;  %v664_v15 = vld [vmem:[%s858_s0 + $0x48] sm:$0xff]  ;;  %v300_v16 = vld [vmem:[%s249_s7] sm:$0xff] }
  0x12   : > { %421 = vmatpush.bf16.msra.mxu1 %v669_v3  ;;  %v305_v17 = vunpack.c.l.b16 %v300_v16  ;;  %v306_v18 = vunpack.c.h.b16 %v300_v16  ;;  %v655_v19 = vld [vmem:[%s858_s0] sm:$0xff]  ;;  %v672_v23 = vld [vmem:[%s860_s2 + $0x8] sm:$0xff] }
  0x13   : > { %471 = vmatpush.bf16.msra.mxu2 %v673_v7  ;;  %v663_v20 = vld [vmem:[%s858_s0 + $0x40] sm:$0xff] }
  0x14   : > { %v307_v21 = vpack.c.b16 %v305_v17, %v305_v17  ;;  %v308_v22 = vpack.c.b16 %v306_v18, %v306_v18  ;;  %v671_v24 = vld [vmem:[%s860_s2] sm:$0xff] }
  0x15   : > { %409 = vmatpush.bf16.msra.mxu0 %v660_v5  ;;  %v699_v25 = vld [vmem:[%s859_s1] ss:$0 sm:$0xff] }
  0x16   : > { %422 = vmatpush.bf16.msra.mxu1 %v668_v6  ;;  %v700_v34 = vld [vmem:[%s861_s3] ss:$0 sm:$0xff] }
  0x17   : > { %472 = vmatpush.bf16.msra.mxu2 %v672_v23 }
  0x19   : > { %410 = vmatpush.bf16.msra.mxu0 %v659_v8 }
  0x1a   : > { %423 = vmatpush.bf16.msra.mxu1 %v667_v9 }
  0x1b   : > { %473 = vmatpush.bf16.msra.mxu2 %v671_v24 }
  0x1d   : > { %411 = vmatpush.bf16.msra.mxu0 %v658_v10 }
  0x1e   : > { %424 = vmatpush.bf16.msra.mxu1 %v666_v11 }
  0x21   : > { %412 = vmatpush.bf16.msra.mxu0 %v657_v12 }
  0x22   : > { %425 = vmatpush.bf16.msra.mxu1 %v665_v13 }
  0x25   : > { %413 = vmatpush.bf16.msra.mxu0 %v656_v14 }
  0x26   : > { %426 = vmatpush.bf16.msra.mxu1 %v664_v15 }
  0x29   : > { %414 = vmatpush.bf16.msra.mxu0 %v655_v19 }
  0x2a   : > { %427 = vmatpush.bf16.msra.mxu1 %v663_v20 }
  0x2c   : > { %415 = vmatmul.bf16.vlgmr.msra.gmra.mxu0 %v307_v21 }
  0x2d   : > { %428 = vmatmul.bf16.vlgmr.msra.gmra.mxu1 %v308_v22 }
  0xa9   : > { %v416_v26 = vpop.f32.mrf.mxu0 }
  0xaa   : > { %v429_v27 = vpop.f32.mrf.mxu1  ;;  %v417_v28 = vadd.f32 %v699_v25, %v416_v26 }
  0xac   : > { %v430_v29 = vadd.f32 %v429_v27, %v417_v28 }
  0xae   : > { %v433_v30 = vmax.f32 %v430_v29, 0.0 }
  0xb0   : > { %v434_v31 = vpack.c.bf16 %v433_v30, %v433_v30 }
  0xb1   : > { %v418_v32 = vpop.f32.mrf.mxu0 }
  0xb2   : > { %v431_v33 = vpop.f32.mrf.mxu1  ;;  %651 = vmatmul.msk.bf16.vlgmr.msra.gmra.mxu2 %vm462_vm0, %v434_v31 }
 0x135   : > { %v475_v35 = vpop.f32.mrf.mxu2 }
 0x136   : > { %v476_v36 = vadd.f32 %v700_v34, %v475_v35 }
 0x138   : > { %v479_v37 = vmax.f32 %v476_v36, 0.0 }
 0x13a   : > { %v480_v38 = vpack.c.bf16 %v479_v37, %v479_v37 }
 0x13c   : > { %482 = vst.msk [vmem:[%s256_s6] sm:$0xf] %vm481_vm1, %v480_v38 }
 0x13d   : > { %v477_v39 = vpop.f32.mrf.mxu2 }
 0x13e PF: > { %s15_s20 = sadd.s32 1, %s723_s20   ;;  %s864_s18 = smov %s719_s19 }
 0x13f   : > { %p12_p5 = scmp.ge.s32.totalorder %s15_s20, 4   ;;  %s865_s19 = smov %s867_s21 }
 0x141   :  { %14 = sbr.rel (!%p12_p5) target bundleno = 2 (0x2), region = 70 }

// kernel: _lambda_.24
= control target key start
LH: loop header
LB: loop body
LE: loop exit
PB: predicated region body
PF: predicated region fallthrough
CT: control target
= control target key end

     0   :  { %s1227_s27 = smov 0   ;;  %s1229_s28 = smov 0   ;;  %s1501_s0 = inlined_call_operand.vmem [shape: bf16[99,32], index: 0, kind: input, shape index: {}]   ;;  %s1502_s1 = inlined_call_operand.vmem [shape: f32[1,32], index: 1, kind: input, shape index: {}, may-alias: {1,3}]   ;;  %s1503_s2 = inlined_call_operand.vmem [shape: bf16[32,32], index: 2, kind: input, shape index: {}]   ;;  %s1504_s3 = inlined_call_operand.vmem [shape: f32[1,32], index: 3, kind: input, shape index: {}, may-alias: {1,3}]   ;;  %s1505_s4 = inlined_call_operand.vmem [shape: bf16[32,64], index: 4, kind: input, shape index: {}]   ;;  %s1506_s5 = inlined_call_operand.vmem [shape: f32[1,64], index: 5, kind: input, shape index: {}]   ;;  %s1507_s6 = inlined_call_operand.vmem [shape: bf16[2,8,99], index: 6, kind: input, shape index: {}]   ;;  %s1508_s7 = inlined_call_operand.vmem [shape: bf16[2,8,8,99], index: 7, kind: input, shape index: {}]   ;;  %s1509_s8 = inlined_call_operand.vmem [shape: bf16[2,8,64], index: 8, kind: output, shape index: {}]  }
   0x1   :  { %s1231_s29 = smov 0  }
   0x2 LB: > { %s30_s30 = sadd.s32 1, %s1175_s28  ;;  %p1040_p0 = scmp.ge.s32.totalorder %s1179_s29, 1  ;;  %s1179_s29 = sphi %s1231_s29, %s18_s29   ;;  %s1175_s28 = sphi %s1229_s28, %s1511_s28   ;;  %s1171_s27 = sphi %s1227_s27, %s1510_s27  }
   0x3   : > { %p32_p1 = scmp.ge.s32.totalorder %s30_s30, 2  ;;  %p295_p2 = scmp.lt.s32.totalorder %s1179_s29, 3 }
   0x5   : > { %s1513_s30 = smov (%p32_p1, %s30_s30), 0  ;;  %p296_p3 = pnand %p1040_p0, %p295_p2 }
   0x6   : > { %p341_p4 = scmp.lt.s32.totalorder (!%p296_p3), %s1171_s27, 1 }
   0x7   : > { %299 = sbr.rel (%p296_p3) target bundleno = 1209 (0x4b9), region = 52 }
   0xc   : > { %v376_v0 = vld [vmem:[%s1501_s0 + $0x30] sm:$0x3]  ;;  %vm440_vm0 = vcmask 1040384   ;;  %vm441_vm1 = vcmask 1041408   ;;  %v1181_v2 = vmov 65535   ;;  %v1255_v7 = vld [vmem:[%s1501_s0 + $0x28] sm:$0xff] }
   0xd   : > { %v422_v1 = vunpack.c.l.b16 %v376_v0  ;;  %v442_v3 = vsel %vm440_vm0, 4294967295, %v1181_v2  ;;  %s1515_s27 = smov (!%p341_p4, %s1171_s27), 1  ;;  %v1264_v8 = vld [vmem:[%s1501_s0 + $0x20] sm:$0xff]  ;;  %v1273_v9 = vld [vmem:[%s1501_s0 + $0x18] sm:$0xff]  ;;  %v1290_v10 = vld [vmem:[%s1501_s0 + $0x10] sm:$0xff]  ;;  %vm436_vm2 = vcmask 809984  }
   0xe   : > { %v443_v4 = vsel %vm441_vm1, %v442_v3, 0  ;;  %s1041_s15 = sshll.u32 %s1515_s27, 2  ;;  %s1118_s16 = sshll.u32 %s1515_s27, 5  ;;  %v1300_v16 = vld [vmem:[%s1501_s0 + $0x8] sm:$0xff]  ;;  %v1309_v19 = vld [vmem:[%s1501_s0] sm:$0xff]  ;;  %vm477_vm3 = vcmask 261120  }
   0xf   : > { %v429_v5 = vpack.c.b16 %v422_v1, %v422_v1  ;;  %s347_s21 = scalar_lea.vmem %s1507_s6, %s1041_s15  ;;  %s1283_s24 = scalar_lea.vmem %s1508_s7, %s1118_s16  ;;  %v1325_v22 = vld [vmem:[%s1503_s2 + $0x8] sm:$0xff]  ;;  %v1331_v23 = vld [vmem:[%s1503_s2] sm:$0xff]  ;;  %vm942_vm4 = vcmask 519168  }
  0x10   : > { %v388_v11 = vld [vmem:[%s347_s21] sm:$0xf]  ;;  %487 = vmatpush.bf16.msra.mxu1 %v1325_v22  ;;  %v1092_v27 = vld [vmem:[%s1283_s24 + $0x8] sm:$0xff]   ;;  %v1362_v42 = vld [vmem:[%s1283_s24 + $0x10] sm:$0xff]   ;;  %s362_s12 = scalar_lea.vmem %s1509_s8, %s1041_s15 }
  0x11   : > { %v1248_v6 = vand.u32 %v443_v4, %v429_v5  ;;  %v389_v12 = vld [vmem:[%s1283_s24] sm:$0xff]   ;;  %v1293_v14 = vunpack.c.l.bf16 %v388_v11  ;;  %v648_v29 = vunpack.c.h.bf16 %v1092_v27  ;;  %v589_v39 = vunpack.c.l.bf16 %v1092_v27  ;;  %v1380_v46 = vld [vmem:[%s1505_s4 + $0x8] sm:$0xff] }
  0x12   : > { %v390_v13 = vunpack.c.l.bf16 %v389_v12  ;;  %v530_v15 = vunpack.c.h.bf16 %v389_v12  ;;  %v1339_v24 = vld [vmem:[%s1502_s1] ss:$0 sm:$0xff]  ;;  %v707_v43 = vunpack.c.l.bf16 %v1362_v42  ;;  %520 = vmatpush.bf16.msra.mxu2 %v1380_v46 }
  0x13   : > { %448 = vmatpush.bf16.msra.mxu0 %v1248_v6  ;;  %537 = vmatpush.bf16.msra.mxu3 %v1248_v6  ;;  %v649_v31 = vsub.f32 %v648_v29, %v1293_v14  ;;  %v590_v40 = vsub.f32 %v589_v39, %v1293_v14  ;;  %v1388_v47 = vld [vmem:[%s1505_s4] sm:$0xff] }
  0x14   : > { %v392_v17 = vsub.f32 %v390_v13, %v1293_v14  ;;  %v531_v18 = vsub.f32 %v530_v15, %v1293_v14  ;;  %488 = vmatpush.bf16.msra.mxu1 %v1331_v23  ;;  %v708_v44 = vsub.f32 %v707_v43, %v1293_v14  ;;  %v1402_v48 = vld [vmem:[%s1504_s3] ss:$0 sm:$0xff] }
  0x15   : > { %v650_v33 = vpack.c.bf16 %v649_v31, %v649_v31  ;;  %v591_v41 = vpack.c.bf16 %v590_v40, %v590_v40 }
  0x16   : > { %v393_v20 = vpack.c.bf16 %v392_v17, %v392_v17  ;;  %v532_v21 = vpack.c.bf16 %v531_v18, %v531_v18  ;;  %v709_v45 = vpack.c.bf16 %v708_v44, %v708_v44  ;;  %521 = vmatpush.bf16.msra.mxu2 %v1388_v47 }
  0x17   : > { %449 = vmatpush.bf16.msra.mxu0 %v1255_v7  ;;  %538 = vmatpush.bf16.msra.mxu3 %v1255_v7 }
  0x18   : > { %560 = vmatpush.bf16.msrb.mxu1 %v1325_v22 }
  0x1a   : > { %578 = vmatpush.bf16.msrb.mxu2 %v1380_v46 }
  0x1b   : > { %450 = vmatpush.bf16.msra.mxu0 %v1264_v8  ;;  %539 = vmatpush.bf16.msra.mxu3 %v1264_v8 }
  0x1c   : > { %561 = vmatpush.bf16.msrb.mxu1 %v1331_v23 }
  0x1e   : > { %579 = vmatpush.bf16.msrb.mxu2 %v1388_v47 }
  0x1f   : > { %451 = vmatpush.bf16.msra.mxu0 %v1273_v9  ;;  %540 = vmatpush.bf16.msra.mxu3 %v1273_v9 }
  0x23   : > { %452 = vmatpush.bf16.msra.mxu0 %v1290_v10  ;;  %541 = vmatpush.bf16.msra.mxu3 %v1290_v10 }
  0x27   : > { %453 = vmatpush.bf16.msra.mxu0 %v1300_v16  ;;  %542 = vmatpush.bf16.msra.mxu3 %v1300_v16 }
  0x2b   : > { %454 = vmatpush.bf16.msra.mxu0 %v1309_v19  ;;  %543 = vmatpush.bf16.msra.mxu3 %v1309_v19 }
  0x2e   : > { %1069 = vmatmul.msk.bf16.vlgmr.msra.gmra.mxu0 %vm436_vm2, %v393_v20  ;;  %1089 = vmatmul.msk.bf16.vlgmr.msra.gmra.mxu3 %vm436_vm2, %v532_v21  ;;  %v1427_v20 = vld [vmem:[%s1506_s5] ss:$0 sm:$0xff] }
  0x2f   : > { %655 = vmatpush.bf16.msrb.mxu3 %v1248_v6  ;;  %637 = vmatpush.bf16.msrb.mxu0 %v1380_v46 }
  0x33   : > { %656 = vmatpush.bf16.msrb.mxu3 %v1255_v7  ;;  %638 = vmatpush.bf16.msrb.mxu0 %v1388_v47 }
  0x37   : > { %657 = vmatpush.bf16.msrb.mxu3 %v1264_v8  ;;  %696 = vmatpush.bf16.msra.mxu0 %v1380_v46 }
  0x3b   : > { %658 = vmatpush.bf16.msrb.mxu3 %v1273_v9  ;;  %697 = vmatpush.bf16.msra.mxu0 %v1388_v47 }
  0x3f   : > { %659 = vmatpush.bf16.msrb.mxu3 %v1290_v10 }
  0x43   : > { %660 = vmatpush.bf16.msrb.mxu3 %v1300_v16 }
  0x47   : > { %661 = vmatpush.bf16.msrb.mxu3 %v1309_v19 }
  0x4a   : > { %1097 = vmatmul.msk.bf16.vlgmr.msrb.gmra.mxu3 %vm436_vm2, %v650_v33 }
  0x4b   : > { %755 = vmatpush.bf16.msra.mxu3 %v1380_v46 }
  0x4f   : > { %756 = vmatpush.bf16.msra.mxu3 %v1388_v47 }
  0x53   : > { %814 = vmatpush.bf16.msrb.mxu3 %v1380_v46 }
  0x57   : > { %815 = vmatpush.bf16.msrb.mxu3 %v1388_v47 }
  0xab   : > { %v456_v25 = vpop.f32.mrf.mxu0 }
  0xac   : > { %v457_v26 = vadd.f32 %v1339_v24, %v456_v25 }
  0xae   : > { %v460_v28 = vmax.f32 %v457_v26, 0.0 }
  0xb0   : > { %v461_v30 = vpack.c.bf16 %v460_v28, %v460_v28 }
  0xb1   : > { %v545_v32 = vpop.f32.mrf.mxu3 }
  0xb2   : > { %1078 = vmatmul.msk.bf16.vlgmr.msra.gmra.mxu1 %vm477_vm3, %v461_v30  ;;  %v546_v35 = vadd.f32 %v1339_v24, %v545_v32 }
  0xb3   : > { %v458_v34 = vpop.f32.mrf.mxu0  ;;  %596 = vmatpush.bf16.msra.mxu1 %v1248_v6 }
  0xb4   : > { %v549_v37 = vmax.f32 %v546_v35, 0.0  ;;  %v1434_v35 = vld [vmem:[%s1283_s24 + $0x18] sm:$0xff]  }
  0xb6   : > { %v550_v38 = vpack.c.bf16 %v549_v37, %v549_v37  ;;  %v825_v37 = vunpack.c.l.bf16 %v1434_v35 }
  0xb7   : > { %597 = vmatpush.bf16.msra.mxu1 %v1255_v7 }
  0xb9   : > { %v547_v36 = vpop.f32.mrf.mxu3 }
  0xbb   : > { %598 = vmatpush.bf16.msra.mxu1 %v1264_v8 }
  0xbf   : > { %599 = vmatpush.bf16.msra.mxu1 %v1273_v9 }
  0xc2   : > { %1090 = vmatmul.msk.bf16.vlgmr.msrb.gmra.mxu1 %vm477_vm3, %v550_v38  ;;  %v826_v38 = vsub.f32 %v825_v37, %v1293_v14 }
  0xc3   : > { %600 = vmatpush.bf16.msra.mxu1 %v1290_v10 }
  0xc4   : > { %v827_v39 = vpack.c.bf16 %v826_v38, %v826_v38 }
  0xc7   : > { %601 = vmatpush.bf16.msra.mxu1 %v1300_v16 }
  0xcb   : > { %602 = vmatpush.bf16.msra.mxu1 %v1309_v19 }
  0xcd   : > { %v663_v54 = vpop.f32.mrf.mxu3 }
  0xce   : > { %v664_v2 = vadd.f32 %v1339_v24, %v663_v54 }
  0xcf   : > { %714 = vmatpush.bf16.msrb.mxu1 %v1248_v6 }
  0xd0   : > { %v667_v3 = vmax.f32 %v664_v2, 0.0 }
  0xd2   : > { %1093 = vmatmul.msk.bf16.vlgmr.msra.gmra.mxu1 %vm436_vm2, %v591_v41  ;;  %v668_v4 = vpack.c.bf16 %v667_v3, %v667_v3 }
  0xd3   : > { %715 = vmatpush.bf16.msrb.mxu1 %v1255_v7 }
  0xd5   : > { %v665_v56 = vpop.f32.mrf.mxu3 }
  0xd7   : > { %716 = vmatpush.bf16.msrb.mxu1 %v1264_v8 }
  0xdb   : > { %717 = vmatpush.bf16.msrb.mxu1 %v1273_v9 }
  0xdf   : > { %718 = vmatpush.bf16.msrb.mxu1 %v1290_v10 }
  0xe3   : > { %719 = vmatpush.bf16.msrb.mxu1 %v1300_v16 }
  0xe7   : > { %720 = vmatpush.bf16.msrb.mxu1 %v1309_v19 }
  0xea   : > { %1101 = vmatmul.msk.bf16.vlgmr.msrb.gmra.mxu1 %vm436_vm2, %v709_v45 }
  0xeb   : > { %832 = vmatpush.bf16.msra.mxu1 %v1248_v6 }
  0xef   : > { %833 = vmatpush.bf16.msra.mxu1 %v1255_v7 }
  0xf3   : > { %834 = vmatpush.bf16.msra.mxu1 %v1264_v8 }
  0xf7   : > { %835 = vmatpush.bf16.msra.mxu1 %v1273_v9 }
  0xfb   : > { %836 = vmatpush.bf16.msra.mxu1 %v1290_v10 }
  0xff   : > { %837 = vmatpush.bf16.msra.mxu1 %v1300_v16 }
 0x103   : > { %838 = vmatpush.bf16.msra.mxu1 %v1309_v19 }
 0x106   : > { %1109 = vmatmul.msk.bf16.vlgmr.msra.gmra.mxu1 %vm436_vm2, %v827_v39 }
 0x12f   : > { %v490_v49 = vpop.f32.mrf.mxu1 }
 0x130   : > { %v491_v50 = vadd.f32 %v1402_v48, %v490_v49  ;;  %v766_v49 = vunpack.c.h.bf16 %v1362_v42 }
 0x132   : > { %v494_v51 = vmax.f32 %v491_v50, 0.0  ;;  %v767_v50 = vsub.f32 %v766_v49, %v1293_v14 }
 0x134   : > { %v495_v52 = vpack.c.bf16 %v494_v51, %v494_v51  ;;  %v768_v54 = vpack.c.bf16 %v767_v50, %v767_v50 }
 0x136   : > { %1087 = vmatmul.msk.bf16.vlgmr.msra.gmra.mxu2 %vm477_vm3, %v495_v52 }
 0x137   : > { %v492_v53 = vpop.f32.mrf.mxu1  ;;  %619 = vmatpush.bf16.msra.mxu2 %v1325_v22 }
 0x13b   : > { %620 = vmatpush.bf16.msra.mxu2 %v1331_v23 }
 0x13f   : > { %v563_v55 = vpop.f32.mrf.mxu1 }
 0x140   : > { %v564_v57 = vadd.f32 %v1402_v48, %v563_v55 }
 0x142   : > { %v567_v58 = vmax.f32 %v564_v57, 0.0 }
 0x144   : > { %v568_v59 = vpack.c.bf16 %v567_v58, %v567_v58 }
 0x146   : > { %1091 = vmatmul.msk.bf16.vlgmr.msrb.gmra.mxu2 %vm477_vm3, %v568_v59 }
 0x147   : > { %v565_v60 = vpop.f32.mrf.mxu1  ;;  %678 = vmatpush.bf16.msrb.mxu2 %v1325_v22 }
 0x14b   : > { %679 = vmatpush.bf16.msrb.mxu2 %v1331_v23 }
 0x14f   : > { %v604_v61 = vpop.f32.mrf.mxu1 }
 0x150   : > { %v605_v62 = vadd.f32 %v1339_v24, %v604_v61 }
 0x152   : > { %v608_v63 = vmax.f32 %v605_v62, 0.0 }
 0x154   : > { %v609_v0 = vpack.c.bf16 %v608_v63, %v608_v63 }
 0x156   : > { %1094 = vmatmul.msk.bf16.vlgmr.msra.gmra.mxu2 %vm477_vm3, %v609_v0 }
 0x157   : > { %v606_v1 = vpop.f32.mrf.mxu1  ;;  %737 = vmatpush.bf16.msra.mxu2 %v1325_v22 }
 0x15b   : > { %738 = vmatpush.bf16.msra.mxu2 %v1331_v23 }
 0x166   : > { %1098 = vmatmul.msk.bf16.vlgmr.msrb.gmra.mxu2 %vm477_vm3, %v668_v4 }
 0x167   : > { %v722_v5 = vpop.f32.mrf.mxu1  ;;  %796 = vmatpush.bf16.msrb.mxu2 %v1325_v22 }
 0x168   : > { %v723_v11 = vadd.f32 %v1339_v24, %v722_v5 }
 0x16a   : > { %v726_v13 = vmax.f32 %v723_v11, 0.0 }
 0x16b   : > { %797 = vmatpush.bf16.msrb.mxu2 %v1331_v23 }
 0x16c   : > { %v727_v15 = vpack.c.bf16 %v726_v13, %v726_v13 }
 0x16f   : > { %v724_v12 = vpop.f32.mrf.mxu1 }
 0x176   : > { %1102 = vmatmul.msk.bf16.vlgmr.msra.gmra.mxu2 %vm477_vm3, %v727_v15 }
 0x177   : > { %873 = vmatpush.bf16.msra.mxu2 %v1380_v46 }
 0x17b   : > { %874 = vmatpush.bf16.msra.mxu2 %v1388_v47 }
 0x183   : > { %v840_v59 = vpop.f32.mrf.mxu1 }
 0x1b9   : > { %v523_v17 = vpop.f32.mrf.mxu2 }
 0x1ba   : > { %v524_v21 = vadd.f32 %v1427_v20, %v523_v17 }
 0x1bc   : > { %v527_v27 = vmax.f32 %v524_v21, 0.0 }
 0x1c1   : > { %v525_v18 = vpop.f32.mrf.mxu2 }
 0x1c9   : > { %v581_v25 = vpop.f32.mrf.mxu2 }
 0x1ca   : > { %v582_v26 = vadd.f32 %v1427_v20, %v581_v25 }
 0x1cc   : > { %v585_v28 = vmax.f32 %v582_v26, 0.0 }
 0x1ce   : > { %v586_v29 = vmax.f32 %v527_v27, %v585_v28 }
 0x1d1   : > { %v583_v30 = vpop.f32.mrf.mxu2 }
 0x1d9   : > { %v622_v31 = vpop.f32.mrf.mxu2 }
 0x1da   : > { %v623_v32 = vadd.f32 %v1402_v48, %v622_v31 }
 0x1dc   : > { %v626_v33 = vmax.f32 %v623_v32, 0.0 }
 0x1de   : > { %v627_v34 = vpack.c.bf16 %v626_v33, %v626_v33 }
 0x1e0   : > { %1095 = vmatmul.msk.bf16.vlgmr.msrb.gmra.mxu0 %vm477_vm3, %v627_v34 }
 0x1e1   : > { %v624_v36 = vpop.f32.mrf.mxu2  ;;  %773 = vmatpush.bf16.msrb.mxu0 %v1248_v6 }
 0x1e5   : > { %774 = vmatpush.bf16.msrb.mxu0 %v1255_v7 }
 0x1e9   : > { %v681_v40 = vpop.f32.mrf.mxu2  ;;  %775 = vmatpush.bf16.msrb.mxu0 %v1264_v8 }
 0x1ea   : > { %v682_v41 = vadd.f32 %v1402_v48, %v681_v40 }
 0x1ec   : > { %v685_v43 = vmax.f32 %v682_v41, 0.0 }
 0x1ed   : > { %776 = vmatpush.bf16.msrb.mxu0 %v1273_v9 }
 0x1ee   : > { %v686_v44 = vpack.c.bf16 %v685_v43, %v685_v43 }
 0x1f0   : > { %1099 = vmatmul.msk.bf16.vlgmr.msra.gmra.mxu0 %vm477_vm3, %v686_v44 }
 0x1f1   : > { %v683_v45 = vpop.f32.mrf.mxu2  ;;  %777 = vmatpush.bf16.msrb.mxu0 %v1290_v10 }
 0x1f5   : > { %778 = vmatpush.bf16.msrb.mxu0 %v1300_v16 }
 0x1f9   : > { %v740_v51 = vpop.f32.mrf.mxu2  ;;  %779 = vmatpush.bf16.msrb.mxu0 %v1309_v19 }
 0x1fa   : > { %v741_v52 = vadd.f32 %v1402_v48, %v740_v51 }
 0x1fc   : > { %v744_v53 = vmax.f32 %v741_v52, 0.0 }
 0x1fd   : > { %855 = vmatpush.bf16.msra.mxu0 %v1325_v22 }
 0x1fe   : > { %v745_v55 = vpack.c.bf16 %v744_v53, %v744_v53 }
 0x200   : > { %1103 = vmatmul.msk.bf16.vlgmr.msra.gmra.mxu3 %vm477_vm3, %v745_v55  ;;  %1105 = vmatmul.msk.bf16.vlgmr.msrb.gmra.mxu0 %vm436_vm2, %v768_v54 }
 0x201   : > { %856 = vmatpush.bf16.msra.mxu0 %v1331_v23  ;;  %v742_v42 = vpop.f32.mrf.mxu2  ;;  %891 = vmatpush.bf16.msra.mxu3 %v1248_v6 }
 0x205   : > { %914 = vmatpush.bf16.msrb.mxu0 %v1325_v22  ;;  %892 = vmatpush.bf16.msra.mxu3 %v1255_v7  ;;  %v841_v7 = vadd.f32 %v1339_v24, %v840_v59 }
 0x209   : > { %915 = vmatpush.bf16.msrb.mxu0 %v1331_v23  ;;  %893 = vmatpush.bf16.msra.mxu3 %v1264_v8  ;;  %v844_v23 = vmax.f32 %v841_v7, 0.0 }
 0x20b   : > { %v845_v60 = vpack.c.bf16 %v844_v23, %v844_v23 }
 0x20d   : > { %894 = vmatpush.bf16.msra.mxu3 %v1273_v9  ;;  %v842_v9 = vpop.f32.mrf.mxu1 }
 0x210   : > { %1110 = vmatmul.msk.bf16.vlgmr.msra.gmra.mxu0 %vm477_vm3, %v845_v60 }
 0x211   : > { %895 = vmatpush.bf16.msra.mxu3 %v1290_v10 }
 0x215   : > { %896 = vmatpush.bf16.msra.mxu3 %v1300_v16 }
 0x219   : > { %897 = vmatpush.bf16.msra.mxu3 %v1309_v19 }
 0x25d   : > { %v640_v56 = vpop.f32.mrf.mxu0 }
 0x25e   : > { %v641_v57 = vadd.f32 %v1427_v20, %v640_v56 }
 0x260   : > { %v644_v6 = vmax.f32 %v641_v57, 0.0 }
 0x262   : > { %v645_v58 = vmax.f32 %v586_v29, %v644_v6  ;;  %v884_v29 = vunpack.c.h.bf16 %v1434_v35 }
 0x265   : > { %v642_v22 = vpop.f32.mrf.mxu0 }
 0x26d   : > { %v699_v8 = vpop.f32.mrf.mxu0 }
 0x26e   : > { %v700_v10 = vadd.f32 %v1427_v20, %v699_v8 }
 0x270   : > { %v703_v16 = vmax.f32 %v700_v10, 0.0 }
 0x272   : > { %v704_v61 = vmax.f32 %v645_v58, %v703_v16 }
 0x275   : > { %v701_v19 = vpop.f32.mrf.mxu0 }
 0x27d   : > { %v781_v62 = vpop.f32.mrf.mxu0 }
 0x27e   : > { %v782_v63 = vadd.f32 %v1339_v24, %v781_v62 }
 0x280   : > { %v785_v0 = vmax.f32 %v782_v63, 0.0 }
 0x282   : > { %v786_v1 = vpack.c.bf16 %v785_v0, %v785_v0 }
 0x283   : > { %v758_v2 = vpop.f32.mrf.mxu3 }
 0x284   : > { %v759_v3 = vadd.f32 %v1427_v20, %v758_v2  ;;  %1106 = vmatmul.msk.bf16.vlgmr.msrb.gmra.mxu2 %vm477_vm3, %v786_v1 }
 0x285   : > { %v783_v4 = vpop.f32.mrf.mxu0  ;;  %932 = vmatpush.bf16.msrb.mxu2 %v1380_v46 }
 0x286   : > { %v762_v5 = vmax.f32 %v759_v3, 0.0 }
 0x288   : > { %v763_v11 = vmax.f32 %v704_v61, %v762_v5 }
 0x289   : > { %933 = vmatpush.bf16.msrb.mxu2 %v1388_v47  ;;  %v885_v47 = vsub.f32 %v884_v29, %v1293_v14 }
 0x28b   : > { %v760_v12 = vpop.f32.mrf.mxu3  ;;  %v886_v30 = vpack.c.bf16 %v885_v47, %v885_v47 }
 0x28d   : > { %v858_v13 = vpop.f32.mrf.mxu0 }
 0x28e   : > { %v859_v15 = vadd.f32 %v1402_v48, %v858_v13 }
 0x290   : > { %v862_v17 = vmax.f32 %v859_v15, 0.0 }
 0x292   : > { %v863_v18 = vpack.c.bf16 %v862_v17, %v862_v17 }
 0x294   : > { %1111 = vmatmul.msk.bf16.vlgmr.msra.gmra.mxu2 %vm477_vm3, %v863_v18 }
 0x295   : > { %v860_v21 = vpop.f32.mrf.mxu0 }
 0x307   : > { %v799_v25 = vpop.f32.mrf.mxu2 }
 0x308   : > { %v800_v26 = vadd.f32 %v1402_v48, %v799_v25 }
 0x30a   : > { %v803_v27 = vmax.f32 %v800_v26, 0.0 }
 0x30c   : > { %v804_v28 = vpack.c.bf16 %v803_v27, %v803_v27 }
 0x30e   : > { %1107 = vmatmul.msk.bf16.vlgmr.msrb.gmra.mxu3 %vm477_vm3, %v804_v28 }
 0x30f   : > { %v801_v46 = vpop.f32.mrf.mxu2 }
 0x317   : > { %v876_v31 = vpop.f32.mrf.mxu2 }
 0x318   : > { %v877_v33 = vadd.f32 %v1427_v20, %v876_v31 }
 0x31a   : > { %v880_v38 = vmax.f32 %v877_v33, 0.0 }
 0x31e   : > { %1113 = vmatmul.msk.bf16.vlgmr.msra.gmra.mxu3 %vm436_vm2, %v886_v30 }
 0x31f   : > { %v878_v32 = vpop.f32.mrf.mxu2 }
 0x391   : > { %v817_v34 = vpop.f32.mrf.mxu3 }
 0x392   : > { %v818_v36 = vadd.f32 %v1427_v20, %v817_v34 }
 0x394   : > { %v821_v37 = vmax.f32 %v818_v36, 0.0 }
 0x396   : > { %v822_v39 = vmax.f32 %v763_v11, %v821_v37 }
 0x398   : > { %v881_v40 = vmax.f32 %v822_v39, %v880_v38 }
 0x399   : > { %v819_v41 = vpop.f32.mrf.mxu3 }
 0x3a1   : > { %v899_v43 = vpop.f32.mrf.mxu3 }
 0x3a2   : > { %v900_v35 = vadd.f32 %v1339_v24, %v899_v43 }
 0x3a4   : > { %v903_v14 = vmax.f32 %v900_v35, 0.0 }
 0x3a6   : > { %v904_v44 = vpack.c.bf16 %v903_v14, %v903_v14 }
 0x3a8   : > { %1114 = vmatmul.msk.bf16.vlgmr.msrb.gmra.mxu0 %vm477_vm3, %v904_v44 }
 0x3a9   : > { %v901_v45 = vpop.f32.mrf.mxu3 }
 0x425   : > { %v917_v49 = vpop.f32.mrf.mxu0 }
 0x426   : > { %v918_v50 = vadd.f32 %v1402_v48, %v917_v49 }
 0x428   : > { %v921_v51 = vmax.f32 %v918_v50, 0.0 }
 0x42a   : > { %v922_v52 = vpack.c.bf16 %v921_v51, %v921_v51 }
 0x42c   : > { %1115 = vmatmul.msk.bf16.vlgmr.msrb.gmra.mxu2 %vm477_vm3, %v922_v52 }
 0x42d   : > { %v919_v53 = vpop.f32.mrf.mxu0 }
 0x4af   : > { %v935_v54 = vpop.f32.mrf.mxu2 }
 0x4b0   : > { %v936_v55 = vadd.f32 %v1427_v20, %v935_v54 }
 0x4b2   : > { %v939_v42 = vmax.f32 %v936_v55, 0.0 }
 0x4b4   : > { %v940_v56 = vmax.f32 %v881_v40, %v939_v42 }
 0x4b6   : > { %v941_v24 = vpack.c.bf16 %v940_v56, %v940_v56 }
 0x4b7   : > { %v937_v57 = vpop.f32.mrf.mxu2 }
 0x4b8   : > { %943 = vst.msk [vmem:[%s362_s12] sm:$0xf] %vm942_vm4, %v941_v24 }
 0x4b9 PF: > { %s18_s29 = sadd.s32 1, %s1179_s29   ;;  %s1510_s27 = smov %s1175_s28 }
 0x4ba   : > { %p15_p5 = scmp.ge.s32.totalorder %s18_s29, 4   ;;  %s1511_s28 = smov %s1513_s30 }
 0x4bc   :  { %17 = sbr.rel (!%p15_p5) target bundleno = 2 (0x2), region = 92 }

// kernel: _lambda_.26
= control target key start
LH: loop header
LB: loop body
LE: loop exit
PB: predicated region body
PF: predicated region fallthrough
CT: control target
= control target key end

     0   :  { %s716_s24 = smov 0   ;;  %s799_s0 = inlined_call_operand.vmem [shape: bf16[131,64], index: 0, kind: input, shape index: {}]   ;;  %s800_s1 = inlined_call_operand.vmem [shape: f32[1,64], index: 1, kind: input, shape index: {}, may-alias: {1,3}]   ;;  %s801_s2 = inlined_call_operand.vmem [shape: bf16[64,64], index: 2, kind: input, shape index: {}]   ;;  %s802_s3 = inlined_call_operand.vmem [shape: f32[1,64], index: 3, kind: input, shape index: {}, may-alias: {1,3}]   ;;  %s803_s4 = inlined_call_operand.vmem [shape: bf16[64,128], index: 4, kind: input, shape index: {}]   ;;  %s804_s5 = inlined_call_operand.vmem [shape: f32[1,128], index: 5, kind: input, shape index: {}]   ;;  %s805_s6 = inlined_call_operand.vmem [shape: bf16[2,8,131], index: 6, kind: input, shape index: {}]   ;;  %s806_s7 = inlined_call_operand.vmem [shape: bf16[2,1,128], index: 7, kind: output, shape index: {}]  }
   0x1 LB: > { %s562_s25 = sadd.s32 4294967295, %s673_s24   ;;  %p566_p0 = scmp.ge.s32.totalorder %s673_s24, 1  ;;  %s673_s24 = sphi %s716_s24, %s17_s24  }
   0x2   : > { %p237_p1 = scmp.lt.s32.totalorder %s673_s24, 3 }
   0x4   : > { %p238_p2 = pnand %p566_p0, %p237_p1 }
   0x5   : > { %p267_p3 = scmp.lt.s32.totalorder (!%p238_p2), %s562_s25, 1 }
   0x6   : > { %241 = sbr.rel (%p238_p2) target bundleno = 467 (0x1d3), region = 48 }
   0xb   : > { %v646_v0 = vld [vmem:[%s799_s0 + $0x38] sm:$0xff]  ;;  %vm377_vm0 = vcmask 1040384   ;;  %vm378_vm1 = vcmask 1041408   ;;  %v675_v1 = vmov 65535   ;;  %v645_v3 = vld [vmem:[%s799_s0 + $0x30] sm:$0xff]  ;;  %s808_s25 = smov (!%p267_p3, %s562_s25), 1 }
   0xc   : > { %v379_v2 = vsel %vm377_vm0, 4294967295, %v675_v1  ;;  %384 = vmatpush.bf16.msra.mxu0 %v646_v0  ;;  %v292_v4 = vld [vmem:[%s799_s0 + $0x40] sm:$0x3]  ;;  %v644_v8 = vld [vmem:[%s799_s0 + $0x28] sm:$0xff]  ;;  %s638_s11 = sshll.u32 %s808_s25, 3  ;;  %vm373_vm2 = vcmask 23552   ;;  %s274_s30 = scalar_lea.vmem %s806_s7, %s808_s25 }
   0xd   : > { %v355_v5 = vunpack.c.l.b16 %v292_v4  ;;  %v380_v6 = vsel %vm378_vm1, %v379_v2, 0  ;;  %s271_s14 = scalar_lea.vmem %s805_s6, %s638_s11  ;;  %v643_v12 = vld [vmem:[%s799_s0 + $0x20] sm:$0xff]  ;;  %v642_v14 = vld [vmem:[%s799_s0 + $0x18] sm:$0xff]  ;;  %v641_v15 = vld [vmem:[%s799_s0 + $0x10] sm:$0xff]  ;;  %vm439_vm3 = vcmask 523264  }
   0xe   : > { %v312_v10 = vld [vmem:[%s271_s14] sm:$0xff]  ;;  %v640_v16 = vld [vmem:[%s799_s0 + $0x8] sm:$0xff]  ;;  %v650_v20 = vld [vmem:[%s801_s2 + $0x18] sm:$0xff]  ;;  %vm510_vm4 = vsmask.f32 256 }
   0xf   : > { %v364_v7 = vpack.c.b16 %v355_v5, %v355_v5  ;;  %v318_v11 = vunpack.c.h.b16 %v312_v10  ;;  %v317_v17 = vunpack.c.l.b16 %v312_v10  ;;  %v639_v18 = vld [vmem:[%s799_s0] sm:$0xff]  ;;  %447 = vmatpush.bf16.msra.mxu2 %v650_v20  ;;  %v649_v21 = vld [vmem:[%s801_s2 + $0x10] sm:$0xff]  ;;  %v648_v22 = vld [vmem:[%s801_s2 + $0x8] sm:$0xff] }
  0x10   : > { %385 = vmatpush.bf16.msra.mxu0 %v645_v3  ;;  %v647_v23 = vld [vmem:[%s801_s2] sm:$0xff]  ;;  %v654_v24 = vld [vmem:[%s803_s4 + $0x18] sm:$0xff]  ;;  %v653_v25 = vld [vmem:[%s803_s4 + $0x10] sm:$0xff] }
  0x11   : > { %v382_v9 = vand.u32 %v380_v6, %v364_v7  ;;  %v320_v13 = vpack.c.b16 %v318_v11, %v318_v11  ;;  %v319_v19 = vpack.c.b16 %v317_v17, %v317_v17  ;;  %492 = vmatpush.bf16.msra.mxu3 %v654_v24  ;;  %v664_v28 = vld [vmem:[%s800_s1] ss:$0 sm:$0xff]  ;;  %v652_v35 = vld [vmem:[%s803_s4 + $0x8] sm:$0xff]  ;;  %vm511_vm5 = vmand %vm377_vm0, %vm510_vm4 }
  0x12   : > { %v651_v36 = vld [vmem:[%s803_s4] sm:$0xff] }
  0x13   : > { %404 = vmatpush.bf16.msra.mxu1 %v382_v9  ;;  %448 = vmatpush.bf16.msra.mxu2 %v649_v21  ;;  %v665_v37 = vld [vmem:[%s802_s3] ss:$0 sm:$0xff] }
  0x14   : > { %386 = vmatpush.bf16.msra.mxu0 %v644_v8  ;;  %v666_v43 = vld [vmem:[%s804_s5] ss:$0 sm:$0xff] }
  0x15   : > { %493 = vmatpush.bf16.msra.mxu3 %v653_v25  ;;  %v512_v54 = vld [vmem:[%s274_s30] sm:$0x1] }
  0x16   : > { %601 = vmatmul.msk.bf16.vlgmr.msra.gmra.mxu1 %vm373_vm2, %v320_v13 }
  0x17   : > { %449 = vmatpush.bf16.msra.mxu2 %v648_v22 }
  0x18   : > { %387 = vmatpush.bf16.msra.mxu0 %v643_v12 }
  0x19   : > { %494 = vmatpush.bf16.msra.mxu3 %v652_v35 }
  0x1b   : > { %450 = vmatpush.bf16.msra.mxu2 %v647_v23 }
  0x1c   : > { %388 = vmatpush.bf16.msra.mxu0 %v642_v14 }
  0x1d   : > { %495 = vmatpush.bf16.msra.mxu3 %v651_v36 }
  0x20   : > { %389 = vmatpush.bf16.msra.mxu0 %v641_v15 }
  0x24   : > { %390 = vmatpush.bf16.msra.mxu0 %v640_v16 }
  0x28   : > { %391 = vmatpush.bf16.msra.mxu0 %v639_v18 }
  0x2b   : > { %392 = vmatmul.bf16.vlgmr.msra.gmra.mxu0 %v319_v19 }
  0x93   : > { %v406_v26 = vpop.f32.mrf.mxu1 }
  0x9b   : > { %v408_v27 = vpop.f32.mrf.mxu1 }
  0xa8   : > { %v393_v29 = vpop.f32.mrf.mxu0 }
  0xa9   : > { %v394_v30 = vadd.f32 %v664_v28, %v393_v29 }
  0xab   : > { %v407_v31 = vadd.f32 %v406_v26, %v394_v30 }
  0xad   : > { %v410_v32 = vmax.f32 %v407_v31, 0.0 }
  0xaf   : > { %v411_v33 = vpack.c.bf16 %v410_v32, %v410_v32 }
  0xb0   : > { %v395_v34 = vpop.f32.mrf.mxu0 }
  0xb1   : > { %618 = vmatmul.msk.bf16.vlgmr.msra.gmra.mxu2 %vm439_vm3, %v411_v33 }
 0x134   : > { %v452_v38 = vpop.f32.mrf.mxu2 }
 0x135   : > { %v453_v39 = vadd.f32 %v665_v37, %v452_v38 }
 0x137   : > { %v456_v40 = vmax.f32 %v453_v39, 0.0 }
 0x139   : > { %v457_v41 = vpack.c.bf16 %v456_v40, %v456_v40 }
 0x13b   : > { %635 = vmatmul.msk.bf16.vlgmr.msra.gmra.mxu3 %vm439_vm3, %v457_v41 }
 0x13c   : > { %v454_v42 = vpop.f32.mrf.mxu2 }
 0x1be   : > { %v497_v44 = vpop.f32.mrf.mxu3 }
 0x1bf   : > { %v498_v45 = vadd.f32 %v666_v43, %v497_v44 }
 0x1c1   : > { %v501_v46 = vmax.f32 %v498_v45, 0.0 }
 0x1c3   : > { %v502_v47 = vrot.slane %v501_v46, 4 }
 0x1c5   : > { %v503_v48 = vmax.f32 %v501_v46, %v502_v47 }
 0x1c6   : > { %v499_v49 = vpop.f32.mrf.mxu3 }
 0x1c7   : > { %v504_v50 = vrot.slane %v503_v48, 2 }
 0x1c9   : > { %v505_v51 = vmax.f32 %v503_v48, %v504_v50 }
 0x1cb   : > { %v506_v52 = vrot.slane %v505_v51, 1 }
 0x1cd   : > { %v507_v53 = vmax.f32 %v505_v51, %v506_v52 }
 0x1cf   : > { %v508_v55 = vpack.c.bf16 %v507_v53, %v507_v53 }
 0x1d1   : > { %v513_v56 = vsel %vm511_vm5, %v508_v55, %v512_v54 }
 0x1d2   : > { %514 = vst [vmem:[%s274_s30] sm:$0x1] %v513_v56 }
 0x1d3 PF: > { %s17_s24 = sadd.s32 1, %s673_s24  }
 0x1d4   : > { %p14_p4 = scmp.ge.s32.totalorder %s17_s24, 4  }
 0x1d6   :  { %16 = sbr.rel (!%p14_p4) target bundleno = 1 (0x1), region = 78 }

// kernel: _lambda_.28
= control target key start
LH: loop header
LB: loop body
LE: loop exit
PB: predicated region body
PF: predicated region fallthrough
CT: control target
= control target key end

     0   :  { %s374_s9 = smov 0   ;;  %s418_s0 = inlined_call_operand.vmem [shape: f32[2,32,3], index: 0, kind: input, shape index: {}]   ;;  %s419_s1 = inlined_call_operand.vmem [shape: f32[2,3,8], index: 1, kind: input, shape index: {}]   ;;  %s420_s2 = inlined_call_operand.vmem [shape: f32[2,32,8], index: 2, kind: output, shape index: {}]  }
   0x1 LB: > { %s321_s10 = sadd.s32 4294967295, %s357_s9   ;;  %p325_p0 = scmp.ge.s32.totalorder %s357_s9, 1  ;;  %s357_s9 = sphi %s374_s9, %s12_s9  }
   0x2   : > { %p121_p1 = scmp.lt.s32.totalorder %s357_s9, 3 }
   0x4   : > { %p122_p2 = pnand %p325_p0, %p121_p1 }
   0x5   : > { %p147_p3 = scmp.lt.s32.totalorder (!%p122_p2), %s321_s10, 1 }
   0x6   : > { %125 = sbr.rel (%p122_p2) target bundleno = 155 (0x9b), region = 28 }
   0xb   : > { %s422_s10 = smov (!%p147_p3, %s321_s10), 1  ;;  %vm204_vm0 = vcmask 1042432   ;;  %vm170_vm1 = vcmask 23552   ;;  %vm184_vm2 = vcmask 59392   ;;  %vm249_vm3 = vcmask 64512  }
   0xc   : > { %s328_s11 = sshll.u32 %s422_s10, 2  ;;  %s338_s12 = sshll.u32 %s422_s10, 5 }
   0xd   : > { %s155_s15 = scalar_lea.vmem %s419_s1, %s328_s11  ;;  %s151_s18 = scalar_lea.vmem %s418_s0, %s338_s12 }
   0xe   : > { %v165_v0 = vld [vmem:[%s155_s15] sm:$0x7]  ;;  %v163_v2 = vld [vmem:[%s151_s18 + $0x10] sm:$0xff]  ;;  %v164_v3 = vld [vmem:[%s151_s18 + $0x18] sm:$0xff]  ;;  %s160_s21 = scalar_lea.vmem %s420_s2, %s338_s12 }
   0xf   : > { %v161_v1 = vld [vmem:[%s151_s18] sm:$0xff]  ;;  %331 = vmatpush.msk.msra.mxu0 %vm204_vm0, %v165_v0  ;;  %341 = vmatpush.msk.msra.mxu2 %vm204_vm0, %v165_v0  ;;  %v168_v4 = vmul.f32 %v163_v2, %v163_v2  ;;  %v162_v6 = vld [vmem:[%s151_s18 + $0x8] sm:$0xff]  ;;  %v169_v9 = vmul.f32 %v164_v3, %v164_v3  ;;  %v183_v13 = vmul.f32 %v165_v0, %v165_v0 }
  0x10   : > { %v166_v5 = vmul.f32 %v161_v1, %v161_v1  ;;  %342 = vmatpush.msk.msra.mxu3 %vm204_vm0, %v165_v0  ;;  %332 = vmatmul.msk.f32.vlgmr.msra.gmra.mxu0 %vm170_vm1, %v161_v1  ;;  %v167_v10 = vmul.f32 %v162_v6, %v162_v6 }
  0x11   : > { %334 = vmatmul.msk.f32.vlgmr.msra.gmra.mxu2 %vm170_vm1, %v163_v2  ;;  %335 = vmatmul.msk.f32.vlgmr.msra.gmra.mxu3 %vm170_vm1, %v164_v3  ;;  %v177_v7 = vsel %vm170_vm1, %v168_v4, 0.0  ;;  %v180_v11 = vsel %vm170_vm1, %v169_v9, 0.0  ;;  %v185_v14 = vsel %vm184_vm2, %v183_v13, 0.0 }
  0x12   : > { %v171_v8 = vsel %vm170_vm1, %v166_v5, 0.0  ;;  %340 = vmatpush.msk.msra.mxu1 %vm204_vm0, %v165_v0  ;;  %178 = vadd.xlane.f32.xlu1 %v177_v7  ;;  %v174_v12 = vsel %vm170_vm1, %v167_v10, 0.0  ;;  %v186_v15 = vrot.slane %v185_v14, 4 }
  0x13   : > { %333 = vmatmul.msk.f32.vlgmr.msra.gmra.mxu1 %vm170_vm1, %v162_v6  ;;  %172 = vadd.xlane.f32.xlu0 %v171_v8 }
  0x14   : > { %v187_v16 = vadd.f32 %v186_v15, %v185_v14 }
  0x16   : > { %v188_v17 = vrot.slane %v187_v16, 2 }
  0x18   : > { %v189_v18 = vadd.f32 %v188_v17, %v187_v16 }
  0x1a   : > { %181 = vadd.xlane.f32.xlu1 %v180_v11  ;;  %v190_v19 = vrot.slane %v189_v18, 1 }
  0x1b   : > { %175 = vadd.xlane.f32.xlu0 %v174_v12 }
  0x1c   : > { %v191_v22 = vadd.f32 %v190_v19, %v189_v18 }
  0x85   : > { %v179_v20 = vpop.xlane.xlu1 %178 }
  0x86   : > { %v173_v21 = vpop.xlane.xlu0 %172  ;;  %v239_v36 = vadd.f32 %v191_v22, %v179_v20 }
  0x87   : > { %v237_v24 = vadd.f32 %v191_v22, %v173_v21 }
  0x8d   : > { %v225_v23 = vpop.f32.mrf.mxu0  ;;  %v182_v29 = vpop.xlane.xlu1 %181 }
  0x8e   : > { %v241_v25 = vmul.f32 2.0, %v225_v23  ;;  %v176_v26 = vpop.xlane.xlu0 %175  ;;  %v240_v32 = vadd.f32 %v191_v22, %v182_v29 }
  0x8f   : > { %v238_v27 = vadd.f32 %v191_v22, %v176_v26 }
  0x90   : > { %v245_v28 = vsub.f32 %v237_v24, %v241_v25  ;;  %v228_v30 = vpop.f32.mrf.mxu1 }
  0x91   : > { %v242_v31 = vmul.f32 2.0, %v228_v30 }
  0x92   : > { %250 = vst.msk [vmem:[%s160_s21] sm:$0xff] %vm249_vm3, %v245_v28 }
  0x93   : > { %v246_v33 = vsub.f32 %v238_v27, %v242_v31 }
  0x94   : > { %v231_v34 = vpop.f32.mrf.mxu2  ;;  %v234_v35 = vpop.f32.mrf.mxu3 }
  0x95   : > { %v243_v37 = vmul.f32 2.0, %v231_v34  ;;  %v244_v38 = vmul.f32 2.0, %v234_v35  ;;  %251 = vst.msk [vmem:[%s160_s21 + $0x8] sm:$0xff] %vm249_vm3, %v246_v33 }
  0x97   : > { %v247_v39 = vsub.f32 %v239_v36, %v243_v37  ;;  %v248_v40 = vsub.f32 %v240_v32, %v244_v38 }
  0x99   : > { %252 = vst.msk [vmem:[%s160_s21 + $0x10] sm:$0xff] %vm249_vm3, %v247_v39 }
  0x9a   : > { %253 = vst.msk [vmem:[%s160_s21 + $0x18] sm:$0xff] %vm249_vm3, %v248_v40 }
  0x9b PF: > { %s12_s9 = sadd.s32 1, %s357_s9  }
  0x9c   : > { %p9_p4 = scmp.ge.s32.totalorder %s12_s9, 4  }
  0x9e   :  { %11 = sbr.rel (!%p9_p4) target bundleno = 1 (0x1), region = 61 }

// kernel: _lambda_.30
= control target key start
LH: loop header
LB: loop body
LE: loop exit
PB: predicated region body
PF: predicated region fallthrough
CT: control target
= control target key end

     0   :  { %s566_s9 = smov 0   ;;  %s713_s0 = inlined_call_operand.vmem [shape: f32[2,128,3], index: 0, kind: input, shape index: {}]   ;;  %s714_s1 = inlined_call_operand.vmem [shape: f32[2,3,32], index: 1, kind: input, shape index: {}]   ;;  %s715_s2 = inlined_call_operand.vmem [shape: f32[2,128,32], index: 2, kind: output, shape index: {}]  }
   0x1 LB: > { %s501_s10 = sadd.s32 4294967295, %s549_s9   ;;  %p505_p0 = scmp.ge.s32.totalorder %s549_s9, 1  ;;  %s549_s9 = sphi %s566_s9, %s12_s9  }
   0x2   : > { %p121_p1 = scmp.lt.s32.totalorder %s549_s9, 3 }
   0x4   : > { %p122_p2 = pnand %p505_p0, %p121_p1 }
   0x5   : > { %p147_p3 = scmp.lt.s32.totalorder (!%p122_p2), %s501_s10, 1 }
   0x6   : > { %125 = sbr.rel (%p122_p2) target bundleno = 182 (0xb6), region = 28 }
   0xb   : > { %s717_s10 = smov (!%p147_p3, %s501_s10), 1  ;;  %vm300_vm0 = vcmask 1042432   ;;  %vm194_vm1 = vcmask 23552   ;;  %vm244_vm2 = vcmask 256000   ;;  %vm417_vm3 = vcmask 261120  }
   0xc   : > { %s530_s11 = sshll.u32 %s717_s10, 7  ;;  %s508_s12 = sshll.u32 %s717_s10, 2 }
   0xd   : > { %s583_s15 = scalar_lea.vmem %s713_s0, %s530_s11  ;;  %s155_s18 = scalar_lea.vmem %s714_s1, %s508_s12 }
   0xe   : > { %v588_v0 = vld [vmem:[%s155_s18] sm:$0x7]  ;;  %v163_v5 = vld [vmem:[%s583_s15 + $0x10] sm:$0xff]  ;;  %v166_v9 = vld [vmem:[%s583_s15 + $0x28] sm:$0xff]  ;;  %s662_s21 = scalar_lea.vmem %s715_s2, %s530_s11 }
   0xf   : > { %v161_v1 = vld [vmem:[%s583_s15] sm:$0xff]  ;;  %511 = vmatpush.msk.msra.mxu0 %vm300_vm0, %v588_v0  ;;  %532 = vmatpush.msk.msra.mxu1 %vm300_vm0, %v588_v0  ;;  %v180_v8 = vmul.f32 %v163_v5, %v163_v5  ;;  %v164_v12 = vld [vmem:[%s583_s15 + $0x18] sm:$0xff]  ;;  %v162_v14 = vld [vmem:[%s583_s15 + $0x8] sm:$0xff]  ;;  %v183_v15 = vmul.f32 %v166_v9, %v166_v9  ;;  %v243_v49 = vmul.f32 %v588_v0, %v588_v0 }
  0x10   : > { %v165_v2 = vld [vmem:[%s583_s15 + $0x20] sm:$0xff]  ;;  %v178_v6 = vmul.f32 %v161_v1, %v161_v1  ;;  %533 = vmatpush.msk.msra.mxu2 %vm300_vm0, %v588_v0  ;;  %512 = vmatmul.msk.f32.vlgmr.msra.gmra.mxu0 %vm194_vm1, %v161_v1  ;;  %v181_v16 = vmul.f32 %v164_v12, %v164_v12  ;;  %v179_v17 = vmul.f32 %v162_v14, %v162_v14  ;;  %v170_v18 = vld [vmem:[%s583_s15 + $0x48] sm:$0xff]  ;;  %v168_v23 = vld [vmem:[%s583_s15 + $0x38] sm:$0xff] }
  0x11   : > { %v169_v3 = vld [vmem:[%s583_s15 + $0x40] sm:$0xff]  ;;  %v182_v4 = vmul.f32 %v165_v2, %v165_v2  ;;  %516 = vmatmul.msk.f32.vlgmr.msra.gmra.mxu1 %vm194_vm1, %v165_v2  ;;  %534 = vmatpush.msk.msra.mxu3 %vm300_vm0, %v588_v0  ;;  %v201_v13 = vsel %vm194_vm1, %v180_v8, 0.0  ;;  %v210_v19 = vsel %vm194_vm1, %v183_v15, 0.0  ;;  %v174_v20 = vld [vmem:[%s583_s15 + $0x68] sm:$0xff]  ;;  %v167_v24 = vld [vmem:[%s583_s15 + $0x30] sm:$0xff]  ;;  %v185_v26 = vmul.f32 %v168_v23, %v168_v23 }
  0x12   : > { %v602_v7 = vld [vmem:[%s583_s15 + $0x60] sm:$0xff]  ;;  %520 = vmatmul.msk.f32.vlgmr.msra.gmra.mxu2 %vm194_vm1, %v169_v3  ;;  %v195_v11 = vsel %vm194_vm1, %v178_v6, 0.0  ;;  %202 = vadd.xlane.f32.xlu1 %v201_v13  ;;  %v204_v21 = vsel %vm194_vm1, %v181_v16, 0.0  ;;  %v198_v22 = vsel %vm194_vm1, %v179_v17, 0.0  ;;  %v186_v25 = vmul.f32 %v169_v3, %v169_v3  ;;  %v171_v28 = vld [vmem:[%s583_s15 + $0x50] sm:$0xff]  ;;  %v172_v32 = vld [vmem:[%s583_s15 + $0x58] sm:$0xff] }
  0x13   : > { %v207_v10 = vsel %vm194_vm1, %v182_v4, 0.0  ;;  %524 = vmatmul.msk.f32.vlgmr.msra.gmra.mxu3 %vm194_vm1, %v602_v7  ;;  %196 = vadd.xlane.f32.xlu0 %v195_v11  ;;  %v184_v27 = vmul.f32 %v167_v24, %v167_v24  ;;  %v175_v30 = vld [vmem:[%s583_s15 + $0x70] sm:$0xff]  ;;  %v216_v31 = vsel %vm194_vm1, %v185_v26, 0.0  ;;  %v189_v34 = vmul.f32 %v172_v32, %v172_v32  ;;  %v176_v38 = vld [vmem:[%s583_s15 + $0x78] sm:$0xff] }
  0x14   : > { %208 = vadd.xlane.f32.xlu2 %v207_v10  ;;  %v219_v29 = vsel %vm194_vm1, %v186_v25, 0.0  ;;  %v188_v35 = vmul.f32 %v171_v28, %v171_v28  ;;  %v187_v36 = vmul.f32 %v170_v18, %v170_v18  ;;  %v192_v41 = vmul.f32 %v175_v30, %v175_v30 }
  0x15   : > { %v213_v33 = vsel %vm194_vm1, %v184_v27, 0.0  ;;  %v228_v37 = vsel %vm194_vm1, %v189_v34, 0.0  ;;  %v191_v42 = vmul.f32 %v174_v20, %v174_v20  ;;  %v190_v43 = vmul.f32 %v602_v7, %v602_v7 }
  0x16   : > { %v225_v39 = vsel %vm194_vm1, %v188_v35, 0.0  ;;  %v222_v40 = vsel %vm194_vm1, %v187_v36, 0.0  ;;  %v237_v44 = vsel %vm194_vm1, %v192_v41, 0.0  ;;  %v193_v47 = vmul.f32 %v176_v38, %v176_v38 }
  0x17   : > { %v234_v45 = vsel %vm194_vm1, %v191_v42, 0.0  ;;  %v231_v46 = vsel %vm194_vm1, %v190_v43, 0.0  ;;  %v245_v50 = vsel %vm244_vm2, %v243_v49, 0.0 }
  0x18   : > { %513 = vmatmul.msk.f32.gmra.mxu0 %vm194_vm1, %v162_v14  ;;  %v240_v48 = vsel %vm194_vm1, %v193_v47, 0.0  ;;  %v246_v51 = vrot.slane %v245_v50, 4 }
  0x19   : > { %517 = vmatmul.msk.f32.gmra.mxu1 %vm194_vm1, %v166_v9 }
  0x1a   : > { %521 = vmatmul.msk.f32.gmra.mxu2 %vm194_vm1, %v170_v18  ;;  %205 = vadd.xlane.f32.xlu1 %v204_v21  ;;  %v247_v52 = vadd.f32 %v246_v51, %v245_v50 }
  0x1b   : > { %525 = vmatmul.msk.f32.gmra.mxu3 %vm194_vm1, %v174_v20  ;;  %199 = vadd.xlane.f32.xlu0 %v198_v22 }
  0x1c   : > { %211 = vadd.xlane.f32.xlu2 %v210_v19  ;;  %v248_v53 = vrot.slane %v247_v52, 2 }
  0x1e   : > { %v249_v54 = vadd.f32 %v248_v53, %v247_v52 }
  0x20   : > { %514 = vmatmul.msk.f32.gmra.mxu0 %vm194_vm1, %v163_v5  ;;  %v250_v56 = vrot.slane %v249_v54, 1 }
  0x21   : > { %518 = vmatmul.msk.f32.gmra.mxu1 %vm194_vm1, %v167_v24 }
  0x22   : > { %522 = vmatmul.msk.f32.gmra.mxu2 %vm194_vm1, %v171_v28  ;;  %217 = vadd.xlane.f32.xlu1 %v216_v31  ;;  %v653_v59 = vadd.f32 %v250_v56, %v249_v54 }
  0x23   : > { %526 = vmatmul.msk.f32.gmra.mxu3 %vm194_vm1, %v175_v30  ;;  %214 = vadd.xlane.f32.xlu0 %v213_v33 }
  0x24   : > { %220 = vadd.xlane.f32.xlu2 %v219_v29 }
  0x28   : > { %515 = vmatmul.msk.f32.gmra.mxu0 %vm194_vm1, %v164_v12 }
  0x29   : > { %519 = vmatmul.msk.f32.gmra.mxu1 %vm194_vm1, %v168_v23 }
  0x2a   : > { %523 = vmatmul.msk.f32.gmra.mxu2 %vm194_vm1, %v172_v32  ;;  %226 = vadd.xlane.f32.xlu1 %v225_v39 }
  0x2b   : > { %527 = vmatmul.msk.f32.gmra.mxu3 %vm194_vm1, %v176_v38  ;;  %223 = vadd.xlane.f32.xlu0 %v222_v40 }
  0x2c   : > { %229 = vadd.xlane.f32.xlu2 %v228_v37 }
  0x32   : > { %235 = vadd.xlane.f32.xlu1 %v234_v45 }
  0x33   : > { %232 = vadd.xlane.f32.xlu0 %v231_v46 }
  0x34   : > { %238 = vadd.xlane.f32.xlu2 %v237_v44 }
  0x3b   : > { %241 = vadd.xlane.f32.xlu0 %v240_v48 }
  0x85   : > { %v203_v57 = vpop.xlane.xlu1 %202 }
  0x86   : > { %v197_v58 = vpop.xlane.xlu0 %196  ;;  %v371_v26 = vadd.f32 %v653_v59, %v203_v57 }
  0x87   : > { %v209_v55 = vpop.xlane.xlu2 %208  ;;  %v369_v63 = vadd.f32 %v653_v59, %v197_v58 }
  0x88   : > { %v373_v60 = vadd.f32 %v653_v59, %v209_v55 }
  0x8d   : > { %v321_v62 = vpop.f32.mrf.mxu0  ;;  %v206_v1 = vpop.xlane.xlu1 %205 }
  0x8e   : > { %v333_v0 = vpop.f32.mrf.mxu1  ;;  %v385_v2 = vmul.f32 2.0, %v321_v62  ;;  %v200_v4 = vpop.xlane.xlu0 %199  ;;  %v372_v44 = vadd.f32 %v653_v59, %v206_v1 }
  0x8f   : > { %v212_v61 = vpop.xlane.xlu2 %211  ;;  %v389_v3 = vmul.f32 2.0, %v333_v0  ;;  %v370_v12 = vadd.f32 %v653_v59, %v200_v4 }
  0x90   : > { %v401_v5 = vsub.f32 %v369_v63, %v385_v2  ;;  %v374_v8 = vadd.f32 %v653_v59, %v212_v61 }
  0x91   : > { %v405_v6 = vsub.f32 %v373_v60, %v389_v3 }
  0x92   : > { %418 = vst.msk [vmem:[%s662_s21] sm:$0xff] %vm417_vm3, %v401_v5 }
  0x93   : > { %422 = vst.msk [vmem:[%s662_s21 + $0x20] sm:$0xff] %vm417_vm3, %v405_v6 }
  0x95   : > { %v345_v7 = vpop.f32.mrf.mxu2  ;;  %v324_v11 = vpop.f32.mrf.mxu0 }
  0x96   : > { %v393_v9 = vmul.f32 2.0, %v345_v7  ;;  %v336_v13 = vpop.f32.mrf.mxu1  ;;  %v357_v14 = vpop.f32.mrf.mxu3  ;;  %v386_v16 = vmul.f32 2.0, %v324_v11 }
  0x97   : > { %v221_v10 = vpop.xlane.xlu2 %220  ;;  %v390_v17 = vmul.f32 2.0, %v336_v13  ;;  %v218_v18 = vpop.xlane.xlu1 %217  ;;  %v397_v45 = vmul.f32 2.0, %v357_v14 }
  0x98   : > { %v377_v15 = vadd.f32 %v653_v59, %v221_v10  ;;  %v215_v19 = vpop.xlane.xlu0 %214  ;;  %v402_v21 = vsub.f32 %v370_v12, %v386_v16  ;;  %v376_v50 = vadd.f32 %v653_v59, %v218_v18 }
  0x99   : > { %v406_v22 = vsub.f32 %v374_v8, %v390_v17  ;;  %v375_v31 = vadd.f32 %v653_v59, %v215_v19 }
  0x9a   : > { %v409_v20 = vsub.f32 %v377_v15, %v393_v9  ;;  %419 = vst.msk [vmem:[%s662_s21 + $0x8] sm:$0xff] %vm417_vm3, %v402_v21 }
  0x9b   : > { %423 = vst.msk [vmem:[%s662_s21 + $0x28] sm:$0xff] %vm417_vm3, %v406_v22 }
  0x9c   : > { %426 = vst.msk [vmem:[%s662_s21 + $0x40] sm:$0xff] %vm417_vm3, %v409_v20 }
  0x9d   : > { %v348_v23 = vpop.f32.mrf.mxu2  ;;  %v327_v25 = vpop.f32.mrf.mxu0 }
  0x9e   : > { %v394_v27 = vmul.f32 2.0, %v348_v23  ;;  %v339_v28 = vpop.f32.mrf.mxu1  ;;  %v360_v29 = vpop.f32.mrf.mxu3  ;;  %v387_v30 = vmul.f32 2.0, %v327_v25 }
  0x9f   : > { %v230_v24 = vpop.xlane.xlu2 %229  ;;  %v391_v32 = vmul.f32 2.0, %v339_v28  ;;  %v227_v33 = vpop.xlane.xlu1 %226  ;;  %v398_v56 = vmul.f32 2.0, %v360_v29 }
  0xa0   : > { %v224_v34 = vpop.xlane.xlu0 %223  ;;  %v403_v35 = vsub.f32 %v371_v26, %v387_v30  ;;  %v379_v39 = vadd.f32 %v653_v59, %v227_v33  ;;  %v380_v2 = vadd.f32 %v653_v59, %v230_v24 }
  0xa1   : > { %v378_v36 = vadd.f32 %v653_v59, %v224_v34  ;;  %v407_v37 = vsub.f32 %v375_v31, %v391_v32 }
  0xa2   : > { %420 = vst.msk [vmem:[%s662_s21 + $0x10] sm:$0xff] %vm417_vm3, %v403_v35 }
  0xa3   : > { %v410_v38 = vsub.f32 %v378_v36, %v394_v27  ;;  %424 = vst.msk [vmem:[%s662_s21 + $0x30] sm:$0xff] %vm417_vm3, %v407_v37 }
  0xa5   : > { %427 = vst.msk [vmem:[%s662_s21 + $0x48] sm:$0xff] %vm417_vm3, %v410_v38  ;;  %v351_v40 = vpop.f32.mrf.mxu2  ;;  %v330_v43 = vpop.f32.mrf.mxu0 }
  0xa6   : > { %v395_v41 = vmul.f32 2.0, %v351_v40  ;;  %v342_v46 = vpop.f32.mrf.mxu1  ;;  %v363_v47 = vpop.f32.mrf.mxu3  ;;  %v388_v49 = vmul.f32 2.0, %v330_v43 }
  0xa7   : > { %v239_v42 = vpop.xlane.xlu2 %238  ;;  %v392_v52 = vmul.f32 2.0, %v342_v46  ;;  %v399_v53 = vmul.f32 2.0, %v363_v47  ;;  %v236_v54 = vpop.xlane.xlu1 %235 }
  0xa8   : > { %v383_v48 = vadd.f32 %v653_v59, %v239_v42  ;;  %v411_v51 = vsub.f32 %v379_v39, %v395_v41  ;;  %v233_v55 = vpop.xlane.xlu0 %232  ;;  %v382_v57 = vadd.f32 %v653_v59, %v236_v54  ;;  %v404_v58 = vsub.f32 %v372_v44, %v388_v49 }
  0xa9   : > { %v381_v60 = vadd.f32 %v653_v59, %v233_v55  ;;  %v408_v61 = vsub.f32 %v376_v50, %v392_v52 }
  0xaa   : > { %428 = vst.msk [vmem:[%s662_s21 + $0x50] sm:$0xff] %vm417_vm3, %v411_v51  ;;  %v415_v62 = vsub.f32 %v383_v48, %v399_v53  ;;  %v414_v63 = vsub.f32 %v382_v57, %v398_v56 }
  0xab   : > { %421 = vst.msk [vmem:[%s662_s21 + $0x18] sm:$0xff] %vm417_vm3, %v404_v58  ;;  %v413_v0 = vsub.f32 %v381_v60, %v397_v45 }
  0xac   : > { %425 = vst.msk [vmem:[%s662_s21 + $0x38] sm:$0xff] %vm417_vm3, %v408_v61 }
  0xad   : > { %432 = vst.msk [vmem:[%s662_s21 + $0x70] sm:$0xff] %vm417_vm3, %v415_v62  ;;  %v354_v1 = vpop.f32.mrf.mxu2 }
  0xae   : > { %431 = vst.msk [vmem:[%s662_s21 + $0x68] sm:$0xff] %vm417_vm3, %v414_v63  ;;  %v396_v3 = vmul.f32 2.0, %v354_v1  ;;  %v366_v4 = vpop.f32.mrf.mxu3 }
  0xaf   : > { %430 = vst.msk [vmem:[%s662_s21 + $0x60] sm:$0xff] %vm417_vm3, %v413_v0  ;;  %v400_v6 = vmul.f32 2.0, %v366_v4 }
  0xb0   : > { %v412_v5 = vsub.f32 %v380_v2, %v396_v3  ;;  %v242_v7 = vpop.xlane.xlu0 %241 }
  0xb1   : > { %v384_v8 = vadd.f32 %v653_v59, %v242_v7 }
  0xb2   : > { %429 = vst.msk [vmem:[%s662_s21 + $0x58] sm:$0xff] %vm417_vm3, %v412_v5 }
  0xb3   : > { %v416_v9 = vsub.f32 %v384_v8, %v400_v6 }
  0xb5   : > { %433 = vst.msk [vmem:[%s662_s21 + $0x78] sm:$0xff] %vm417_vm3, %v416_v9 }
  0xb6 PF: > { %s12_s9 = sadd.s32 1, %s549_s9  }
  0xb7   : > { %p9_p4 = scmp.ge.s32.totalorder %s12_s9, 4  }
  0xb9   :  { %11 = sbr.rel (!%p9_p4) target bundleno = 1 (0x1), region = 61 }

// kernel: _lambda_.29
= control target key start
LH: loop header
LB: loop body
LE: loop exit
PB: predicated region body
PF: predicated region fallthrough
CT: control target
= control target key end

     0   :  { %s785_s18 = smov 0   ;;  %s787_s19 = smov 0   ;;  %s886_s0 = inlined_call_operand.vmem [shape: bf16[160,64], index: 0, kind: input, shape index: {}]   ;;  %s887_s1 = inlined_call_operand.vmem [shape: f32[1,64], index: 1, kind: input, shape index: {}]   ;;  %s888_s2 = inlined_call_operand.vmem [shape: bf16[64,32], index: 2, kind: input, shape index: {}]   ;;  %s889_s3 = inlined_call_operand.vmem [shape: f32[1,32], index: 3, kind: input, shape index: {}]   ;;  %s890_s4 = inlined_call_operand.vmem [shape: bf16[2,32,160], index: 4, kind: input, shape index: {}]   ;;  %s891_s5 = inlined_call_operand.vmem [shape: bf16[2,32,32], index: 5, kind: output, shape index: {}]  }
   0x1   :  { %s789_s20 = smov 0  }
   0x2 LB: > { %s27_s21 = sadd.s32 1, %s749_s19  ;;  %p594_p0 = scmp.ge.s32.totalorder %s753_s20, 1  ;;  %s753_s20 = sphi %s789_s20, %s15_s20   ;;  %s749_s19 = sphi %s787_s19, %s893_s19   ;;  %s745_s18 = sphi %s785_s18, %s892_s18  }
   0x3   : > { %p29_p1 = scmp.ge.s32.totalorder %s27_s21, 2  ;;  %p209_p2 = scmp.lt.s32.totalorder %s753_s20, 3 }
   0x5   : > { %s895_s21 = smov (%p29_p1, %s27_s21), 0  ;;  %p210_p3 = pnand %p594_p0, %p209_p2 }
   0x6   : > { %p247_p4 = scmp.lt.s32.totalorder (!%p210_p3), %s745_s18, 1 }
   0x7   : > { %213 = sbr.rel (%p210_p3) target bundleno = 349 (0x15d), region = 40 }
   0xc   : > { %v686_v0 = vld [vmem:[%s886_s0 + $0x38] sm:$0xff]  ;;  %v688_v1 = vld [vmem:[%s886_s0 + $0x48] sm:$0xff]  ;;  %v685_v2 = vld [vmem:[%s886_s0 + $0x30] sm:$0xff]  ;;  %s897_s18 = smov (!%p247_p4, %s745_s18), 1  ;;  %vm383_vm0 = vcmask 261120   ;;  %vm461_vm1 = vcmask 523264  }
   0xd   : > { %390 = vmatpush.bf16.msra.mxu0 %v686_v0  ;;  %697 = vmatpush.bf16.msra.mxu3 %v686_v0  ;;  %v687_v3 = vld [vmem:[%s886_s0 + $0x40] sm:$0xff]  ;;  %s677_s30 = sshll.u32 %s897_s18, 5  ;;  %v684_v4 = vld [vmem:[%s886_s0 + $0x28] sm:$0xff]  ;;  %v682_v9 = vld [vmem:[%s886_s0 + $0x18] sm:$0xff]  ;;  %s678_s12 = sshll.u32 %s897_s18, 4  ;;  %vm495_vm2 = vcmask 257024  }
   0xe   : > { %415 = vmatpush.bf16.msra.mxu1 %v688_v1  ;;  %s821_s8 = scalar_lea.vmem %s890_s4, %s677_s30  ;;  %v683_v8 = vld [vmem:[%s886_s0 + $0x20] sm:$0xff]  ;;  %v681_v10 = vld [vmem:[%s886_s0 + $0x10] sm:$0xff]  ;;  %v680_v13 = vld [vmem:[%s886_s0 + $0x8] sm:$0xff]  ;;  %s265_s15 = scalar_lea.vmem %s891_s5, %s678_s12 }
   0xf   : > { %v693_v5 = vld [vmem:[%s821_s8 + $0x4] sm:$0xf]  ;;  %v603_v6 = vld [vmem:[%s821_s8 + $0x8] sm:$0xf0]  ;;  %v695_v11 = vld [vmem:[%s821_s8 + $0x14] sm:$0xf] }
  0x10   : > { %v606_v7 = vor.u32 %v693_v5, %v603_v6  ;;  %v611_v12 = vld [vmem:[%s821_s8 + $0x18] sm:$0xf0]  ;;  %v679_v15 = vld [vmem:[%s886_s0] sm:$0xff]  ;;  %v694_v17 = vld [vmem:[%s821_s8 + $0x4] sm:$0xf0] }
  0x11   : > { %391 = vmatpush.bf16.msra.mxu0 %v685_v2  ;;  %698 = vmatpush.bf16.msra.mxu3 %v685_v2  ;;  %v614_v14 = vor.u32 %v695_v11, %v611_v12  ;;  %v601_v16 = vld [vmem:[%s821_s8] sm:$0xf]  ;;  %v609_v18 = vld [vmem:[%s821_s8 + $0x10] sm:$0xf]  ;;  %v696_v19 = vld [vmem:[%s821_s8 + $0x14] sm:$0xf0] }
  0x12   : > { %416 = vmatpush.bf16.msra.mxu1 %v687_v3  ;;  %v602_v20 = vor.u32 %v694_v17, %v601_v16  ;;  %v610_v21 = vor.u32 %v696_v19, %v609_v18  ;;  %v692_v22 = vld [vmem:[%s888_s2 + $0x18] sm:$0xff]  ;;  %v691_v23 = vld [vmem:[%s888_s2 + $0x10] sm:$0xff]  ;;  %v690_v24 = vld [vmem:[%s888_s2 + $0x8] sm:$0xff] }
  0x13   : > { %472 = vmatpush.bf16.msra.mxu2 %v692_v22  ;;  %v689_v25 = vld [vmem:[%s888_s2] sm:$0xff] }
  0x14   : > { %v729_v29 = vld [vmem:[%s887_s1] ss:$0 sm:$0xff] }
  0x15   : > { %392 = vmatpush.bf16.msra.mxu0 %v684_v4  ;;  %699 = vmatpush.bf16.msra.mxu3 %v684_v4  ;;  %v730_v49 = vld [vmem:[%s889_s3] ss:$0 sm:$0xff] }
  0x16   : > { %655 = vmatmul.msk.bf16.vlgmr.msra.gmra.mxu1 %vm383_vm0, %v606_v7 }
  0x17   : > { %473 = vmatpush.bf16.msra.mxu2 %v691_v23 }
  0x19   : > { %393 = vmatpush.bf16.msra.mxu0 %v683_v8  ;;  %700 = vmatpush.bf16.msra.mxu3 %v683_v8 }
  0x1b   : > { %474 = vmatpush.bf16.msra.mxu2 %v690_v24 }
  0x1d   : > { %394 = vmatpush.bf16.msra.mxu0 %v682_v9  ;;  %701 = vmatpush.bf16.msra.mxu3 %v682_v9 }
  0x1f   : > { %475 = vmatpush.bf16.msra.mxu2 %v689_v25 }
  0x21   : > { %395 = vmatpush.bf16.msra.mxu0 %v681_v10  ;;  %702 = vmatpush.bf16.msra.mxu3 %v681_v10 }
  0x25   : > { %396 = vmatpush.bf16.msra.mxu0 %v680_v13  ;;  %703 = vmatpush.bf16.msra.mxu3 %v680_v13 }
  0x26   : > { %656 = vmatmul.msk.bf16.gmra.mxu1 %vm383_vm0, %v614_v14 }
  0x29   : > { %397 = vmatpush.bf16.msra.mxu0 %v679_v15  ;;  %704 = vmatpush.bf16.msra.mxu3 %v679_v15 }
  0x2c   : > { %398 = vmatmul.bf16.vlgmr.msra.gmra.mxu0 %v602_v20  ;;  %403 = vmatmul.bf16.vlgmr.msra.gmra.mxu3 %v610_v21 }
  0x93   : > { %v418_v26 = vpop.f32.mrf.mxu1 }
  0x9b   : > { %v420_v28 = vpop.f32.mrf.mxu1 }
  0xa3   : > { %v423_v35 = vpop.f32.mrf.mxu1 }
  0xa9   : > { %v399_v27 = vpop.f32.mrf.mxu0 }
  0xaa   : > { %v400_v30 = vadd.f32 %v729_v29, %v399_v27 }
  0xab   : > { %v425_v43 = vpop.f32.mrf.mxu1 }
  0xac   : > { %v419_v33 = vadd.f32 %v418_v26, %v400_v30 }
  0xae   : > { %v428_v37 = vmax.f32 %v419_v33, 0.0 }
  0xaf   : > { %v404_v31 = vpop.f32.mrf.mxu3 }
  0xb0   : > { %v405_v41 = vadd.f32 %v729_v29, %v404_v31 }
  0xb1   : > { %v401_v32 = vpop.f32.mrf.mxu0 }
  0xb2   : > { %v402_v34 = vadd.f32 %v729_v29, %v401_v32  ;;  %v424_v44 = vadd.f32 %v423_v35, %v405_v41 }
  0xb4   : > { %v421_v36 = vadd.f32 %v420_v28, %v402_v34  ;;  %v430_v46 = vmax.f32 %v424_v44, 0.0 }
  0xb6   : > { %v429_v38 = vmax.f32 %v421_v36, 0.0 }
  0xb7   : > { %v406_v40 = vpop.f32.mrf.mxu3 }
  0xb8   : > { %v432_v39 = vpack.c.bf16 %v429_v38, %v428_v37  ;;  %v407_v42 = vadd.f32 %v729_v29, %v406_v40 }
  0xba   : > { %673 = vmatmul.msk.bf16.vlgmr.msra.gmra.mxu2 %vm461_vm1, %v432_v39  ;;  %v426_v45 = vadd.f32 %v425_v43, %v407_v42 }
  0xbc   : > { %v431_v47 = vmax.f32 %v426_v45, 0.0 }
  0xbe   : > { %v433_v48 = vpack.c.bf16 %v431_v47, %v430_v46 }
  0xca   : > { %674 = vmatmul.msk.bf16.gmra.mxu2 %vm461_vm1, %v433_v48 }
 0x13d   : > { %v477_v50 = vpop.f32.mrf.mxu2 }
 0x13e   : > { %v478_v51 = vadd.f32 %v730_v49, %v477_v50 }
 0x140   : > { %v487_v52 = vmax.f32 %v478_v51, 0.0 }
 0x142   : > { %v491_v53 = vpack.c.bf16 %v487_v52, %v487_v52 }
 0x144   : > { %496 = vst.msk [vmem:[%s265_s15] sm:$0xf] %vm495_vm2, %v491_v53 }
 0x145   : > { %v479_v54 = vpop.f32.mrf.mxu2 }
 0x146   : > { %v480_v55 = vadd.f32 %v730_v49, %v479_v54 }
 0x148   : > { %v488_v56 = vmax.f32 %v480_v55, 0.0 }
 0x14a   : > { %v492_v57 = vpack.c.bf16 %v488_v56, %v488_v56 }
 0x14c   : > { %497 = vst.msk [vmem:[%s265_s15 + $0x4] sm:$0xf] %vm495_vm2, %v492_v57 }
 0x14d   : > { %v482_v58 = vpop.f32.mrf.mxu2 }
 0x14e   : > { %v483_v59 = vadd.f32 %v730_v49, %v482_v58 }
 0x150   : > { %v489_v60 = vmax.f32 %v483_v59, 0.0 }
 0x152   : > { %v493_v61 = vpack.c.bf16 %v489_v60, %v489_v60 }
 0x154   : > { %498 = vst.msk [vmem:[%s265_s15 + $0x8] sm:$0xf] %vm495_vm2, %v493_v61 }
 0x155   : > { %v484_v62 = vpop.f32.mrf.mxu2 }
 0x156   : > { %v485_v63 = vadd.f32 %v730_v49, %v484_v62 }
 0x158   : > { %v490_v0 = vmax.f32 %v485_v63, 0.0 }
 0x15a   : > { %v494_v1 = vpack.c.bf16 %v490_v0, %v490_v0 }
 0x15c   : > { %499 = vst.msk [vmem:[%s265_s15 + $0xc] sm:$0xf] %vm495_vm2, %v494_v1 }
 0x15d PF: > { %s15_s20 = sadd.s32 1, %s753_s20   ;;  %s892_s18 = smov %s749_s19 }
 0x15e   : > { %p12_p5 = scmp.ge.s32.totalorder %s15_s20, 4   ;;  %s893_s19 = smov %s895_s21 }
 0x160   :  { %14 = sbr.rel (!%p12_p5) target bundleno = 2 (0x2), region = 70 }

// kernel: _lambda_.31
= control target key start
LH: loop header
LB: loop body
LE: loop exit
PB: predicated region body
PF: predicated region fallthrough
CT: control target
= control target key end

     0   :  { %s856_s18 = smov 0   ;;  %s858_s19 = smov 0   ;;  %s977_s0 = inlined_call_operand.vmem [shape: bf16[39,32], index: 0, kind: input, shape index: {}]   ;;  %s978_s1 = inlined_call_operand.vmem [shape: f32[1,32], index: 1, kind: input, shape index: {}, may-alias: {1,3}]   ;;  %s979_s2 = inlined_call_operand.vmem [shape: bf16[32,32], index: 2, kind: input, shape index: {}]   ;;  %s980_s3 = inlined_call_operand.vmem [shape: f32[1,32], index: 3, kind: input, shape index: {}, may-alias: {1,3}]   ;;  %s981_s4 = inlined_call_operand.vmem [shape: bf16[2,128,39], index: 4, kind: input, shape index: {}]   ;;  %s982_s5 = inlined_call_operand.vmem [shape: bf16[2,128,32], index: 5, kind: output, shape index: {}]  }
   0x1   :  { %s860_s20 = smov 0  }
   0x2 LB: > { %s27_s21 = sadd.s32 1, %s819_s19  ;;  %p684_p0 = scmp.ge.s32.totalorder %s823_s20, 1  ;;  %s823_s20 = sphi %s860_s20, %s15_s20   ;;  %s819_s19 = sphi %s858_s19, %s984_s19   ;;  %s815_s18 = sphi %s856_s18, %s983_s18  }
   0x3   : > { %p29_p1 = scmp.ge.s32.totalorder %s27_s21, 2  ;;  %p208_p2 = scmp.lt.s32.totalorder %s823_s20, 3 }
   0x5   : > { %s986_s21 = smov (%p29_p1, %s27_s21), 0  ;;  %p209_p3 = pnand %p684_p0, %p208_p2 }
   0x6   : > { %p245_p4 = scmp.lt.s32.totalorder (!%p209_p3), %s815_s18, 1 }
   0x7   : > { %212 = sbr.rel (%p209_p3) target bundleno = 375 (0x177), region = 40 }
   0xc   : > { %v269_v0 = vld [vmem:[%s977_s0 + $0x10] sm:$0xf]  ;;  %vm375_vm0 = vcmask 1042432   ;;  %vm376_vm1 = vcmask 1043456   ;;  %v825_v2 = vmov 65535   ;;  %s988_s18 = smov (!%p245_p4, %s815_s18), 1 }
   0xd   : > { %v344_v1 = vunpack.c.l.b16 %v269_v0  ;;  %v377_v3 = vsel %vm375_vm0, 4294967295, %v825_v2  ;;  %v758_v7 = vld [vmem:[%s977_s0 + $0x8] sm:$0xff]  ;;  %s755_s26 = sshll.u32 %s988_s18, 6  ;;  %v757_v8 = vld [vmem:[%s977_s0] sm:$0xff]  ;;  %vm350_vm2 = vcmask 318464   ;;  %vm470_vm3 = vcmask 261120  }
   0xe   : > { %v378_v4 = vsel %vm376_vm1, %v377_v3, 0  ;;  %s252_s6 = scalar_lea.vmem %s981_s4, %s755_s26  ;;  %v760_v17 = vld [vmem:[%s979_s2 + $0x8] sm:$0xff]  ;;  %v759_v18 = vld [vmem:[%s979_s2] sm:$0xff]  ;;  %s919_s17 = scalar_lea.vmem %s982_s5, %s755_s26  ;;  %vm576_vm4 = vcmask 257024  }
   0xf   : > { %v347_v5 = vpack.c.b16 %v344_v1, %v344_v1  ;;  %v761_v9 = vld [vmem:[%s252_s6] sm:$0xff]  ;;  %v762_v11 = vld [vmem:[%s252_s6 + $0x8] sm:$0xff]  ;;  %v763_v13 = vld [vmem:[%s252_s6 + $0x10] sm:$0xff]  ;;  %501 = vmatpush.bf16.msra.mxu1 %v760_v17  ;;  %772 = vmatpush.bf16.msra.mxu3 %v760_v17 }
  0x10   : > { %v765_v10 = vld [vmem:[%s252_s6 + $0x20] sm:$0xff]  ;;  %v766_v12 = vld [vmem:[%s252_s6 + $0x28] sm:$0xff]  ;;  %v767_v14 = vld [vmem:[%s252_s6 + $0x30] sm:$0xff] }
  0x11   : > { %v380_v6 = vand.u32 %v378_v4, %v347_v5  ;;  %v764_v15 = vld [vmem:[%s252_s6 + $0x18] sm:$0xff]  ;;  %v799_v20 = vld [vmem:[%s978_s1] ss:$0 sm:$0xff] }
  0x12   : > { %v768_v16 = vld [vmem:[%s252_s6 + $0x38] sm:$0xff] }
  0x13   : > { %387 = vmatpush.bf16.msra.mxu0 %v380_v6  ;;  %769 = vmatpush.bf16.msra.mxu2 %v380_v6 }
  0x14   : > { %502 = vmatpush.bf16.msra.mxu1 %v759_v18  ;;  %773 = vmatpush.bf16.msra.mxu3 %v759_v18 }
  0x17   : > { %388 = vmatpush.bf16.msra.mxu0 %v758_v7  ;;  %770 = vmatpush.bf16.msra.mxu2 %v758_v7 }
  0x1b   : > { %389 = vmatpush.bf16.msra.mxu0 %v757_v8  ;;  %771 = vmatpush.bf16.msra.mxu2 %v757_v8 }
  0x1e   : > { %729 = vmatmul.msk.bf16.vlgmr.msra.gmra.mxu0 %vm350_vm2, %v761_v9  ;;  %733 = vmatmul.msk.bf16.vlgmr.msra.gmra.mxu2 %vm350_vm2, %v765_v10 }
  0x2e   : > { %730 = vmatmul.msk.bf16.gmra.mxu0 %vm350_vm2, %v762_v11  ;;  %734 = vmatmul.msk.bf16.gmra.mxu2 %vm350_vm2, %v766_v12  ;;  %v911_v12 = vld [vmem:[%s980_s3] ss:$0 sm:$0xff] }
  0x3e   : > { %731 = vmatmul.msk.bf16.gmra.mxu0 %vm350_vm2, %v763_v13  ;;  %735 = vmatmul.msk.bf16.gmra.mxu2 %vm350_vm2, %v767_v14 }
  0x4e   : > { %732 = vmatmul.msk.bf16.gmra.mxu0 %vm350_vm2, %v764_v15  ;;  %736 = vmatmul.msk.bf16.gmra.mxu2 %vm350_vm2, %v768_v16 }
  0x9b   : > { %v391_v19 = vpop.f32.mrf.mxu0 }
  0x9c   : > { %v392_v22 = vadd.f32 %v799_v20, %v391_v19 }
  0x9e   : > { %v431_v26 = vmax.f32 %v392_v22, 0.0 }
  0xa1   : > { %v411_v21 = vpop.f32.mrf.mxu2 }
  0xa2   : > { %v412_v23 = vadd.f32 %v799_v20, %v411_v21 }
  0xa3   : > { %v393_v24 = vpop.f32.mrf.mxu0 }
  0xa4   : > { %v394_v25 = vadd.f32 %v799_v20, %v393_v24  ;;  %v439_v32 = vmax.f32 %v412_v23, 0.0 }
  0xa6   : > { %v432_v27 = vmax.f32 %v394_v25, 0.0 }
  0xa8   : > { %v447_v28 = vpack.c.bf16 %v432_v27, %v431_v26 }
  0xa9   : > { %v413_v29 = vpop.f32.mrf.mxu2 }
  0xaa   : > { %v414_v30 = vadd.f32 %v799_v20, %v413_v29  ;;  %745 = vmatmul.msk.bf16.vlgmr.msra.gmra.mxu1 %vm470_vm3, %v447_v28 }
  0xab   : > { %v396_v31 = vpop.f32.mrf.mxu0 }
  0xac   : > { %v440_v33 = vmax.f32 %v414_v30, 0.0  ;;  %v397_v36 = vadd.f32 %v799_v20, %v396_v31 }
  0xae   : > { %v451_v34 = vpack.c.bf16 %v440_v33, %v439_v32  ;;  %v433_v39 = vmax.f32 %v397_v36, 0.0 }
  0xb1   : > { %v416_v35 = vpop.f32.mrf.mxu2 }
  0xb2   : > { %v417_v41 = vadd.f32 %v799_v20, %v416_v35 }
  0xb3   : > { %v398_v37 = vpop.f32.mrf.mxu0 }
  0xb4   : > { %v399_v38 = vadd.f32 %v799_v20, %v398_v37  ;;  %v441_v46 = vmax.f32 %v417_v41, 0.0 }
  0xb6   : > { %v434_v40 = vmax.f32 %v399_v38, 0.0 }
  0xb8   : > { %v448_v42 = vpack.c.bf16 %v434_v40, %v433_v39 }
  0xb9   : > { %v418_v43 = vpop.f32.mrf.mxu2 }
  0xba   : > { %v419_v44 = vadd.f32 %v799_v20, %v418_v43  ;;  %746 = vmatmul.msk.bf16.gmra.mxu1 %vm470_vm3, %v448_v42 }
  0xbb   : > { %v401_v45 = vpop.f32.mrf.mxu0 }
  0xbc   : > { %v442_v47 = vmax.f32 %v419_v44, 0.0  ;;  %v402_v50 = vadd.f32 %v799_v20, %v401_v45 }
  0xbe   : > { %v452_v48 = vpack.c.bf16 %v442_v47, %v441_v46  ;;  %v435_v53 = vmax.f32 %v402_v50, 0.0 }
  0xc0   : > { %750 = vmatmul.msk.bf16.vlgmr.msra.gmra.mxu3 %vm470_vm3, %v452_v48 }
  0xc1   : > { %v421_v49 = vpop.f32.mrf.mxu2 }
  0xc2   : > { %v422_v55 = vadd.f32 %v799_v20, %v421_v49 }
  0xc3   : > { %v403_v51 = vpop.f32.mrf.mxu0 }
  0xc4   : > { %v404_v52 = vadd.f32 %v799_v20, %v403_v51  ;;  %v443_v60 = vmax.f32 %v422_v55, 0.0 }
  0xc6   : > { %v436_v54 = vmax.f32 %v404_v52, 0.0 }
  0xc8   : > { %v449_v56 = vpack.c.bf16 %v436_v54, %v435_v53 }
  0xc9   : > { %v423_v57 = vpop.f32.mrf.mxu2 }
  0xca   : > { %v424_v58 = vadd.f32 %v799_v20, %v423_v57  ;;  %747 = vmatmul.msk.bf16.gmra.mxu1 %vm470_vm3, %v449_v56 }
  0xcb   : > { %v406_v59 = vpop.f32.mrf.mxu0 }
  0xcc   : > { %v444_v61 = vmax.f32 %v424_v58, 0.0  ;;  %v407_v0 = vadd.f32 %v799_v20, %v406_v59 }
  0xce   : > { %v453_v62 = vpack.c.bf16 %v444_v61, %v443_v60  ;;  %v437_v3 = vmax.f32 %v407_v0, 0.0 }
  0xd0   : > { %751 = vmatmul.msk.bf16.gmra.mxu3 %vm470_vm3, %v453_v62 }
  0xd1   : > { %v426_v63 = vpop.f32.mrf.mxu2 }
  0xd2   : > { %v427_v5 = vadd.f32 %v799_v20, %v426_v63 }
  0xd3   : > { %v408_v1 = vpop.f32.mrf.mxu0 }
  0xd4   : > { %v409_v2 = vadd.f32 %v799_v20, %v408_v1  ;;  %v445_v9 = vmax.f32 %v427_v5, 0.0 }
  0xd6   : > { %v438_v4 = vmax.f32 %v409_v2, 0.0 }
  0xd8   : > { %v450_v6 = vpack.c.bf16 %v438_v4, %v437_v3 }
  0xd9   : > { %v428_v7 = vpop.f32.mrf.mxu2 }
  0xda   : > { %v429_v8 = vadd.f32 %v799_v20, %v428_v7  ;;  %748 = vmatmul.msk.bf16.gmra.mxu1 %vm470_vm3, %v450_v6 }
  0xdc   : > { %v446_v10 = vmax.f32 %v429_v8, 0.0 }
  0xde   : > { %v454_v11 = vpack.c.bf16 %v446_v10, %v445_v9 }
  0xe0   : > { %752 = vmatmul.msk.bf16.gmra.mxu3 %vm470_vm3, %v454_v11 }
  0xea   : > { %749 = vmatmul.msk.bf16.gmra.mxu1 %vm470_vm3, %v451_v34 }
 0x127   : > { %v504_v13 = vpop.f32.mrf.mxu1 }
 0x128   : > { %v505_v14 = vadd.f32 %v911_v12, %v504_v13 }
 0x12a   : > { %v544_v15 = vmax.f32 %v505_v14, 0.0 }
 0x12c   : > { %v560_v16 = vpack.c.bf16 %v544_v15, %v544_v15 }
 0x12e   : > { %577 = vst.msk [vmem:[%s919_s17] sm:$0xf] %vm576_vm4, %v560_v16 }
 0x12f   : > { %v506_v17 = vpop.f32.mrf.mxu1 }
 0x130   : > { %v507_v18 = vadd.f32 %v911_v12, %v506_v17 }
 0x132   : > { %v545_v19 = vmax.f32 %v507_v18, 0.0 }
 0x134   : > { %v561_v20 = vpack.c.bf16 %v545_v19, %v545_v19 }
 0x136   : > { %578 = vst.msk [vmem:[%s919_s17 + $0x4] sm:$0xf] %vm576_vm4, %v561_v20 }
 0x137   : > { %v509_v21 = vpop.f32.mrf.mxu1 }
 0x138   : > { %v510_v22 = vadd.f32 %v911_v12, %v509_v21 }
 0x13a   : > { %v546_v23 = vmax.f32 %v510_v22, 0.0 }
 0x13c   : > { %v562_v24 = vpack.c.bf16 %v546_v23, %v546_v23 }
 0x13e   : > { %579 = vst.msk [vmem:[%s919_s17 + $0x8] sm:$0xf] %vm576_vm4, %v562_v24 }
 0x13f   : > { %v511_v25 = vpop.f32.mrf.mxu1 }
 0x140   : > { %v512_v26 = vadd.f32 %v911_v12, %v511_v25 }
 0x142   : > { %v547_v27 = vmax.f32 %v512_v26, 0.0 }
 0x143   : > { %v529_v28 = vpop.f32.mrf.mxu3 }
 0x144   : > { %v563_v29 = vpack.c.bf16 %v547_v27, %v547_v27  ;;  %v530_v30 = vadd.f32 %v911_v12, %v529_v28 }
 0x146   : > { %580 = vst.msk [vmem:[%s919_s17 + $0xc] sm:$0xf] %vm576_vm4, %v563_v29  ;;  %v554_v31 = vmax.f32 %v530_v30, 0.0 }
 0x147   : > { %v514_v32 = vpop.f32.mrf.mxu1 }
 0x148   : > { %v570_v33 = vpack.c.bf16 %v554_v31, %v554_v31  ;;  %v515_v34 = vadd.f32 %v911_v12, %v514_v32 }
 0x14a   : > { %587 = vst.msk [vmem:[%s919_s17 + $0x28] sm:$0xf] %vm576_vm4, %v570_v33  ;;  %v548_v35 = vmax.f32 %v515_v34, 0.0 }
 0x14b   : > { %v531_v36 = vpop.f32.mrf.mxu3 }
 0x14c   : > { %v564_v37 = vpack.c.bf16 %v548_v35, %v548_v35  ;;  %v532_v38 = vadd.f32 %v911_v12, %v531_v36 }
 0x14e   : > { %581 = vst.msk [vmem:[%s919_s17 + $0x10] sm:$0xf] %vm576_vm4, %v564_v37  ;;  %v555_v39 = vmax.f32 %v532_v38, 0.0 }
 0x14f   : > { %v516_v40 = vpop.f32.mrf.mxu1 }
 0x150   : > { %v571_v41 = vpack.c.bf16 %v555_v39, %v555_v39  ;;  %v517_v42 = vadd.f32 %v911_v12, %v516_v40 }
 0x152   : > { %588 = vst.msk [vmem:[%s919_s17 + $0x2c] sm:$0xf] %vm576_vm4, %v571_v41  ;;  %v549_v43 = vmax.f32 %v517_v42, 0.0 }
 0x153   : > { %v534_v44 = vpop.f32.mrf.mxu3 }
 0x154   : > { %v565_v45 = vpack.c.bf16 %v549_v43, %v549_v43  ;;  %v535_v46 = vadd.f32 %v911_v12, %v534_v44 }
 0x156   : > { %582 = vst.msk [vmem:[%s919_s17 + $0x14] sm:$0xf] %vm576_vm4, %v565_v45  ;;  %v556_v47 = vmax.f32 %v535_v46, 0.0 }
 0x157   : > { %v519_v48 = vpop.f32.mrf.mxu1 }
 0x158   : > { %v572_v49 = vpack.c.bf16 %v556_v47, %v556_v47  ;;  %v520_v50 = vadd.f32 %v911_v12, %v519_v48 }
 0x15a   : > { %589 = vst.msk [vmem:[%s919_s17 + $0x30] sm:$0xf] %vm576_vm4, %v572_v49  ;;  %v550_v51 = vmax.f32 %v520_v50, 0.0 }
 0x15b   : > { %v536_v52 = vpop.f32.mrf.mxu3 }
 0x15c   : > { %v566_v53 = vpack.c.bf16 %v550_v51, %v550_v51  ;;  %v537_v54 = vadd.f32 %v911_v12, %v536_v52 }
 0x15e   : > { %583 = vst.msk [vmem:[%s919_s17 + $0x18] sm:$0xf] %vm576_vm4, %v566_v53  ;;  %v557_v55 = vmax.f32 %v537_v54, 0.0 }
 0x15f   : > { %v521_v56 = vpop.f32.mrf.mxu1 }
 0x160   : > { %v573_v57 = vpack.c.bf16 %v557_v55, %v557_v55  ;;  %v522_v58 = vadd.f32 %v911_v12, %v521_v56 }
 0x162   : > { %590 = vst.msk [vmem:[%s919_s17 + $0x34] sm:$0xf] %vm576_vm4, %v573_v57  ;;  %v551_v59 = vmax.f32 %v522_v58, 0.0 }
 0x163   : > { %v539_v60 = vpop.f32.mrf.mxu3 }
 0x164   : > { %v567_v61 = vpack.c.bf16 %v551_v59, %v551_v59  ;;  %v540_v62 = vadd.f32 %v911_v12, %v539_v60 }
 0x166   : > { %584 = vst.msk [vmem:[%s919_s17 + $0x1c] sm:$0xf] %vm576_vm4, %v567_v61  ;;  %v558_v63 = vmax.f32 %v540_v62, 0.0 }
 0x167   : > { %v524_v0 = vpop.f32.mrf.mxu1 }
 0x168   : > { %v574_v1 = vpack.c.bf16 %v558_v63, %v558_v63  ;;  %v525_v2 = vadd.f32 %v911_v12, %v524_v0 }
 0x16a   : > { %591 = vst.msk [vmem:[%s919_s17 + $0x38] sm:$0xf] %vm576_vm4, %v574_v1  ;;  %v552_v3 = vmax.f32 %v525_v2, 0.0 }
 0x16b   : > { %v541_v4 = vpop.f32.mrf.mxu3 }
 0x16c   : > { %v568_v5 = vpack.c.bf16 %v552_v3, %v552_v3  ;;  %v542_v6 = vadd.f32 %v911_v12, %v541_v4 }
 0x16e   : > { %585 = vst.msk [vmem:[%s919_s17 + $0x20] sm:$0xf] %vm576_vm4, %v568_v5  ;;  %v559_v7 = vmax.f32 %v542_v6, 0.0 }
 0x16f   : > { %v526_v8 = vpop.f32.mrf.mxu1 }
 0x170   : > { %v575_v9 = vpack.c.bf16 %v559_v7, %v559_v7  ;;  %v527_v10 = vadd.f32 %v911_v12, %v526_v8 }
 0x172   : > { %592 = vst.msk [vmem:[%s919_s17 + $0x3c] sm:$0xf] %vm576_vm4, %v575_v9  ;;  %v553_v11 = vmax.f32 %v527_v10, 0.0 }
 0x174   : > { %v569_v13 = vpack.c.bf16 %v553_v11, %v553_v11 }
 0x176   : > { %586 = vst.msk [vmem:[%s919_s17 + $0x24] sm:$0xf] %vm576_vm4, %v569_v13 }
 0x177 PF: > { %s15_s20 = sadd.s32 1, %s823_s20   ;;  %s983_s18 = smov %s819_s19 }
 0x178   : > { %p12_p5 = scmp.ge.s32.totalorder %s15_s20, 4   ;;  %s984_s19 = smov %s986_s21 }
 0x17a   :  { %14 = sbr.rel (!%p12_p5) target bundleno = 2 (0x2), region = 70 }

// kernel: _lambda_.32
= control target key start
LH: loop header
LB: loop body
LE: loop exit
PB: predicated region body
PF: predicated region fallthrough
CT: control target
= control target key end

     0   :  { %s1205_s30 = smov 0   ;;  %s1207_s10 = smov 0   ;;  %s1362_s0 = inlined_call_operand.vmem [shape: bf16[32,32], index: 0, kind: input, shape index: {}]   ;;  %s1363_s1 = inlined_call_operand.vmem [shape: f32[1,32], index: 1, kind: input, shape index: {}, may-alias: {1,3,5}]   ;;  %s1364_s2 = inlined_call_operand.vmem [shape: bf16[32,32], index: 2, kind: input, shape index: {}]   ;;  %s1365_s3 = inlined_call_operand.vmem [shape: f32[1,32], index: 3, kind: input, shape index: {}, may-alias: {1,3,5}]   ;;  %s1366_s4 = inlined_call_operand.vmem [shape: bf16[32,32], index: 4, kind: input, shape index: {}]   ;;  %s1367_s5 = inlined_call_operand.vmem [shape: f32[1,32], index: 5, kind: input, shape index: {}, may-alias: {1,3,5}]   ;;  %s1368_s6 = inlined_call_operand.vmem [shape: bf16[32,8], index: 6, kind: input, shape index: {}]   ;;  %s1369_s7 = inlined_call_operand.vmem [shape: f32[1,8], index: 7, kind: input, shape index: {}]   ;;  %s1370_s8 = inlined_call_operand.vmem [shape: bf16[2,128,32], index: 8, kind: input, shape index: {}]   ;;  %s1371_s9 = inlined_call_operand.vmem [shape: f32[2,128,8], index: 9, kind: output, shape index: {}]  }
   0x1   :  { %s1209_s11 = smov 0  }
   0x2 LB: > { %s31_s12 = sadd.s32 1, %s1149_s10  ;;  %p982_p0 = scmp.ge.s32.totalorder %s1153_s11, 1  ;;  %s1153_s11 = sphi %s1209_s11, %s19_s11   ;;  %s1149_s10 = sphi %s1207_s10, %s1373_s10   ;;  %s1145_s30 = sphi %s1205_s30, %s1372_s30  }
   0x3   : > { %p33_p1 = scmp.ge.s32.totalorder %s31_s12, 2  ;;  %p308_p2 = scmp.lt.s32.totalorder %s1153_s11, 3 }
   0x5   : > { %s1375_s12 = smov (%p33_p1, %s31_s12), 0  ;;  %p309_p3 = pnand %p982_p0, %p308_p2 }
   0x6   : > { %p353_p4 = scmp.lt.s32.totalorder (!%p309_p3), %s1145_s30, 1 }
   0x7   : > { %312 = sbr.rel (%p309_p3) target bundleno = 701 (0x2bd), region = 56 }
   0xc   : > { %v1088_v0 = vld [vmem:[%s1362_s0 + $0x8] sm:$0xff]  ;;  %v1087_v1 = vld [vmem:[%s1362_s0] sm:$0xff]  ;;  %s1377_s30 = smov (!%p353_p4, %s1145_s30), 1  ;;  %vm464_vm0 = vcmask 261120   ;;  %vm874_vm1 = vcmask 64512  }
   0xd   : > { %495 = vmatpush.bf16.msra.mxu0 %v1088_v0  ;;  %s1085_s17 = sshll.u32 %s1377_s30, 6  ;;  %v1090_v9 = vld [vmem:[%s1364_s2 + $0x8] sm:$0xff]  ;;  %v1089_v10 = vld [vmem:[%s1364_s2] sm:$0xff]  ;;  %s1086_s22 = sshll.u32 %s1377_s30, 7 }
   0xe   : > { %s360_s20 = scalar_lea.vmem %s1370_s8, %s1085_s17  ;;  %607 = vmatpush.bf16.msra.mxu1 %v1090_v9  ;;  %v1252_v13 = vld [vmem:[%s1363_s1] ss:$0 sm:$0xff]  ;;  %v1092_v63 = vld [vmem:[%s1366_s4 + $0x8] sm:$0xff]  ;;  %s1319_s27 = scalar_lea.vmem %s1371_s9, %s1086_s22 }
   0xf   : > { %v1095_v2 = vld [vmem:[%s360_s20] sm:$0xff]  ;;  %v1096_v3 = vld [vmem:[%s360_s20 + $0x8] sm:$0xff]  ;;  %v1097_v4 = vld [vmem:[%s360_s20 + $0x10] sm:$0xff]  ;;  %719 = vmatpush.bf16.msra.mxu2 %v1092_v63 }
  0x10   : > { %v1098_v5 = vld [vmem:[%s360_s20 + $0x18] sm:$0xff]  ;;  %v1099_v6 = vld [vmem:[%s360_s20 + $0x20] sm:$0xff]  ;;  %v1100_v7 = vld [vmem:[%s360_s20 + $0x28] sm:$0xff] }
  0x11   : > { %496 = vmatpush.bf16.msra.mxu0 %v1087_v1  ;;  %v1101_v8 = vld [vmem:[%s360_s20 + $0x30] sm:$0xff]  ;;  %v1102_v11 = vld [vmem:[%s360_s20 + $0x38] sm:$0xff]  ;;  %v1091_v0 = vld [vmem:[%s1366_s4] sm:$0xff] }
  0x12   : > { %608 = vmatpush.bf16.msra.mxu1 %v1089_v10 }
  0x13   : > { %720 = vmatpush.bf16.msra.mxu2 %v1091_v0  ;;  %v1093_v0 = vld [vmem:[%s1368_s6] sm:$0xff] }
  0x14   : > { %1027 = vmatmul.msk.bf16.vlgmr.msra.gmra.mxu0 %vm464_vm0, %v1095_v2 }
  0x24   : > { %1028 = vmatmul.msk.bf16.gmra.mxu0 %vm464_vm0, %v1096_v3 }
  0x34   : > { %1029 = vmatmul.msk.bf16.gmra.mxu0 %vm464_vm0, %v1097_v4 }
  0x44   : > { %1030 = vmatmul.msk.bf16.gmra.mxu0 %vm464_vm0, %v1098_v5 }
  0x54   : > { %1031 = vmatmul.msk.bf16.gmra.mxu0 %vm464_vm0, %v1099_v6 }
  0x64   : > { %1032 = vmatmul.msk.bf16.gmra.mxu0 %vm464_vm0, %v1100_v7 }
  0x74   : > { %1033 = vmatmul.msk.bf16.gmra.mxu0 %vm464_vm0, %v1101_v8  ;;  %v1128_v8 = vld [vmem:[%s1365_s3] ss:$0 sm:$0xff] }
  0x84   : > { %1034 = vmatmul.msk.bf16.gmra.mxu0 %vm464_vm0, %v1102_v11 }
  0x91   : > { %v498_v12 = vpop.f32.mrf.mxu0 }
  0x92   : > { %v499_v14 = vadd.f32 %v1252_v13, %v498_v12 }
  0x94   : > { %v538_v17 = vmax.f32 %v499_v14, 0.0 }
  0x99   : > { %v500_v15 = vpop.f32.mrf.mxu0 }
  0x9a   : > { %v501_v16 = vadd.f32 %v1252_v13, %v500_v15 }
  0x9c   : > { %v539_v18 = vmax.f32 %v501_v16, 0.0 }
  0x9e   : > { %v554_v19 = vpack.c.bf16 %v539_v18, %v538_v17 }
  0xa0   : > { %1043 = vmatmul.msk.bf16.vlgmr.msra.gmra.mxu1 %vm464_vm0, %v554_v19 }
  0xa1   : > { %v503_v20 = vpop.f32.mrf.mxu0 }
  0xa2   : > { %v504_v21 = vadd.f32 %v1252_v13, %v503_v20 }
  0xa4   : > { %v540_v24 = vmax.f32 %v504_v21, 0.0 }
  0xa9   : > { %v505_v22 = vpop.f32.mrf.mxu0 }
  0xaa   : > { %v506_v23 = vadd.f32 %v1252_v13, %v505_v22 }
  0xac   : > { %v541_v25 = vmax.f32 %v506_v23, 0.0 }
  0xae   : > { %v555_v26 = vpack.c.bf16 %v541_v25, %v540_v24 }
  0xb0   : > { %1044 = vmatmul.msk.bf16.gmra.mxu1 %vm464_vm0, %v555_v26 }
  0xb1   : > { %v508_v27 = vpop.f32.mrf.mxu0 }
  0xb2   : > { %v509_v28 = vadd.f32 %v1252_v13, %v508_v27 }
  0xb4   : > { %v542_v31 = vmax.f32 %v509_v28, 0.0 }
  0xb9   : > { %v510_v29 = vpop.f32.mrf.mxu0 }
  0xba   : > { %v511_v30 = vadd.f32 %v1252_v13, %v510_v29 }
  0xbc   : > { %v543_v32 = vmax.f32 %v511_v30, 0.0 }
  0xbe   : > { %v556_v33 = vpack.c.bf16 %v543_v32, %v542_v31 }
  0xc0   : > { %1045 = vmatmul.msk.bf16.gmra.mxu1 %vm464_vm0, %v556_v33 }
  0xc1   : > { %v513_v34 = vpop.f32.mrf.mxu0 }
  0xc2   : > { %v514_v35 = vadd.f32 %v1252_v13, %v513_v34 }
  0xc4   : > { %v544_v38 = vmax.f32 %v514_v35, 0.0 }
  0xc9   : > { %v515_v36 = vpop.f32.mrf.mxu0 }
  0xca   : > { %v516_v37 = vadd.f32 %v1252_v13, %v515_v36 }
  0xcc   : > { %v545_v39 = vmax.f32 %v516_v37, 0.0 }
  0xce   : > { %v557_v40 = vpack.c.bf16 %v545_v39, %v544_v38 }
  0xd0   : > { %1046 = vmatmul.msk.bf16.gmra.mxu1 %vm464_vm0, %v557_v40 }
  0xd1   : > { %v518_v41 = vpop.f32.mrf.mxu0 }
  0xd2   : > { %v519_v42 = vadd.f32 %v1252_v13, %v518_v41 }
  0xd4   : > { %v546_v45 = vmax.f32 %v519_v42, 0.0 }
  0xd9   : > { %v520_v43 = vpop.f32.mrf.mxu0 }
  0xda   : > { %v521_v44 = vadd.f32 %v1252_v13, %v520_v43 }
  0xdc   : > { %v547_v46 = vmax.f32 %v521_v44, 0.0 }
  0xde   : > { %v558_v47 = vpack.c.bf16 %v547_v46, %v546_v45 }
  0xe0   : > { %1047 = vmatmul.msk.bf16.gmra.mxu1 %vm464_vm0, %v558_v47 }
  0xe1   : > { %v523_v48 = vpop.f32.mrf.mxu0 }
  0xe2   : > { %v524_v49 = vadd.f32 %v1252_v13, %v523_v48 }
  0xe4   : > { %v548_v52 = vmax.f32 %v524_v49, 0.0 }
  0xe9   : > { %v525_v50 = vpop.f32.mrf.mxu0 }
  0xea   : > { %v526_v51 = vadd.f32 %v1252_v13, %v525_v50 }
  0xec   : > { %v549_v53 = vmax.f32 %v526_v51, 0.0 }
  0xee   : > { %v559_v54 = vpack.c.bf16 %v549_v53, %v548_v52 }
  0xf0   : > { %1048 = vmatmul.msk.bf16.gmra.mxu1 %vm464_vm0, %v559_v54 }
  0xf1   : > { %v528_v55 = vpop.f32.mrf.mxu0 }
  0xf2   : > { %v529_v56 = vadd.f32 %v1252_v13, %v528_v55 }
  0xf4   : > { %v550_v59 = vmax.f32 %v529_v56, 0.0 }
  0xf9   : > { %v530_v57 = vpop.f32.mrf.mxu0 }
  0xfa   : > { %v531_v58 = vadd.f32 %v1252_v13, %v530_v57 }
  0xfc   : > { %v551_v60 = vmax.f32 %v531_v58, 0.0 }
  0xfe   : > { %v560_v61 = vpack.c.bf16 %v551_v60, %v550_v59  ;;  %v1094_v60 = vld [vmem:[%s1368_s6 + $0x8] sm:$0xff] }
  0xff   : > { %831 = vmatpush.bf16.msra.mxu3 %v1094_v60 }
 0x100   : > { %1049 = vmatmul.msk.bf16.gmra.mxu1 %vm464_vm0, %v560_v61 }
 0x101   : > { %v533_v62 = vpop.f32.mrf.mxu0 }
 0x102   : > { %v534_v1 = vadd.f32 %v1252_v13, %v533_v62 }
 0x103   : > { %832 = vmatpush.bf16.msra.mxu3 %v1093_v0 }
 0x104   : > { %v552_v4 = vmax.f32 %v534_v1, 0.0 }
 0x109   : > { %v535_v2 = vpop.f32.mrf.mxu0 }
 0x10a   : > { %v536_v3 = vadd.f32 %v1252_v13, %v535_v2 }
 0x10c   : > { %v553_v5 = vmax.f32 %v536_v3, 0.0  ;;  %v1129_v3 = vld [vmem:[%s1367_s5] ss:$0 sm:$0xff] }
 0x10e   : > { %v561_v6 = vpack.c.bf16 %v553_v5, %v552_v4 }
 0x110   : > { %1050 = vmatmul.msk.bf16.gmra.mxu1 %vm464_vm0, %v561_v6 }
 0x11d   : > { %v610_v7 = vpop.f32.mrf.mxu1 }
 0x11e   : > { %v611_v9 = vadd.f32 %v1128_v8, %v610_v7 }
 0x120   : > { %v650_v12 = vmax.f32 %v611_v9, 0.0 }
 0x125   : > { %v612_v10 = vpop.f32.mrf.mxu1 }
 0x126   : > { %v613_v11 = vadd.f32 %v1128_v8, %v612_v10 }
 0x128   : > { %v651_v14 = vmax.f32 %v613_v11, 0.0 }
 0x12a   : > { %v666_v15 = vpack.c.bf16 %v651_v14, %v650_v12 }
 0x12c   : > { %1059 = vmatmul.msk.bf16.vlgmr.msra.gmra.mxu2 %vm464_vm0, %v666_v15 }
 0x12d   : > { %v615_v16 = vpop.f32.mrf.mxu1 }
 0x12e   : > { %v616_v13 = vadd.f32 %v1128_v8, %v615_v16 }
 0x130   : > { %v652_v19 = vmax.f32 %v616_v13, 0.0 }
 0x135   : > { %v617_v17 = vpop.f32.mrf.mxu1 }
 0x136   : > { %v618_v18 = vadd.f32 %v1128_v8, %v617_v17 }
 0x138   : > { %v653_v20 = vmax.f32 %v618_v18, 0.0 }
 0x13a   : > { %v667_v21 = vpack.c.bf16 %v653_v20, %v652_v19 }
 0x13c   : > { %1060 = vmatmul.msk.bf16.gmra.mxu2 %vm464_vm0, %v667_v21 }
 0x13d   : > { %v620_v22 = vpop.f32.mrf.mxu1 }
 0x13e   : > { %v621_v23 = vadd.f32 %v1128_v8, %v620_v22 }
 0x140   : > { %v654_v26 = vmax.f32 %v621_v23, 0.0 }
 0x145   : > { %v622_v24 = vpop.f32.mrf.mxu1 }
 0x146   : > { %v623_v25 = vadd.f32 %v1128_v8, %v622_v24 }
 0x148   : > { %v655_v27 = vmax.f32 %v623_v25, 0.0 }
 0x14a   : > { %v668_v28 = vpack.c.bf16 %v655_v27, %v654_v26 }
 0x14c   : > { %1061 = vmatmul.msk.bf16.gmra.mxu2 %vm464_vm0, %v668_v28 }
 0x14d   : > { %v625_v29 = vpop.f32.mrf.mxu1 }
 0x14e   : > { %v626_v30 = vadd.f32 %v1128_v8, %v625_v29 }
 0x150   : > { %v656_v33 = vmax.f32 %v626_v30, 0.0 }
 0x155   : > { %v627_v31 = vpop.f32.mrf.mxu1 }
 0x156   : > { %v628_v32 = vadd.f32 %v1128_v8, %v627_v31 }
 0x158   : > { %v657_v34 = vmax.f32 %v628_v32, 0.0 }
 0x15a   : > { %v669_v35 = vpack.c.bf16 %v657_v34, %v656_v33 }
 0x15c   : > { %1062 = vmatmul.msk.bf16.gmra.mxu2 %vm464_vm0, %v669_v35 }
 0x15d   : > { %v630_v36 = vpop.f32.mrf.mxu1 }
 0x15e   : > { %v631_v37 = vadd.f32 %v1128_v8, %v630_v36 }
 0x160   : > { %v658_v40 = vmax.f32 %v631_v37, 0.0 }
 0x165   : > { %v632_v38 = vpop.f32.mrf.mxu1 }
 0x166   : > { %v633_v39 = vadd.f32 %v1128_v8, %v632_v38 }
 0x168   : > { %v659_v41 = vmax.f32 %v633_v39, 0.0 }
 0x16a   : > { %v670_v42 = vpack.c.bf16 %v659_v41, %v658_v40 }
 0x16c   : > { %1063 = vmatmul.msk.bf16.gmra.mxu2 %vm464_vm0, %v670_v42 }
 0x16d   : > { %v635_v43 = vpop.f32.mrf.mxu1 }
 0x16e   : > { %v636_v44 = vadd.f32 %v1128_v8, %v635_v43 }
 0x170   : > { %v660_v47 = vmax.f32 %v636_v44, 0.0 }
 0x175   : > { %v637_v45 = vpop.f32.mrf.mxu1 }
 0x176   : > { %v638_v46 = vadd.f32 %v1128_v8, %v637_v45 }
 0x178   : > { %v661_v48 = vmax.f32 %v638_v46, 0.0 }
 0x17a   : > { %v671_v49 = vpack.c.bf16 %v661_v48, %v660_v47 }
 0x17c   : > { %1064 = vmatmul.msk.bf16.gmra.mxu2 %vm464_vm0, %v671_v49 }
 0x17d   : > { %v640_v50 = vpop.f32.mrf.mxu1 }
 0x17e   : > { %v641_v51 = vadd.f32 %v1128_v8, %v640_v50 }
 0x180   : > { %v662_v54 = vmax.f32 %v641_v51, 0.0 }
 0x185   : > { %v642_v52 = vpop.f32.mrf.mxu1 }
 0x186   : > { %v643_v53 = vadd.f32 %v1128_v8, %v642_v52 }
 0x188   : > { %v663_v55 = vmax.f32 %v643_v53, 0.0 }
 0x18a   : > { %v672_v56 = vpack.c.bf16 %v663_v55, %v662_v54 }
 0x18c   : > { %1065 = vmatmul.msk.bf16.gmra.mxu2 %vm464_vm0, %v672_v56 }
 0x18d   : > { %v645_v57 = vpop.f32.mrf.mxu1 }
 0x18e   : > { %v646_v58 = vadd.f32 %v1128_v8, %v645_v57 }
 0x190   : > { %v664_v62 = vmax.f32 %v646_v58, 0.0 }
 0x195   : > { %v647_v59 = vpop.f32.mrf.mxu1 }
 0x196   : > { %v648_v61 = vadd.f32 %v1128_v8, %v647_v59  ;;  %v1130_v59 = vld [vmem:[%s1369_s7] ss:$0 sm:$0xff] }
 0x198   : > { %v665_v63 = vmax.f32 %v648_v61, 0.0 }
 0x19a   : > { %v673_v1 = vpack.c.bf16 %v665_v63, %v664_v62 }
 0x19c   : > { %1066 = vmatmul.msk.bf16.gmra.mxu2 %vm464_vm0, %v673_v1 }
 0x1af   : > { %v722_v2 = vpop.f32.mrf.mxu2 }
 0x1b0   : > { %v723_v4 = vadd.f32 %v1129_v3, %v722_v2 }
 0x1b2   : > { %v762_v7 = vmax.f32 %v723_v4, 0.0 }
 0x1b7   : > { %v724_v5 = vpop.f32.mrf.mxu2 }
 0x1b8   : > { %v725_v6 = vadd.f32 %v1129_v3, %v724_v5 }
 0x1ba   : > { %v763_v8 = vmax.f32 %v725_v6, 0.0 }
 0x1bc   : > { %v778_v9 = vpack.c.bf16 %v763_v8, %v762_v7 }
 0x1be   : > { %1075 = vmatmul.msk.bf16.vlgmr.msra.gmra.mxu3 %vm464_vm0, %v778_v9 }
 0x1bf   : > { %v727_v10 = vpop.f32.mrf.mxu2 }
 0x1c0   : > { %v728_v11 = vadd.f32 %v1129_v3, %v727_v10 }
 0x1c2   : > { %v764_v15 = vmax.f32 %v728_v11, 0.0 }
 0x1c7   : > { %v729_v12 = vpop.f32.mrf.mxu2 }
 0x1c8   : > { %v730_v14 = vadd.f32 %v1129_v3, %v729_v12 }
 0x1ca   : > { %v765_v16 = vmax.f32 %v730_v14, 0.0 }
 0x1cc   : > { %v779_v13 = vpack.c.bf16 %v765_v16, %v764_v15 }
 0x1ce   : > { %1076 = vmatmul.msk.bf16.gmra.mxu3 %vm464_vm0, %v779_v13 }
 0x1cf   : > { %v732_v17 = vpop.f32.mrf.mxu2 }
 0x1d0   : > { %v733_v18 = vadd.f32 %v1129_v3, %v732_v17 }
 0x1d2   : > { %v766_v21 = vmax.f32 %v733_v18, 0.0 }
 0x1d7   : > { %v734_v19 = vpop.f32.mrf.mxu2 }
 0x1d8   : > { %v735_v20 = vadd.f32 %v1129_v3, %v734_v19 }
 0x1da   : > { %v767_v22 = vmax.f32 %v735_v20, 0.0 }
 0x1dc   : > { %v780_v23 = vpack.c.bf16 %v767_v22, %v766_v21 }
 0x1de   : > { %1077 = vmatmul.msk.bf16.gmra.mxu3 %vm464_vm0, %v780_v23 }
 0x1df   : > { %v737_v24 = vpop.f32.mrf.mxu2 }
 0x1e0   : > { %v738_v25 = vadd.f32 %v1129_v3, %v737_v24 }
 0x1e2   : > { %v768_v28 = vmax.f32 %v738_v25, 0.0 }
 0x1e7   : > { %v739_v26 = vpop.f32.mrf.mxu2 }
 0x1e8   : > { %v740_v27 = vadd.f32 %v1129_v3, %v739_v26 }
 0x1ea   : > { %v769_v29 = vmax.f32 %v740_v27, 0.0 }
 0x1ec   : > { %v781_v30 = vpack.c.bf16 %v769_v29, %v768_v28 }
 0x1ee   : > { %1078 = vmatmul.msk.bf16.gmra.mxu3 %vm464_vm0, %v781_v30 }
 0x1ef   : > { %v742_v31 = vpop.f32.mrf.mxu2 }
 0x1f0   : > { %v743_v32 = vadd.f32 %v1129_v3, %v742_v31 }
 0x1f2   : > { %v770_v35 = vmax.f32 %v743_v32, 0.0 }
 0x1f7   : > { %v744_v33 = vpop.f32.mrf.mxu2 }
 0x1f8   : > { %v745_v34 = vadd.f32 %v1129_v3, %v744_v33 }
 0x1fa   : > { %v771_v36 = vmax.f32 %v745_v34, 0.0 }
 0x1fc   : > { %v782_v37 = vpack.c.bf16 %v771_v36, %v770_v35 }
 0x1fe   : > { %1079 = vmatmul.msk.bf16.gmra.mxu3 %vm464_vm0, %v782_v37 }
 0x1ff   : > { %v747_v38 = vpop.f32.mrf.mxu2 }
 0x200   : > { %v748_v39 = vadd.f32 %v1129_v3, %v747_v38 }
 0x202   : > { %v772_v42 = vmax.f32 %v748_v39, 0.0 }
 0x207   : > { %v749_v40 = vpop.f32.mrf.mxu2 }
 0x208   : > { %v750_v41 = vadd.f32 %v1129_v3, %v749_v40 }
 0x20a   : > { %v773_v43 = vmax.f32 %v750_v41, 0.0 }
 0x20c   : > { %v783_v44 = vpack.c.bf16 %v773_v43, %v772_v42 }
 0x20e   : > { %1080 = vmatmul.msk.bf16.gmra.mxu3 %vm464_vm0, %v783_v44 }
 0x20f   : > { %v752_v45 = vpop.f32.mrf.mxu2 }
 0x210   : > { %v753_v46 = vadd.f32 %v1129_v3, %v752_v45 }
 0x212   : > { %v774_v49 = vmax.f32 %v753_v46, 0.0 }
 0x217   : > { %v754_v47 = vpop.f32.mrf.mxu2 }
 0x218   : > { %v755_v48 = vadd.f32 %v1129_v3, %v754_v47 }
 0x21a   : > { %v775_v50 = vmax.f32 %v755_v48, 0.0 }
 0x21c   : > { %v784_v51 = vpack.c.bf16 %v775_v50, %v774_v49 }
 0x21e   : > { %1081 = vmatmul.msk.bf16.gmra.mxu3 %vm464_vm0, %v784_v51 }
 0x21f   : > { %v757_v52 = vpop.f32.mrf.mxu2 }
 0x220   : > { %v758_v53 = vadd.f32 %v1129_v3, %v757_v52 }
 0x222   : > { %v776_v56 = vmax.f32 %v758_v53, 0.0 }
 0x227   : > { %v759_v54 = vpop.f32.mrf.mxu2 }
 0x228   : > { %v760_v55 = vadd.f32 %v1129_v3, %v759_v54 }
 0x22a   : > { %v777_v57 = vmax.f32 %v760_v55, 0.0 }
 0x22c   : > { %v785_v58 = vpack.c.bf16 %v777_v57, %v776_v56 }
 0x22e   : > { %1082 = vmatmul.msk.bf16.gmra.mxu3 %vm464_vm0, %v785_v58 }
 0x241   : > { %v834_v60 = vpop.f32.mrf.mxu3 }
 0x242   : > { %v835_v61 = vadd.f32 %v1130_v59, %v834_v60 }
 0x244   : > { %875 = vst.msk [vmem:[%s1319_s27] sm:$0xff] %vm874_vm1, %v835_v61 }
 0x249   : > { %v836_v62 = vpop.f32.mrf.mxu3 }
 0x24a   : > { %v837_v63 = vadd.f32 %v1130_v59, %v836_v62 }
 0x24c   : > { %876 = vst.msk [vmem:[%s1319_s27 + $0x8] sm:$0xff] %vm874_vm1, %v837_v63 }
 0x251   : > { %v839_v0 = vpop.f32.mrf.mxu3 }
 0x252   : > { %v840_v1 = vadd.f32 %v1130_v59, %v839_v0 }
 0x254   : > { %877 = vst.msk [vmem:[%s1319_s27 + $0x10] sm:$0xff] %vm874_vm1, %v840_v1 }
 0x259   : > { %v841_v2 = vpop.f32.mrf.mxu3 }
 0x25a   : > { %v842_v3 = vadd.f32 %v1130_v59, %v841_v2 }
 0x25c   : > { %878 = vst.msk [vmem:[%s1319_s27 + $0x18] sm:$0xff] %vm874_vm1, %v842_v3 }
 0x261   : > { %v844_v4 = vpop.f32.mrf.mxu3 }
 0x262   : > { %v845_v5 = vadd.f32 %v1130_v59, %v844_v4 }
 0x264   : > { %879 = vst.msk [vmem:[%s1319_s27 + $0x20] sm:$0xff] %vm874_vm1, %v845_v5 }
 0x269   : > { %v846_v6 = vpop.f32.mrf.mxu3 }
 0x26a   : > { %v847_v7 = vadd.f32 %v1130_v59, %v846_v6 }
 0x26c   : > { %880 = vst.msk [vmem:[%s1319_s27 + $0x28] sm:$0xff] %vm874_vm1, %v847_v7 }
 0x271   : > { %v849_v8 = vpop.f32.mrf.mxu3 }
 0x272   : > { %v850_v9 = vadd.f32 %v1130_v59, %v849_v8 }
 0x274   : > { %881 = vst.msk [vmem:[%s1319_s27 + $0x30] sm:$0xff] %vm874_vm1, %v850_v9 }
 0x279   : > { %v851_v10 = vpop.f32.mrf.mxu3 }
 0x27a   : > { %v852_v11 = vadd.f32 %v1130_v59, %v851_v10 }
 0x27c   : > { %882 = vst.msk [vmem:[%s1319_s27 + $0x38] sm:$0xff] %vm874_vm1, %v852_v11 }
 0x281   : > { %v854_v12 = vpop.f32.mrf.mxu3 }
 0x282   : > { %v855_v14 = vadd.f32 %v1130_v59, %v854_v12 }
 0x284   : > { %883 = vst.msk [vmem:[%s1319_s27 + $0x40] sm:$0xff] %vm874_vm1, %v855_v14 }
 0x289   : > { %v856_v15 = vpop.f32.mrf.mxu3 }
 0x28a   : > { %v857_v16 = vadd.f32 %v1130_v59, %v856_v15 }
 0x28c   : > { %884 = vst.msk [vmem:[%s1319_s27 + $0x48] sm:$0xff] %vm874_vm1, %v857_v16 }
 0x291   : > { %v859_v13 = vpop.f32.mrf.mxu3 }
 0x292   : > { %v860_v17 = vadd.f32 %v1130_v59, %v859_v13 }
 0x294   : > { %885 = vst.msk [vmem:[%s1319_s27 + $0x50] sm:$0xff] %vm874_vm1, %v860_v17 }
 0x299   : > { %v861_v18 = vpop.f32.mrf.mxu3 }
 0x29a   : > { %v862_v19 = vadd.f32 %v1130_v59, %v861_v18 }
 0x29c   : > { %886 = vst.msk [vmem:[%s1319_s27 + $0x58] sm:$0xff] %vm874_vm1, %v862_v19 }
 0x2a1   : > { %v864_v20 = vpop.f32.mrf.mxu3 }
 0x2a2   : > { %v865_v21 = vadd.f32 %v1130_v59, %v864_v20 }
 0x2a4   : > { %887 = vst.msk [vmem:[%s1319_s27 + $0x60] sm:$0xff] %vm874_vm1, %v865_v21 }
 0x2a9   : > { %v866_v22 = vpop.f32.mrf.mxu3 }
 0x2aa   : > { %v867_v23 = vadd.f32 %v1130_v59, %v866_v22 }
 0x2ac   : > { %888 = vst.msk [vmem:[%s1319_s27 + $0x68] sm:$0xff] %vm874_vm1, %v867_v23 }
 0x2b1   : > { %v869_v24 = vpop.f32.mrf.mxu3 }
 0x2b2   : > { %v870_v25 = vadd.f32 %v1130_v59, %v869_v24 }
 0x2b4   : > { %889 = vst.msk [vmem:[%s1319_s27 + $0x70] sm:$0xff] %vm874_vm1, %v870_v25 }
 0x2b9   : > { %v871_v26 = vpop.f32.mrf.mxu3 }
 0x2ba   : > { %v872_v27 = vadd.f32 %v1130_v59, %v871_v26 }
 0x2bc   : > { %890 = vst.msk [vmem:[%s1319_s27 + $0x78] sm:$0xff] %vm874_vm1, %v872_v27 }
 0x2bd PF: > { %s19_s11 = sadd.s32 1, %s1153_s11   ;;  %s1372_s30 = smov %s1149_s10 }
 0x2be   : > { %p16_p5 = scmp.ge.s32.totalorder %s19_s11, 4   ;;  %s1373_s10 = smov %s1375_s12 }
 0x2c0   :  { %18 = sbr.rel (!%p16_p5) target bundleno = 2 (0x2), region = 86 }

// kernel: _lambda_.33
= control target key start
LH: loop header
LB: loop body
LE: loop exit
PB: predicated region body
PF: predicated region fallthrough
CT: control target
= control target key end

     0   :  { %12 = vsyncpa [#allocation3], 0  ;;  %s912_s0 = inlined_call_operand.vmem [shape: bf16[128,32], index: 0, kind: input, shape index: {}]   ;;  %s913_s1 = inlined_call_operand.vmem [shape: f32[1,32], index: 1, kind: input, shape index: {}, may-alias: {1,3}]   ;;  %s914_s2 = inlined_call_operand.vmem [shape: bf16[32,32], index: 2, kind: input, shape index: {}]   ;;  %s915_s3 = inlined_call_operand.vmem [shape: f32[1,32], index: 3, kind: input, shape index: {}, may-alias: {1,3}]   ;;  %s916_s4 = inlined_call_operand.vmem [shape: bf16[32,4], index: 4, kind: input, shape index: {}]   ;;  %s917_s5 = inlined_call_operand.vmem [shape: f32[1,4], index: 5, kind: input, shape index: {}]   ;;  %s918_s6 = inlined_call_operand.vmem [shape: bf16[2,1,128], index: 6, kind: input, shape index: {}]   ;;  %s919_s7 = inlined_call_operand.hbm [shape: f32[2,1,4], index: 7, kind: output, shape index: {}]  }
   0x1   :  { %14 = vsyncpa [#allocation3 + $0x1], 0  ;;  %s770_s24 = smov 0   ;;  %s772_s25 = smov 0  }
   0x2   :  { %s774_s26 = smov 0   ;;  %s776_s27 = smov 0  }
   0x3   :  { %s778_s28 = smov 0   ;;  %s780_s29 = smov 0  }
   0x4 LB: > { %s526_s30 = sadd.s32 4294967295, %s728_s29   ;;  %s527_s8 = sadd.s32 4294967294, %s728_s29   ;;  %s728_s29 = sphi %s780_s29, %s20_s29   ;;  %s724_s28 = sphi %s778_s28, %s926_s28   ;;  %s720_s27 = sphi %s776_s27, %s925_s27   ;;  %s716_s26 = sphi %s774_s26, %s924_s26   ;;  %s712_s25 = sphi %s772_s25, %s923_s25   ;;  %s708_s24 = sphi %s770_s24, %s922_s24  }
   0x5   : > { %s32_s9 = sadd.s32 1, %s724_s28  ;;  %s195_s10 = sadd.s32 1, %s716_s26 }
   0x6   : > { %p34_p0 = scmp.ge.s32.totalorder %s32_s9, 2  ;;  %p205_p1 = scmp.ne.s32.totalorder %s716_s26, %s712_s25 }
   0x7   : > { %p206_p2 = scmp.eq.s32.totalorder %s526_s30, 1  ;;  %p211_p3 = scmp.ne.s32.totalorder %s712_s25, %s708_s24 }
   0x8   : > { %s928_s9 = smov (%p34_p0, %s32_s9), 0  ;;  %p212_p5 = scmp.eq.s32.totalorder %s527_s8, 1 }
   0x9   : > { %p810_p4 = por %p206_p2, %p205_p1  ;;  %s190_s12 = ssub.s32 %s724_s28, %s928_s9 }
   0xa   : > { %p530_p6 = scmp.ge.s32.totalorder %s728_s29, 1  ;;  %p193_p7 = scmp.eq.s32.totalorder %s190_s12, 0 }
   0xb   : > { %p817_p8 = por %p212_p5, %p211_p3  ;;  %p257_p9 = scmp.lt.s32.totalorder %s728_s29, 3 }
   0xc   : > { %s823_s14 = scalar_select %p193_p7, %s716_s26, %s195_s10  }
   0xd   : > { %p258_p10 = pnand %p530_p6, %p257_p9 }
   0xe   : > { %p289_p11 = scmp.lt.s32.totalorder (!%p258_p10), %s720_s27, 1  ;;  %s458_s30 = scalar_lea.hbm (!%p258_p10), %s919_s7, %s720_s27 }
   0xf   : > { %261 = sbr.rel (%p258_p10) target bundleno = 456 (0x1c8), region = 48  ;;  %s670_s22 = scalar_lea.hbm (!%p258_p10), %s919_s7, 2 }
  0x14   : > { %v590_v0 = vld [vmem:[%s912_s0 + $0x38] sm:$0xff]  ;;  %v589_v1 = vld [vmem:[%s912_s0 + $0x30] sm:$0xff]  ;;  %v588_v2 = vld [vmem:[%s912_s0 + $0x28] sm:$0xff]  ;;  %s290_s16 = scalar_select %p289_p11, %s720_s27, 1  ;;  %vm399_vm0 = vcmask 261120   ;;  %vm446_vm1 = vcmask 24576  }
  0x15   : > { %372 = vmatpush.bf16.msra.mxu0 %v590_v0  ;;  %v587_v3 = vld [vmem:[%s912_s0 + $0x20] sm:$0xff]  ;;  %v586_v4 = vld [vmem:[%s912_s0 + $0x18] sm:$0xff]  ;;  %v585_v5 = vld [vmem:[%s912_s0 + $0x10] sm:$0xff] }
  0x16   : > { %v584_v6 = vld [vmem:[%s912_s0 + $0x8] sm:$0xff]  ;;  %v583_v7 = vld [vmem:[%s912_s0] sm:$0xff]  ;;  %s294_s21 = scalar_lea.vmem %s918_s6, %s290_s16  ;;  %s462_s16 = sshll.u32 %s458_s30, 4  ;;  %s463_s16 = int_to_ptr.hbm [resolvable:$true] %s462_s16 }
  0x17   : > { %v323_v8 = vld [vmem:[%s294_s21] sm:$0x1]  ;;  %v592_v9 = vld [vmem:[%s914_s2 + $0x8] sm:$0xff]  ;;  %s287_s21 = sand.u32 1, %s712_s25   ;;  %s664_s18 = sshra.s32 %s463_s16, 4  ;;  %s665_s18 = int_to_ptr.hbm [resolvable:$true] %s664_s18 }
  0x18   : > { %409 = vmatpush.bf16.msra.mxu1 %v592_v9  ;;  %v591_v10 = vld [vmem:[%s914_s2] sm:$0xff]  ;;  %v594_v17 = vld [vmem:[%s916_s4 + $0x8] sm:$0xff]  ;;  %s288_s12 = scalar_lea.vmem [#allocation2], %s287_s21  ;;  %s449_s17 = scalar_lea.sflag [#allocation3], %s287_s21 }
  0x19   : > { %373 = vmatpush.bf16.msra.mxu0 %v589_v1  ;;  %v320_v11 = vld [vmem:[%s913_s1] sm:$0x1]  ;;  %439 = vmatpush.bf16.msra.mxu2 %v594_v17  ;;  %s460_s15 = sshll.u32 %s288_s12, 4  ;;  %s666_s19 = scalar_lea.hbm %s665_s18, 1  ;;  %s461_s15 = int_to_ptr.vmem [resolvable:$true] %s460_s15 }
  0x1a   : > { %v593_v18 = vld [vmem:[%s916_s4] sm:$0xff]  ;;  %p667_p12 = scmp.ne.s32.totalorder %s665_s18, %s666_s19  ;;  %p671_p1 = scmp.lt.s32.totalorder %s665_s18, %s919_s7 }
  0x1b   : > { %v321_v19 = vld [vmem:[%s915_s3] sm:$0x1]  ;;  %p672_p2 = scmp.lt.s32.totalorder %s670_s22, %s666_s19 }
  0x1c   : > { %410 = vmatpush.bf16.msra.mxu1 %v591_v10  ;;  %v322_v25 = vld [vmem:[%s917_s5] sm:$0x1]  ;;  %p668_p13 = pnand %p667_p12, %p810_p4 }
  0x1d   : > { %374 = vmatpush.bf16.msra.mxu0 %v588_v2  ;;  %440 = vmatpush.bf16.msra.mxu2 %v593_v18  ;;  %p673_p3 = por %p672_p2, %p671_p1 }
  0x1e   : > { %p669_p0 = pneg %p668_p13 }
  0x20   : > { %p674_p5 = pnand %p673_p3, %p669_p0 }
  0x21   : > { %375 = vmatpush.bf16.msra.mxu0 %v587_v3 }
  0x25   : > { %376 = vmatpush.bf16.msra.mxu0 %v586_v4 }
  0x29   : > { %377 = vmatpush.bf16.msra.mxu0 %v585_v5 }
  0x2d   : > { %378 = vmatpush.bf16.msra.mxu0 %v584_v6 }
  0x31   : > { %379 = vmatpush.bf16.msra.mxu0 %v583_v7 }
  0x34   : > { %380 = vmatmul.bf16.vlgmr.msra.gmra.mxu0 %v323_v8 }
  0xb1   : > { %v381_v12 = vpop.f32.mrf.mxu0 }
  0xb2   : > { %v382_v13 = vadd.f32 %v381_v12, %v320_v11 }
  0xb4   : > { %v385_v14 = vmax.f32 %v382_v13, 0.0 }
  0xb6   : > { %v386_v15 = vpack.c.bf16 %v385_v14, %v385_v14 }
  0xb8   : > { %571 = vmatmul.msk.bf16.vlgmr.msra.gmra.mxu1 %vm399_vm0, %v386_v15 }
  0xb9   : > { %v383_v16 = vpop.f32.mrf.mxu0 }
 0x135   : > { %v412_v20 = vpop.f32.mrf.mxu1 }
 0x136   : > { %v413_v21 = vadd.f32 %v412_v20, %v321_v19 }
 0x138   : > { %v416_v22 = vmax.f32 %v413_v21, 0.0 }
 0x13a   : > { %v417_v23 = vpack.c.bf16 %v416_v22, %v416_v22 }
 0x13c   : > { %580 = vmatmul.msk.bf16.vlgmr.msra.gmra.mxu2 %vm399_vm0, %v417_v23 }
 0x13d   : > { %v414_v24 = vpop.f32.mrf.mxu1 }
 0x1bf   : > { %v442_v26 = vpop.f32.mrf.mxu2 }
 0x1c0   : > { %v443_v27 = vadd.f32 %v442_v26, %v322_v25 }
 0x1c2   : > { %447 = vst.msk [vmem:[%s288_s12] sm:$0x1] %vm446_vm1, %v443_v27 }
 0x1c3   : > { %677 = shalt.err (!%p674_p5)
}
 0x1c4   : > { %595 = dma.vmem_to_hbm [thread:$0]  (%p810_p4), %s461_s15, 16, %s463_s16, %s449_s17  }
 0x1c7   : > { %v444_v28 = vpop.f32.mrf.mxu2 }
 0x1c8 PF: > { %p601_p6 = scmp.ge.s32.totalorder %s728_s29, 2  ;;  %s474_s21 = sand.u32 1, %s708_s24  }
 0x1c9   : > { %s475_s8 = scalar_lea.sflag [#allocation3], %s474_s21 }
 0x1ca   : > { %p598_p7 = pnand %p601_p6, %p817_p8 }
 0x1cc   : > { %p599_p9 = pneg %p598_p7 }
 0x1ce   : > { %703 = dma.done.wait (%p599_p9), %s475_s8, 16  }
 0x1cf   : > { %705 = vsyncadd (%p599_p9), %s475_s8, 4294967280  ;;  %s20_s29 = sadd.s32 1, %s728_s29   ;;  %s922_s24 = smov %s712_s25 }
 0x1d0   : > { %p17_p10 = scmp.ge.s32.totalorder %s20_s29, 4   ;;  %s923_s25 = smov %s716_s26 }
 0x1d1   : > { %s924_s26 = smov %s823_s14  ;;  %s925_s27 = smov %s724_s28 }
 0x1d2   : > { %s926_s28 = smov %s928_s9  ;;  %19 = sbr.rel (!%p17_p10) target bundleno = 4 (0x4), region = 83 }
 0x1d7   :  { %480 = vsyncpa [#allocation3], 1 }
 0x1d8   :  { %482 = vsyncpa [#allocation3 + $0x1], 1 }

</bundles_post_ra>
